<compile_context>
chip_gen: v7x
topology: tpu7x:2x2x1
jax: 0.10.0
libtpu: 0.0.40
codegen_flags: <defaults>
</compile_context>

<pallas_src>
import functools

import jax
import jax.numpy as jnp
from jax.experimental import pallas as pl
from jax.experimental.pallas import tpu as pltpu

SELU_ALPHA = 1.6732632423543772
SELU_SCALE = 1.0507009873554805


# ----------------------------- Pallas kernel --------------------------------
def _fused_matmul_kernel(x_ref, w_ref, shift_ref, o_ref, *, act, n_phase):
    # x: (n_phase, tm, K) bf16 patches, w: (K, N) bf16 (BN scale pre-folded),
    # shift: (1, N) f32.  n_phase > 1 => phases are max-reduced (fused maxpool).
    w = w_ref[...]
    shift = shift_ref[...]
    out = None
    for p in range(n_phase):
        y = jnp.dot(x_ref[p], w, preferred_element_type=jnp.float32)
        y = y + shift
        if act == "relu":
            y = jnp.maximum(y, 0.0)
        elif act == "selu":
            neg = SELU_ALPHA * (jnp.exp(jnp.minimum(y, 0.0)) - 1.0)
            y = SELU_SCALE * jnp.where(y > 0.0, y, neg)
        elif act == "sigmoid":
            y = pl.reciprocal(1.0 + jnp.exp(-y), approx=True)
        out = y if out is None else jnp.maximum(out, y)
    o_ref[...] = out.astype(o_ref.dtype)


def _choose_tile(m):
    # Prefer >=2 grid steps (megacore / v7x) with tm a multiple of 16 (bf16).
    for t in (512, 256, 128, 64, 32, 16):
        if m % t == 0 and m // t >= 2:
            return t
    return m  # tiny layers: single full-extent block (exempt from (8,128) rule)


def fused_matmul(phased_patches, w_mat, shift, act, out_dtype):
    """out = act(patches @ w_mat + shift), max-reduced over the phase axis."""
    P, M, K = phased_patches.shape
    K2, N = w_mat.shape
    assert K == K2
    tm = _choose_tile(M)
    kernel = functools.partial(_fused_matmul_kernel, act=act, n_phase=P)
    return pl.pallas_call(
        kernel,
        out_shape=jax.ShapeDtypeStruct((M, N), out_dtype),
        grid=(M // tm,),
        in_specs=[
            pl.BlockSpec((P, tm, K), lambda i: (0, i, 0)),
            pl.BlockSpec((K, N), lambda i: (0, 0)),
            pl.BlockSpec((1, N), lambda i: (0, 0)),
        ],
        out_specs=pl.BlockSpec((tm, N), lambda i: (i, 0)),
        compiler_params=pltpu.CompilerParams(dimension_semantics=("parallel",)),
    )(phased_patches, w_mat, shift.reshape(1, N))


# ------------------------------- JAX glue ------------------------------------
def im2col(x, kh, kw, pad):
    """x: (B, H, W, C) NHWC -> stride-1 patches (B*Ho*Wo, kh*kw*C)."""
    if pad > 0:
        x = jnp.pad(x, ((0, 0), (pad, pad), (pad, pad), (0, 0)))
    B, Hp, Wp, C = x.shape
    Ho = Hp - kh + 1
    Wo = Wp - kw + 1
    cols = []
    for i in range(kh):
        for j in range(kw):
            cols.append(x[:, i:i + Ho, j:j + Wo, :])
    patches = jnp.stack(cols, axis=3)  # (B, Ho, Wo, kh*kw, C)
    return patches.reshape(B * Ho * Wo, kh * kw * C), (B, Ho, Wo)


def im2col_pool_phases(x, kh, kw, pad):
    """Patches for stride-1 conv followed by 2x2 maxpool, split into the 4
    pooling-window phases: returns (4, B*Hq*Wq, kh*kw*C)."""
    if pad > 0:
        x = jnp.pad(x, ((0, 0), (pad, pad), (pad, pad), (0, 0)))
    B, Hp, Wp, C = x.shape
    Ho = Hp - kh + 1
    Wo = Wp - kw + 1
    Hq, Wq = Ho // 2, Wo // 2
    phases = []
    for pi in range(2):
        for pj in range(2):
            cols = []
            for i in range(kh):
                for j in range(kw):
                    cols.append(x[:, pi + i:pi + i + 2 * Hq - 1:2,
                                  pj + j:pj + j + 2 * Wq - 1:2, :])
            p = jnp.stack(cols, axis=3)  # (B, Hq, Wq, kh*kw, C)
            phases.append(p.reshape(B * Hq * Wq, kh * kw * C))
    return jnp.stack(phases, axis=0), (B, Hq, Wq)


def conv_bn_relu_pool(x, w_mat, shift):
    """conv3x3(s1,p1,no bias) -> BN -> ReLU -> maxpool2, fused in one kernel."""
    phases, (B, Hq, Wq) = im2col_pool_phases(x, 3, 3, 1)
    out = fused_matmul(phases, w_mat, shift, "relu", jnp.bfloat16)
    return out.reshape(B, Hq, Wq, -1)


def conv_fused(x, w_mat, shift, kh, kw, pad, act, out_dtype):
    patches, (B, Ho, Wo) = im2col(x, kh, kw, pad)
    out = fused_matmul(patches[None], w_mat, shift, act, out_dtype)
    return out.reshape(B, Ho, Wo, -1)


def convT_fused(x, w_mat, shift, act, out_dtype):
    """ConvTranspose2d(4, s=2, p=1) as sub-pixel conv: 3x3 s1 p1 patch matmul
    with the 4 output phases packed on N, then pixel-shuffle (depth-to-space)."""
    patches, (B, H, W) = im2col(x, 3, 3, 1)
    out = fused_matmul(patches[None], w_mat, shift, act, out_dtype)  # (B*H*W, 4*Cout)
    cout = out.shape[-1] // 4
    out = out.reshape(B, H, W, 2, 2, cout)
    out = out.transpose(0, 1, 3, 2, 4, 5).reshape(B, 2 * H, 2 * W, cout)
    return out


# ------------------------- parameter construction ----------------------------
def conv_w_to_mat(w):
    # PyTorch Conv2d weight (Cout, Cin, kh, kw) -> (kh*kw*Cin, Cout)
    return jnp.transpose(w, (2, 3, 1, 0)).reshape(-1, w.shape[0])


def convT_phase_w_to_mat(w):
    """PyTorch ConvTranspose2d weight (Cin, Cout, 4, 4) -> sub-pixel 3x3 conv
    weight matrix of shape (9*Cin, 4*Cout).  K index = (a*3+b)*Cin + ci over the
    3x3 window of the pad-1 input; N index = (ry*2+rx)*Cout + co over the 2x2
    output phase and output channel."""
    cin, cout = w.shape[0], w.shape[1]
    W = jnp.zeros((3, 3, cin, 2, 2, cout), w.dtype)
    for ry in range(2):
        for rx in range(2):
            for a in (ry, ry + 1):
                for b in (rx, rx + 1):
                    W = W.at[a, b, :, ry, rx, :].set(
                        w[:, :, 3 - 2 * a + ry, 3 - 2 * b + rx])
    return W.reshape(9 * cin, 4 * cout)


def bn_fold(gamma, beta, mean, var, eps=1e-5):
    scale = gamma / jnp.sqrt(var + eps)
    shift = beta - mean * scale
    return scale, shift


def init_params(key, c_in, c_out, n_feature, n_base):
    keys = iter(jax.random.split(key, 128))

    def nrm(shape, s=0.1):
        return s * jax.random.normal(next(keys), shape, jnp.float32)

    def bn(c):
        gamma = 1.0 + nrm((c,))
        beta = nrm((c,))
        mean = nrm((c,))
        var = jax.random.uniform(next(keys), (c,), jnp.float32, 0.5, 1.5)
        return bn_fold(gamma, beta, mean, var)

    params = {}
    # Encoder: conv3x3 (no bias) + BN folded into weights
    enc = []
    chans = [c_in, n_base * 8, n_base * 4, n_base * 2, n_base]
    for cin, cout in zip(chans[:-1], chans[1:]):
        w = nrm((cout, cin, 3, 3))
        sc, sh = bn(cout)
        wm = conv_w_to_mat(w) * sc[None, :]
        enc.append((wm.astype(jnp.bfloat16), sh))
    params["enc"] = enc
    # Encoder bottleneck conv 4x4 (bias, no BN)
    w5 = nrm((n_feature, n_base, 4, 4))
    b5 = nrm((n_feature,))
    params["enc5"] = (conv_w_to_mat(w5).astype(jnp.bfloat16), b5)

    # Decoder: convT4 s2 p1 (no bias) + BN folded, SELU
    dec = []
    dchans = [n_feature, n_base, n_base * 2, n_base * 4, n_base * 8, n_base * 8]
    for cin, cout in zip(dchans[:-1], dchans[1:]):
        w = nrm((cin, cout, 4, 4))
        sc, sh = bn(cout)
        wm = convT_phase_w_to_mat(w) * jnp.tile(sc, 4)[None, :]
        dec.append((wm.astype(jnp.bfloat16), jnp.tile(sh, 4)))
    params["dec"] = dec
    # Final convT (bias) + Sigmoid
    w6 = nrm((n_base * 8, c_out, 4, 4))
    b6 = nrm((c_out,))
    params["dec6"] = (convT_phase_w_to_mat(w6).astype(jnp.bfloat16), jnp.tile(b6, 4))
    return params


# ------------------------------- forward -------------------------------------
def cae_forward(x_nchw, params):
    x = jnp.transpose(x_nchw, (0, 2, 3, 1)).astype(jnp.bfloat16)  # NCHW -> NHWC
    # Encoder
    for (wm, sh) in params["enc"]:
        x = conv_bn_relu_pool(x, wm, sh)
    wm, sh = params["enc5"]
    x = conv_fused(x, wm, sh, 4, 4, 0, "relu", jnp.bfloat16)
    # Decoder
    for (wm, sh) in params["dec"]:
        x = convT_fused(x, wm, sh, "selu", jnp.bfloat16)
    wm, sh = params["dec6"]
    x = convT_fused(x, wm, sh, "sigmoid", jnp.float32)
    return jnp.transpose(x, (0, 3, 1, 2))  # NHWC -> NCHW


# --------------------------------- main ---------------------------------------
if __name__ == "__main__":
    C_IN, C_OUT, N_FEATURE, N_BASE = 3, 3, 32, 4
    B, S = 2, 64  # spatial must be 64 so the 4x4 bottleneck conv is valid

    key = jax.random.PRNGKey(0)
    pkey, xkey = jax.random.split(key)
    params = init_params(pkey, C_IN, C_OUT, N_FEATURE, N_BASE)
    x = jax.random.normal(xkey, (B, C_IN, S, S), jnp.float32)

    fwd = jax.jit(lambda inp: cae_forward(inp, params))
    y = fwd(x)
    jax.block_until_ready(y)
    assert y.shape == (B, C_OUT, S, S), y.shape
    assert bool(jnp.all(jnp.isfinite(y)))
    print("KERNEL_OK")
</pallas_src>

<mosaic_0001>
module attributes {stable_mosaic.version = 11 : i64} {
  func.func @_fused_matmul_kernel(%arg0: i32, %arg1: memref<4x512x27xbf16, #tpu.memory_space<vmem>>, %arg2: memref<27x32xbf16, #tpu.memory_space<vmem>>, %arg3: memref<1x32xf32, #tpu.memory_space<vmem>>, %arg4: memref<512x32xbf16, #tpu.memory_space<vmem>>) attributes {dimension_semantics = [#tpu.dimension_semantics<parallel>], iteration_bounds = array<i64: 4>, scalar_prefetch = 0 : i64, scratch_operands = 0 : i64, tpu.core_type = #tpu.core_type<tc>, window_params = [{transform_indices = @transform_0, window_bounds = array<i64: 4, 512, 27>}, {pipeline_mode = #tpu.pipeline_mode<synchronous>, transform_indices = @transform_1, window_bounds = array<i64: 27, 32>}, {pipeline_mode = #tpu.pipeline_mode<synchronous>, transform_indices = @transform_2, window_bounds = array<i64: 1, 32>}, {transform_indices = @transform_3, window_bounds = array<i64: 512, 32>}]} {
    %c0 = arith.constant 0 : index
    %c0_0 = arith.constant 0 : index
    %0 = vector.load %arg2[%c0, %c0_0] : memref<27x32xbf16, #tpu.memory_space<vmem>>, vector<27x32xbf16>
    %c0_1 = arith.constant 0 : index
    %c0_2 = arith.constant 0 : index
    %1 = vector.load %arg3[%c0_1, %c0_2] : memref<1x32xf32, #tpu.memory_space<vmem>>, vector<1x32xf32>
    %c0_3 = arith.constant 0 : index
    %c0_4 = arith.constant 0 : index
    %c0_5 = arith.constant 0 : index
    %2 = vector.load %arg1[%c0_3, %c0_4, %c0_5] : memref<4x512x27xbf16, #tpu.memory_space<vmem>>, vector<1x512x27xbf16>
    %3 = vector.shape_cast %2 : vector<1x512x27xbf16> to vector<512x27xbf16>
    %cst = arith.constant dense<0.000000e+00> : vector<512x32xf32>
    %4 = tpu.matmul %3, %0, %cst {dimension_numbers = #tpu.dot_dimension_numbers<[1], [0], [0], [1], [0, 0, 1, 1], [], []>} : vector<512x27xbf16>, vector<27x32xbf16>, vector<512x32xf32> -> vector<512x32xf32>
    %5 = vector.broadcast %1 : vector<1x32xf32> to vector<512x32xf32>
    %6 = arith.addf %4, %5 : vector<512x32xf32>
    %cst_6 = arith.constant 0.000000e+00 : f32
    %7 = vector.broadcast %cst_6 : f32 to vector<512x32xf32>
    %8 = arith.maximumf %6, %7 : vector<512x32xf32>
    %c1 = arith.constant 1 : index
    %c0_7 = arith.constant 0 : index
    %c0_8 = arith.constant 0 : index
    %9 = vector.load %arg1[%c1, %c0_7, %c0_8] : memref<4x512x27xbf16, #tpu.memory_space<vmem>>, vector<1x512x27xbf16>
    %10 = vector.shape_cast %9 : vector<1x512x27xbf16> to vector<512x27xbf16>
    %cst_9 = arith.constant dense<0.000000e+00> : vector<512x32xf32>
    %11 = tpu.matmul %10, %0, %cst_9 {dimension_numbers = #tpu.dot_dimension_numbers<[1], [0], [0], [1], [0, 0, 1, 1], [], []>} : vector<512x27xbf16>, vector<27x32xbf16>, vector<512x32xf32> -> vector<512x32xf32>
    %12 = vector.broadcast %1 : vector<1x32xf32> to vector<512x32xf32>
    %13 = arith.addf %11, %12 : vector<512x32xf32>
    %cst_10 = arith.constant 0.000000e+00 : f32
    %14 = vector.broadcast %cst_10 : f32 to vector<512x32xf32>
    %15 = arith.maximumf %13, %14 : vector<512x32xf32>
    %16 = arith.maximumf %8, %15 : vector<512x32xf32>
    %c2 = arith.constant 2 : index
    %c0_11 = arith.constant 0 : index
    %c0_12 = arith.constant 0 : index
    %17 = vector.load %arg1[%c2, %c0_11, %c0_12] : memref<4x512x27xbf16, #tpu.memory_space<vmem>>, vector<1x512x27xbf16>
    %18 = vector.shape_cast %17 : vector<1x512x27xbf16> to vector<512x27xbf16>
    %cst_13 = arith.constant dense<0.000000e+00> : vector<512x32xf32>
    %19 = tpu.matmul %18, %0, %cst_13 {dimension_numbers = #tpu.dot_dimension_numbers<[1], [0], [0], [1], [0, 0, 1, 1], [], []>} : vector<512x27xbf16>, vector<27x32xbf16>, vector<512x32xf32> -> vector<512x32xf32>
    %20 = vector.broadcast %1 : vector<1x32xf32> to vector<512x32xf32>
    %21 = arith.addf %19, %20 : vector<512x32xf32>
    %cst_14 = arith.constant 0.000000e+00 : f32
    %22 = vector.broadcast %cst_14 : f32 to vector<512x32xf32>
    %23 = arith.maximumf %21, %22 : vector<512x32xf32>
    %24 = arith.maximumf %16, %23 : vector<512x32xf32>
    %c3 = arith.constant 3 : index
    %c0_15 = arith.constant 0 : index
    %c0_16 = arith.constant 0 : index
    %25 = vector.load %arg1[%c3, %c0_15, %c0_16] : memref<4x512x27xbf16, #tpu.memory_space<vmem>>, vector<1x512x27xbf16>
    %26 = vector.shape_cast %25 : vector<1x512x27xbf16> to vector<512x27xbf16>
    %cst_17 = arith.constant dense<0.000000e+00> : vector<512x32xf32>
    %27 = tpu.matmul %26, %0, %cst_17 {dimension_numbers = #tpu.dot_dimension_numbers<[1], [0], [0], [1], [0, 0, 1, 1], [], []>} : vector<512x27xbf16>, vector<27x32xbf16>, vector<512x32xf32> -> vector<512x32xf32>
    %28 = vector.broadcast %1 : vector<1x32xf32> to vector<512x32xf32>
    %29 = arith.addf %27, %28 : vector<512x32xf32>
    %cst_18 = arith.constant 0.000000e+00 : f32
    %30 = vector.broadcast %cst_18 : f32 to vector<512x32xf32>
    %31 = arith.maximumf %29, %30 : vector<512x32xf32>
    %32 = arith.maximumf %24, %31 : vector<512x32xf32>
    %33 = arith.truncf %32 : vector<512x32xf32> to vector<512x32xbf16>
    %c0_19 = arith.constant 0 : index
    %c0_20 = arith.constant 0 : index
    %34 = vector.load %arg4[%c0_19, %c0_20] : memref<512x32xbf16, #tpu.memory_space<vmem>>, vector<512x32xbf16>
    tpu.vector_store %arg4[%c0_19, %c0_20], %33 {strides = array<i32>} : memref<512x32xbf16, #tpu.memory_space<vmem>>, vector<512x32xbf16>,
    return
  }
  func.func @transform_0(%arg0: i32) -> (i32, i32, i32) {
    %c0_i32 = arith.constant 0 : i32
    %c0_i32_0 = arith.constant 0 : i32
    %c0_i32_1 = arith.constant 0 : i32
    return %c0_i32, %arg0, %c0_i32_0 : i32, i32, i32
  }
  func.func @transform_1(%arg0: i32) -> (i32, i32) {
    %c0_i32 = arith.constant 0 : i32
    %c0_i32_0 = arith.constant 0 : i32
    %c0_i32_1 = arith.constant 0 : i32
    return %c0_i32, %c0_i32_0 : i32, i32
  }
  func.func @transform_2(%arg0: i32) -> (i32, i32) {
    %c0_i32 = arith.constant 0 : i32
    %c0_i32_0 = arith.constant 0 : i32
    %c0_i32_1 = arith.constant 0 : i32
    return %c0_i32, %c0_i32_0 : i32, i32
  }
  func.func @transform_3(%arg0: i32) -> (i32, i32) {
    %c0_i32 = arith.constant 0 : i32
    %c0_i32_0 = arith.constant 0 : i32
    return %arg0, %c0_i32 : i32, i32
  }
}

module attributes {stable_mosaic.version = 11 : i64} {
  func.func @_fused_matmul_kernel(%arg0: i32, %arg1: memref<4x256x288xbf16, #tpu.memory_space<vmem>>, %arg2: memref<288x16xbf16, #tpu.memory_space<vmem>>, %arg3: memref<1x16xf32, #tpu.memory_space<vmem>>, %arg4: memref<256x16xbf16, #tpu.memory_space<vmem>>) attributes {dimension_semantics = [#tpu.dimension_semantics<parallel>], iteration_bounds = array<i64: 2>, scalar_prefetch = 0 : i64, scratch_operands = 0 : i64, tpu.core_type = #tpu.core_type<tc>, window_params = [{transform_indices = @transform_0, window_bounds = array<i64: 4, 256, 288>}, {pipeline_mode = #tpu.pipeline_mode<synchronous>, transform_indices = @transform_1, window_bounds = array<i64: 288, 16>}, {pipeline_mode = #tpu.pipeline_mode<synchronous>, transform_indices = @transform_2, window_bounds = array<i64: 1, 16>}, {transform_indices = @transform_3, window_bounds = array<i64: 256, 16>}]} {
    %c0 = arith.constant 0 : index
    %c0_0 = arith.constant 0 : index
    %0 = vector.load %arg2[%c0, %c0_0] : memref<288x16xbf16, #tpu.memory_space<vmem>>, vector<288x16xbf16>
    %c0_1 = arith.constant 0 : index
    %c0_2 = arith.constant 0 : index
    %1 = vector.load %arg3[%c0_1, %c0_2] : memref<1x16xf32, #tpu.memory_space<vmem>>, vector<1x16xf32>
    %c0_3 = arith.constant 0 : index
    %c0_4 = arith.constant 0 : index
    %c0_5 = arith.constant 0 : index
    %2 = vector.load %arg1[%c0_3, %c0_4, %c0_5] : memref<4x256x288xbf16, #tpu.memory_space<vmem>>, vector<1x256x288xbf16>
    %3 = vector.shape_cast %2 : vector<1x256x288xbf16> to vector<256x288xbf16>
    %cst = arith.constant dense<0.000000e+00> : vector<256x16xf32>
    %4 = tpu.matmul %3, %0, %cst {dimension_numbers = #tpu.dot_dimension_numbers<[1], [0], [0], [1], [0, 0, 1, 1], [], []>} : vector<256x288xbf16>, vector<288x16xbf16>, vector<256x16xf32> -> vector<256x16xf32>
    %5 = vector.broadcast %1 : vector<1x16xf32> to vector<256x16xf32>
    %6 = arith.addf %4, %5 : vector<256x16xf32>
    %cst_6 = arith.constant 0.000000e+00 : f32
    %7 = vector.broadcast %cst_6 : f32 to vector<256x16xf32>
    %8 = arith.maximumf %6, %7 : vector<256x16xf32>
    %c1 = arith.constant 1 : index
    %c0_7 = arith.constant 0 : index
    %c0_8 = arith.constant 0 : index
    %9 = vector.load %arg1[%c1, %c0_7, %c0_8] : memref<4x256x288xbf16, #tpu.memory_space<vmem>>, vector<1x256x288xbf16>
    %10 = vector.shape_cast %9 : vector<1x256x288xbf16> to vector<256x288xbf16>
    %cst_9 = arith.constant dense<0.000000e+00> : vector<256x16xf32>
    %11 = tpu.matmul %10, %0, %cst_9 {dimension_numbers = #tpu.dot_dimension_numbers<[1], [0], [0], [1], [0, 0, 1, 1], [], []>} : vector<256x288xbf16>, vector<288x16xbf16>, vector<256x16xf32> -> vector<256x16xf32>
    %12 = vector.broadcast %1 : vector<1x16xf32> to vector<256x16xf32>
    %13 = arith.addf %11, %12 : vector<256x16xf32>
    %cst_10 = arith.constant 0.000000e+00 : f32
    %14 = vector.broadcast %cst_10 : f32 to vector<256x16xf32>
    %15 = arith.maximumf %13, %14 : vector<256x16xf32>
    %16 = arith.maximumf %8, %15 : vector<256x16xf32>
    %c2 = arith.constant 2 : index
    %c0_11 = arith.constant 0 : index
    %c0_12 = arith.constant 0 : index
    %17 = vector.load %arg1[%c2, %c0_11, %c0_12] : memref<4x256x288xbf16, #tpu.memory_space<vmem>>, vector<1x256x288xbf16>
    %18 = vector.shape_cast %17 : vector<1x256x288xbf16> to vector<256x288xbf16>
    %cst_13 = arith.constant dense<0.000000e+00> : vector<256x16xf32>
    %19 = tpu.matmul %18, %0, %cst_13 {dimension_numbers = #tpu.dot_dimension_numbers<[1], [0], [0], [1], [0, 0, 1, 1], [], []>} : vector<256x288xbf16>, vector<288x16xbf16>, vector<256x16xf32> -> vector<256x16xf32>
    %20 = vector.broadcast %1 : vector<1x16xf32> to vector<256x16xf32>
    %21 = arith.addf %19, %20 : vector<256x16xf32>
    %cst_14 = arith.constant 0.000000e+00 : f32
    %22 = vector.broadcast %cst_14 : f32 to vector<256x16xf32>
    %23 = arith.maximumf %21, %22 : vector<256x16xf32>
    %24 = arith.maximumf %16, %23 : vector<256x16xf32>
    %c3 = arith.constant 3 : index
    %c0_15 = arith.constant 0 : index
    %c0_16 = arith.constant 0 : index
    %25 = vector.load %arg1[%c3, %c0_15, %c0_16] : memref<4x256x288xbf16, #tpu.memory_space<vmem>>, vector<1x256x288xbf16>
    %26 = vector.shape_cast %25 : vector<1x256x288xbf16> to vector<256x288xbf16>
    %cst_17 = arith.constant dense<0.000000e+00> : vector<256x16xf32>
    %27 = tpu.matmul %26, %0, %cst_17 {dimension_numbers = #tpu.dot_dimension_numbers<[1], [0], [0], [1], [0, 0, 1, 1], [], []>} : vector<256x288xbf16>, vector<288x16xbf16>, vector<256x16xf32> -> vector<256x16xf32>
    %28 = vector.broadcast %1 : vector<1x16xf32> to vector<256x16xf32>
    %29 = arith.addf %27, %28 : vector<256x16xf32>
    %cst_18 = arith.constant 0.000000e+00 : f32
    %30 = vector.broadcast %cst_18 : f32 to vector<256x16xf32>
    %31 = arith.maximumf %29, %30 : vector<256x16xf32>
    %32 = arith.maximumf %24, %31 : vector<256x16xf32>
    %33 = arith.truncf %32 : vector<256x16xf32> to vector<256x16xbf16>
    %c0_19 = arith.constant 0 : index
    %c0_20 = arith.constant 0 : index
    %34 = vector.load %arg4[%c0_19, %c0_20] : memref<256x16xbf16, #tpu.memory_space<vmem>>, vector<256x16xbf16>
    tpu.vector_store %arg4[%c0_19, %c0_20], %33 {strides = array<i32>} : memref<256x16xbf16, #tpu.memory_space<vmem>>, vector<256x16xbf16>,
    return
  }
  func.func @transform_0(%arg0: i32) -> (i32, i32, i32) {
    %c0_i32 = arith.constant 0 : i32
    %c0_i32_0 = arith.constant 0 : i32
    %c0_i32_1 = arith.constant 0 : i32
    return %c0_i32, %arg0, %c0_i32_0 : i32, i32, i32
  }
  func.func @transform_1(%arg0: i32) -> (i32, i32) {
    %c0_i32 = arith.constant 0 : i32
    %c0_i32_0 = arith.constant 0 : i32
    %c0_i32_1 = arith.constant 0 : i32
    return %c0_i32, %c0_i32_0 : i32, i32
  }
  func.func @transform_2(%arg0: i32) -> (i32, i32) {
    %c0_i32 = arith.constant 0 : i32
    %c0_i32_0 = arith.constant 0 : i32
    %c0_i32_1 = arith.constant 0 : i32
    return %c0_i32, %c0_i32_0 : i32, i32
  }
  func.func @transform_3(%arg0: i32) -> (i32, i32) {
    %c0_i32 = arith.constant 0 : i32
    %c0_i32_0 = arith.constant 0 : i32
    return %arg0, %c0_i32 : i32, i32
  }
}

module attributes {stable_mosaic.version = 11 : i64} {
  func.func @_fused_matmul_kernel(%arg0: i32, %arg1: memref<4x64x144xbf16, #tpu.memory_space<vmem>>, %arg2: memref<144x8xbf16, #tpu.memory_space<vmem>>, %arg3: memref<1x8xf32, #tpu.memory_space<vmem>>, %arg4: memref<64x8xbf16, #tpu.memory_space<vmem>>) attributes {dimension_semantics = [#tpu.dimension_semantics<parallel>], iteration_bounds = array<i64: 2>, scalar_prefetch = 0 : i64, scratch_operands = 0 : i64, tpu.core_type = #tpu.core_type<tc>, window_params = [{transform_indices = @transform_0, window_bounds = array<i64: 4, 64, 144>}, {pipeline_mode = #tpu.pipeline_mode<synchronous>, transform_indices = @transform_1, window_bounds = array<i64: 144, 8>}, {pipeline_mode = #tpu.pipeline_mode<synchronous>, transform_indices = @transform_2, window_bounds = array<i64: 1, 8>}, {transform_indices = @transform_3, window_bounds = array<i64: 64, 8>}]} {
    %c0 = arith.constant 0 : index
    %c0_0 = arith.constant 0 : index
    %0 = vector.load %arg2[%c0, %c0_0] : memref<144x8xbf16, #tpu.memory_space<vmem>>, vector<144x8xbf16>
    %c0_1 = arith.constant 0 : index
    %c0_2 = arith.constant 0 : index
    %1 = vector.load %arg3[%c0_1, %c0_2] : memref<1x8xf32, #tpu.memory_space<vmem>>, vector<1x8xf32>
    %c0_3 = arith.constant 0 : index
    %c0_4 = arith.constant 0 : index
    %c0_5 = arith.constant 0 : index
    %2 = vector.load %arg1[%c0_3, %c0_4, %c0_5] : memref<4x64x144xbf16, #tpu.memory_space<vmem>>, vector<1x64x144xbf16>
    %3 = vector.shape_cast %2 : vector<1x64x144xbf16> to vector<64x144xbf16>
    %cst = arith.constant dense<0.000000e+00> : vector<64x8xf32>
    %4 = tpu.matmul %3, %0, %cst {dimension_numbers = #tpu.dot_dimension_numbers<[1], [0], [0], [1], [0, 0, 1, 1], [], []>} : vector<64x144xbf16>, vector<144x8xbf16>, vector<64x8xf32> -> vector<64x8xf32>
    %5 = vector.broadcast %1 : vector<1x8xf32> to vector<64x8xf32>
    %6 = arith.addf %4, %5 : vector<64x8xf32>
    %cst_6 = arith.constant 0.000000e+00 : f32
    %7 = vector.broadcast %cst_6 : f32 to vector<64x8xf32>
    %8 = arith.maximumf %6, %7 : vector<64x8xf32>
    %c1 = arith.constant 1 : index
    %c0_7 = arith.constant 0 : index
    %c0_8 = arith.constant 0 : index
    %9 = vector.load %arg1[%c1, %c0_7, %c0_8] : memref<4x64x144xbf16, #tpu.memory_space<vmem>>, vector<1x64x144xbf16>
    %10 = vector.shape_cast %9 : vector<1x64x144xbf16> to vector<64x144xbf16>
    %cst_9 = arith.constant dense<0.000000e+00> : vector<64x8xf32>
    %11 = tpu.matmul %10, %0, %cst_9 {dimension_numbers = #tpu.dot_dimension_numbers<[1], [0], [0], [1], [0, 0, 1, 1], [], []>} : vector<64x144xbf16>, vector<144x8xbf16>, vector<64x8xf32> -> vector<64x8xf32>
    %12 = vector.broadcast %1 : vector<1x8xf32> to vector<64x8xf32>
    %13 = arith.addf %11, %12 : vector<64x8xf32>
    %cst_10 = arith.constant 0.000000e+00 : f32
    %14 = vector.broadcast %cst_10 : f32 to vector<64x8xf32>
    %15 = arith.maximumf %13, %14 : vector<64x8xf32>
    %16 = arith.maximumf %8, %15 : vector<64x8xf32>
    %c2 = arith.constant 2 : index
    %c0_11 = arith.constant 0 : index
    %c0_12 = arith.constant 0 : index
    %17 = vector.load %arg1[%c2, %c0_11, %c0_12] : memref<4x64x144xbf16, #tpu.memory_space<vmem>>, vector<1x64x144xbf16>
    %18 = vector.shape_cast %17 : vector<1x64x144xbf16> to vector<64x144xbf16>
    %cst_13 = arith.constant dense<0.000000e+00> : vector<64x8xf32>
    %19 = tpu.matmul %18, %0, %cst_13 {dimension_numbers = #tpu.dot_dimension_numbers<[1], [0], [0], [1], [0, 0, 1, 1], [], []>} : vector<64x144xbf16>, vector<144x8xbf16>, vector<64x8xf32> -> vector<64x8xf32>
    %20 = vector.broadcast %1 : vector<1x8xf32> to vector<64x8xf32>
    %21 = arith.addf %19, %20 : vector<64x8xf32>
    %cst_14 = arith.constant 0.000000e+00 : f32
    %22 = vector.broadcast %cst_14 : f32 to vector<64x8xf32>
    %23 = arith.maximumf %21, %22 : vector<64x8xf32>
    %24 = arith.maximumf %16, %23 : vector<64x8xf32>
    %c3 = arith.constant 3 : index
    %c0_15 = arith.constant 0 : index
    %c0_16 = arith.constant 0 : index
    %25 = vector.load %arg1[%c3, %c0_15, %c0_16] : memref<4x64x144xbf16, #tpu.memory_space<vmem>>, vector<1x64x144xbf16>
    %26 = vector.shape_cast %25 : vector<1x64x144xbf16> to vector<64x144xbf16>
    %cst_17 = arith.constant dense<0.000000e+00> : vector<64x8xf32>
    %27 = tpu.matmul %26, %0, %cst_17 {dimension_numbers = #tpu.dot_dimension_numbers<[1], [0], [0], [1], [0, 0, 1, 1], [], []>} : vector<64x144xbf16>, vector<144x8xbf16>, vector<64x8xf32> -> vector<64x8xf32>
    %28 = vector.broadcast %1 : vector<1x8xf32> to vector<64x8xf32>
    %29 = arith.addf %27, %28 : vector<64x8xf32>
    %cst_18 = arith.constant 0.000000e+00 : f32
    %30 = vector.broadcast %cst_18 : f32 to vector<64x8xf32>
    %31 = arith.maximumf %29, %30 : vector<64x8xf32>
    %32 = arith.maximumf %24, %31 : vector<64x8xf32>
    %33 = arith.truncf %32 : vector<64x8xf32> to vector<64x8xbf16>
    %c0_19 = arith.constant 0 : index
    %c0_20 = arith.constant 0 : index
    %34 = vector.load %arg4[%c0_19, %c0_20] : memref<64x8xbf16, #tpu.memory_space<vmem>>, vector<64x8xbf16>
    tpu.vector_store %arg4[%c0_19, %c0_20], %33 {strides = array<i32>} : memref<64x8xbf16, #tpu.memory_space<vmem>>, vector<64x8xbf16>,
    return
  }
  func.func @transform_0(%arg0: i32) -> (i32, i32, i32) {
    %c0_i32 = arith.constant 0 : i32
    %c0_i32_0 = arith.constant 0 : i32
    %c0_i32_1 = arith.constant 0 : i32
    return %c0_i32, %arg0, %c0_i32_0 : i32, i32, i32
  }
  func.func @transform_1(%arg0: i32) -> (i32, i32) {
    %c0_i32 = arith.constant 0 : i32
    %c0_i32_0 = arith.constant 0 : i32
    %c0_i32_1 = arith.constant 0 : i32
    return %c0_i32, %c0_i32_0 : i32, i32
  }
  func.func @transform_2(%arg0: i32) -> (i32, i32) {
    %c0_i32 = arith.constant 0 : i32
    %c0_i32_0 = arith.constant 0 : i32
    %c0_i32_1 = arith.constant 0 : i32
    return %c0_i32, %c0_i32_0 : i32, i32
  }
  func.func @transform_3(%arg0: i32) -> (i32, i32) {
    %c0_i32 = arith.constant 0 : i32
    %c0_i32_0 = arith.constant 0 : i32
    return %arg0, %c0_i32 : i32, i32
  }
}

module attributes {stable_mosaic.version = 11 : i64} {
  func.func @_fused_matmul_kernel(%arg0: i32, %arg1: memref<4x16x72xbf16, #tpu.memory_space<vmem>>, %arg2: memref<72x4xbf16, #tpu.memory_space<vmem>>, %arg3: memref<1x4xf32, #tpu.memory_space<vmem>>, %arg4: memref<16x4xbf16, #tpu.memory_space<vmem>>) attributes {dimension_semantics = [#tpu.dimension_semantics<parallel>], iteration_bounds = array<i64: 2>, scalar_prefetch = 0 : i64, scratch_operands = 0 : i64, tpu.core_type = #tpu.core_type<tc>, window_params = [{transform_indices = @transform_0, window_bounds = array<i64: 4, 16, 72>}, {pipeline_mode = #tpu.pipeline_mode<synchronous>, transform_indices = @transform_1, window_bounds = array<i64: 72, 4>}, {pipeline_mode = #tpu.pipeline_mode<synchronous>, transform_indices = @transform_2, window_bounds = array<i64: 1, 4>}, {transform_indices = @transform_3, window_bounds = array<i64: 16, 4>}]} {
    %c0 = arith.constant 0 : index
    %c0_0 = arith.constant 0 : index
    %0 = vector.load %arg2[%c0, %c0_0] : memref<72x4xbf16, #tpu.memory_space<vmem>>, vector<72x4xbf16>
    %c0_1 = arith.constant 0 : index
    %c0_2 = arith.constant 0 : index
    %1 = vector.load %arg3[%c0_1, %c0_2] : memref<1x4xf32, #tpu.memory_space<vmem>>, vector<1x4xf32>
    %c0_3 = arith.constant 0 : index
    %c0_4 = arith.constant 0 : index
    %c0_5 = arith.constant 0 : index
    %2 = vector.load %arg1[%c0_3, %c0_4, %c0_5] : memref<4x16x72xbf16, #tpu.memory_space<vmem>>, vector<1x16x72xbf16>
    %3 = vector.shape_cast %2 : vector<1x16x72xbf16> to vector<16x72xbf16>
    %cst = arith.constant dense<0.000000e+00> : vector<16x4xf32>
    %4 = tpu.matmul %3, %0, %cst {dimension_numbers = #tpu.dot_dimension_numbers<[1], [0], [0], [1], [0, 0, 1, 1], [], []>} : vector<16x72xbf16>, vector<72x4xbf16>, vector<16x4xf32> -> vector<16x4xf32>
    %5 = vector.broadcast %1 : vector<1x4xf32> to vector<16x4xf32>
    %6 = arith.addf %4, %5 : vector<16x4xf32>
    %cst_6 = arith.constant 0.000000e+00 : f32
    %7 = vector.broadcast %cst_6 : f32 to vector<16x4xf32>
    %8 = arith.maximumf %6, %7 : vector<16x4xf32>
    %c1 = arith.constant 1 : index
    %c0_7 = arith.constant 0 : index
    %c0_8 = arith.constant 0 : index
    %9 = vector.load %arg1[%c1, %c0_7, %c0_8] : memref<4x16x72xbf16, #tpu.memory_space<vmem>>, vector<1x16x72xbf16>
    %10 = vector.shape_cast %9 : vector<1x16x72xbf16> to vector<16x72xbf16>
    %cst_9 = arith.constant dense<0.000000e+00> : vector<16x4xf32>
    %11 = tpu.matmul %10, %0, %cst_9 {dimension_numbers = #tpu.dot_dimension_numbers<[1], [0], [0], [1], [0, 0, 1, 1], [], []>} : vector<16x72xbf16>, vector<72x4xbf16>, vector<16x4xf32> -> vector<16x4xf32>
    %12 = vector.broadcast %1 : vector<1x4xf32> to vector<16x4xf32>
    %13 = arith.addf %11, %12 : vector<16x4xf32>
    %cst_10 = arith.constant 0.000000e+00 : f32
    %14 = vector.broadcast %cst_10 : f32 to vector<16x4xf32>
    %15 = arith.maximumf %13, %14 : vector<16x4xf32>
    %16 = arith.maximumf %8, %15 : vector<16x4xf32>
    %c2 = arith.constant 2 : index
    %c0_11 = arith.constant 0 : index
    %c0_12 = arith.constant 0 : index
    %17 = vector.load %arg1[%c2, %c0_11, %c0_12] : memref<4x16x72xbf16, #tpu.memory_space<vmem>>, vector<1x16x72xbf16>
    %18 = vector.shape_cast %17 : vector<1x16x72xbf16> to vector<16x72xbf16>
    %cst_13 = arith.constant dense<0.000000e+00> : vector<16x4xf32>
    %19 = tpu.matmul %18, %0, %cst_13 {dimension_numbers = #tpu.dot_dimension_numbers<[1], [0], [0], [1], [0, 0, 1, 1], [], []>} : vector<16x72xbf16>, vector<72x4xbf16>, vector<16x4xf32> -> vector<16x4xf32>
    %20 = vector.broadcast %1 : vector<1x4xf32> to vector<16x4xf32>
    %21 = arith.addf %19, %20 : vector<16x4xf32>
    %cst_14 = arith.constant 0.000000e+00 : f32
    %22 = vector.broadcast %cst_14 : f32 to vector<16x4xf32>
    %23 = arith.maximumf %21, %22 : vector<16x4xf32>
    %24 = arith.maximumf %16, %23 : vector<16x4xf32>
    %c3 = arith.constant 3 : index
    %c0_15 = arith.constant 0 : index
    %c0_16 = arith.constant 0 : index
    %25 = vector.load %arg1[%c3, %c0_15, %c0_16] : memref<4x16x72xbf16, #tpu.memory_space<vmem>>, vector<1x16x72xbf16>
    %26 = vector.shape_cast %25 : vector<1x16x72xbf16> to vector<16x72xbf16>
    %cst_17 = arith.constant dense<0.000000e+00> : vector<16x4xf32>
    %27 = tpu.matmul %26, %0, %cst_17 {dimension_numbers = #tpu.dot_dimension_numbers<[1], [0], [0], [1], [0, 0, 1, 1], [], []>} : vector<16x72xbf16>, vector<72x4xbf16>, vector<16x4xf32> -> vector<16x4xf32>
    %28 = vector.broadcast %1 : vector<1x4xf32> to vector<16x4xf32>
    %29 = arith.addf %27, %28 : vector<16x4xf32>
    %cst_18 = arith.constant 0.000000e+00 : f32
    %30 = vector.broadcast %cst_18 : f32 to vector<16x4xf32>
    %31 = arith.maximumf %29, %30 : vector<16x4xf32>
    %32 = arith.maximumf %24, %31 : vector<16x4xf32>
    %33 = arith.truncf %32 : vector<16x4xf32> to vector<16x4xbf16>
    %c0_19 = arith.constant 0 : index
    %c0_20 = arith.constant 0 : index
    %34 = vector.load %arg4[%c0_19, %c0_20] : memref<16x4xbf16, #tpu.memory_space<vmem>>, vector<16x4xbf16>
    tpu.vector_store %arg4[%c0_19, %c0_20], %33 {strides = array<i32>} : memref<16x4xbf16, #tpu.memory_space<vmem>>, vector<16x4xbf16>,
    return
  }
  func.func @transform_0(%arg0: i32) -> (i32, i32, i32) {
    %c0_i32 = arith.constant 0 : i32
    %c0_i32_0 = arith.constant 0 : i32
    %c0_i32_1 = arith.constant 0 : i32
    return %c0_i32, %arg0, %c0_i32_0 : i32, i32, i32
  }
  func.func @transform_1(%arg0: i32) -> (i32, i32) {
    %c0_i32 = arith.constant 0 : i32
    %c0_i32_0 = arith.constant 0 : i32
    %c0_i32_1 = arith.constant 0 : i32
    return %c0_i32, %c0_i32_0 : i32, i32
  }
  func.func @transform_2(%arg0: i32) -> (i32, i32) {
    %c0_i32 = arith.constant 0 : i32
    %c0_i32_0 = arith.constant 0 : i32
    %c0_i32_1 = arith.constant 0 : i32
    return %c0_i32, %c0_i32_0 : i32, i32
  }
  func.func @transform_3(%arg0: i32) -> (i32, i32) {
    %c0_i32 = arith.constant 0 : i32
    %c0_i32_0 = arith.constant 0 : i32
    return %arg0, %c0_i32 : i32, i32
  }
}

module attributes {stable_mosaic.version = 11 : i64} {
  func.func @_fused_matmul_kernel(%arg0: i32, %arg1: memref<1x2x64xbf16, #tpu.memory_space<vmem>>, %arg2: memref<64x32xbf16, #tpu.memory_space<vmem>>, %arg3: memref<1x32xf32, #tpu.memory_space<vmem>>, %arg4: memref<2x32xbf16, #tpu.memory_space<vmem>>) attributes {dimension_semantics = [#tpu.dimension_semantics<parallel>], iteration_bounds = array<i64: 1>, scalar_prefetch = 0 : i64, scratch_operands = 0 : i64, tpu.core_type = #tpu.core_type<tc>, window_params = [{transform_indices = @transform_0, window_bounds = array<i64: 1, 2, 64>}, {pipeline_mode = #tpu.pipeline_mode<synchronous>, transform_indices = @transform_1, window_bounds = array<i64: 64, 32>}, {pipeline_mode = #tpu.pipeline_mode<synchronous>, transform_indices = @transform_2, window_bounds = array<i64: 1, 32>}, {transform_indices = @transform_3, window_bounds = array<i64: 2, 32>}]} {
    %c0 = arith.constant 0 : index
    %c0_0 = arith.constant 0 : index
    %0 = vector.load %arg2[%c0, %c0_0] : memref<64x32xbf16, #tpu.memory_space<vmem>>, vector<64x32xbf16>
    %c0_1 = arith.constant 0 : index
    %c0_2 = arith.constant 0 : index
    %1 = vector.load %arg3[%c0_1, %c0_2] : memref<1x32xf32, #tpu.memory_space<vmem>>, vector<1x32xf32>
    %c0_3 = arith.constant 0 : index
    %c0_4 = arith.constant 0 : index
    %c0_5 = arith.constant 0 : index
    %2 = vector.load %arg1[%c0_3, %c0_4, %c0_5] : memref<1x2x64xbf16, #tpu.memory_space<vmem>>, vector<1x2x64xbf16>
    %3 = vector.shape_cast %2 : vector<1x2x64xbf16> to vector<2x64xbf16>
    %cst = arith.constant dense<0.000000e+00> : vector<2x32xf32>
    %4 = tpu.matmul %3, %0, %cst {dimension_numbers = #tpu.dot_dimension_numbers<[1], [0], [0], [1], [0, 0, 1, 1], [], []>} : vector<2x64xbf16>, vector<64x32xbf16>, vector<2x32xf32> -> vector<2x32xf32>
    %5 = vector.broadcast %1 : vector<1x32xf32> to vector<2x32xf32>
    %6 = arith.addf %4, %5 : vector<2x32xf32>
    %cst_6 = arith.constant 0.000000e+00 : f32
    %7 = vector.broadcast %cst_6 : f32 to vector<2x32xf32>
    %8 = arith.maximumf %6, %7 : vector<2x32xf32>
    %9 = arith.truncf %8 : vector<2x32xf32> to vector<2x32xbf16>
    %c0_7 = arith.constant 0 : index
    %c0_8 = arith.constant 0 : index
    %10 = vector.load %arg4[%c0_7, %c0_8] : memref<2x32xbf16, #tpu.memory_space<vmem>>, vector<2x32xbf16>
    tpu.vector_store %arg4[%c0_7, %c0_8], %9 {strides = array<i32>} : memref<2x32xbf16, #tpu.memory_space<vmem>>, vector<2x32xbf16>,
    return
  }
  func.func @transform_0(%arg0: i32) -> (i32, i32, i32) {
    %c0_i32 = arith.constant 0 : i32
    %c0_i32_0 = arith.constant 0 : i32
    %c0_i32_1 = arith.constant 0 : i32
    return %c0_i32, %arg0, %c0_i32_0 : i32, i32, i32
  }
  func.func @transform_1(%arg0: i32) -> (i32, i32) {
    %c0_i32 = arith.constant 0 : i32
    %c0_i32_0 = arith.constant 0 : i32
    %c0_i32_1 = arith.constant 0 : i32
    return %c0_i32, %c0_i32_0 : i32, i32
  }
  func.func @transform_2(%arg0: i32) -> (i32, i32) {
    %c0_i32 = arith.constant 0 : i32
    %c0_i32_0 = arith.constant 0 : i32
    %c0_i32_1 = arith.constant 0 : i32
    return %c0_i32, %c0_i32_0 : i32, i32
  }
  func.func @transform_3(%arg0: i32) -> (i32, i32) {
    %c0_i32 = arith.constant 0 : i32
    %c0_i32_0 = arith.constant 0 : i32
    return %arg0, %c0_i32 : i32, i32
  }
}

module attributes {stable_mosaic.version = 11 : i64} {
  func.func @_fused_matmul_kernel(%arg0: i32, %arg1: memref<1x2x288xbf16, #tpu.memory_space<vmem>>, %arg2: memref<288x16xbf16, #tpu.memory_space<vmem>>, %arg3: memref<1x16xf32, #tpu.memory_space<vmem>>, %arg4: memref<2x16xbf16, #tpu.memory_space<vmem>>) attributes {dimension_semantics = [#tpu.dimension_semantics<parallel>], iteration_bounds = array<i64: 1>, scalar_prefetch = 0 : i64, scratch_operands = 0 : i64, tpu.core_type = #tpu.core_type<tc>, window_params = [{transform_indices = @transform_0, window_bounds = array<i64: 1, 2, 288>}, {pipeline_mode = #tpu.pipeline_mode<synchronous>, transform_indices = @transform_1, window_bounds = array<i64: 288, 16>}, {pipeline_mode = #tpu.pipeline_mode<synchronous>, transform_indices = @transform_2, window_bounds = array<i64: 1, 16>}, {transform_indices = @transform_3, window_bounds = array<i64: 2, 16>}]} {
    %c0 = arith.constant 0 : index
    %c0_0 = arith.constant 0 : index
    %0 = vector.load %arg2[%c0, %c0_0] : memref<288x16xbf16, #tpu.memory_space<vmem>>, vector<288x16xbf16>
    %c0_1 = arith.constant 0 : index
    %c0_2 = arith.constant 0 : index
    %1 = vector.load %arg3[%c0_1, %c0_2] : memref<1x16xf32, #tpu.memory_space<vmem>>, vector<1x16xf32>
    %c0_3 = arith.constant 0 : index
    %c0_4 = arith.constant 0 : index
    %c0_5 = arith.constant 0 : index
    %2 = vector.load %arg1[%c0_3, %c0_4, %c0_5] : memref<1x2x288xbf16, #tpu.memory_space<vmem>>, vector<1x2x288xbf16>
    %3 = vector.shape_cast %2 : vector<1x2x288xbf16> to vector<2x288xbf16>
    %cst = arith.constant dense<0.000000e+00> : vector<2x16xf32>
    %4 = tpu.matmul %3, %0, %cst {dimension_numbers = #tpu.dot_dimension_numbers<[1], [0], [0], [1], [0, 0, 1, 1], [], []>} : vector<2x288xbf16>, vector<288x16xbf16>, vector<2x16xf32> -> vector<2x16xf32>
    %5 = vector.broadcast %1 : vector<1x16xf32> to vector<2x16xf32>
    %6 = arith.addf %4, %5 : vector<2x16xf32>
    %cst_6 = arith.constant 0.000000e+00 : f32
    %7 = vector.broadcast %cst_6 : f32 to vector<2x16xf32>
    %8 = arith.minimumf %6, %7 : vector<2x16xf32>
    %9 = math.exp %8 : vector<2x16xf32>
    %cst_7 = arith.constant 1.000000e+00 : f32
    %10 = vector.broadcast %cst_7 : f32 to vector<2x16xf32>
    %11 = arith.subf %9, %10 : vector<2x16xf32>
    %cst_8 = arith.constant 1.67326319 : f32
    %12 = vector.broadcast %cst_8 : f32 to vector<2x16xf32>
    %13 = arith.mulf %12, %11 : vector<2x16xf32>
    %cst_9 = arith.constant 0.000000e+00 : f32
    %14 = vector.broadcast %cst_9 : f32 to vector<2x16xf32>
    %15 = arith.cmpf ogt, %6, %14 : vector<2x16xf32>
    %16 = arith.select %15, %6, %13 : vector<2x16xi1>, vector<2x16xf32>
    %cst_10 = arith.constant 1.05070102 : f32
    %17 = vector.broadcast %cst_10 : f32 to vector<2x16xf32>
    %18 = arith.mulf %17, %16 : vector<2x16xf32>
    %19 = arith.truncf %18 : vector<2x16xf32> to vector<2x16xbf16>
    %c0_11 = arith.constant 0 : index
    %c0_12 = arith.constant 0 : index
    %20 = vector.load %arg4[%c0_11, %c0_12] : memref<2x16xbf16, #tpu.memory_space<vmem>>, vector<2x16xbf16>
    tpu.vector_store %arg4[%c0_11, %c0_12], %19 {strides = array<i32>} : memref<2x16xbf16, #tpu.memory_space<vmem>>, vector<2x16xbf16>,
    return
  }
  func.func @transform_0(%arg0: i32) -> (i32, i32, i32) {
    %c0_i32 = arith.constant 0 : i32
    %c0_i32_0 = arith.constant 0 : i32
    %c0_i32_1 = arith.constant 0 : i32
    return %c0_i32, %arg0, %c0_i32_0 : i32, i32, i32
  }
  func.func @transform_1(%arg0: i32) -> (i32, i32) {
    %c0_i32 = arith.constant 0 : i32
    %c0_i32_0 = arith.constant 0 : i32
    %c0_i32_1 = arith.constant 0 : i32
    return %c0_i32, %c0_i32_0 : i32, i32
  }
  func.func @transform_2(%arg0: i32) -> (i32, i32) {
    %c0_i32 = arith.constant 0 : i32
    %c0_i32_0 = arith.constant 0 : i32
    %c0_i32_1 = arith.constant 0 : i32
    return %c0_i32, %c0_i32_0 : i32, i32
  }
  func.func @transform_3(%arg0: i32) -> (i32, i32) {
    %c0_i32 = arith.constant 0 : i32
    %c0_i32_0 = arith.constant 0 : i32
    return %arg0, %c0_i32 : i32, i32
  }
}

module attributes {stable_mosaic.version = 11 : i64} {
  func.func @_fused_matmul_kernel(%arg0: i32, %arg1: memref<1x8x36xbf16, #tpu.memory_space<vmem>>, %arg2: memref<36x32xbf16, #tpu.memory_space<vmem>>, %arg3: memref<1x32xf32, #tpu.memory_space<vmem>>, %arg4: memref<8x32xbf16, #tpu.memory_space<vmem>>) attributes {dimension_semantics = [#tpu.dimension_semantics<parallel>], iteration_bounds = array<i64: 1>, scalar_prefetch = 0 : i64, scratch_operands = 0 : i64, tpu.core_type = #tpu.core_type<tc>, window_params = [{transform_indices = @transform_0, window_bounds = array<i64: 1, 8, 36>}, {pipeline_mode = #tpu.pipeline_mode<synchronous>, transform_indices = @transform_1, window_bounds = array<i64: 36, 32>}, {pipeline_mode = #tpu.pipeline_mode<synchronous>, transform_indices = @transform_2, window_bounds = array<i64: 1, 32>}, {transform_indices = @transform_3, window_bounds = array<i64: 8, 32>}]} {
    %c0 = arith.constant 0 : index
    %c0_0 = arith.constant 0 : index
    %0 = vector.load %arg2[%c0, %c0_0] : memref<36x32xbf16, #tpu.memory_space<vmem>>, vector<36x32xbf16>
    %c0_1 = arith.constant 0 : index
    %c0_2 = arith.constant 0 : index
    %1 = vector.load %arg3[%c0_1, %c0_2] : memref<1x32xf32, #tpu.memory_space<vmem>>, vector<1x32xf32>
    %c0_3 = arith.constant 0 : index
    %c0_4 = arith.constant 0 : index
    %c0_5 = arith.constant 0 : index
    %2 = vector.load %arg1[%c0_3, %c0_4, %c0_5] : memref<1x8x36xbf16, #tpu.memory_space<vmem>>, vector<1x8x36xbf16>
    %3 = vector.shape_cast %2 : vector<1x8x36xbf16> to vector<8x36xbf16>
    %cst = arith.constant dense<0.000000e+00> : vector<8x32xf32>
    %4 = tpu.matmul %3, %0, %cst {dimension_numbers = #tpu.dot_dimension_numbers<[1], [0], [0], [1], [0, 0, 1, 1], [], []>} : vector<8x36xbf16>, vector<36x32xbf16>, vector<8x32xf32> -> vector<8x32xf32>
    %5 = vector.broadcast %1 : vector<1x32xf32> to vector<8x32xf32>
    %6 = arith.addf %4, %5 : vector<8x32xf32>
    %cst_6 = arith.constant 0.000000e+00 : f32
    %7 = vector.broadcast %cst_6 : f32 to vector<8x32xf32>
    %8 = arith.minimumf %6, %7 : vector<8x32xf32>
    %9 = math.exp %8 : vector<8x32xf32>
    %cst_7 = arith.constant 1.000000e+00 : f32
    %10 = vector.broadcast %cst_7 : f32 to vector<8x32xf32>
    %11 = arith.subf %9, %10 : vector<8x32xf32>
    %cst_8 = arith.constant 1.67326319 : f32
    %12 = vector.broadcast %cst_8 : f32 to vector<8x32xf32>
    %13 = arith.mulf %12, %11 : vector<8x32xf32>
    %cst_9 = arith.constant 0.000000e+00 : f32
    %14 = vector.broadcast %cst_9 : f32 to vector<8x32xf32>
    %15 = arith.cmpf ogt, %6, %14 : vector<8x32xf32>
    %16 = arith.select %15, %6, %13 : vector<8x32xi1>, vector<8x32xf32>
    %cst_10 = arith.constant 1.05070102 : f32
    %17 = vector.broadcast %cst_10 : f32 to vector<8x32xf32>
    %18 = arith.mulf %17, %16 : vector<8x32xf32>
    %19 = arith.truncf %18 : vector<8x32xf32> to vector<8x32xbf16>
    %c0_11 = arith.constant 0 : index
    %c0_12 = arith.constant 0 : index
    %20 = vector.load %arg4[%c0_11, %c0_12] : memref<8x32xbf16, #tpu.memory_space<vmem>>, vector<8x32xbf16>
    tpu.vector_store %arg4[%c0_11, %c0_12], %19 {strides = array<i32>} : memref<8x32xbf16, #tpu.memory_space<vmem>>, vector<8x32xbf16>,
    return
  }
  func.func @transform_0(%arg0: i32) -> (i32, i32, i32) {
    %c0_i32 = arith.constant 0 : i32
    %c0_i32_0 = arith.constant 0 : i32
    %c0_i32_1 = arith.constant 0 : i32
    return %c0_i32, %arg0, %c0_i32_0 : i32, i32, i32
  }
  func.func @transform_1(%arg0: i32) -> (i32, i32) {
    %c0_i32 = arith.constant 0 : i32
    %c0_i32_0 = arith.constant 0 : i32
    %c0_i32_1 = arith.constant 0 : i32
    return %c0_i32, %c0_i32_0 : i32, i32
  }
  func.func @transform_2(%arg0: i32) -> (i32, i32) {
    %c0_i32 = arith.constant 0 : i32
    %c0_i32_0 = arith.constant 0 : i32
    %c0_i32_1 = arith.constant 0 : i32
    return %c0_i32, %c0_i32_0 : i32, i32
  }
  func.func @transform_3(%arg0: i32) -> (i32, i32) {
    %c0_i32 = arith.constant 0 : i32
    %c0_i32_0 = arith.constant 0 : i32
    return %arg0, %c0_i32 : i32, i32
  }
}

module attributes {stable_mosaic.version = 11 : i64} {
  func.func @_fused_matmul_kernel(%arg0: i32, %arg1: memref<1x16x72xbf16, #tpu.memory_space<vmem>>, %arg2: memref<72x64xbf16, #tpu.memory_space<vmem>>, %arg3: memref<1x64xf32, #tpu.memory_space<vmem>>, %arg4: memref<16x64xbf16, #tpu.memory_space<vmem>>) attributes {dimension_semantics = [#tpu.dimension_semantics<parallel>], iteration_bounds = array<i64: 2>, scalar_prefetch = 0 : i64, scratch_operands = 0 : i64, tpu.core_type = #tpu.core_type<tc>, window_params = [{transform_indices = @transform_0, window_bounds = array<i64: 1, 16, 72>}, {pipeline_mode = #tpu.pipeline_mode<synchronous>, transform_indices = @transform_1, window_bounds = array<i64: 72, 64>}, {pipeline_mode = #tpu.pipeline_mode<synchronous>, transform_indices = @transform_2, window_bounds = array<i64: 1, 64>}, {transform_indices = @transform_3, window_bounds = array<i64: 16, 64>}]} {
    %c0 = arith.constant 0 : index
    %c0_0 = arith.constant 0 : index
    %0 = vector.load %arg2[%c0, %c0_0] : memref<72x64xbf16, #tpu.memory_space<vmem>>, vector<72x64xbf16>
    %c0_1 = arith.constant 0 : index
    %c0_2 = arith.constant 0 : index
    %1 = vector.load %arg3[%c0_1, %c0_2] : memref<1x64xf32, #tpu.memory_space<vmem>>, vector<1x64xf32>
    %c0_3 = arith.constant 0 : index
    %c0_4 = arith.constant 0 : index
    %c0_5 = arith.constant 0 : index
    %2 = vector.load %arg1[%c0_3, %c0_4, %c0_5] : memref<1x16x72xbf16, #tpu.memory_space<vmem>>, vector<1x16x72xbf16>
    %3 = vector.shape_cast %2 : vector<1x16x72xbf16> to vector<16x72xbf16>
    %cst = arith.constant dense<0.000000e+00> : vector<16x64xf32>
    %4 = tpu.matmul %3, %0, %cst {dimension_numbers = #tpu.dot_dimension_numbers<[1], [0], [0], [1], [0, 0, 1, 1], [], []>} : vector<16x72xbf16>, vector<72x64xbf16>, vector<16x64xf32> -> vector<16x64xf32>
    %5 = vector.broadcast %1 : vector<1x64xf32> to vector<16x64xf32>
    %6 = arith.addf %4, %5 : vector<16x64xf32>
    %cst_6 = arith.constant 0.000000e+00 : f32
    %7 = vector.broadcast %cst_6 : f32 to vector<16x64xf32>
    %8 = arith.minimumf %6, %7 : vector<16x64xf32>
    %9 = math.exp %8 : vector<16x64xf32>
    %cst_7 = arith.constant 1.000000e+00 : f32
    %10 = vector.broadcast %cst_7 : f32 to vector<16x64xf32>
    %11 = arith.subf %9, %10 : vector<16x64xf32>
    %cst_8 = arith.constant 1.67326319 : f32
    %12 = vector.broadcast %cst_8 : f32 to vector<16x64xf32>
    %13 = arith.mulf %12, %11 : vector<16x64xf32>
    %cst_9 = arith.constant 0.000000e+00 : f32
    %14 = vector.broadcast %cst_9 : f32 to vector<16x64xf32>
    %15 = arith.cmpf ogt, %6, %14 : vector<16x64xf32>
    %16 = arith.select %15, %6, %13 : vector<16x64xi1>, vector<16x64xf32>
    %cst_10 = arith.constant 1.05070102 : f32
    %17 = vector.broadcast %cst_10 : f32 to vector<16x64xf32>
    %18 = arith.mulf %17, %16 : vector<16x64xf32>
    %19 = arith.truncf %18 : vector<16x64xf32> to vector<16x64xbf16>
    %c0_11 = arith.constant 0 : index
    %c0_12 = arith.constant 0 : index
    %20 = vector.load %arg4[%c0_11, %c0_12] : memref<16x64xbf16, #tpu.memory_space<vmem>>, vector<16x64xbf16>
    tpu.vector_store %arg4[%c0_11, %c0_12], %19 {strides = array<i32>} : memref<16x64xbf16, #tpu.memory_space<vmem>>, vector<16x64xbf16>,
    return
  }
  func.func @transform_0(%arg0: i32) -> (i32, i32, i32) {
    %c0_i32 = arith.constant 0 : i32
    %c0_i32_0 = arith.constant 0 : i32
    %c0_i32_1 = arith.constant 0 : i32
    return %c0_i32, %arg0, %c0_i32_0 : i32, i32, i32
  }
  func.func @transform_1(%arg0: i32) -> (i32, i32) {
    %c0_i32 = arith.constant 0 : i32
    %c0_i32_0 = arith.constant 0 : i32
    %c0_i32_1 = arith.constant 0 : i32
    return %c0_i32, %c0_i32_0 : i32, i32
  }
  func.func @transform_2(%arg0: i32) -> (i32, i32) {
    %c0_i32 = arith.constant 0 : i32
    %c0_i32_0 = arith.constant 0 : i32
    %c0_i32_1 = arith.constant 0 : i32
    return %c0_i32, %c0_i32_0 : i32, i32
  }
  func.func @transform_3(%arg0: i32) -> (i32, i32) {
    %c0_i32 = arith.constant 0 : i32
    %c0_i32_0 = arith.constant 0 : i32
    return %arg0, %c0_i32 : i32, i32
  }
}

module attributes {stable_mosaic.version = 11 : i64} {
  func.func @_fused_matmul_kernel(%arg0: i32, %arg1: memref<1x64x144xbf16, #tpu.memory_space<vmem>>, %arg2: memref<144x128xbf16, #tpu.memory_space<vmem>>, %arg3: memref<1x128xf32, #tpu.memory_space<vmem>>, %arg4: memref<64x128xbf16, #tpu.memory_space<vmem>>) attributes {dimension_semantics = [#tpu.dimension_semantics<parallel>], iteration_bounds = array<i64: 2>, scalar_prefetch = 0 : i64, scratch_operands = 0 : i64, tpu.core_type = #tpu.core_type<tc>, window_params = [{transform_indices = @transform_0, window_bounds = array<i64: 1, 64, 144>}, {pipeline_mode = #tpu.pipeline_mode<synchronous>, transform_indices = @transform_1, window_bounds = array<i64: 144, 128>}, {pipeline_mode = #tpu.pipeline_mode<synchronous>, transform_indices = @transform_2, window_bounds = array<i64: 1, 128>}, {transform_indices = @transform_3, window_bounds = array<i64: 64, 128>}]} {
    %c0 = arith.constant 0 : index
    %c0_0 = arith.constant 0 : index
    %0 = vector.load %arg2[%c0, %c0_0] : memref<144x128xbf16, #tpu.memory_space<vmem>>, vector<144x128xbf16>
    %c0_1 = arith.constant 0 : index
    %c0_2 = arith.constant 0 : index
    %1 = vector.load %arg3[%c0_1, %c0_2] : memref<1x128xf32, #tpu.memory_space<vmem>>, vector<1x128xf32>
    %c0_3 = arith.constant 0 : index
    %c0_4 = arith.constant 0 : index
    %c0_5 = arith.constant 0 : index
    %2 = vector.load %arg1[%c0_3, %c0_4, %c0_5] : memref<1x64x144xbf16, #tpu.memory_space<vmem>>, vector<1x64x144xbf16>
    %3 = vector.shape_cast %2 : vector<1x64x144xbf16> to vector<64x144xbf16>
    %cst = arith.constant dense<0.000000e+00> : vector<64x128xf32>
    %4 = tpu.matmul %3, %0, %cst {dimension_numbers = #tpu.dot_dimension_numbers<[1], [0], [0], [1], [0, 0, 1, 1], [], []>} : vector<64x144xbf16>, vector<144x128xbf16>, vector<64x128xf32> -> vector<64x128xf32>
    %5 = vector.broadcast %1 : vector<1x128xf32> to vector<64x128xf32>
    %6 = arith.addf %4, %5 : vector<64x128xf32>
    %cst_6 = arith.constant 0.000000e+00 : f32
    %7 = vector.broadcast %cst_6 : f32 to vector<64x128xf32>
    %8 = arith.minimumf %6, %7 : vector<64x128xf32>
    %9 = math.exp %8 : vector<64x128xf32>
    %cst_7 = arith.constant 1.000000e+00 : f32
    %10 = vector.broadcast %cst_7 : f32 to vector<64x128xf32>
    %11 = arith.subf %9, %10 : vector<64x128xf32>
    %cst_8 = arith.constant 1.67326319 : f32
    %12 = vector.broadcast %cst_8 : f32 to vector<64x128xf32>
    %13 = arith.mulf %12, %11 : vector<64x128xf32>
    %cst_9 = arith.constant 0.000000e+00 : f32
    %14 = vector.broadcast %cst_9 : f32 to vector<64x128xf32>
    %15 = arith.cmpf ogt, %6, %14 : vector<64x128xf32>
    %16 = arith.select %15, %6, %13 : vector<64x128xi1>, vector<64x128xf32>
    %cst_10 = arith.constant 1.05070102 : f32
    %17 = vector.broadcast %cst_10 : f32 to vector<64x128xf32>
    %18 = arith.mulf %17, %16 : vector<64x128xf32>
    %19 = arith.truncf %18 : vector<64x128xf32> to vector<64x128xbf16>
    %c0_11 = arith.constant 0 : index
    %c0_12 = arith.constant 0 : index
    %20 = vector.load %arg4[%c0_11, %c0_12] : memref<64x128xbf16, #tpu.memory_space<vmem>>, vector<64x128xbf16>
    tpu.vector_store %arg4[%c0_11, %c0_12], %19 {strides = array<i32>} : memref<64x128xbf16, #tpu.memory_space<vmem>>, vector<64x128xbf16>,
    return
  }
  func.func @transform_0(%arg0: i32) -> (i32, i32, i32) {
    %c0_i32 = arith.constant 0 : i32
    %c0_i32_0 = arith.constant 0 : i32
    %c0_i32_1 = arith.constant 0 : i32
    return %c0_i32, %arg0, %c0_i32_0 : i32, i32, i32
  }
  func.func @transform_1(%arg0: i32) -> (i32, i32) {
    %c0_i32 = arith.constant 0 : i32
    %c0_i32_0 = arith.constant 0 : i32
    %c0_i32_1 = arith.constant 0 : i32
    return %c0_i32, %c0_i32_0 : i32, i32
  }
  func.func @transform_2(%arg0: i32) -> (i32, i32) {
    %c0_i32 = arith.constant 0 : i32
    %c0_i32_0 = arith.constant 0 : i32
    %c0_i32_1 = arith.constant 0 : i32
    return %c0_i32, %c0_i32_0 : i32, i32
  }
  func.func @transform_3(%arg0: i32) -> (i32, i32) {
    %c0_i32 = arith.constant 0 : i32
    %c0_i32_0 = arith.constant 0 : i32
    return %arg0, %c0_i32 : i32, i32
  }
}

module attributes {stable_mosaic.version = 11 : i64} {
  func.func @_fused_matmul_kernel(%arg0: i32, %arg1: memref<1x256x288xbf16, #tpu.memory_space<vmem>>, %arg2: memref<288x128xbf16, #tpu.memory_space<vmem>>, %arg3: memref<1x128xf32, #tpu.memory_space<vmem>>, %arg4: memref<256x128xbf16, #tpu.memory_space<vmem>>) attributes {dimension_semantics = [#tpu.dimension_semantics<parallel>], iteration_bounds = array<i64: 2>, scalar_prefetch = 0 : i64, scratch_operands = 0 : i64, tpu.core_type = #tpu.core_type<tc>, window_params = [{transform_indices = @transform_0, window_bounds = array<i64: 1, 256, 288>}, {pipeline_mode = #tpu.pipeline_mode<synchronous>, transform_indices = @transform_1, window_bounds = array<i64: 288, 128>}, {pipeline_mode = #tpu.pipeline_mode<synchronous>, transform_indices = @transform_2, window_bounds = array<i64: 1, 128>}, {transform_indices = @transform_3, window_bounds = array<i64: 256, 128>}]} {
    %c0 = arith.constant 0 : index
    %c0_0 = arith.constant 0 : index
    %0 = vector.load %arg2[%c0, %c0_0] : memref<288x128xbf16, #tpu.memory_space<vmem>>, vector<288x128xbf16>
    %c0_1 = arith.constant 0 : index
    %c0_2 = arith.constant 0 : index
    %1 = vector.load %arg3[%c0_1, %c0_2] : memref<1x128xf32, #tpu.memory_space<vmem>>, vector<1x128xf32>
    %c0_3 = arith.constant 0 : index
    %c0_4 = arith.constant 0 : index
    %c0_5 = arith.constant 0 : index
    %2 = vector.load %arg1[%c0_3, %c0_4, %c0_5] : memref<1x256x288xbf16, #tpu.memory_space<vmem>>, vector<1x256x288xbf16>
    %3 = vector.shape_cast %2 : vector<1x256x288xbf16> to vector<256x288xbf16>
    %cst = arith.constant dense<0.000000e+00> : vector<256x128xf32>
    %4 = tpu.matmul %3, %0, %cst {dimension_numbers = #tpu.dot_dimension_numbers<[1], [0], [0], [1], [0, 0, 1, 1], [], []>} : vector<256x288xbf16>, vector<288x128xbf16>, vector<256x128xf32> -> vector<256x128xf32>
    %5 = vector.broadcast %1 : vector<1x128xf32> to vector<256x128xf32>
    %6 = arith.addf %4, %5 : vector<256x128xf32>
    %cst_6 = arith.constant 0.000000e+00 : f32
    %7 = vector.broadcast %cst_6 : f32 to vector<256x128xf32>
    %8 = arith.minimumf %6, %7 : vector<256x128xf32>
    %9 = math.exp %8 : vector<256x128xf32>
    %cst_7 = arith.constant 1.000000e+00 : f32
    %10 = vector.broadcast %cst_7 : f32 to vector<256x128xf32>
    %11 = arith.subf %9, %10 : vector<256x128xf32>
    %cst_8 = arith.constant 1.67326319 : f32
    %12 = vector.broadcast %cst_8 : f32 to vector<256x128xf32>
    %13 = arith.mulf %12, %11 : vector<256x128xf32>
    %cst_9 = arith.constant 0.000000e+00 : f32
    %14 = vector.broadcast %cst_9 : f32 to vector<256x128xf32>
    %15 = arith.cmpf ogt, %6, %14 : vector<256x128xf32>
    %16 = arith.select %15, %6, %13 : vector<256x128xi1>, vector<256x128xf32>
    %cst_10 = arith.constant 1.05070102 : f32
    %17 = vector.broadcast %cst_10 : f32 to vector<256x128xf32>
    %18 = arith.mulf %17, %16 : vector<256x128xf32>
    %19 = arith.truncf %18 : vector<256x128xf32> to vector<256x128xbf16>
    %c0_11 = arith.constant 0 : index
    %c0_12 = arith.constant 0 : index
    %20 = vector.load %arg4[%c0_11, %c0_12] : memref<256x128xbf16, #tpu.memory_space<vmem>>, vector<256x128xbf16>
    tpu.vector_store %arg4[%c0_11, %c0_12], %19 {strides = array<i32>} : memref<256x128xbf16, #tpu.memory_space<vmem>>, vector<256x128xbf16>,
    return
  }
  func.func @transform_0(%arg0: i32) -> (i32, i32, i32) {
    %c0_i32 = arith.constant 0 : i32
    %c0_i32_0 = arith.constant 0 : i32
    %c0_i32_1 = arith.constant 0 : i32
    return %c0_i32, %arg0, %c0_i32_0 : i32, i32, i32
  }
  func.func @transform_1(%arg0: i32) -> (i32, i32) {
    %c0_i32 = arith.constant 0 : i32
    %c0_i32_0 = arith.constant 0 : i32
    %c0_i32_1 = arith.constant 0 : i32
    return %c0_i32, %c0_i32_0 : i32, i32
  }
  func.func @transform_2(%arg0: i32) -> (i32, i32) {
    %c0_i32 = arith.constant 0 : i32
    %c0_i32_0 = arith.constant 0 : i32
    %c0_i32_1 = arith.constant 0 : i32
    return %c0_i32, %c0_i32_0 : i32, i32
  }
  func.func @transform_3(%arg0: i32) -> (i32, i32) {
    %c0_i32 = arith.constant 0 : i32
    %c0_i32_0 = arith.constant 0 : i32
    return %arg0, %c0_i32 : i32, i32
  }
}

module attributes {stable_mosaic.version = 11 : i64} {
  func.func @_fused_matmul_kernel(%arg0: i32, %arg1: memref<1x512x288xbf16, #tpu.memory_space<vmem>>, %arg2: memref<288x12xbf16, #tpu.memory_space<vmem>>, %arg3: memref<1x12xf32, #tpu.memory_space<vmem>>, %arg4: memref<512x12xf32, #tpu.memory_space<vmem>>) attributes {dimension_semantics = [#tpu.dimension_semantics<parallel>], iteration_bounds = array<i64: 4>, scalar_prefetch = 0 : i64, scratch_operands = 0 : i64, tpu.core_type = #tpu.core_type<tc>, window_params = [{transform_indices = @transform_0, window_bounds = array<i64: 1, 512, 288>}, {pipeline_mode = #tpu.pipeline_mode<synchronous>, transform_indices = @transform_1, window_bounds = array<i64: 288, 12>}, {pipeline_mode = #tpu.pipeline_mode<synchronous>, transform_indices = @transform_2, window_bounds = array<i64: 1, 12>}, {transform_indices = @transform_3, window_bounds = array<i64: 512, 12>}]} {
    %c0 = arith.constant 0 : index
    %c0_0 = arith.constant 0 : index
    %0 = vector.load %arg2[%c0, %c0_0] : memref<288x12xbf16, #tpu.memory_space<vmem>>, vector<288x12xbf16>
    %c0_1 = arith.constant 0 : index
    %c0_2 = arith.constant 0 : index
    %1 = vector.load %arg3[%c0_1, %c0_2] : memref<1x12xf32, #tpu.memory_space<vmem>>, vector<1x12xf32>
    %c0_3 = arith.constant 0 : index
    %c0_4 = arith.constant 0 : index
    %c0_5 = arith.constant 0 : index
    %2 = vector.load %arg1[%c0_3, %c0_4, %c0_5] : memref<1x512x288xbf16, #tpu.memory_space<vmem>>, vector<1x512x288xbf16>
    %3 = vector.shape_cast %2 : vector<1x512x288xbf16> to vector<512x288xbf16>
    %cst = arith.constant dense<0.000000e+00> : vector<512x12xf32>
    %4 = tpu.matmul %3, %0, %cst {dimension_numbers = #tpu.dot_dimension_numbers<[1], [0], [0], [1], [0, 0, 1, 1], [], []>} : vector<512x288xbf16>, vector<288x12xbf16>, vector<512x12xf32> -> vector<512x12xf32>
    %5 = vector.broadcast %1 : vector<1x12xf32> to vector<512x12xf32>
    %6 = arith.addf %4, %5 : vector<512x12xf32>
    %cst_6 = arith.constant 0.000000e+00 : f32
    %7 = vector.broadcast %cst_6 : f32 to vector<512x12xf32>
    %8 = arith.subf %7, %6 : vector<512x12xf32>
    %9 = math.exp %8 : vector<512x12xf32>
    %cst_7 = arith.constant 1.000000e+00 : f32
    %10 = vector.broadcast %cst_7 : f32 to vector<512x12xf32>
    %11 = arith.addf %10, %9 : vector<512x12xf32>
    %12 = tpu.reciprocal %11 {approx = true} : vector<512x12xf32> -> vector<512x12xf32>
    %c0_8 = arith.constant 0 : index
    %c0_9 = arith.constant 0 : index
    %13 = vector.load %arg4[%c0_8, %c0_9] : memref<512x12xf32, #tpu.memory_space<vmem>>, vector<512x12xf32>
    tpu.vector_store %arg4[%c0_8, %c0_9], %12 {strides = array<i32>} : memref<512x12xf32, #tpu.memory_space<vmem>>, vector<512x12xf32>,
    return
  }
  func.func @transform_0(%arg0: i32) -> (i32, i32, i32) {
    %c0_i32 = arith.constant 0 : i32
    %c0_i32_0 = arith.constant 0 : i32
    %c0_i32_1 = arith.constant 0 : i32
    return %c0_i32, %arg0, %c0_i32_0 : i32, i32, i32
  }
  func.func @transform_1(%arg0: i32) -> (i32, i32) {
    %c0_i32 = arith.constant 0 : i32
    %c0_i32_0 = arith.constant 0 : i32
    %c0_i32_1 = arith.constant 0 : i32
    return %c0_i32, %c0_i32_0 : i32, i32
  }
  func.func @transform_2(%arg0: i32) -> (i32, i32) {
    %c0_i32 = arith.constant 0 : i32
    %c0_i32_0 = arith.constant 0 : i32
    %c0_i32_1 = arith.constant 0 : i32
    return %c0_i32, %c0_i32_0 : i32, i32
  }
  func.func @transform_3(%arg0: i32) -> (i32, i32) {
    %c0_i32 = arith.constant 0 : i32
    %c0_i32_0 = arith.constant 0 : i32
    return %arg0, %c0_i32 : i32, i32
  }
}

</mosaic_0001>

<bundles_post_ra>
// kernel: _lambda_.12
= control target key start
LH: loop header
LB: loop body
LE: loop exit
PB: predicated region body
PF: predicated region fallthrough
CT: control target
= control target key end

     0   :  { %s5739_s12 = smov 0   ;;  %s5741_s13 = smov 0   ;;  %s6908_s0 = inlined_call_operand.vmem [shape: bf16[4,2048,27], index: 0, kind: input, shape index: {}]   ;;  %s6909_s1 = inlined_call_operand.vmem [shape: bf16[27,32], index: 1, kind: input, shape index: {}]   ;;  %s6910_s2 = inlined_call_operand.vmem [shape: f32[1,32], index: 2, kind: input, shape index: {}]   ;;  %s6911_s3 = inlined_call_operand.vmem [shape: bf16[2048,32], index: 3, kind: output, shape index: {}]  }
   0x1   :  { %s5743_s14 = smov 0  }
   0x2 LB: > { %s4536_s15 = sadd.s32 4294967295, %s5716_s14   ;;  %s5756_s16 = sadd.s32 1, %s5716_s14   ;;  %s5716_s14 = sphi %s5743_s14, %s6956_s14   ;;  %s5712_s13 = sphi %s5741_s13, %s6955_s13   ;;  %s5708_s12 = sphi %s5739_s12, %s6954_s12  }
   0x3   : > { %s17_s17 = ssub.s32 %s5716_s14, %s5756_s16  ;;  %s20_s18 = sadd.s32 1, %s5712_s13 }
   0x4   : > { %p18_p0 = scmp.eq.s32.totalorder %s17_s17, 0  ;;  %p27_p1 = scmp.ne.s32.totalorder %s5712_s13, %s5708_s12 }
   0x5   : > { %p28_p2 = scmp.eq.s32.totalorder %s5716_s14, 0  ;;  %p4539_p4 = scmp.ge.s32.totalorder %s5716_s14, 4 }
   0x6   : > { %s5765_s19 = scalar_select %p18_p0, %s5712_s13, %s20_s18  }
   0x7   : > { %p29_p3 = por %p28_p2, %p27_p1  ;;  %127 = sbr.rel (%p4539_p4) target bundleno = 82 (0x52), region = 24 }
   0xe   : > { %130 = sbr.rel (!%p29_p3) target bundleno = 82 (0x52), region = 28  ;;  %s132_s20 = sand.u32 (%p29_p3), 1, %s5712_s13  }
   0xf   : > { %s5064_s21 = sshll.u32 (%p29_p3), %s5716_s14, 8  ;;  %s4540_s22 = sshll.u32 (%p29_p3), %s132_s20, 10 }
  0x10   : > { %s5773_s25 = scalar_lea.vmem (%p29_p3), %s6908_s0, %s5064_s21  ;;  %s5778_s26 = scalar_lea.vmem (%p29_p3), [#allocation2], %s4540_s22 }
  0x11   : > { %v153_v0 = vld [vmem:[%s5773_s25] sm:$0xff] (%p29_p3)   ;;  %v157_v1 = vld [vmem:[%s5773_s25 + $0x8] sm:$0xff] (%p29_p3)   ;;  %v161_v2 = vld [vmem:[%s5773_s25 + $0x10] sm:$0xff] (%p29_p3)  }
  0x12   : > { %154 = vst [vmem:[%s5778_s26] sm:$0xff] (%p29_p3), %v153_v0   ;;  %158 = vst [vmem:[%s5778_s26 + $0x8] sm:$0xff] (%p29_p3), %v157_v1   ;;  %v165_v3 = vld [vmem:[%s5773_s25 + $0x18] sm:$0xff] (%p29_p3)   ;;  %v169_v4 = vld [vmem:[%s5773_s25 + $0x20] sm:$0xff] (%p29_p3)  }
  0x13   : > { %162 = vst [vmem:[%s5778_s26 + $0x10] sm:$0xff] (%p29_p3), %v161_v2   ;;  %v173_v5 = vld [vmem:[%s5773_s25 + $0x28] sm:$0xff] (%p29_p3)   ;;  %166 = vst [vmem:[%s5778_s26 + $0x18] sm:$0xff] (%p29_p3), %v165_v3   ;;  %v177_v6 = vld [vmem:[%s5773_s25 + $0x30] sm:$0xff] (%p29_p3)  }
  0x14   : > { %170 = vst [vmem:[%s5778_s26 + $0x20] sm:$0xff] (%p29_p3), %v169_v4   ;;  %174 = vst [vmem:[%s5778_s26 + $0x28] sm:$0xff] (%p29_p3), %v173_v5   ;;  %v181_v7 = vld [vmem:[%s5773_s25 + $0x38] sm:$0xff] (%p29_p3)   ;;  %v185_v8 = vld [vmem:[%s5773_s25 + $0x40] sm:$0xff] (%p29_p3)  }
  0x15   : > { %178 = vst [vmem:[%s5778_s26 + $0x30] sm:$0xff] %v177_v6   ;;  %182 = vst [vmem:[%s5778_s26 + $0x38] sm:$0xff] %v181_v7   ;;  %v189_v9 = vld [vmem:[%s5773_s25 + $0x48] sm:$0xff]   ;;  %v193_v10 = vld [vmem:[%s5773_s25 + $0x50] sm:$0xff]  }
  0x16   : > { %186 = vst [vmem:[%s5778_s26 + $0x40] sm:$0xff] %v185_v8   ;;  %v197_v11 = vld [vmem:[%s5773_s25 + $0x58] sm:$0xff]   ;;  %190 = vst [vmem:[%s5778_s26 + $0x48] sm:$0xff] %v189_v9   ;;  %v201_v12 = vld [vmem:[%s5773_s25 + $0x60] sm:$0xff]  }
  0x17   : > { %194 = vst [vmem:[%s5778_s26 + $0x50] sm:$0xff] %v193_v10   ;;  %198 = vst [vmem:[%s5778_s26 + $0x58] sm:$0xff] %v197_v11   ;;  %v205_v13 = vld [vmem:[%s5773_s25 + $0x68] sm:$0xff]   ;;  %v209_v14 = vld [vmem:[%s5773_s25 + $0x70] sm:$0xff]  }
  0x18   : > { %202 = vst [vmem:[%s5778_s26 + $0x60] sm:$0xff] %v201_v12   ;;  %206 = vst [vmem:[%s5778_s26 + $0x68] sm:$0xff] %v205_v13   ;;  %v213_v15 = vld [vmem:[%s5773_s25 + $0x78] sm:$0xff]   ;;  %v217_v16 = vld [vmem:[%s5773_s25 + $0x80] sm:$0xff]  }
  0x19   : > { %210 = vst [vmem:[%s5778_s26 + $0x70] sm:$0xff] %v209_v14   ;;  %v221_v17 = vld [vmem:[%s5773_s25 + $0x88] sm:$0xff]   ;;  %214 = vst [vmem:[%s5778_s26 + $0x78] sm:$0xff] %v213_v15   ;;  %v225_v18 = vld [vmem:[%s5773_s25 + $0x90] sm:$0xff]  }
  0x1a   : > { %218 = vst [vmem:[%s5778_s26 + $0x80] sm:$0xff] %v217_v16   ;;  %222 = vst [vmem:[%s5778_s26 + $0x88] sm:$0xff] %v221_v17   ;;  %v229_v19 = vld [vmem:[%s5773_s25 + $0x98] sm:$0xff]   ;;  %v233_v20 = vld [vmem:[%s5773_s25 + $0xa0] sm:$0xff]  }
  0x1b   : > { %226 = vst [vmem:[%s5778_s26 + $0x90] sm:$0xff] %v225_v18   ;;  %230 = vst [vmem:[%s5778_s26 + $0x98] sm:$0xff] %v229_v19   ;;  %v237_v21 = vld [vmem:[%s5773_s25 + $0xa8] sm:$0xff]   ;;  %v241_v22 = vld [vmem:[%s5773_s25 + $0xb0] sm:$0xff]  }
  0x1c   : > { %234 = vst [vmem:[%s5778_s26 + $0xa0] sm:$0xff] %v233_v20   ;;  %v245_v23 = vld [vmem:[%s5773_s25 + $0xb8] sm:$0xff]   ;;  %238 = vst [vmem:[%s5778_s26 + $0xa8] sm:$0xff] %v237_v21   ;;  %v249_v24 = vld [vmem:[%s5773_s25 + $0xc0] sm:$0xff]  }
  0x1d   : > { %242 = vst [vmem:[%s5778_s26 + $0xb0] sm:$0xff] %v241_v22   ;;  %246 = vst [vmem:[%s5778_s26 + $0xb8] sm:$0xff] %v245_v23   ;;  %v253_v25 = vld [vmem:[%s5773_s25 + $0xc8] sm:$0xff]   ;;  %v257_v26 = vld [vmem:[%s5773_s25 + $0xd0] sm:$0xff]  }
  0x1e   : > { %250 = vst [vmem:[%s5778_s26 + $0xc0] sm:$0xff] %v249_v24   ;;  %254 = vst [vmem:[%s5778_s26 + $0xc8] sm:$0xff] %v253_v25   ;;  %v261_v27 = vld [vmem:[%s5773_s25 + $0xd8] sm:$0xff]   ;;  %v265_v28 = vld [vmem:[%s5773_s25 + $0xe0] sm:$0xff]  }
  0x1f   : > { %258 = vst [vmem:[%s5778_s26 + $0xd0] sm:$0xff] %v257_v26   ;;  %v269_v29 = vld [vmem:[%s5773_s25 + $0xe8] sm:$0xff]   ;;  %262 = vst [vmem:[%s5778_s26 + $0xd8] sm:$0xff] %v261_v27   ;;  %v273_v30 = vld [vmem:[%s5773_s25 + $0xf0] sm:$0xff]  }
  0x20   : > { %266 = vst [vmem:[%s5778_s26 + $0xe0] sm:$0xff] %v265_v28   ;;  %270 = vst [vmem:[%s5778_s26 + $0xe8] sm:$0xff] %v269_v29   ;;  %v277_v31 = vld [vmem:[%s5773_s25 + $0xf8] sm:$0xff]   ;;  %v281_v32 = vld [vmem:[%s5773_s25 + $0x400] sm:$0xff]  }
  0x21   : > { %274 = vst [vmem:[%s5778_s26 + $0xf0] sm:$0xff] %v273_v30   ;;  %278 = vst [vmem:[%s5778_s26 + $0xf8] sm:$0xff] %v277_v31   ;;  %v285_v33 = vld [vmem:[%s5773_s25 + $0x408] sm:$0xff]   ;;  %v289_v34 = vld [vmem:[%s5773_s25 + $0x410] sm:$0xff]  }
  0x22   : > { %282 = vst [vmem:[%s5778_s26 + $0x100] sm:$0xff] %v281_v32   ;;  %v293_v35 = vld [vmem:[%s5773_s25 + $0x418] sm:$0xff]   ;;  %286 = vst [vmem:[%s5778_s26 + $0x108] sm:$0xff] %v285_v33   ;;  %v297_v36 = vld [vmem:[%s5773_s25 + $0x420] sm:$0xff]  }
  0x23   : > { %290 = vst [vmem:[%s5778_s26 + $0x110] sm:$0xff] %v289_v34   ;;  %294 = vst [vmem:[%s5778_s26 + $0x118] sm:$0xff] %v293_v35   ;;  %v301_v37 = vld [vmem:[%s5773_s25 + $0x428] sm:$0xff]   ;;  %v305_v38 = vld [vmem:[%s5773_s25 + $0x430] sm:$0xff]  }
  0x24   : > { %298 = vst [vmem:[%s5778_s26 + $0x120] sm:$0xff] %v297_v36   ;;  %302 = vst [vmem:[%s5778_s26 + $0x128] sm:$0xff] %v301_v37   ;;  %v309_v39 = vld [vmem:[%s5773_s25 + $0x438] sm:$0xff]   ;;  %v313_v40 = vld [vmem:[%s5773_s25 + $0x440] sm:$0xff]  }
  0x25   : > { %306 = vst [vmem:[%s5778_s26 + $0x130] sm:$0xff] %v305_v38   ;;  %v317_v41 = vld [vmem:[%s5773_s25 + $0x448] sm:$0xff]   ;;  %310 = vst [vmem:[%s5778_s26 + $0x138] sm:$0xff] %v309_v39   ;;  %v321_v42 = vld [vmem:[%s5773_s25 + $0x450] sm:$0xff]  }
  0x26   : > { %314 = vst [vmem:[%s5778_s26 + $0x140] sm:$0xff] %v313_v40   ;;  %318 = vst [vmem:[%s5778_s26 + $0x148] sm:$0xff] %v317_v41   ;;  %v325_v43 = vld [vmem:[%s5773_s25 + $0x458] sm:$0xff]   ;;  %v329_v44 = vld [vmem:[%s5773_s25 + $0x460] sm:$0xff]  }
  0x27   : > { %322 = vst [vmem:[%s5778_s26 + $0x150] sm:$0xff] %v321_v42   ;;  %326 = vst [vmem:[%s5778_s26 + $0x158] sm:$0xff] %v325_v43   ;;  %v333_v45 = vld [vmem:[%s5773_s25 + $0x468] sm:$0xff]   ;;  %v337_v46 = vld [vmem:[%s5773_s25 + $0x470] sm:$0xff]  }
  0x28   : > { %330 = vst [vmem:[%s5778_s26 + $0x160] sm:$0xff] %v329_v44   ;;  %v341_v47 = vld [vmem:[%s5773_s25 + $0x478] sm:$0xff]   ;;  %334 = vst [vmem:[%s5778_s26 + $0x168] sm:$0xff] %v333_v45   ;;  %v345_v48 = vld [vmem:[%s5773_s25 + $0x480] sm:$0xff]  }
  0x29   : > { %338 = vst [vmem:[%s5778_s26 + $0x170] sm:$0xff] %v337_v46   ;;  %342 = vst [vmem:[%s5778_s26 + $0x178] sm:$0xff] %v341_v47   ;;  %v349_v49 = vld [vmem:[%s5773_s25 + $0x488] sm:$0xff]   ;;  %v353_v50 = vld [vmem:[%s5773_s25 + $0x490] sm:$0xff]  }
  0x2a   : > { %346 = vst [vmem:[%s5778_s26 + $0x180] sm:$0xff] %v345_v48   ;;  %350 = vst [vmem:[%s5778_s26 + $0x188] sm:$0xff] %v349_v49   ;;  %v357_v51 = vld [vmem:[%s5773_s25 + $0x498] sm:$0xff]   ;;  %v361_v52 = vld [vmem:[%s5773_s25 + $0x4a0] sm:$0xff]  }
  0x2b   : > { %354 = vst [vmem:[%s5778_s26 + $0x190] sm:$0xff] %v353_v50   ;;  %v365_v53 = vld [vmem:[%s5773_s25 + $0x4a8] sm:$0xff]   ;;  %358 = vst [vmem:[%s5778_s26 + $0x198] sm:$0xff] %v357_v51   ;;  %v369_v54 = vld [vmem:[%s5773_s25 + $0x4b0] sm:$0xff]  }
  0x2c   : > { %362 = vst [vmem:[%s5778_s26 + $0x1a0] sm:$0xff] %v361_v52   ;;  %366 = vst [vmem:[%s5778_s26 + $0x1a8] sm:$0xff] %v365_v53   ;;  %v373_v55 = vld [vmem:[%s5773_s25 + $0x4b8] sm:$0xff]   ;;  %v377_v56 = vld [vmem:[%s5773_s25 + $0x4c0] sm:$0xff]  }
  0x2d   : > { %370 = vst [vmem:[%s5778_s26 + $0x1b0] sm:$0xff] %v369_v54   ;;  %374 = vst [vmem:[%s5778_s26 + $0x1b8] sm:$0xff] %v373_v55   ;;  %v381_v57 = vld [vmem:[%s5773_s25 + $0x4c8] sm:$0xff]   ;;  %v385_v58 = vld [vmem:[%s5773_s25 + $0x4d0] sm:$0xff]  }
  0x2e   : > { %378 = vst [vmem:[%s5778_s26 + $0x1c0] sm:$0xff] %v377_v56   ;;  %v389_v59 = vld [vmem:[%s5773_s25 + $0x4d8] sm:$0xff]   ;;  %382 = vst [vmem:[%s5778_s26 + $0x1c8] sm:$0xff] %v381_v57   ;;  %v393_v60 = vld [vmem:[%s5773_s25 + $0x4e0] sm:$0xff]  }
  0x2f   : > { %386 = vst [vmem:[%s5778_s26 + $0x1d0] sm:$0xff] %v385_v58   ;;  %390 = vst [vmem:[%s5778_s26 + $0x1d8] sm:$0xff] %v389_v59   ;;  %v397_v61 = vld [vmem:[%s5773_s25 + $0x4e8] sm:$0xff]   ;;  %v401_v62 = vld [vmem:[%s5773_s25 + $0x4f0] sm:$0xff]  }
  0x30   : > { %394 = vst [vmem:[%s5778_s26 + $0x1e0] sm:$0xff] %v393_v60   ;;  %398 = vst [vmem:[%s5778_s26 + $0x1e8] sm:$0xff] %v397_v61   ;;  %v405_v63 = vld [vmem:[%s5773_s25 + $0x4f8] sm:$0xff]   ;;  %v409_v0 = vld [vmem:[%s5773_s25 + $0x800] sm:$0xff]  }
  0x31   : > { %402 = vst [vmem:[%s5778_s26 + $0x1f0] sm:$0xff] %v401_v62   ;;  %v413_v1 = vld [vmem:[%s5773_s25 + $0x808] sm:$0xff]   ;;  %406 = vst [vmem:[%s5778_s26 + $0x1f8] sm:$0xff] %v405_v63   ;;  %v417_v2 = vld [vmem:[%s5773_s25 + $0x810] sm:$0xff]  }
  0x32   : > { %410 = vst [vmem:[%s5778_s26 + $0x200] sm:$0xff] %v409_v0   ;;  %414 = vst [vmem:[%s5778_s26 + $0x208] sm:$0xff] %v413_v1   ;;  %v421_v3 = vld [vmem:[%s5773_s25 + $0x818] sm:$0xff]   ;;  %v425_v4 = vld [vmem:[%s5773_s25 + $0x820] sm:$0xff]  }
  0x33   : > { %418 = vst [vmem:[%s5778_s26 + $0x210] sm:$0xff] %v417_v2   ;;  %422 = vst [vmem:[%s5778_s26 + $0x218] sm:$0xff] %v421_v3   ;;  %v429_v5 = vld [vmem:[%s5773_s25 + $0x828] sm:$0xff]   ;;  %v433_v6 = vld [vmem:[%s5773_s25 + $0x830] sm:$0xff]  }
  0x34   : > { %426 = vst [vmem:[%s5778_s26 + $0x220] sm:$0xff] %v425_v4   ;;  %v437_v7 = vld [vmem:[%s5773_s25 + $0x838] sm:$0xff]   ;;  %430 = vst [vmem:[%s5778_s26 + $0x228] sm:$0xff] %v429_v5   ;;  %v441_v8 = vld [vmem:[%s5773_s25 + $0x840] sm:$0xff]  }
  0x35   : > { %434 = vst [vmem:[%s5778_s26 + $0x230] sm:$0xff] %v433_v6   ;;  %438 = vst [vmem:[%s5778_s26 + $0x238] sm:$0xff] %v437_v7   ;;  %v445_v9 = vld [vmem:[%s5773_s25 + $0x848] sm:$0xff]   ;;  %v449_v10 = vld [vmem:[%s5773_s25 + $0x850] sm:$0xff]  }
  0x36   : > { %442 = vst [vmem:[%s5778_s26 + $0x240] sm:$0xff] %v441_v8   ;;  %446 = vst [vmem:[%s5778_s26 + $0x248] sm:$0xff] %v445_v9   ;;  %v453_v11 = vld [vmem:[%s5773_s25 + $0x858] sm:$0xff]   ;;  %v457_v12 = vld [vmem:[%s5773_s25 + $0x860] sm:$0xff]  }
  0x37   : > { %450 = vst [vmem:[%s5778_s26 + $0x250] sm:$0xff] %v449_v10   ;;  %v461_v13 = vld [vmem:[%s5773_s25 + $0x868] sm:$0xff]   ;;  %454 = vst [vmem:[%s5778_s26 + $0x258] sm:$0xff] %v453_v11   ;;  %v465_v14 = vld [vmem:[%s5773_s25 + $0x870] sm:$0xff]  }
  0x38   : > { %458 = vst [vmem:[%s5778_s26 + $0x260] sm:$0xff] %v457_v12   ;;  %462 = vst [vmem:[%s5778_s26 + $0x268] sm:$0xff] %v461_v13   ;;  %v469_v15 = vld [vmem:[%s5773_s25 + $0x878] sm:$0xff]   ;;  %v473_v16 = vld [vmem:[%s5773_s25 + $0x880] sm:$0xff]  }
  0x39   : > { %466 = vst [vmem:[%s5778_s26 + $0x270] sm:$0xff] %v465_v14   ;;  %470 = vst [vmem:[%s5778_s26 + $0x278] sm:$0xff] %v469_v15   ;;  %v477_v17 = vld [vmem:[%s5773_s25 + $0x888] sm:$0xff]   ;;  %v481_v18 = vld [vmem:[%s5773_s25 + $0x890] sm:$0xff]  }
  0x3a   : > { %474 = vst [vmem:[%s5778_s26 + $0x280] sm:$0xff] %v473_v16   ;;  %v485_v19 = vld [vmem:[%s5773_s25 + $0x898] sm:$0xff]   ;;  %478 = vst [vmem:[%s5778_s26 + $0x288] sm:$0xff] %v477_v17   ;;  %v489_v20 = vld [vmem:[%s5773_s25 + $0x8a0] sm:$0xff]  }
  0x3b   : > { %482 = vst [vmem:[%s5778_s26 + $0x290] sm:$0xff] %v481_v18   ;;  %486 = vst [vmem:[%s5778_s26 + $0x298] sm:$0xff] %v485_v19   ;;  %v493_v21 = vld [vmem:[%s5773_s25 + $0x8a8] sm:$0xff]   ;;  %v497_v22 = vld [vmem:[%s5773_s25 + $0x8b0] sm:$0xff]  }
  0x3c   : > { %490 = vst [vmem:[%s5778_s26 + $0x2a0] sm:$0xff] %v489_v20   ;;  %494 = vst [vmem:[%s5778_s26 + $0x2a8] sm:$0xff] %v493_v21   ;;  %v501_v23 = vld [vmem:[%s5773_s25 + $0x8b8] sm:$0xff]   ;;  %v505_v24 = vld [vmem:[%s5773_s25 + $0x8c0] sm:$0xff]  }
  0x3d   : > { %498 = vst [vmem:[%s5778_s26 + $0x2b0] sm:$0xff] %v497_v22   ;;  %v509_v25 = vld [vmem:[%s5773_s25 + $0x8c8] sm:$0xff]   ;;  %502 = vst [vmem:[%s5778_s26 + $0x2b8] sm:$0xff] %v501_v23   ;;  %v513_v26 = vld [vmem:[%s5773_s25 + $0x8d0] sm:$0xff]  }
  0x3e   : > { %506 = vst [vmem:[%s5778_s26 + $0x2c0] sm:$0xff] %v505_v24   ;;  %510 = vst [vmem:[%s5778_s26 + $0x2c8] sm:$0xff] %v509_v25   ;;  %v517_v27 = vld [vmem:[%s5773_s25 + $0x8d8] sm:$0xff]   ;;  %v521_v28 = vld [vmem:[%s5773_s25 + $0x8e0] sm:$0xff]  }
  0x3f   : > { %514 = vst [vmem:[%s5778_s26 + $0x2d0] sm:$0xff] %v513_v26   ;;  %518 = vst [vmem:[%s5778_s26 + $0x2d8] sm:$0xff] %v517_v27   ;;  %v525_v29 = vld [vmem:[%s5773_s25 + $0x8e8] sm:$0xff]   ;;  %v529_v30 = vld [vmem:[%s5773_s25 + $0x8f0] sm:$0xff]  }
  0x40   : > { %522 = vst [vmem:[%s5778_s26 + $0x2e0] sm:$0xff] %v521_v28   ;;  %v533_v31 = vld [vmem:[%s5773_s25 + $0x8f8] sm:$0xff]   ;;  %526 = vst [vmem:[%s5778_s26 + $0x2e8] sm:$0xff] %v525_v29   ;;  %v537_v32 = vld [vmem:[%s5773_s25 + $0xc00] sm:$0xff]  }
  0x41   : > { %530 = vst [vmem:[%s5778_s26 + $0x2f0] sm:$0xff] %v529_v30   ;;  %534 = vst [vmem:[%s5778_s26 + $0x2f8] sm:$0xff] %v533_v31   ;;  %v541_v33 = vld [vmem:[%s5773_s25 + $0xc08] sm:$0xff]   ;;  %v545_v34 = vld [vmem:[%s5773_s25 + $0xc10] sm:$0xff]  }
  0x42   : > { %538 = vst [vmem:[%s5778_s26 + $0x300] sm:$0xff] %v537_v32   ;;  %542 = vst [vmem:[%s5778_s26 + $0x308] sm:$0xff] %v541_v33   ;;  %v549_v35 = vld [vmem:[%s5773_s25 + $0xc18] sm:$0xff]   ;;  %v553_v36 = vld [vmem:[%s5773_s25 + $0xc20] sm:$0xff]  }
  0x43   : > { %546 = vst [vmem:[%s5778_s26 + $0x310] sm:$0xff] %v545_v34   ;;  %v557_v37 = vld [vmem:[%s5773_s25 + $0xc28] sm:$0xff]   ;;  %550 = vst [vmem:[%s5778_s26 + $0x318] sm:$0xff] %v549_v35   ;;  %v561_v38 = vld [vmem:[%s5773_s25 + $0xc30] sm:$0xff]  }
  0x44   : > { %554 = vst [vmem:[%s5778_s26 + $0x320] sm:$0xff] %v553_v36   ;;  %558 = vst [vmem:[%s5778_s26 + $0x328] sm:$0xff] %v557_v37   ;;  %v565_v39 = vld [vmem:[%s5773_s25 + $0xc38] sm:$0xff]   ;;  %v569_v40 = vld [vmem:[%s5773_s25 + $0xc40] sm:$0xff]  }
  0x45   : > { %562 = vst [vmem:[%s5778_s26 + $0x330] sm:$0xff] %v561_v38   ;;  %566 = vst [vmem:[%s5778_s26 + $0x338] sm:$0xff] %v565_v39   ;;  %v573_v41 = vld [vmem:[%s5773_s25 + $0xc48] sm:$0xff]   ;;  %v577_v42 = vld [vmem:[%s5773_s25 + $0xc50] sm:$0xff]  }
  0x46   : > { %570 = vst [vmem:[%s5778_s26 + $0x340] sm:$0xff] %v569_v40   ;;  %v581_v43 = vld [vmem:[%s5773_s25 + $0xc58] sm:$0xff]   ;;  %574 = vst [vmem:[%s5778_s26 + $0x348] sm:$0xff] %v573_v41   ;;  %v585_v44 = vld [vmem:[%s5773_s25 + $0xc60] sm:$0xff]  }
  0x47   : > { %578 = vst [vmem:[%s5778_s26 + $0x350] sm:$0xff] %v577_v42   ;;  %582 = vst [vmem:[%s5778_s26 + $0x358] sm:$0xff] %v581_v43   ;;  %v589_v45 = vld [vmem:[%s5773_s25 + $0xc68] sm:$0xff]   ;;  %v593_v46 = vld [vmem:[%s5773_s25 + $0xc70] sm:$0xff]  }
  0x48   : > { %586 = vst [vmem:[%s5778_s26 + $0x360] sm:$0xff] %v585_v44   ;;  %590 = vst [vmem:[%s5778_s26 + $0x368] sm:$0xff] %v589_v45   ;;  %v597_v47 = vld [vmem:[%s5773_s25 + $0xc78] sm:$0xff]   ;;  %v601_v48 = vld [vmem:[%s5773_s25 + $0xc80] sm:$0xff]  }
  0x49   : > { %594 = vst [vmem:[%s5778_s26 + $0x370] sm:$0xff] %v593_v46   ;;  %v605_v49 = vld [vmem:[%s5773_s25 + $0xc88] sm:$0xff]   ;;  %598 = vst [vmem:[%s5778_s26 + $0x378] sm:$0xff] %v597_v47   ;;  %v609_v50 = vld [vmem:[%s5773_s25 + $0xc90] sm:$0xff]  }
  0x4a   : > { %602 = vst [vmem:[%s5778_s26 + $0x380] sm:$0xff] %v601_v48   ;;  %606 = vst [vmem:[%s5778_s26 + $0x388] sm:$0xff] %v605_v49   ;;  %v613_v51 = vld [vmem:[%s5773_s25 + $0xc98] sm:$0xff]   ;;  %v617_v52 = vld [vmem:[%s5773_s25 + $0xca0] sm:$0xff]  }
  0x4b   : > { %610 = vst [vmem:[%s5778_s26 + $0x390] sm:$0xff] %v609_v50   ;;  %614 = vst [vmem:[%s5778_s26 + $0x398] sm:$0xff] %v613_v51   ;;  %v621_v53 = vld [vmem:[%s5773_s25 + $0xca8] sm:$0xff]   ;;  %v625_v54 = vld [vmem:[%s5773_s25 + $0xcb0] sm:$0xff]  }
  0x4c   : > { %618 = vst [vmem:[%s5778_s26 + $0x3a0] sm:$0xff] %v617_v52   ;;  %v629_v55 = vld [vmem:[%s5773_s25 + $0xcb8] sm:$0xff]   ;;  %622 = vst [vmem:[%s5778_s26 + $0x3a8] sm:$0xff] %v621_v53   ;;  %v633_v56 = vld [vmem:[%s5773_s25 + $0xcc0] sm:$0xff]  }
  0x4d   : > { %626 = vst [vmem:[%s5778_s26 + $0x3b0] sm:$0xff] %v625_v54   ;;  %630 = vst [vmem:[%s5778_s26 + $0x3b8] sm:$0xff] %v629_v55   ;;  %v637_v57 = vld [vmem:[%s5773_s25 + $0xcc8] sm:$0xff]   ;;  %v641_v58 = vld [vmem:[%s5773_s25 + $0xcd0] sm:$0xff]  }
  0x4e   : > { %634 = vst [vmem:[%s5778_s26 + $0x3c0] sm:$0xff] %v633_v56   ;;  %638 = vst [vmem:[%s5778_s26 + $0x3c8] sm:$0xff] %v637_v57   ;;  %v645_v59 = vld [vmem:[%s5773_s25 + $0xcd8] sm:$0xff]   ;;  %v649_v60 = vld [vmem:[%s5773_s25 + $0xce0] sm:$0xff]  }
  0x4f   : > { %642 = vst [vmem:[%s5778_s26 + $0x3d0] sm:$0xff] %v641_v58   ;;  %v653_v61 = vld [vmem:[%s5773_s25 + $0xce8] sm:$0xff]   ;;  %646 = vst [vmem:[%s5778_s26 + $0x3d8] sm:$0xff] %v645_v59   ;;  %v657_v62 = vld [vmem:[%s5773_s25 + $0xcf0] sm:$0xff]  }
  0x50   : > { %650 = vst [vmem:[%s5778_s26 + $0x3e0] sm:$0xff] %v649_v60   ;;  %654 = vst [vmem:[%s5778_s26 + $0x3e8] sm:$0xff] %v653_v61   ;;  %v661_v63 = vld [vmem:[%s5773_s25 + $0xcf8] sm:$0xff]  }
  0x51   : > { %658 = vst [vmem:[%s5778_s26 + $0x3f0] sm:$0xff] %v657_v62   ;;  %662 = vst [vmem:[%s5778_s26 + $0x3f8] sm:$0xff] %v661_v63  }
  0x52 PF: > { %p4543_p5 = scmp.ge.s32.totalorder %s5716_s14, 1  ;;  %p1198_p6 = scmp.lt.s32.totalorder %s5716_s14, 5 }
  0x54   : > { %p1199_p7 = pnand %p4543_p5, %p1198_p6 }
  0x56   : > { %1202 = sbr.rel (%p1199_p7) target bundleno = 578 (0x242), region = 69 }
  0x5d   : > { %v5562_v0 = vld [vmem:[%s6909_s1] sm:$0xff]   ;;  %vm1579_vm0 = vcmask 1044480   ;;  %v5563_v1 = vld [vmem:[%s6909_s1 + $0x8] sm:$0x3f]   ;;  %vm1580_vm1 = vcmask 1045504   ;;  %s1205_s4 = sand.u32 1, %s5708_s12  }
  0x5e   : > { %5265 = vmatprep.subr.bf16.mxu0 %v5562_v0  ;;  %5333 = vmatprep.subr.bf16.mxu1 %v5562_v0  ;;  %v5718_v2 = vmov 65535   ;;  %s4544_s5 = sshll.u32 %s1205_s4, 10  ;;  %vm1482_vm2 = vcmask 220160   ;;  %s4545_s9 = sshll.u32 %s4536_s15, 6  ;;  %vm4409_vm3 = vcmask 257024  }
  0x5f   : > { %5266 = vmatpush3.bf16.msra.mxu0 %v5562_v0  ;;  %5334 = vmatpush3.bf16.msra.mxu1 %v5562_v0  ;;  %v1581_v3 = vsel %vm1579_vm0, 4294967295, %v5718_v2  ;;  %s6042_s6 = scalar_lea.vmem [#allocation2], %s4544_s5  ;;  %p1230_p8 = scmp.lt.s32.totalorder %s4545_s9, 255 }
  0x60   : > { %v1582_v4 = vsel %vm1580_vm1, %v1581_v3, 0  ;;  %v5564_v6 = vld [vmem:[%s6042_s6] sm:$0xff]   ;;  %v5566_v8 = vld [vmem:[%s6042_s6 + $0x8] sm:$0xff]   ;;  %v5568_v10 = vld [vmem:[%s6042_s6 + $0x10] sm:$0xff]  }
  0x61   : > { %v1584_v5 = vand.u32 %v5563_v1, %v1582_v4  ;;  %v5565_v7 = vld [vmem:[%s6042_s6 + $0x100] sm:$0xff]   ;;  %v5567_v9 = vld [vmem:[%s6042_s6 + $0x108] sm:$0xff]   ;;  %5269 = vmatprep.mubr.msk.bf16.mxu0 %vm1482_vm2, %v5564_v6  ;;  %v5569_v11 = vld [vmem:[%s6042_s6 + $0x110] sm:$0xff]   ;;  %s6958_s9 = smov (!%p1230_p8, %s4545_s9), 255 }
  0x62   : > { %5337 = vmatprep.mubr.msk.bf16.mxu1 %vm1482_vm2, %v5565_v7  ;;  %v5570_v12 = vld [vmem:[%s6042_s6 + $0x18] sm:$0xff]   ;;  %v5572_v14 = vld [vmem:[%s6042_s6 + $0x20] sm:$0xff]   ;;  %v5574_v16 = vld [vmem:[%s6042_s6 + $0x28] sm:$0xff]   ;;  %s4546_s10 = sshll.u32 %s6958_s9, 2 }
  0x63   : > { %5267 = vmatprep.subr.bf16.mxu0 %v1584_v5  ;;  %5335 = vmatprep.subr.bf16.mxu1 %v1584_v5  ;;  %v5571_v13 = vld [vmem:[%s6042_s6 + $0x118] sm:$0xff]   ;;  %v5573_v15 = vld [vmem:[%s6042_s6 + $0x120] sm:$0xff]   ;;  %v5575_v17 = vld [vmem:[%s6042_s6 + $0x128] sm:$0xff]   ;;  %s6577_s14 = scalar_lea.vmem %s6911_s3, %s4546_s10 }
  0x64   : > { %5268 = vmatpush3.bf16.msra.mxu0 %v1584_v5  ;;  %5336 = vmatpush3.bf16.msra.mxu1 %v1584_v5  ;;  %v5576_v18 = vld [vmem:[%s6042_s6 + $0x30] sm:$0xff]   ;;  %v5578_v20 = vld [vmem:[%s6042_s6 + $0x38] sm:$0xff]   ;;  %v5580_v22 = vld [vmem:[%s6042_s6 + $0x40] sm:$0xff]  }
  0x65   : > { %5401 = vmatprep.subr.bf16.mxu0 %v5562_v0  ;;  %5469 = vmatprep.subr.bf16.mxu1 %v5562_v0  ;;  %v5577_v19 = vld [vmem:[%s6042_s6 + $0x130] sm:$0xff]   ;;  %v5579_v21 = vld [vmem:[%s6042_s6 + $0x138] sm:$0xff]   ;;  %v5581_v23 = vld [vmem:[%s6042_s6 + $0x140] sm:$0xff]  }
  0x66   : > { %v5582_v24 = vld [vmem:[%s6042_s6 + $0x48] sm:$0xff]   ;;  %v5584_v26 = vld [vmem:[%s6042_s6 + $0x50] sm:$0xff]   ;;  %v5586_v28 = vld [vmem:[%s6042_s6 + $0x58] sm:$0xff]  }
  0x67   : > { %5270 = vmatmul.mubr.msk.bf16.vlgmr.msra.gmra.mrb[0].mxu0 %vm1482_vm2, %v5566_v8  ;;  %5338 = vmatmul.mubr.msk.bf16.vlgmr.msra.gmra.mrb[0].mxu1 %vm1482_vm2, %v5567_v9  ;;  %v5583_v25 = vld [vmem:[%s6042_s6 + $0x148] sm:$0xff]   ;;  %v5585_v27 = vld [vmem:[%s6042_s6 + $0x150] sm:$0xff]   ;;  %v5587_v29 = vld [vmem:[%s6042_s6 + $0x158] sm:$0xff]  }
  0x68   : > { %5402 = vmatpush3.bf16.msra.mxu0 %v5562_v0  ;;  %5470 = vmatpush3.bf16.msra.mxu1 %v5562_v0  ;;  %v5588_v30 = vld [vmem:[%s6042_s6 + $0x60] sm:$0xff]   ;;  %v5590_v32 = vld [vmem:[%s6042_s6 + $0x68] sm:$0xff]   ;;  %v5592_v34 = vld [vmem:[%s6042_s6 + $0x70] sm:$0xff]  }
  0x69   : > { %5273 = vmatprep.mubr.msk.bf16.mxu0 %vm1482_vm2, %v5568_v10  ;;  %5341 = vmatprep.mubr.msk.bf16.mxu1 %vm1482_vm2, %v5569_v11  ;;  %v5589_v31 = vld [vmem:[%s6042_s6 + $0x160] sm:$0xff]   ;;  %v5591_v33 = vld [vmem:[%s6042_s6 + $0x168] sm:$0xff]   ;;  %v5593_v35 = vld [vmem:[%s6042_s6 + $0x170] sm:$0xff]  }
  0x6a   : > { %5403 = vmatprep.subr.bf16.mxu0 %v1584_v5  ;;  %5471 = vmatprep.subr.bf16.mxu1 %v1584_v5  ;;  %v5594_v36 = vld [vmem:[%s6042_s6 + $0x78] sm:$0xff]   ;;  %v5596_v38 = vld [vmem:[%s6042_s6 + $0x80] sm:$0xff]   ;;  %v5598_v40 = vld [vmem:[%s6042_s6 + $0x88] sm:$0xff]  }
  0x6b   : > { %v5595_v37 = vld [vmem:[%s6042_s6 + $0x178] sm:$0xff]   ;;  %v5597_v39 = vld [vmem:[%s6042_s6 + $0x180] sm:$0xff]   ;;  %v5599_v41 = vld [vmem:[%s6042_s6 + $0x188] sm:$0xff]  }
  0x6c   : > { %5404 = vmatpush3.bf16.msra.mxu0 %v1584_v5  ;;  %5472 = vmatpush3.bf16.msra.mxu1 %v1584_v5  ;;  %v5600_v42 = vld [vmem:[%s6042_s6 + $0x90] sm:$0xff]   ;;  %v5602_v44 = vld [vmem:[%s6042_s6 + $0x98] sm:$0xff]   ;;  %v5604_v46 = vld [vmem:[%s6042_s6 + $0xa0] sm:$0xff]  }
  0x6d   : > { %v5601_v43 = vld [vmem:[%s6042_s6 + $0x190] sm:$0xff]   ;;  %v5603_v45 = vld [vmem:[%s6042_s6 + $0x198] sm:$0xff]   ;;  %v5605_v47 = vld [vmem:[%s6042_s6 + $0x1a0] sm:$0xff]  }
  0x6e   : > { %v5606_v48 = vld [vmem:[%s6042_s6 + $0xa8] sm:$0xff]   ;;  %v5608_v50 = vld [vmem:[%s6042_s6 + $0xb0] sm:$0xff]   ;;  %v5610_v52 = vld [vmem:[%s6042_s6 + $0xb8] sm:$0xff]  }
  0x6f   : > { %5274 = vmatmul.mubr.msk.bf16.gmra.mrb[4].mxu0 %vm1482_vm2, %v5570_v12  ;;  %5342 = vmatmul.mubr.msk.bf16.gmra.mrb[4].mxu1 %vm1482_vm2, %v5571_v13  ;;  %v5607_v49 = vld [vmem:[%s6042_s6 + $0x1a8] sm:$0xff]   ;;  %v5609_v51 = vld [vmem:[%s6042_s6 + $0x1b0] sm:$0xff]   ;;  %v5611_v53 = vld [vmem:[%s6042_s6 + $0x1b8] sm:$0xff]  }
  0x70   : > { %5277 = vmatprep.mubr.msk.bf16.mxu0 %vm1482_vm2, %v5572_v14  ;;  %5345 = vmatprep.mubr.msk.bf16.mxu1 %vm1482_vm2, %v5573_v15  ;;  %v5612_v54 = vld [vmem:[%s6042_s6 + $0xc0] sm:$0xff]   ;;  %v5614_v56 = vld [vmem:[%s6042_s6 + $0xc8] sm:$0xff]   ;;  %v5616_v58 = vld [vmem:[%s6042_s6 + $0xd0] sm:$0xff]  }
  0x71   : > { %v5613_v55 = vld [vmem:[%s6042_s6 + $0x1c0] sm:$0xff]   ;;  %v5615_v57 = vld [vmem:[%s6042_s6 + $0x1c8] sm:$0xff]   ;;  %v5617_v59 = vld [vmem:[%s6042_s6 + $0x1d0] sm:$0xff]  }
  0x72   : > { %v5618_v60 = vld [vmem:[%s6042_s6 + $0xd8] sm:$0xff]   ;;  %v5620_v62 = vld [vmem:[%s6042_s6 + $0xe0] sm:$0xff]   ;;  %v5622_v0 = vld [vmem:[%s6042_s6 + $0xe8] sm:$0xff]  }
  0x73   : > { %v5619_v61 = vld [vmem:[%s6042_s6 + $0x1d8] sm:$0xff]   ;;  %v5621_v63 = vld [vmem:[%s6042_s6 + $0x1e0] sm:$0xff]   ;;  %v5623_v1 = vld [vmem:[%s6042_s6 + $0x1e8] sm:$0xff]  }
  0x74   : > { %v5624_v2 = vld [vmem:[%s6042_s6 + $0xf0] sm:$0xff]   ;;  %v5626_v4 = vld [vmem:[%s6042_s6 + $0xf8] sm:$0xff]   ;;  %v5628_v6 = vld [vmem:[%s6042_s6 + $0x200] sm:$0xff]  }
  0x75   : > { %v5625_v3 = vld [vmem:[%s6042_s6 + $0x1f0] sm:$0xff]   ;;  %v5627_v5 = vld [vmem:[%s6042_s6 + $0x1f8] sm:$0xff]   ;;  %v5629_v7 = vld [vmem:[%s6042_s6 + $0x300] sm:$0xff]  }
  0x76   : > { %v5630_v8 = vld [vmem:[%s6042_s6 + $0x208] sm:$0xff]   ;;  %v5632_v10 = vld [vmem:[%s6042_s6 + $0x210] sm:$0xff]   ;;  %v5634_v12 = vld [vmem:[%s6042_s6 + $0x218] sm:$0xff]  }
  0x77   : > { %5278 = vmatmul.mubr.msk.bf16.gmra.mrb[8].mxu0 %vm1482_vm2, %v5574_v16  ;;  %5346 = vmatmul.mubr.msk.bf16.gmra.mrb[8].mxu1 %vm1482_vm2, %v5575_v17  ;;  %v5631_v9 = vld [vmem:[%s6042_s6 + $0x308] sm:$0xff]   ;;  %v5633_v11 = vld [vmem:[%s6042_s6 + $0x310] sm:$0xff]   ;;  %v5635_v13 = vld [vmem:[%s6042_s6 + $0x318] sm:$0xff]  }
  0x78   : > { %5281 = vmatprep.mubr.msk.bf16.mxu0 %vm1482_vm2, %v5576_v18  ;;  %5349 = vmatprep.mubr.msk.bf16.mxu1 %vm1482_vm2, %v5577_v19  ;;  %v5636_v14 = vld [vmem:[%s6042_s6 + $0x220] sm:$0xff]   ;;  %v5638_v16 = vld [vmem:[%s6042_s6 + $0x228] sm:$0xff]   ;;  %v5640_v18 = vld [vmem:[%s6042_s6 + $0x230] sm:$0xff]  }
  0x79   : > { %v5637_v15 = vld [vmem:[%s6042_s6 + $0x320] sm:$0xff]   ;;  %v5639_v17 = vld [vmem:[%s6042_s6 + $0x328] sm:$0xff]   ;;  %v5641_v19 = vld [vmem:[%s6042_s6 + $0x330] sm:$0xff]  }
  0x7f   : > { %5282 = vmatmul.mubr.msk.bf16.gmra.mrb[12].mxu0 %vm1482_vm2, %v5578_v20  ;;  %5350 = vmatmul.mubr.msk.bf16.gmra.mrb[12].mxu1 %vm1482_vm2, %v5579_v21  ;;  %v5642_v20 = vld [vmem:[%s6042_s6 + $0x238] sm:$0xff]  }
  0x80   : > { %5285 = vmatprep.mubr.msk.bf16.mxu0 %vm1482_vm2, %v5580_v22  ;;  %5353 = vmatprep.mubr.msk.bf16.mxu1 %vm1482_vm2, %v5581_v23  ;;  %v5643_v21 = vld [vmem:[%s6042_s6 + $0x338] sm:$0xff]   ;;  %v5644_v22 = vld [vmem:[%s6042_s6 + $0x240] sm:$0xff]  }
  0x81   : > { %v5645_v23 = vld [vmem:[%s6042_s6 + $0x340] sm:$0xff]  }
  0x87   : > { %5286 = vmatmul.mubr.msk.bf16.gmra.mrb[16].mxu0 %vm1482_vm2, %v5582_v24  ;;  %5354 = vmatmul.mubr.msk.bf16.gmra.mrb[16].mxu1 %vm1482_vm2, %v5583_v25  ;;  %v5646_v24 = vld [vmem:[%s6042_s6 + $0x248] sm:$0xff]  }
  0x88   : > { %5289 = vmatprep.mubr.msk.bf16.mxu0 %vm1482_vm2, %v5584_v26  ;;  %5357 = vmatprep.mubr.msk.bf16.mxu1 %vm1482_vm2, %v5585_v27  ;;  %v5647_v25 = vld [vmem:[%s6042_s6 + $0x348] sm:$0xff]   ;;  %v5648_v26 = vld [vmem:[%s6042_s6 + $0x250] sm:$0xff]  }
  0x89   : > { %v5649_v27 = vld [vmem:[%s6042_s6 + $0x350] sm:$0xff]  }
  0x8f   : > { %5290 = vmatmul.mubr.msk.bf16.gmra.mrb[20].mxu0 %vm1482_vm2, %v5586_v28  ;;  %5358 = vmatmul.mubr.msk.bf16.gmra.mrb[20].mxu1 %vm1482_vm2, %v5587_v29  ;;  %v5650_v28 = vld [vmem:[%s6042_s6 + $0x258] sm:$0xff]  }
  0x90   : > { %5293 = vmatprep.mubr.msk.bf16.mxu0 %vm1482_vm2, %v5588_v30  ;;  %5361 = vmatprep.mubr.msk.bf16.mxu1 %vm1482_vm2, %v5589_v31  ;;  %v5651_v29 = vld [vmem:[%s6042_s6 + $0x358] sm:$0xff]   ;;  %v5652_v30 = vld [vmem:[%s6042_s6 + $0x260] sm:$0xff]  }
  0x91   : > { %v5653_v31 = vld [vmem:[%s6042_s6 + $0x360] sm:$0xff]  }
  0x97   : > { %5294 = vmatmul.mubr.msk.bf16.gmra.mrb[24].mxu0 %vm1482_vm2, %v5590_v32  ;;  %5362 = vmatmul.mubr.msk.bf16.gmra.mrb[24].mxu1 %vm1482_vm2, %v5591_v33  ;;  %v5654_v32 = vld [vmem:[%s6042_s6 + $0x268] sm:$0xff]  }
  0x98   : > { %5297 = vmatprep.mubr.msk.bf16.mxu0 %vm1482_vm2, %v5592_v34  ;;  %5365 = vmatprep.mubr.msk.bf16.mxu1 %vm1482_vm2, %v5593_v35  ;;  %v5655_v33 = vld [vmem:[%s6042_s6 + $0x368] sm:$0xff]   ;;  %v5656_v34 = vld [vmem:[%s6042_s6 + $0x270] sm:$0xff]  }
  0x99   : > { %v5657_v35 = vld [vmem:[%s6042_s6 + $0x370] sm:$0xff]  }
  0x9f   : > { %5298 = vmatmul.mubr.msk.bf16.gmra.mrb[28].mxu0 %vm1482_vm2, %v5594_v36  ;;  %5366 = vmatmul.mubr.msk.bf16.gmra.mrb[28].mxu1 %vm1482_vm2, %v5595_v37  ;;  %v5658_v36 = vld [vmem:[%s6042_s6 + $0x278] sm:$0xff]  }
  0xa0   : > { %5301 = vmatprep.mubr.msk.bf16.mxu0 %vm1482_vm2, %v5596_v38  ;;  %5369 = vmatprep.mubr.msk.bf16.mxu1 %vm1482_vm2, %v5597_v39  ;;  %v5659_v37 = vld [vmem:[%s6042_s6 + $0x378] sm:$0xff]   ;;  %v5660_v38 = vld [vmem:[%s6042_s6 + $0x280] sm:$0xff]  }
  0xa1   : > { %v5661_v39 = vld [vmem:[%s6042_s6 + $0x380] sm:$0xff]  }
  0xa7   : > { %5302 = vmatmul.mubr.msk.bf16.gmra.mrb[32].mxu0 %vm1482_vm2, %v5598_v40  ;;  %5370 = vmatmul.mubr.msk.bf16.gmra.mrb[32].mxu1 %vm1482_vm2, %v5599_v41  ;;  %v5662_v40 = vld [vmem:[%s6042_s6 + $0x288] sm:$0xff]  }
  0xa8   : > { %5305 = vmatprep.mubr.msk.bf16.mxu0 %vm1482_vm2, %v5600_v42  ;;  %5373 = vmatprep.mubr.msk.bf16.mxu1 %vm1482_vm2, %v5601_v43  ;;  %v5663_v41 = vld [vmem:[%s6042_s6 + $0x388] sm:$0xff]   ;;  %v5664_v42 = vld [vmem:[%s6042_s6 + $0x290] sm:$0xff]  }
  0xa9   : > { %v5665_v43 = vld [vmem:[%s6042_s6 + $0x390] sm:$0xff]  }
  0xaf   : > { %5306 = vmatmul.mubr.msk.bf16.gmra.mrb[36].mxu0 %vm1482_vm2, %v5602_v44  ;;  %5374 = vmatmul.mubr.msk.bf16.gmra.mrb[36].mxu1 %vm1482_vm2, %v5603_v45  ;;  %v5666_v44 = vld [vmem:[%s6042_s6 + $0x298] sm:$0xff]  }
  0xb0   : > { %5309 = vmatprep.mubr.msk.bf16.mxu0 %vm1482_vm2, %v5604_v46  ;;  %5377 = vmatprep.mubr.msk.bf16.mxu1 %vm1482_vm2, %v5605_v47  ;;  %v5667_v45 = vld [vmem:[%s6042_s6 + $0x398] sm:$0xff]   ;;  %v5668_v46 = vld [vmem:[%s6042_s6 + $0x2a0] sm:$0xff]  }
  0xb1   : > { %v5669_v47 = vld [vmem:[%s6042_s6 + $0x3a0] sm:$0xff]  }
  0xb7   : > { %5310 = vmatmul.mubr.msk.bf16.gmra.mrb[40].mxu0 %vm1482_vm2, %v5606_v48  ;;  %5378 = vmatmul.mubr.msk.bf16.gmra.mrb[40].mxu1 %vm1482_vm2, %v5607_v49  ;;  %v5670_v48 = vld [vmem:[%s6042_s6 + $0x2a8] sm:$0xff]  }
  0xb8   : > { %5313 = vmatprep.mubr.msk.bf16.mxu0 %vm1482_vm2, %v5608_v50  ;;  %5381 = vmatprep.mubr.msk.bf16.mxu1 %vm1482_vm2, %v5609_v51  ;;  %v5671_v49 = vld [vmem:[%s6042_s6 + $0x3a8] sm:$0xff]   ;;  %v5672_v50 = vld [vmem:[%s6042_s6 + $0x2b0] sm:$0xff]  }
  0xb9   : > { %v5673_v51 = vld [vmem:[%s6042_s6 + $0x3b0] sm:$0xff]  }
  0xbf   : > { %5314 = vmatmul.mubr.msk.bf16.gmra.mrb[44].mxu0 %vm1482_vm2, %v5610_v52  ;;  %5382 = vmatmul.mubr.msk.bf16.gmra.mrb[44].mxu1 %vm1482_vm2, %v5611_v53  ;;  %v6265_v52 = vld [vmem:[%s6910_s2] ss:$0 sm:$0xff] }
  0xc0   : > { %5317 = vmatprep.mubr.msk.bf16.mxu0 %vm1482_vm2, %v5612_v54  ;;  %5385 = vmatprep.mubr.msk.bf16.mxu1 %vm1482_vm2, %v5613_v55 }
  0xc7   : > { %5318 = vmatmul.mubr.msk.bf16.gmra.mrb[48].mxu0 %vm1482_vm2, %v5614_v56  ;;  %5386 = vmatmul.mubr.msk.bf16.gmra.mrb[48].mxu1 %vm1482_vm2, %v5615_v57 }
  0xc8   : > { %5321 = vmatprep.mubr.msk.bf16.mxu0 %vm1482_vm2, %v5616_v58  ;;  %5389 = vmatprep.mubr.msk.bf16.mxu1 %vm1482_vm2, %v5617_v59  ;;  %v5674_v59 = vld [vmem:[%s6042_s6 + $0x2b8] sm:$0xff]  }
  0xcf   : > { %5322 = vmatmul.mubr.msk.bf16.gmra.mrb[52].mxu0 %vm1482_vm2, %v5618_v60  ;;  %5390 = vmatmul.mubr.msk.bf16.gmra.mrb[52].mxu1 %vm1482_vm2, %v5619_v61  ;;  %v5675_v60 = vld [vmem:[%s6042_s6 + $0x3b8] sm:$0xff]  }
  0xd0   : > { %5325 = vmatprep.mubr.msk.bf16.mxu0 %vm1482_vm2, %v5620_v62  ;;  %5393 = vmatprep.mubr.msk.bf16.mxu1 %vm1482_vm2, %v5621_v63 }
  0xd7   : > { %5326 = vmatmul.mubr.msk.bf16.gmra.mrb[56].mxu0 %vm1482_vm2, %v5622_v0  ;;  %5394 = vmatmul.mubr.msk.bf16.gmra.mrb[56].mxu1 %vm1482_vm2, %v5623_v1  ;;  %v5676_v1 = vld [vmem:[%s6042_s6 + $0x2c0] sm:$0xff]  }
  0xd8   : > { %5329 = vmatprep.mubr.msk.bf16.mxu0 %vm1482_vm2, %v5624_v2  ;;  %5397 = vmatprep.mubr.msk.bf16.mxu1 %vm1482_vm2, %v5625_v3  ;;  %v5677_v2 = vld [vmem:[%s6042_s6 + $0x3c0] sm:$0xff]  }
  0xdf   : > { %5330 = vmatmul.mubr.msk.bf16.gmra.mrb[60].mxu0 %vm1482_vm2, %v5626_v4  ;;  %5398 = vmatmul.mubr.msk.bf16.gmra.mrb[60].mxu1 %vm1482_vm2, %v5627_v5 }
  0xe0   : > { %5405 = vmatprep.mubr.msk.bf16.mxu0 %vm1482_vm2, %v5628_v6  ;;  %5473 = vmatprep.mubr.msk.bf16.mxu1 %vm1482_vm2, %v5629_v7 }
  0xe7   : > { %5406 = vmatmul.mubr.msk.bf16.vlgmr.msra.gmra.mrb[64].mxu0 %vm1482_vm2, %v5630_v8  ;;  %5474 = vmatmul.mubr.msk.bf16.vlgmr.msra.gmra.mrb[64].mxu1 %vm1482_vm2, %v5631_v9 }
  0xe8   : > { %5409 = vmatprep.mubr.msk.bf16.mxu0 %vm1482_vm2, %v5632_v10  ;;  %5477 = vmatprep.mubr.msk.bf16.mxu1 %vm1482_vm2, %v5633_v11 }
  0xef   : > { %5410 = vmatmul.mubr.msk.bf16.gmra.mrb[68].mxu0 %vm1482_vm2, %v5634_v12  ;;  %5478 = vmatmul.mubr.msk.bf16.gmra.mrb[68].mxu1 %vm1482_vm2, %v5635_v13 }
  0xf0   : > { %5413 = vmatprep.mubr.msk.bf16.mxu0 %vm1482_vm2, %v5636_v14  ;;  %5481 = vmatprep.mubr.msk.bf16.mxu1 %vm1482_vm2, %v5637_v15 }
  0xf7   : > { %5414 = vmatmul.mubr.msk.bf16.gmra.mrb[72].mxu0 %vm1482_vm2, %v5638_v16  ;;  %5482 = vmatmul.mubr.msk.bf16.gmra.mrb[72].mxu1 %vm1482_vm2, %v5639_v17 }
  0xf8   : > { %5417 = vmatprep.mubr.msk.bf16.mxu0 %vm1482_vm2, %v5640_v18  ;;  %5485 = vmatprep.mubr.msk.bf16.mxu1 %vm1482_vm2, %v5641_v19 }
  0xff   : > { %5418 = vmatmul.mubr.msk.bf16.gmra.mrb[76].mxu0 %vm1482_vm2, %v5642_v20  ;;  %5486 = vmatmul.mubr.msk.bf16.gmra.mrb[76].mxu1 %vm1482_vm2, %v5643_v21 }
 0x100   : > { %5421 = vmatprep.mubr.msk.bf16.mxu0 %vm1482_vm2, %v5644_v22  ;;  %5489 = vmatprep.mubr.msk.bf16.mxu1 %vm1482_vm2, %v5645_v23 }
 0x107   : > { %5422 = vmatmul.mubr.msk.bf16.gmra.mrb[80].mxu0 %vm1482_vm2, %v5646_v24  ;;  %5490 = vmatmul.mubr.msk.bf16.gmra.mrb[80].mxu1 %vm1482_vm2, %v5647_v25 }
 0x108   : > { %5425 = vmatprep.mubr.msk.bf16.mxu0 %vm1482_vm2, %v5648_v26  ;;  %5493 = vmatprep.mubr.msk.bf16.mxu1 %vm1482_vm2, %v5649_v27  ;;  %v5678_v27 = vld [vmem:[%s6042_s6 + $0x2c8] sm:$0xff]  }
 0x10f   : > { %5426 = vmatmul.mubr.msk.bf16.gmra.mrb[84].mxu0 %vm1482_vm2, %v5650_v28  ;;  %5494 = vmatmul.mubr.msk.bf16.gmra.mrb[84].mxu1 %vm1482_vm2, %v5651_v29  ;;  %v5679_v28 = vld [vmem:[%s6042_s6 + $0x3c8] sm:$0xff]  }
 0x110   : > { %5429 = vmatprep.mubr.msk.bf16.mxu0 %vm1482_vm2, %v5652_v30  ;;  %5497 = vmatprep.mubr.msk.bf16.mxu1 %vm1482_vm2, %v5653_v31 }
 0x117   : > { %5430 = vmatmul.mubr.msk.bf16.gmra.mrb[88].mxu0 %vm1482_vm2, %v5654_v32  ;;  %5498 = vmatmul.mubr.msk.bf16.gmra.mrb[88].mxu1 %vm1482_vm2, %v5655_v33  ;;  %v5680_v33 = vld [vmem:[%s6042_s6 + $0x2d0] sm:$0xff]  }
 0x118   : > { %5433 = vmatprep.mubr.msk.bf16.mxu0 %vm1482_vm2, %v5656_v34  ;;  %5501 = vmatprep.mubr.msk.bf16.mxu1 %vm1482_vm2, %v5657_v35  ;;  %v5681_v34 = vld [vmem:[%s6042_s6 + $0x3d0] sm:$0xff]  }
 0x11f   : > { %5434 = vmatmul.mubr.msk.bf16.gmra.mrb[92].mxu0 %vm1482_vm2, %v5658_v36  ;;  %5502 = vmatmul.mubr.msk.bf16.gmra.mrb[92].mxu1 %vm1482_vm2, %v5659_v37 }
 0x120   : > { %5437 = vmatprep.mubr.msk.bf16.mxu0 %vm1482_vm2, %v5660_v38  ;;  %5505 = vmatprep.mubr.msk.bf16.mxu1 %vm1482_vm2, %v5661_v39 }
 0x127   : > { %5438 = vmatmul.mubr.msk.bf16.gmra.mrb[96].mxu0 %vm1482_vm2, %v5662_v40  ;;  %5506 = vmatmul.mubr.msk.bf16.gmra.mrb[96].mxu1 %vm1482_vm2, %v5663_v41 }
 0x128   : > { %5441 = vmatprep.mubr.msk.bf16.mxu0 %vm1482_vm2, %v5664_v42  ;;  %5509 = vmatprep.mubr.msk.bf16.mxu1 %vm1482_vm2, %v5665_v43 }
 0x12f   : > { %5442 = vmatmul.mubr.msk.bf16.gmra.mrb[100].mxu0 %vm1482_vm2, %v5666_v44  ;;  %5510 = vmatmul.mubr.msk.bf16.gmra.mrb[100].mxu1 %vm1482_vm2, %v5667_v45 }
 0x130   : > { %5445 = vmatprep.mubr.msk.bf16.mxu0 %vm1482_vm2, %v5668_v46  ;;  %5513 = vmatprep.mubr.msk.bf16.mxu1 %vm1482_vm2, %v5669_v47 }
 0x137   : > { %5446 = vmatmul.mubr.msk.bf16.gmra.mrb[104].mxu0 %vm1482_vm2, %v5670_v48  ;;  %5514 = vmatmul.mubr.msk.bf16.gmra.mrb[104].mxu1 %vm1482_vm2, %v5671_v49 }
 0x138   : > { %5449 = vmatprep.mubr.msk.bf16.mxu0 %vm1482_vm2, %v5672_v50  ;;  %5517 = vmatprep.mubr.msk.bf16.mxu1 %vm1482_vm2, %v5673_v51 }
 0x13a   : > { %v5271_v53 = vpop.f32.mrb[0].mxu0  ;;  %v5339_v54 = vpop.f32.mrb[0].mxu1 }
 0x13b   : > { %v1629_v55 = vadd.f32 %v5271_v53, %v6265_v52  ;;  %v2303_v56 = vadd.f32 %v5339_v54, %v6265_v52  ;;  %v1620_v57 = vpop.f32.mrb[1].mxu0  ;;  %v2294_v58 = vpop.f32.mrb[1].mxu1 }
 0x13c   : > { %v1621_v61 = vadd.f32 %v6265_v52, %v1620_v57  ;;  %v2295_v62 = vadd.f32 %v6265_v52, %v2294_v58  ;;  %v5272_v63 = vpop.f32.mrb[2].mxu0  ;;  %v5340_v0 = vpop.f32.mrb[2].mxu1 }
 0x13d   : > { %v1877_v3 = vmax.f32 %v1629_v55, 0.0  ;;  %v2551_v4 = vmax.f32 %v2303_v56, 0.0  ;;  %v1632_v5 = vadd.f32 %v5272_v63, %v6265_v52  ;;  %v2306_v6 = vadd.f32 %v5340_v0, %v6265_v52  ;;  %v1623_v7 = vpop.f32.mrb[3].mxu0  ;;  %v2297_v8 = vpop.f32.mrb[3].mxu1 }
 0x13e   : > { %v1875_v9 = vmax.f32 %v1621_v61, 0.0  ;;  %v2549_v10 = vmax.f32 %v2295_v62, 0.0  ;;  %v1624_v11 = vadd.f32 %v6265_v52, %v1623_v7  ;;  %v2298_v12 = vadd.f32 %v6265_v52, %v2297_v8  ;;  %v5683_v61 = vld [vmem:[%s6042_s6 + $0x3d8] sm:$0xff]  }
 0x13f   : > { %v6281_v13 = vmax.f32 %v1877_v3, %v2551_v4  ;;  %v1878_v14 = vmax.f32 %v1632_v5, 0.0  ;;  %v2552_v15 = vmax.f32 %v2306_v6, 0.0  ;;  %5450 = vmatmul.mubr.msk.bf16.gmra.mrb[108].mxu0 %vm1482_vm2, %v5674_v59  ;;  %5518 = vmatmul.mubr.msk.bf16.gmra.mrb[108].mxu1 %vm1482_vm2, %v5675_v60  ;;  %v5682_v60 = vld [vmem:[%s6042_s6 + $0x2d8] sm:$0xff]   ;;  %v5685_v3 = vld [vmem:[%s6042_s6 + $0x3e0] sm:$0xff]  }
 0x140   : > { %v6285_v16 = vmax.f32 %v1875_v9, %v2549_v10  ;;  %v1876_v17 = vmax.f32 %v1624_v11, 0.0  ;;  %v2550_v18 = vmax.f32 %v2298_v12, 0.0  ;;  %5453 = vmatprep.mubr.msk.bf16.mxu0 %vm1482_vm2, %v5676_v1  ;;  %5521 = vmatprep.mubr.msk.bf16.mxu1 %vm1482_vm2, %v5677_v2  ;;  %v5684_v2 = vld [vmem:[%s6042_s6 + $0x2e0] sm:$0xff]  }
 0x141   : > { %v6289_v19 = vmax.f32 %v1878_v14, %v2552_v15 }
 0x142   : > { %v6291_v20 = vmax.f32 %v1876_v17, %v2550_v18  ;;  %v5275_v21 = vpop.f32.mrb[4].mxu0  ;;  %v5343_v22 = vpop.f32.mrb[4].mxu1 }
 0x143   : > { %v1645_v23 = vadd.f32 %v5275_v21, %v6265_v52  ;;  %v2319_v24 = vadd.f32 %v5343_v22, %v6265_v52  ;;  %v1636_v25 = vpop.f32.mrb[5].mxu0  ;;  %v2310_v26 = vpop.f32.mrb[5].mxu1 }
 0x144   : > { %v1637_v29 = vadd.f32 %v6265_v52, %v1636_v25  ;;  %v2311_v30 = vadd.f32 %v6265_v52, %v2310_v26  ;;  %v5276_v31 = vpop.f32.mrb[6].mxu0  ;;  %v5344_v32 = vpop.f32.mrb[6].mxu1 }
 0x145   : > { %v1881_v35 = vmax.f32 %v1645_v23, 0.0  ;;  %v2555_v36 = vmax.f32 %v2319_v24, 0.0  ;;  %v1648_v37 = vadd.f32 %v5276_v31, %v6265_v52  ;;  %v2322_v38 = vadd.f32 %v5344_v32, %v6265_v52  ;;  %v1639_v39 = vpop.f32.mrb[7].mxu0  ;;  %v2313_v40 = vpop.f32.mrb[7].mxu1  ;;  %v5686_v32 = vld [vmem:[%s6042_s6 + $0x2e8] sm:$0xff]  }
 0x146   : > { %v1879_v41 = vmax.f32 %v1637_v29, 0.0  ;;  %v2553_v42 = vmax.f32 %v2311_v30, 0.0  ;;  %v1640_v43 = vadd.f32 %v6265_v52, %v1639_v39  ;;  %v2314_v44 = vadd.f32 %v6265_v52, %v2313_v40  ;;  %v5689_v39 = vld [vmem:[%s6042_s6 + $0x3f0] sm:$0xff]  }
 0x147   : > { %v6305_v45 = vmax.f32 %v1881_v35, %v2555_v36  ;;  %v1882_v46 = vmax.f32 %v1648_v37, 0.0  ;;  %v2556_v47 = vmax.f32 %v2322_v38, 0.0  ;;  %5454 = vmatmul.mubr.msk.bf16.gmra.mrb[112].mxu0 %vm1482_vm2, %v5678_v27  ;;  %5522 = vmatmul.mubr.msk.bf16.gmra.mrb[112].mxu1 %vm1482_vm2, %v5679_v28  ;;  %v5688_v38 = vld [vmem:[%s6042_s6 + $0x2f0] sm:$0xff]  }
 0x148   : > { %v6309_v48 = vmax.f32 %v1879_v41, %v2553_v42  ;;  %v1880_v49 = vmax.f32 %v1640_v43, 0.0  ;;  %v2554_v50 = vmax.f32 %v2314_v44, 0.0  ;;  %5457 = vmatprep.mubr.msk.bf16.mxu0 %vm1482_vm2, %v5680_v33  ;;  %5525 = vmatprep.mubr.msk.bf16.mxu1 %vm1482_vm2, %v5681_v34  ;;  %v5687_v33 = vld [vmem:[%s6042_s6 + $0x3e8] sm:$0xff]  }
 0x149   : > { %v6313_v51 = vmax.f32 %v1882_v46, %v2556_v47 }
 0x14a   : > { %v6315_v53 = vmax.f32 %v1880_v49, %v2554_v50  ;;  %v5279_v54 = vpop.f32.mrb[8].mxu0  ;;  %v5347_v55 = vpop.f32.mrb[8].mxu1 }
 0x14b   : > { %v1661_v56 = vadd.f32 %v5279_v54, %v6265_v52  ;;  %v2335_v57 = vadd.f32 %v5347_v55, %v6265_v52  ;;  %v1652_v58 = vpop.f32.mrb[9].mxu0  ;;  %v2326_v59 = vpop.f32.mrb[9].mxu1 }
 0x14c   : > { %v1653_v62 = vadd.f32 %v6265_v52, %v1652_v58  ;;  %v2327_v63 = vadd.f32 %v6265_v52, %v2326_v59  ;;  %v5280_v0 = vpop.f32.mrb[10].mxu0  ;;  %v5348_v1 = vpop.f32.mrb[10].mxu1 }
 0x14d   : > { %v1885_v4 = vmax.f32 %v1661_v56, 0.0  ;;  %v2559_v5 = vmax.f32 %v2335_v57, 0.0  ;;  %v1664_v6 = vadd.f32 %v5280_v0, %v6265_v52  ;;  %v2338_v7 = vadd.f32 %v5348_v1, %v6265_v52  ;;  %v1655_v8 = vpop.f32.mrb[11].mxu0  ;;  %v2329_v9 = vpop.f32.mrb[11].mxu1 }
 0x14e   : > { %v1883_v10 = vmax.f32 %v1653_v62, 0.0  ;;  %v2557_v11 = vmax.f32 %v2327_v63, 0.0  ;;  %v1656_v12 = vadd.f32 %v6265_v52, %v1655_v8  ;;  %v2330_v14 = vadd.f32 %v6265_v52, %v2329_v9 }
 0x14f   : > { %v6329_v15 = vmax.f32 %v1885_v4, %v2559_v5  ;;  %v1886_v17 = vmax.f32 %v1664_v6, 0.0  ;;  %v2560_v18 = vmax.f32 %v2338_v7, 0.0  ;;  %5458 = vmatmul.mubr.msk.bf16.gmra.mrb[116].mxu0 %vm1482_vm2, %v5682_v60  ;;  %5526 = vmatmul.mubr.msk.bf16.gmra.mrb[116].mxu1 %vm1482_vm2, %v5683_v61  ;;  %v5690_v5 = vld [vmem:[%s6042_s6 + $0x2f8] sm:$0xff]  }
 0x150   : > { %v6333_v21 = vmax.f32 %v1883_v10, %v2557_v11  ;;  %v1884_v22 = vmax.f32 %v1656_v12, 0.0  ;;  %v2558_v23 = vmax.f32 %v2330_v14, 0.0  ;;  %5461 = vmatprep.mubr.msk.bf16.mxu0 %vm1482_vm2, %v5684_v2  ;;  %5529 = vmatprep.mubr.msk.bf16.mxu1 %vm1482_vm2, %v5685_v3  ;;  %v5691_v6 = vld [vmem:[%s6042_s6 + $0x3f8] sm:$0xff]  }
 0x151   : > { %v6337_v24 = vmax.f32 %v1886_v17, %v2560_v18 }
 0x152   : > { %v6339_v25 = vmax.f32 %v1884_v22, %v2558_v23  ;;  %v5283_v26 = vpop.f32.mrb[12].mxu0  ;;  %v5351_v27 = vpop.f32.mrb[12].mxu1 }
 0x153   : > { %v1677_v28 = vadd.f32 %v5283_v26, %v6265_v52  ;;  %v2351_v29 = vadd.f32 %v5351_v27, %v6265_v52  ;;  %v1668_v30 = vpop.f32.mrb[13].mxu0  ;;  %v2342_v31 = vpop.f32.mrb[13].mxu1 }
 0x154   : > { %v1669_v34 = vadd.f32 %v6265_v52, %v1668_v30  ;;  %v2343_v35 = vadd.f32 %v6265_v52, %v2342_v31  ;;  %v5284_v36 = vpop.f32.mrb[14].mxu0  ;;  %v5352_v37 = vpop.f32.mrb[14].mxu1 }
 0x155   : > { %v1889_v40 = vmax.f32 %v1677_v28, 0.0  ;;  %v2563_v41 = vmax.f32 %v2351_v29, 0.0  ;;  %v1680_v42 = vadd.f32 %v5284_v36, %v6265_v52  ;;  %v2354_v43 = vadd.f32 %v5352_v37, %v6265_v52  ;;  %v1671_v44 = vpop.f32.mrb[15].mxu0  ;;  %v2345_v46 = vpop.f32.mrb[15].mxu1 }
 0x156   : > { %v1887_v47 = vmax.f32 %v1669_v34, 0.0  ;;  %v2561_v49 = vmax.f32 %v2343_v35, 0.0  ;;  %v1672_v50 = vadd.f32 %v6265_v52, %v1671_v44  ;;  %v2346_v54 = vadd.f32 %v6265_v52, %v2345_v46 }
 0x157   : > { %v6353_v55 = vmax.f32 %v1889_v40, %v2563_v41  ;;  %v1890_v56 = vmax.f32 %v1680_v42, 0.0  ;;  %v2564_v57 = vmax.f32 %v2354_v43, 0.0  ;;  %5462 = vmatmul.mubr.msk.bf16.gmra.mrb[120].mxu0 %vm1482_vm2, %v5686_v32  ;;  %5530 = vmatmul.mubr.msk.bf16.gmra.mrb[120].mxu1 %vm1482_vm2, %v5687_v33 }
 0x158   : > { %v6357_v58 = vmax.f32 %v1887_v47, %v2561_v49  ;;  %v1888_v59 = vmax.f32 %v1672_v50, 0.0  ;;  %v2562_v60 = vmax.f32 %v2346_v54, 0.0  ;;  %5465 = vmatprep.mubr.msk.bf16.mxu0 %vm1482_vm2, %v5688_v38  ;;  %5533 = vmatprep.mubr.msk.bf16.mxu1 %vm1482_vm2, %v5689_v39 }
 0x159   : > { %v6361_v61 = vmax.f32 %v1890_v56, %v2564_v57 }
 0x15a   : > { %v6363_v62 = vmax.f32 %v1888_v59, %v2562_v60  ;;  %v5287_v63 = vpop.f32.mrb[16].mxu0  ;;  %v5355_v0 = vpop.f32.mrb[16].mxu1 }
 0x15b   : > { %v1693_v1 = vadd.f32 %v5287_v63, %v6265_v52  ;;  %v2367_v2 = vadd.f32 %v5355_v0, %v6265_v52  ;;  %v1684_v3 = vpop.f32.mrb[17].mxu0  ;;  %v2358_v4 = vpop.f32.mrb[17].mxu1 }
 0x15c   : > { %v1685_v7 = vadd.f32 %v6265_v52, %v1684_v3  ;;  %v2359_v8 = vadd.f32 %v6265_v52, %v2358_v4  ;;  %v5288_v9 = vpop.f32.mrb[18].mxu0  ;;  %v5356_v10 = vpop.f32.mrb[18].mxu1 }
 0x15d   : > { %v1893_v11 = vmax.f32 %v1693_v1, 0.0  ;;  %v2567_v12 = vmax.f32 %v2367_v2, 0.0  ;;  %v1696_v14 = vadd.f32 %v5288_v9, %v6265_v52  ;;  %v2370_v17 = vadd.f32 %v5356_v10, %v6265_v52  ;;  %v1687_v18 = vpop.f32.mrb[19].mxu0  ;;  %v2361_v22 = vpop.f32.mrb[19].mxu1 }
 0x15e   : > { %v1891_v23 = vmax.f32 %v1685_v7, 0.0  ;;  %v2565_v26 = vmax.f32 %v2359_v8, 0.0  ;;  %v1688_v27 = vadd.f32 %v6265_v52, %v1687_v18  ;;  %v2362_v28 = vadd.f32 %v6265_v52, %v2361_v22 }
 0x15f   : > { %v6375_v29 = vmax.f32 %v1893_v11, %v2567_v12  ;;  %v1894_v30 = vmax.f32 %v1696_v14, 0.0  ;;  %v2568_v31 = vmax.f32 %v2370_v17, 0.0  ;;  %5466 = vmatmul.mubr.msk.bf16.gmra.mrb[124].mxu0 %vm1482_vm2, %v5690_v5  ;;  %5534 = vmatmul.mubr.msk.bf16.gmra.mrb[124].mxu1 %vm1482_vm2, %v5691_v6 }
 0x160   : > { %v6379_v32 = vmax.f32 %v1891_v23, %v2565_v26  ;;  %v1892_v33 = vmax.f32 %v1688_v27, 0.0  ;;  %v2566_v34 = vmax.f32 %v2362_v28, 0.0 }
 0x161   : > { %v6381_v35 = vmax.f32 %v1894_v30, %v2568_v31 }
 0x162   : > { %v6383_v36 = vmax.f32 %v1892_v33, %v2566_v34  ;;  %v5291_v37 = vpop.f32.mrb[20].mxu0  ;;  %v5359_v38 = vpop.f32.mrb[20].mxu1 }
 0x163   : > { %v1709_v39 = vadd.f32 %v5291_v37, %v6265_v52  ;;  %v2383_v40 = vadd.f32 %v5359_v38, %v6265_v52  ;;  %v1700_v41 = vpop.f32.mrb[21].mxu0  ;;  %v2374_v42 = vpop.f32.mrb[21].mxu1 }
 0x164   : > { %v1701_v43 = vadd.f32 %v6265_v52, %v1700_v41  ;;  %v2375_v44 = vadd.f32 %v6265_v52, %v2374_v42  ;;  %v5292_v46 = vpop.f32.mrb[22].mxu0  ;;  %v5360_v47 = vpop.f32.mrb[22].mxu1 }
 0x165   : > { %v1897_v49 = vmax.f32 %v1709_v39, 0.0  ;;  %v2571_v50 = vmax.f32 %v2383_v40, 0.0  ;;  %v1712_v54 = vadd.f32 %v5292_v46, %v6265_v52  ;;  %v2386_v56 = vadd.f32 %v5360_v47, %v6265_v52  ;;  %v1703_v57 = vpop.f32.mrb[23].mxu0  ;;  %v2377_v59 = vpop.f32.mrb[23].mxu1 }
 0x166   : > { %v1895_v60 = vmax.f32 %v1701_v43, 0.0  ;;  %v2569_v63 = vmax.f32 %v2375_v44, 0.0  ;;  %v1704_v0 = vadd.f32 %v6265_v52, %v1703_v57  ;;  %v2378_v1 = vadd.f32 %v6265_v52, %v2377_v59 }
 0x167   : > { %v6393_v2 = vmax.f32 %v1897_v49, %v2571_v50  ;;  %v1898_v3 = vmax.f32 %v1712_v54, 0.0  ;;  %v2572_v4 = vmax.f32 %v2386_v56, 0.0 }
 0x168   : > { %v6395_v5 = vmax.f32 %v1895_v60, %v2569_v63  ;;  %v1896_v6 = vmax.f32 %v1704_v0, 0.0  ;;  %v2570_v7 = vmax.f32 %v2378_v1, 0.0 }
 0x169   : > { %v6397_v8 = vmax.f32 %v1898_v3, %v2572_v4 }
 0x16a   : > { %v6399_v9 = vmax.f32 %v1896_v6, %v2570_v7  ;;  %v5295_v10 = vpop.f32.mrb[24].mxu0  ;;  %v5363_v11 = vpop.f32.mrb[24].mxu1 }
 0x16b   : > { %v1725_v12 = vadd.f32 %v5295_v10, %v6265_v52  ;;  %v2399_v14 = vadd.f32 %v5363_v11, %v6265_v52  ;;  %v1716_v17 = vpop.f32.mrb[25].mxu0  ;;  %v2390_v18 = vpop.f32.mrb[25].mxu1 }
 0x16c   : > { %v1717_v22 = vadd.f32 %v6265_v52, %v1716_v17  ;;  %v2391_v23 = vadd.f32 %v6265_v52, %v2390_v18  ;;  %v5296_v26 = vpop.f32.mrb[26].mxu0  ;;  %v5364_v27 = vpop.f32.mrb[26].mxu1 }
 0x16d   : > { %v1901_v28 = vmax.f32 %v1725_v12, 0.0  ;;  %v2575_v30 = vmax.f32 %v2399_v14, 0.0  ;;  %v1728_v31 = vadd.f32 %v5296_v26, %v6265_v52  ;;  %v2402_v33 = vadd.f32 %v5364_v27, %v6265_v52  ;;  %v1719_v34 = vpop.f32.mrb[27].mxu0  ;;  %v2393_v37 = vpop.f32.mrb[27].mxu1 }
 0x16e   : > { %v1899_v38 = vmax.f32 %v1717_v22, 0.0  ;;  %v2573_v39 = vmax.f32 %v2391_v23, 0.0  ;;  %v1720_v40 = vadd.f32 %v6265_v52, %v1719_v34  ;;  %v2394_v41 = vadd.f32 %v6265_v52, %v2393_v37 }
 0x16f   : > { %v6409_v42 = vmax.f32 %v1901_v28, %v2575_v30  ;;  %v1902_v43 = vmax.f32 %v1728_v31, 0.0  ;;  %v2576_v44 = vmax.f32 %v2402_v33, 0.0 }
 0x170   : > { %v6411_v46 = vmax.f32 %v1899_v38, %v2573_v39  ;;  %v1900_v47 = vmax.f32 %v1720_v40, 0.0  ;;  %v2574_v49 = vmax.f32 %v2394_v41, 0.0 }
 0x171   : > { %v6413_v50 = vmax.f32 %v1902_v43, %v2576_v44 }
 0x172   : > { %v6415_v54 = vmax.f32 %v1900_v47, %v2574_v49  ;;  %v5299_v56 = vpop.f32.mrb[28].mxu0  ;;  %v5367_v57 = vpop.f32.mrb[28].mxu1 }
 0x173   : > { %v1741_v59 = vadd.f32 %v5299_v56, %v6265_v52  ;;  %v2415_v60 = vadd.f32 %v5367_v57, %v6265_v52  ;;  %v1732_v63 = vpop.f32.mrb[29].mxu0  ;;  %v2406_v0 = vpop.f32.mrb[29].mxu1 }
 0x174   : > { %v1733_v1 = vadd.f32 %v6265_v52, %v1732_v63  ;;  %v2407_v3 = vadd.f32 %v6265_v52, %v2406_v0  ;;  %v5300_v4 = vpop.f32.mrb[30].mxu0  ;;  %v5368_v6 = vpop.f32.mrb[30].mxu1 }
 0x175   : > { %v1905_v7 = vmax.f32 %v1741_v59, 0.0  ;;  %v2579_v10 = vmax.f32 %v2415_v60, 0.0  ;;  %v1744_v11 = vadd.f32 %v5300_v4, %v6265_v52  ;;  %v2418_v12 = vadd.f32 %v5368_v6, %v6265_v52  ;;  %v1735_v14 = vpop.f32.mrb[31].mxu0  ;;  %v2409_v17 = vpop.f32.mrb[31].mxu1 }
 0x176   : > { %v1903_v18 = vmax.f32 %v1733_v1, 0.0  ;;  %v2577_v22 = vmax.f32 %v2407_v3, 0.0  ;;  %v1736_v23 = vadd.f32 %v6265_v52, %v1735_v14  ;;  %v2410_v26 = vadd.f32 %v6265_v52, %v2409_v17 }
 0x177   : > { %v6425_v27 = vmax.f32 %v1905_v7, %v2579_v10  ;;  %v1906_v28 = vmax.f32 %v1744_v11, 0.0  ;;  %v2580_v30 = vmax.f32 %v2418_v12, 0.0 }
 0x178   : > { %v6427_v31 = vmax.f32 %v1903_v18, %v2577_v22  ;;  %v1904_v33 = vmax.f32 %v1736_v23, 0.0  ;;  %v2578_v34 = vmax.f32 %v2410_v26, 0.0 }
 0x179   : > { %v6429_v37 = vmax.f32 %v1906_v28, %v2580_v30 }
 0x17a   : > { %v6431_v38 = vmax.f32 %v1904_v33, %v2578_v34  ;;  %v5303_v39 = vpop.f32.mrb[32].mxu0  ;;  %v5371_v40 = vpop.f32.mrb[32].mxu1 }
 0x17b   : > { %v1757_v41 = vadd.f32 %v5303_v39, %v6265_v52  ;;  %v2431_v43 = vadd.f32 %v5371_v40, %v6265_v52  ;;  %v1748_v44 = vpop.f32.mrb[33].mxu0  ;;  %v2422_v47 = vpop.f32.mrb[33].mxu1 }
 0x17c   : > { %v1749_v49 = vadd.f32 %v6265_v52, %v1748_v44  ;;  %v2423_v56 = vadd.f32 %v6265_v52, %v2422_v47  ;;  %v5304_v57 = vpop.f32.mrb[34].mxu0  ;;  %v5372_v59 = vpop.f32.mrb[34].mxu1 }
 0x17d   : > { %v1909_v60 = vmax.f32 %v1757_v41, 0.0  ;;  %v2583_v63 = vmax.f32 %v2431_v43, 0.0  ;;  %v1760_v0 = vadd.f32 %v5304_v57, %v6265_v52  ;;  %v2434_v1 = vadd.f32 %v5372_v59, %v6265_v52  ;;  %v1751_v3 = vpop.f32.mrb[35].mxu0  ;;  %v2425_v4 = vpop.f32.mrb[35].mxu1 }
 0x17e   : > { %v1907_v6 = vmax.f32 %v1749_v49, 0.0  ;;  %v2581_v7 = vmax.f32 %v2423_v56, 0.0  ;;  %v1752_v10 = vadd.f32 %v6265_v52, %v1751_v3  ;;  %v2426_v11 = vadd.f32 %v6265_v52, %v2425_v4 }
 0x17f   : > { %v6441_v12 = vmax.f32 %v1909_v60, %v2583_v63  ;;  %v1910_v14 = vmax.f32 %v1760_v0, 0.0  ;;  %v2584_v17 = vmax.f32 %v2434_v1, 0.0 }
 0x180   : > { %v6443_v18 = vmax.f32 %v1907_v6, %v2581_v7  ;;  %v1908_v22 = vmax.f32 %v1752_v10, 0.0  ;;  %v2582_v23 = vmax.f32 %v2426_v11, 0.0 }
 0x181   : > { %v6445_v26 = vmax.f32 %v1910_v14, %v2584_v17 }
 0x182   : > { %v6447_v28 = vmax.f32 %v1908_v22, %v2582_v23  ;;  %v5307_v30 = vpop.f32.mrb[36].mxu0  ;;  %v5375_v33 = vpop.f32.mrb[36].mxu1 }
 0x183   : > { %v1773_v34 = vadd.f32 %v5307_v30, %v6265_v52  ;;  %v2447_v39 = vadd.f32 %v5375_v33, %v6265_v52  ;;  %v1764_v40 = vpop.f32.mrb[37].mxu0  ;;  %v2438_v41 = vpop.f32.mrb[37].mxu1 }
 0x184   : > { %v1765_v43 = vadd.f32 %v6265_v52, %v1764_v40  ;;  %v2439_v44 = vadd.f32 %v6265_v52, %v2438_v41  ;;  %v5308_v47 = vpop.f32.mrb[38].mxu0  ;;  %v5376_v49 = vpop.f32.mrb[38].mxu1 }
 0x185   : > { %v1913_v56 = vmax.f32 %v1773_v34, 0.0  ;;  %v2587_v57 = vmax.f32 %v2447_v39, 0.0  ;;  %v1776_v59 = vadd.f32 %v5308_v47, %v6265_v52  ;;  %v2450_v60 = vadd.f32 %v5376_v49, %v6265_v52  ;;  %v1767_v63 = vpop.f32.mrb[39].mxu0  ;;  %v2441_v0 = vpop.f32.mrb[39].mxu1 }
 0x186   : > { %v1911_v1 = vmax.f32 %v1765_v43, 0.0  ;;  %v2585_v3 = vmax.f32 %v2439_v44, 0.0  ;;  %v1768_v4 = vadd.f32 %v6265_v52, %v1767_v63  ;;  %v2442_v6 = vadd.f32 %v6265_v52, %v2441_v0 }
 0x187   : > { %v6457_v7 = vmax.f32 %v1913_v56, %v2587_v57  ;;  %v1914_v10 = vmax.f32 %v1776_v59, 0.0  ;;  %v2588_v11 = vmax.f32 %v2450_v60, 0.0 }
 0x188   : > { %v6459_v14 = vmax.f32 %v1911_v1, %v2585_v3  ;;  %v1912_v17 = vmax.f32 %v1768_v4, 0.0  ;;  %v2586_v22 = vmax.f32 %v2442_v6, 0.0 }
 0x189   : > { %v6461_v23 = vmax.f32 %v1914_v10, %v2588_v11 }
 0x18a   : > { %v6463_v30 = vmax.f32 %v1912_v17, %v2586_v22  ;;  %v5311_v33 = vpop.f32.mrb[40].mxu0  ;;  %v5379_v34 = vpop.f32.mrb[40].mxu1 }
 0x18b   : > { %v1789_v39 = vadd.f32 %v5311_v33, %v6265_v52  ;;  %v2463_v40 = vadd.f32 %v5379_v34, %v6265_v52  ;;  %v1780_v41 = vpop.f32.mrb[41].mxu0  ;;  %v2454_v43 = vpop.f32.mrb[41].mxu1 }
 0x18c   : > { %v1781_v44 = vadd.f32 %v6265_v52, %v1780_v41  ;;  %v2455_v47 = vadd.f32 %v6265_v52, %v2454_v43  ;;  %v5312_v49 = vpop.f32.mrb[42].mxu0  ;;  %v5380_v56 = vpop.f32.mrb[42].mxu1 }
 0x18d   : > { %v1917_v57 = vmax.f32 %v1789_v39, 0.0  ;;  %v2591_v59 = vmax.f32 %v2463_v40, 0.0  ;;  %v1792_v60 = vadd.f32 %v5312_v49, %v6265_v52  ;;  %v2466_v63 = vadd.f32 %v5380_v56, %v6265_v52  ;;  %v1783_v0 = vpop.f32.mrb[43].mxu0  ;;  %v2457_v1 = vpop.f32.mrb[43].mxu1 }
 0x18e   : > { %v1915_v3 = vmax.f32 %v1781_v44, 0.0  ;;  %v2589_v4 = vmax.f32 %v2455_v47, 0.0  ;;  %v1784_v6 = vadd.f32 %v6265_v52, %v1783_v0  ;;  %v2458_v10 = vadd.f32 %v6265_v52, %v2457_v1 }
 0x18f   : > { %v6473_v11 = vmax.f32 %v1917_v57, %v2591_v59  ;;  %v1918_v17 = vmax.f32 %v1792_v60, 0.0  ;;  %v2592_v22 = vmax.f32 %v2466_v63, 0.0 }
 0x190   : > { %v6475_v33 = vmax.f32 %v1915_v3, %v2589_v4  ;;  %v1916_v34 = vmax.f32 %v1784_v6, 0.0  ;;  %v2590_v39 = vmax.f32 %v2458_v10, 0.0 }
 0x191   : > { %v6477_v40 = vmax.f32 %v1918_v17, %v2592_v22 }
 0x192   : > { %6912 = vst [vmem:[#allocation3_spill] sm:$0xff] %v6475_v33  ;;  %v6479_v41 = vmax.f32 %v1916_v34, %v2590_v39  ;;  %v5315_v43 = vpop.f32.mrb[44].mxu0  ;;  %v5383_v49 = vpop.f32.mrb[44].mxu1 }
 0x193   : > { %6913 = vst [vmem:[#allocation4_spill] sm:$0xff] %v6477_v40  ;;  %v1805_v44 = vadd.f32 %v5315_v43, %v6265_v52  ;;  %v2479_v47 = vadd.f32 %v5383_v49, %v6265_v52  ;;  %v1796_v56 = vpop.f32.mrb[45].mxu0  ;;  %v2470_v0 = vpop.f32.mrb[45].mxu1 }
 0x194   : > { %6914 = vst [vmem:[#allocation5_spill] sm:$0xff] %v6479_v41  ;;  %v1797_v57 = vadd.f32 %v6265_v52, %v1796_v56  ;;  %v2471_v59 = vadd.f32 %v6265_v52, %v2470_v0  ;;  %v5316_v60 = vpop.f32.mrb[46].mxu0  ;;  %v5384_v63 = vpop.f32.mrb[46].mxu1 }
 0x195   : > { %v1921_v1 = vmax.f32 %v1805_v44, 0.0  ;;  %v2595_v3 = vmax.f32 %v2479_v47, 0.0  ;;  %v1808_v4 = vadd.f32 %v5316_v60, %v6265_v52  ;;  %v2482_v6 = vadd.f32 %v5384_v63, %v6265_v52  ;;  %v1799_v10 = vpop.f32.mrb[47].mxu0  ;;  %v2473_v17 = vpop.f32.mrb[47].mxu1 }
 0x196   : > { %v1919_v22 = vmax.f32 %v1797_v57, 0.0  ;;  %v2593_v34 = vmax.f32 %v2471_v59, 0.0  ;;  %v1800_v39 = vadd.f32 %v6265_v52, %v1799_v10  ;;  %v2474_v43 = vadd.f32 %v6265_v52, %v2473_v17 }
 0x197   : > { %v6489_v49 = vmax.f32 %v1921_v1, %v2595_v3  ;;  %v1922_v56 = vmax.f32 %v1808_v4, 0.0  ;;  %v2596_v0 = vmax.f32 %v2482_v6, 0.0 }
 0x198   : > { %v6491_v41 = vmax.f32 %v1919_v22, %v2593_v34  ;;  %v1920_v44 = vmax.f32 %v1800_v39, 0.0  ;;  %v2594_v47 = vmax.f32 %v2474_v43, 0.0 }
 0x199   : > { %6915 = vst [vmem:[#allocation6_spill] sm:$0xff] %v6489_v49  ;;  %v6493_v40 = vmax.f32 %v1922_v56, %v2596_v0 }
 0x19a   : > { %6916 = vst [vmem:[#allocation7_spill] sm:$0xff] %v6491_v41  ;;  %v6495_v60 = vmax.f32 %v1920_v44, %v2594_v47  ;;  %v5319_v63 = vpop.f32.mrb[48].mxu0  ;;  %v5387_v33 = vpop.f32.mrb[48].mxu1 }
 0x19b   : > { %6917 = vst [vmem:[#allocation8_spill] sm:$0xff] %v6493_v40  ;;  %v1821_v57 = vadd.f32 %v5319_v63, %v6265_v52  ;;  %v2495_v59 = vadd.f32 %v5387_v33, %v6265_v52  ;;  %v1812_v10 = vpop.f32.mrb[49].mxu0  ;;  %v2486_v17 = vpop.f32.mrb[49].mxu1 }
 0x19c   : > { %6918 = vst [vmem:[#allocation9_spill] sm:$0xff] %v6495_v60  ;;  %v1813_v1 = vadd.f32 %v6265_v52, %v1812_v10  ;;  %v2487_v3 = vadd.f32 %v6265_v52, %v2486_v17  ;;  %v5320_v4 = vpop.f32.mrb[50].mxu0  ;;  %v5388_v6 = vpop.f32.mrb[50].mxu1 }
 0x19d   : > { %v1925_v22 = vmax.f32 %v1821_v57, 0.0  ;;  %v2599_v34 = vmax.f32 %v2495_v59, 0.0  ;;  %v1824_v39 = vadd.f32 %v5320_v4, %v6265_v52  ;;  %v2498_v43 = vadd.f32 %v5388_v6, %v6265_v52  ;;  %v1815_v56 = vpop.f32.mrb[51].mxu0  ;;  %v2489_v0 = vpop.f32.mrb[51].mxu1 }
 0x19e   : > { %v1923_v44 = vmax.f32 %v1813_v1, 0.0  ;;  %v2597_v47 = vmax.f32 %v2487_v3, 0.0  ;;  %v1816_v33 = vadd.f32 %v6265_v52, %v1815_v56  ;;  %v2490_v63 = vadd.f32 %v6265_v52, %v2489_v0 }
 0x19f   : > { %v6505_v60 = vmax.f32 %v1925_v22, %v2599_v34  ;;  %v1926_v10 = vmax.f32 %v1824_v39, 0.0  ;;  %v2600_v17 = vmax.f32 %v2498_v43, 0.0 }
 0x1a0   : > { %v6507_v40 = vmax.f32 %v1923_v44, %v2597_v47  ;;  %v1924_v57 = vmax.f32 %v1816_v33, 0.0  ;;  %v2598_v59 = vmax.f32 %v2490_v63, 0.0 }
 0x1a1   : > { %6919 = vst [vmem:[#allocation10_spill] sm:$0xff] %v6505_v60  ;;  %v6509_v41 = vmax.f32 %v1926_v10, %v2600_v17 }
 0x1a2   : > { %6920 = vst [vmem:[#allocation11_spill] sm:$0xff] %v6507_v40  ;;  %v6511_v4 = vmax.f32 %v1924_v57, %v2598_v59  ;;  %v5323_v6 = vpop.f32.mrb[52].mxu0  ;;  %v5391_v49 = vpop.f32.mrb[52].mxu1 }
 0x1a3   : > { %6921 = vst [vmem:[#allocation12_spill] sm:$0xff] %v6509_v41  ;;  %v1837_v1 = vadd.f32 %v5323_v6, %v6265_v52  ;;  %v2511_v3 = vadd.f32 %v5391_v49, %v6265_v52  ;;  %v1828_v56 = vpop.f32.mrb[53].mxu0  ;;  %v2502_v0 = vpop.f32.mrb[53].mxu1 }
 0x1a4   : > { %6922 = vst [vmem:[#allocation13_spill] sm:$0xff] %v6511_v4  ;;  %v1829_v22 = vadd.f32 %v6265_v52, %v1828_v56  ;;  %v2503_v34 = vadd.f32 %v6265_v52, %v2502_v0  ;;  %v5324_v39 = vpop.f32.mrb[54].mxu0  ;;  %v5392_v43 = vpop.f32.mrb[54].mxu1 }
 0x1a5   : > { %v1929_v44 = vmax.f32 %v1837_v1, 0.0  ;;  %v2603_v47 = vmax.f32 %v2511_v3, 0.0  ;;  %v1840_v33 = vadd.f32 %v5324_v39, %v6265_v52  ;;  %v2514_v63 = vadd.f32 %v5392_v43, %v6265_v52  ;;  %v1831_v10 = vpop.f32.mrb[55].mxu0  ;;  %v2505_v17 = vpop.f32.mrb[55].mxu1 }
 0x1a6   : > { %v1927_v57 = vmax.f32 %v1829_v22, 0.0  ;;  %v2601_v59 = vmax.f32 %v2503_v34, 0.0  ;;  %v1832_v49 = vadd.f32 %v6265_v52, %v1831_v10  ;;  %v2506_v6 = vadd.f32 %v6265_v52, %v2505_v17 }
 0x1a7   : > { %v6521_v4 = vmax.f32 %v1929_v44, %v2603_v47  ;;  %v1930_v56 = vmax.f32 %v1840_v33, 0.0  ;;  %v2604_v0 = vmax.f32 %v2514_v63, 0.0 }
 0x1a8   : > { %v6523_v41 = vmax.f32 %v1927_v57, %v2601_v59  ;;  %v1928_v1 = vmax.f32 %v1832_v49, 0.0  ;;  %v2602_v3 = vmax.f32 %v2506_v6, 0.0 }
 0x1a9   : > { %v6525_v40 = vmax.f32 %v1930_v56, %v2604_v0 }
 0x1aa   : > { %6923 = vst [vmem:[#allocation14_spill] sm:$0xff] %v6523_v41  ;;  %v6527_v39 = vmax.f32 %v1928_v1, %v2602_v3  ;;  %v5327_v43 = vpop.f32.mrb[56].mxu0  ;;  %v5395_v60 = vpop.f32.mrb[56].mxu1 }
 0x1ab   : > { %6924 = vst [vmem:[#allocation15_spill] sm:$0xff] %v6525_v40  ;;  %v1853_v22 = vadd.f32 %v5327_v43, %v6265_v52  ;;  %v2527_v34 = vadd.f32 %v5395_v60, %v6265_v52  ;;  %v1844_v10 = vpop.f32.mrb[57].mxu0  ;;  %v2518_v17 = vpop.f32.mrb[57].mxu1 }
 0x1ac   : > { %6925 = vst [vmem:[#allocation16_spill] sm:$0xff] %v6527_v39  ;;  %v1845_v44 = vadd.f32 %v6265_v52, %v1844_v10  ;;  %v2519_v47 = vadd.f32 %v6265_v52, %v2518_v17  ;;  %v5328_v33 = vpop.f32.mrb[58].mxu0  ;;  %v5396_v63 = vpop.f32.mrb[58].mxu1 }
 0x1ad   : > { %v1933_v57 = vmax.f32 %v1853_v22, 0.0  ;;  %v2607_v59 = vmax.f32 %v2527_v34, 0.0  ;;  %v1856_v49 = vadd.f32 %v5328_v33, %v6265_v52  ;;  %v2530_v6 = vadd.f32 %v5396_v63, %v6265_v52  ;;  %v1847_v56 = vpop.f32.mrb[59].mxu0  ;;  %v2521_v0 = vpop.f32.mrb[59].mxu1 }
 0x1ae   : > { %v1931_v1 = vmax.f32 %v1845_v44, 0.0  ;;  %v2605_v3 = vmax.f32 %v2519_v47, 0.0  ;;  %v1848_v60 = vadd.f32 %v6265_v52, %v1847_v56  ;;  %v2522_v43 = vadd.f32 %v6265_v52, %v2521_v0 }
 0x1af   : > { %v6537_v39 = vmax.f32 %v1933_v57, %v2607_v59  ;;  %v1934_v10 = vmax.f32 %v1856_v49, 0.0  ;;  %v2608_v17 = vmax.f32 %v2530_v6, 0.0 }
 0x1b0   : > { %v6539_v40 = vmax.f32 %v1931_v1, %v2605_v3  ;;  %v1932_v22 = vmax.f32 %v1848_v60, 0.0  ;;  %v2606_v34 = vmax.f32 %v2522_v43, 0.0 }
 0x1b1   : > { %6926 = vst [vmem:[#allocation17_spill] sm:$0xff] %v6537_v39  ;;  %v6541_v33 = vmax.f32 %v1934_v10, %v2608_v17 }
 0x1b2   : > { %6927 = vst [vmem:[#allocation18_spill] sm:$0xff] %v6539_v40  ;;  %v6543_v63 = vmax.f32 %v1932_v22, %v2606_v34  ;;  %v5331_v41 = vpop.f32.mrb[60].mxu0  ;;  %v5399_v44 = vpop.f32.mrb[60].mxu1 }
 0x1b3   : > { %6928 = vst [vmem:[#allocation19_spill] sm:$0xff] %v6541_v33  ;;  %v1869_v47 = vadd.f32 %v5331_v41, %v6265_v52  ;;  %v2543_v56 = vadd.f32 %v5399_v44, %v6265_v52  ;;  %v1860_v0 = vpop.f32.mrb[61].mxu0  ;;  %v2534_v57 = vpop.f32.mrb[61].mxu1 }
 0x1b4   : > { %6929 = vst [vmem:[#allocation20_spill] sm:$0xff] %v6543_v63  ;;  %v1861_v59 = vadd.f32 %v6265_v52, %v1860_v0  ;;  %v2535_v49 = vadd.f32 %v6265_v52, %v2534_v57  ;;  %v5332_v6 = vpop.f32.mrb[62].mxu0  ;;  %v5400_v1 = vpop.f32.mrb[62].mxu1 }
 0x1b5   : > { %v1937_v3 = vmax.f32 %v1869_v47, 0.0  ;;  %v2611_v60 = vmax.f32 %v2543_v56, 0.0  ;;  %v1872_v43 = vadd.f32 %v5332_v6, %v6265_v52  ;;  %v2546_v10 = vadd.f32 %v5400_v1, %v6265_v52  ;;  %v1863_v17 = vpop.f32.mrb[63].mxu0  ;;  %v2537_v41 = vpop.f32.mrb[63].mxu1 }
 0x1b6   : > { %v1935_v22 = vmax.f32 %v1861_v59, 0.0  ;;  %v2609_v34 = vmax.f32 %v2535_v49, 0.0  ;;  %v1864_v44 = vadd.f32 %v6265_v52, %v1863_v17  ;;  %v2538_v0 = vadd.f32 %v6265_v52, %v2537_v41 }
 0x1b7   : > { %v6555_v63 = vmax.f32 %v1937_v3, %v2611_v60  ;;  %v1938_v57 = vmax.f32 %v1872_v43, 0.0  ;;  %v2612_v33 = vmax.f32 %v2546_v10, 0.0 }
 0x1b8   : > { %v6557_v40 = vmax.f32 %v1935_v22, %v2609_v34  ;;  %v1936_v47 = vmax.f32 %v1864_v44, 0.0  ;;  %v2610_v56 = vmax.f32 %v2538_v0, 0.0 }
 0x1b9   : > { %v6559_v6 = vmax.f32 %v1938_v57, %v2612_v33 }
 0x1ba   : > { %6930 = vst [vmem:[#allocation21_spill] sm:$0xff] %v6557_v40  ;;  %v6561_v1 = vmax.f32 %v1936_v47, %v2610_v56  ;;  %v5407_v39 = vpop.f32.mrb[64].mxu0  ;;  %v5475_v59 = vpop.f32.mrb[64].mxu1 }
 0x1bb   : > { %6931 = vst [vmem:[#allocation22_spill] sm:$0xff] %v6559_v6  ;;  %v3041_v49 = vadd.f32 %v5407_v39, %v6265_v52  ;;  %v3779_v17 = vadd.f32 %v5475_v59, %v6265_v52  ;;  %v3032_v3 = vpop.f32.mrb[65].mxu0  ;;  %v3770_v60 = vpop.f32.mrb[65].mxu1 }
 0x1bc   : > { %6932 = vst [vmem:[#allocation23_spill] sm:$0xff] %v6561_v1  ;;  %v3033_v43 = vadd.f32 %v6265_v52, %v3032_v3  ;;  %v3771_v10 = vadd.f32 %v6265_v52, %v3770_v60  ;;  %v5408_v41 = vpop.f32.mrb[66].mxu0  ;;  %v5476_v22 = vpop.f32.mrb[66].mxu1 }
 0x1bd   : > { %v3289_v34 = vmax.f32 %v3041_v49, 0.0  ;;  %v4027_v33 = vmax.f32 %v3779_v17, 0.0  ;;  %v3044_v44 = vadd.f32 %v5408_v41, %v6265_v52  ;;  %v3782_v0 = vadd.f32 %v5476_v22, %v6265_v52  ;;  %v3035_v57 = vpop.f32.mrb[67].mxu0  ;;  %v3773_v47 = vpop.f32.mrb[67].mxu1 }
 0x1be   : > { %v3287_v39 = vmax.f32 %v3033_v43, 0.0  ;;  %v4025_v56 = vmax.f32 %v3771_v10, 0.0  ;;  %v3036_v59 = vadd.f32 %v6265_v52, %v3035_v57  ;;  %v3774_v1 = vadd.f32 %v6265_v52, %v3773_v47 }
 0x1bf   : > { %v3353_v3 = vmax.f32 %v6281_v13, %v3289_v34  ;;  %v3290_v60 = vmax.f32 %v3044_v44, 0.0  ;;  %v4028_v40 = vmax.f32 %v3782_v0, 0.0 }
 0x1c0   : > { %v3351_v6 = vmax.f32 %v6285_v16, %v3287_v39  ;;  %v3288_v49 = vmax.f32 %v3036_v59, 0.0  ;;  %v4026_v10 = vmax.f32 %v3774_v1, 0.0 }
 0x1c1   : > { %v4091_v17 = vmax.f32 %v3353_v3, %v4027_v33  ;;  %v3354_v41 = vmax.f32 %v6289_v19, %v3290_v60  ;;  %v6583_v19 = vld [vmem:[%s6910_s2] ss:$0 sm:$0xff] }
 0x1c2   : > { %v4089_v43 = vmax.f32 %v3351_v6, %v4025_v56  ;;  %v3352_v52 = vmax.f32 %v6291_v20, %v3288_v49  ;;  %v5411_v13 = vpop.f32.mrb[68].mxu0  ;;  %v5479_v22 = vpop.f32.mrb[68].mxu1 }
 0x1c3   : > { %v5067_v34 = vpack.c.bf16 %v4091_v17, %v4091_v17  ;;  %v4092_v16 = vmax.f32 %v3354_v41, %v4028_v40  ;;  %v3057_v33 = vadd.f32 %v6583_v19, %v5411_v13  ;;  %v3795_v44 = vadd.f32 %v6583_v19, %v5479_v22  ;;  %v3048_v0 = vpop.f32.mrb[69].mxu0  ;;  %v3786_v6 = vpop.f32.mrb[69].mxu1 }
 0x1c4   : > { %v5065_v57 = vpack.c.bf16 %v4089_v43, %v4089_v43  ;;  %v4090_v20 = vmax.f32 %v3352_v52, %v4026_v10  ;;  %v3049_v1 = vadd.f32 %v6583_v19, %v3048_v0  ;;  %v3787_v47 = vadd.f32 %v6583_v19, %v3786_v6  ;;  %v5412_v40 = vpop.f32.mrb[70].mxu0  ;;  %v5480_v39 = vpop.f32.mrb[70].mxu1 }
 0x1c5   : > { %4412 = vst.msk [vmem:[%s6577_s14 + $0x8] sm:$0xf] %vm4409_vm3, %v5067_v34  ;;  %v5068_v56 = vpack.c.bf16 %v4092_v16, %v4092_v16  ;;  %v3293_v59 = vmax.f32 %v3057_v33, 0.0  ;;  %v4031_v3 = vmax.f32 %v3795_v44, 0.0  ;;  %v3060_v60 = vadd.f32 %v6583_v19, %v5412_v40  ;;  %v3051_v49 = vpop.f32.mrb[71].mxu0  ;;  %v3789_v17 = vpop.f32.mrb[71].mxu1 }
 0x1c6   : > { %4410 = vst.msk [vmem:[%s6577_s14] sm:$0xf] %vm4409_vm3, %v5065_v57  ;;  %v5066_v41 = vpack.c.bf16 %v4090_v20, %v4090_v20  ;;  %v3291_v43 = vmax.f32 %v3049_v1, 0.0  ;;  %v4029_v52 = vmax.f32 %v3787_v47, 0.0  ;;  %v3798_v10 = vadd.f32 %v6583_v19, %v5480_v39 }
 0x1c7   : > { %4413 = vst.msk [vmem:[%s6577_s14 + $0xc] sm:$0xf] %vm4409_vm3, %v5068_v56  ;;  %v3357_v13 = vmax.f32 %v6305_v45, %v3293_v59  ;;  %v3294_v22 = vmax.f32 %v3060_v60, 0.0  ;;  %v3052_v34 = vadd.f32 %v6583_v19, %v3051_v49  ;;  %v3790_v16 = vadd.f32 %v6583_v19, %v3789_v17 }
 0x1c8   : > { %4411 = vst.msk [vmem:[%s6577_s14 + $0x4] sm:$0xf] %vm4409_vm3, %v5066_v41  ;;  %v3355_v33 = vmax.f32 %v6309_v48, %v3291_v43  ;;  %v4032_v6 = vmax.f32 %v3798_v10, 0.0 }
 0x1c9   : > { %v4095_v44 = vmax.f32 %v3357_v13, %v4031_v3  ;;  %v3358_v0 = vmax.f32 %v6313_v51, %v3294_v22  ;;  %v3292_v57 = vmax.f32 %v3052_v34, 0.0  ;;  %v4030_v1 = vmax.f32 %v3790_v16, 0.0 }
 0x1ca   : > { %v4093_v20 = vmax.f32 %v3355_v33, %v4029_v52  ;;  %v5415_v47 = vpop.f32.mrb[72].mxu0  ;;  %v5483_v40 = vpop.f32.mrb[72].mxu1 }
 0x1cb   : > { %v5071_v45 = vpack.c.bf16 %v4095_v44, %v4095_v44  ;;  %v4096_v39 = vmax.f32 %v3358_v0, %v4032_v6  ;;  %v3356_v56 = vmax.f32 %v6315_v53, %v3292_v57  ;;  %v3073_v59 = vadd.f32 %v6583_v19, %v5415_v47  ;;  %v3064_v60 = vpop.f32.mrb[73].mxu0  ;;  %v3802_v49 = vpop.f32.mrb[73].mxu1 }
 0x1cc   : > { %v5069_v48 = vpack.c.bf16 %v4093_v20, %v4093_v20  ;;  %v3811_v3 = vadd.f32 %v6583_v19, %v5483_v40  ;;  %v3065_v51 = vadd.f32 %v6583_v19, %v3064_v60  ;;  %v3803_v17 = vadd.f32 %v6583_v19, %v3802_v49  ;;  %v5416_v41 = vpop.f32.mrb[74].mxu0  ;;  %v5484_v43 = vpop.f32.mrb[74].mxu1 }
 0x1cd   : > { %4416 = vst.msk [vmem:[%s6577_s14 + $0x18] sm:$0xf] %vm4409_vm3, %v5071_v45  ;;  %v5072_v52 = vpack.c.bf16 %v4096_v39, %v4096_v39  ;;  %v4094_v10 = vmax.f32 %v3356_v56, %v4030_v1  ;;  %v3297_v53 = vmax.f32 %v3073_v59, 0.0  ;;  %v3076_v13 = vadd.f32 %v6583_v19, %v5416_v41  ;;  %v3067_v22 = vpop.f32.mrb[75].mxu0  ;;  %v3805_v34 = vpop.f32.mrb[75].mxu1 }
 0x1ce   : > { %4414 = vst.msk [vmem:[%s6577_s14 + $0x10] sm:$0xf] %vm4409_vm3, %v5069_v48  ;;  %v4035_v16 = vmax.f32 %v3811_v3, 0.0  ;;  %v3295_v33 = vmax.f32 %v3065_v51, 0.0  ;;  %v4033_v44 = vmax.f32 %v3803_v17, 0.0  ;;  %v3814_v0 = vadd.f32 %v6583_v19, %v5484_v43 }
 0x1cf   : > { %4417 = vst.msk [vmem:[%s6577_s14 + $0x1c] sm:$0xf] %vm4409_vm3, %v5072_v52  ;;  %v5070_v6 = vpack.c.bf16 %v4094_v10, %v4094_v10  ;;  %v3361_v57 = vmax.f32 %v6329_v15, %v3297_v53  ;;  %v3298_v20 = vmax.f32 %v3076_v13, 0.0  ;;  %v3068_v1 = vadd.f32 %v6583_v19, %v3067_v22 }
 0x1d0   : > { %v3359_v47 = vmax.f32 %v6333_v21, %v3295_v33  ;;  %v3806_v40 = vadd.f32 %v6583_v19, %v3805_v34  ;;  %v4036_v56 = vmax.f32 %v3814_v0, 0.0 }
 0x1d1   : > { %4415 = vst.msk [vmem:[%s6577_s14 + $0x14] sm:$0xf] %vm4409_vm3, %v5070_v6  ;;  %v4099_v45 = vmax.f32 %v3361_v57, %v4035_v16  ;;  %v3362_v39 = vmax.f32 %v6337_v24, %v3298_v20  ;;  %v3296_v59 = vmax.f32 %v3068_v1, 0.0 }
 0x1d2   : > { %v4097_v60 = vmax.f32 %v3359_v47, %v4033_v44  ;;  %v4034_v49 = vmax.f32 %v3806_v40, 0.0  ;;  %v5419_v48 = vpop.f32.mrb[76].mxu0  ;;  %v5487_v3 = vpop.f32.mrb[76].mxu1 }
 0x1d3   : > { %v5075_v15 = vpack.c.bf16 %v4099_v45, %v4099_v45  ;;  %v4100_v51 = vmax.f32 %v3362_v39, %v4036_v56  ;;  %v3360_v17 = vmax.f32 %v6339_v25, %v3296_v59  ;;  %v3089_v21 = vadd.f32 %v6583_v19, %v5419_v48  ;;  %v3080_v41 = vpop.f32.mrb[77].mxu0  ;;  %v3818_v43 = vpop.f32.mrb[77].mxu1 }
 0x1d4   : > { %v5073_v52 = vpack.c.bf16 %v4097_v60, %v4097_v60  ;;  %v3827_v10 = vadd.f32 %v6583_v19, %v5487_v3  ;;  %v3081_v24 = vadd.f32 %v6583_v19, %v3080_v41  ;;  %v3819_v53 = vadd.f32 %v6583_v19, %v3818_v43  ;;  %v5420_v13 = vpop.f32.mrb[78].mxu0  ;;  %v5488_v22 = vpop.f32.mrb[78].mxu1 }
 0x1d5   : > { %4420 = vst.msk [vmem:[%s6577_s14 + $0x28] sm:$0xf] %vm4409_vm3, %v5075_v15  ;;  %v5076_v34 = vpack.c.bf16 %v4100_v51, %v4100_v51  ;;  %v4098_v16 = vmax.f32 %v3360_v17, %v4034_v49  ;;  %v3301_v25 = vmax.f32 %v3089_v21, 0.0  ;;  %v3092_v33 = vadd.f32 %v6583_v19, %v5420_v13  ;;  %v3083_v44 = vpop.f32.mrb[79].mxu0  ;;  %v3821_v0 = vpop.f32.mrb[79].mxu1 }
 0x1d6   : > { %4418 = vst.msk [vmem:[%s6577_s14 + $0x20] sm:$0xf] %vm4409_vm3, %v5073_v52  ;;  %v4039_v6 = vmax.f32 %v3827_v10, 0.0  ;;  %v3299_v57 = vmax.f32 %v3081_v24, 0.0  ;;  %v4037_v20 = vmax.f32 %v3819_v53, 0.0  ;;  %v3830_v1 = vadd.f32 %v6583_v19, %v5488_v22 }
 0x1d7   : > { %4421 = vst.msk [vmem:[%s6577_s14 + $0x2c] sm:$0xf] %vm4409_vm3, %v5076_v34  ;;  %v5074_v47 = vpack.c.bf16 %v4098_v16, %v4098_v16  ;;  %v3365_v40 = vmax.f32 %v6353_v55, %v3301_v25  ;;  %v3302_v45 = vmax.f32 %v3092_v33, 0.0  ;;  %v3084_v39 = vadd.f32 %v6583_v19, %v3083_v44 }
 0x1d8   : > { %v3363_v56 = vmax.f32 %v6357_v58, %v3299_v57  ;;  %v3822_v59 = vadd.f32 %v6583_v19, %v3821_v0  ;;  %v4040_v48 = vmax.f32 %v3830_v1, 0.0 }
 0x1d9   : > { %4419 = vst.msk [vmem:[%s6577_s14 + $0x24] sm:$0xf] %vm4409_vm3, %v5074_v47  ;;  %v4103_v60 = vmax.f32 %v3365_v40, %v4039_v6  ;;  %v3366_v49 = vmax.f32 %v6361_v61, %v3302_v45  ;;  %v3300_v3 = vmax.f32 %v3084_v39, 0.0 }
 0x1da   : > { %v4101_v15 = vmax.f32 %v3363_v56, %v4037_v20  ;;  %v4038_v51 = vmax.f32 %v3822_v59, 0.0  ;;  %v5423_v17 = vpop.f32.mrb[80].mxu0  ;;  %v5491_v21 = vpop.f32.mrb[80].mxu1 }
 0x1db   : > { %v5079_v55 = vpack.c.bf16 %v4103_v60, %v4103_v60  ;;  %v4104_v41 = vmax.f32 %v3366_v49, %v4040_v48  ;;  %v3364_v43 = vmax.f32 %v6363_v62, %v3300_v3  ;;  %v3105_v58 = vadd.f32 %v6583_v19, %v5423_v17  ;;  %v3096_v52 = vpop.f32.mrb[81].mxu0  ;;  %v3834_v10 = vpop.f32.mrb[81].mxu1 }
 0x1dc   : > { %v5077_v24 = vpack.c.bf16 %v4101_v15, %v4101_v15  ;;  %v3843_v53 = vadd.f32 %v6583_v19, %v5491_v21  ;;  %v3097_v61 = vadd.f32 %v6583_v19, %v3096_v52  ;;  %v3835_v13 = vadd.f32 %v6583_v19, %v3834_v10  ;;  %v5424_v22 = vpop.f32.mrb[82].mxu0  ;;  %v5492_v34 = vpop.f32.mrb[82].mxu1 }
 0x1dd   : > { %4424 = vst.msk [vmem:[%s6577_s14 + $0x38] sm:$0xf] %vm4409_vm3, %v5079_v55  ;;  %v5080_v16 = vpack.c.bf16 %v4104_v41, %v4104_v41  ;;  %v4102_v25 = vmax.f32 %v3364_v43, %v4038_v51  ;;  %v3305_v62 = vmax.f32 %v3105_v58, 0.0  ;;  %v3108_v33 = vadd.f32 %v6583_v19, %v5424_v22  ;;  %v3099_v44 = vpop.f32.mrb[83].mxu0  ;;  %v3837_v0 = vpop.f32.mrb[83].mxu1 }
 0x1de   : > { %4422 = vst.msk [vmem:[%s6577_s14 + $0x30] sm:$0xf] %vm4409_vm3, %v5077_v24  ;;  %v4043_v6 = vmax.f32 %v3843_v53, 0.0  ;;  %v3303_v57 = vmax.f32 %v3097_v61, 0.0  ;;  %v4041_v20 = vmax.f32 %v3835_v13, 0.0  ;;  %v3846_v1 = vadd.f32 %v6583_v19, %v5492_v34 }
 0x1df   : > { %4425 = vst.msk [vmem:[%s6577_s14 + $0x3c] sm:$0xf] %vm4409_vm3, %v5080_v16  ;;  %v5078_v47 = vpack.c.bf16 %v4102_v25, %v4102_v25  ;;  %v3369_v40 = vmax.f32 %v6375_v29, %v3305_v62  ;;  %v3306_v45 = vmax.f32 %v3108_v33, 0.0  ;;  %v3100_v39 = vadd.f32 %v6583_v19, %v3099_v44 }
 0x1e0   : > { %v3367_v56 = vmax.f32 %v6379_v32, %v3303_v57  ;;  %v3838_v59 = vadd.f32 %v6583_v19, %v3837_v0  ;;  %v4044_v48 = vmax.f32 %v3846_v1, 0.0 }
 0x1e1   : > { %4423 = vst.msk [vmem:[%s6577_s14 + $0x34] sm:$0xf] %vm4409_vm3, %v5078_v47  ;;  %v4107_v60 = vmax.f32 %v3369_v40, %v4043_v6  ;;  %v3370_v49 = vmax.f32 %v6381_v35, %v3306_v45  ;;  %v3304_v3 = vmax.f32 %v3100_v39, 0.0 }
 0x1e2   : > { %v4105_v15 = vmax.f32 %v3367_v56, %v4041_v20  ;;  %v4042_v51 = vmax.f32 %v3838_v59, 0.0  ;;  %v5427_v17 = vpop.f32.mrb[84].mxu0  ;;  %v5495_v21 = vpop.f32.mrb[84].mxu1 }
 0x1e3   : > { %v5083_v29 = vpack.c.bf16 %v4107_v60, %v4107_v60  ;;  %v4108_v55 = vmax.f32 %v3370_v49, %v4044_v48  ;;  %v3368_v41 = vmax.f32 %v6383_v36, %v3304_v3  ;;  %v3121_v32 = vadd.f32 %v6583_v19, %v5427_v17  ;;  %v3112_v43 = vpop.f32.mrb[85].mxu0  ;;  %v3850_v58 = vpop.f32.mrb[85].mxu1 }
 0x1e4   : > { %v5081_v52 = vpack.c.bf16 %v4105_v15, %v4105_v15  ;;  %v3859_v10 = vadd.f32 %v6583_v19, %v5495_v21  ;;  %v3113_v35 = vadd.f32 %v6583_v19, %v3112_v43  ;;  %v3851_v24 = vadd.f32 %v6583_v19, %v3850_v58  ;;  %v5428_v53 = vpop.f32.mrb[86].mxu0  ;;  %v5496_v61 = vpop.f32.mrb[86].mxu1 }
 0x1e5   : > { %4428 = vst.msk [vmem:[%s6577_s14 + $0x48] sm:$0xf] %vm4409_vm3, %v5083_v29  ;;  %v5084_v13 = vpack.c.bf16 %v4108_v55, %v4108_v55  ;;  %v4106_v22 = vmax.f32 %v3368_v41, %v4042_v51  ;;  %v3309_v36 = vmax.f32 %v3121_v32, 0.0  ;;  %v3124_v34 = vadd.f32 %v6583_v19, %v5428_v53  ;;  %v3115_v16 = vpop.f32.mrb[87].mxu0  ;;  %v3853_v25 = vpop.f32.mrb[87].mxu1 }
 0x1e6   : > { %4426 = vst.msk [vmem:[%s6577_s14 + $0x40] sm:$0xf] %vm4409_vm3, %v5081_v52  ;;  %v4047_v62 = vmax.f32 %v3859_v10, 0.0  ;;  %v3307_v33 = vmax.f32 %v3113_v35, 0.0  ;;  %v4045_v44 = vmax.f32 %v3851_v24, 0.0  ;;  %v3862_v0 = vadd.f32 %v6583_v19, %v5496_v61 }
 0x1e7   : > { %4429 = vst.msk [vmem:[%s6577_s14 + $0x4c] sm:$0xf] %vm4409_vm3, %v5084_v13  ;;  %v5082_v6 = vpack.c.bf16 %v4106_v22, %v4106_v22  ;;  %v3373_v57 = vmax.f32 %v6393_v2, %v3309_v36  ;;  %v3310_v20 = vmax.f32 %v3124_v34, 0.0  ;;  %v3116_v1 = vadd.f32 %v6583_v19, %v3115_v16 }
 0x1e8   : > { %v3371_v47 = vmax.f32 %v6395_v5, %v3307_v33  ;;  %v3854_v40 = vadd.f32 %v6583_v19, %v3853_v25  ;;  %v4048_v56 = vmax.f32 %v3862_v0, 0.0 }
 0x1e9   : > { %4427 = vst.msk [vmem:[%s6577_s14 + $0x44] sm:$0xf] %vm4409_vm3, %v5082_v6  ;;  %v4111_v45 = vmax.f32 %v3373_v57, %v4047_v62  ;;  %v3374_v39 = vmax.f32 %v6397_v8, %v3310_v20  ;;  %v3308_v59 = vmax.f32 %v3116_v1, 0.0 }
 0x1ea   : > { %v4109_v60 = vmax.f32 %v3371_v47, %v4045_v44  ;;  %v4046_v49 = vmax.f32 %v3854_v40, 0.0  ;;  %v5431_v48 = vpop.f32.mrb[88].mxu0  ;;  %v5499_v3 = vpop.f32.mrb[88].mxu1 }
 0x1eb   : > { %v5087_v2 = vpack.c.bf16 %v4111_v45, %v4111_v45  ;;  %v4112_v15 = vmax.f32 %v3374_v39, %v4048_v56  ;;  %v3372_v51 = vmax.f32 %v6399_v9, %v3308_v59  ;;  %v3137_v5 = vadd.f32 %v6583_v19, %v5431_v48  ;;  %v3128_v17 = vpop.f32.mrb[89].mxu0  ;;  %v3866_v21 = vpop.f32.mrb[89].mxu1 }
 0x1ec   : > { %v5085_v29 = vpack.c.bf16 %v4109_v60, %v4109_v60  ;;  %v3875_v55 = vadd.f32 %v6583_v19, %v5499_v3  ;;  %v3129_v8 = vadd.f32 %v6583_v19, %v3128_v17  ;;  %v3867_v41 = vadd.f32 %v6583_v19, %v3866_v21  ;;  %v5432_v32 = vpop.f32.mrb[90].mxu0  ;;  %v5500_v43 = vpop.f32.mrb[90].mxu1 }
 0x1ed   : > { %4432 = vst.msk [vmem:[%s6577_s14 + $0x58] sm:$0xf] %vm4409_vm3, %v5087_v2  ;;  %v5088_v58 = vpack.c.bf16 %v4112_v15, %v4112_v15  ;;  %v4110_v52 = vmax.f32 %v3372_v51, %v4046_v49  ;;  %v3313_v9 = vmax.f32 %v3137_v5, 0.0  ;;  %v3140_v10 = vadd.f32 %v6583_v19, %v5432_v32  ;;  %v3131_v35 = vpop.f32.mrb[91].mxu0  ;;  %v3869_v24 = vpop.f32.mrb[91].mxu1 }
 0x1ee   : > { %4430 = vst.msk [vmem:[%s6577_s14 + $0x50] sm:$0xf] %vm4409_vm3, %v5085_v29  ;;  %v4051_v53 = vmax.f32 %v3875_v55, 0.0  ;;  %v3311_v61 = vmax.f32 %v3129_v8, 0.0  ;;  %v4049_v13 = vmax.f32 %v3867_v41, 0.0  ;;  %v3878_v22 = vadd.f32 %v6583_v19, %v5500_v43 }
 0x1ef   : > { %4433 = vst.msk [vmem:[%s6577_s14 + $0x5c] sm:$0xf] %vm4409_vm3, %v5088_v58  ;;  %v5086_v36 = vpack.c.bf16 %v4110_v52, %v4110_v52  ;;  %v3377_v34 = vmax.f32 %v6409_v42, %v3313_v9  ;;  %v3314_v16 = vmax.f32 %v3140_v10, 0.0  ;;  %v3132_v25 = vadd.f32 %v6583_v19, %v3131_v35 }
 0x1f0   : > { %v3375_v62 = vmax.f32 %v6411_v46, %v3311_v61  ;;  %v3870_v33 = vadd.f32 %v6583_v19, %v3869_v24  ;;  %v4052_v6 = vmax.f32 %v3878_v22, 0.0 }
 0x1f1   : > { %4431 = vst.msk [vmem:[%s6577_s14 + $0x54] sm:$0xf] %vm4409_vm3, %v5086_v36  ;;  %v4115_v44 = vmax.f32 %v3377_v34, %v4051_v53  ;;  %v3378_v0 = vmax.f32 %v6413_v50, %v3314_v16  ;;  %v3312_v57 = vmax.f32 %v3132_v25, 0.0 }
 0x1f2   : > { %v4113_v20 = vmax.f32 %v3375_v62, %v4049_v13  ;;  %v4050_v1 = vmax.f32 %v3870_v33, 0.0  ;;  %v5435_v47 = vpop.f32.mrb[92].mxu0  ;;  %v5503_v40 = vpop.f32.mrb[92].mxu1 }
 0x1f3   : > { %v5091_v42 = vpack.c.bf16 %v4115_v44, %v4115_v44  ;;  %v4116_v45 = vmax.f32 %v3378_v0, %v4052_v6  ;;  %v3376_v39 = vmax.f32 %v6415_v54, %v3312_v57  ;;  %v3153_v46 = vadd.f32 %v6583_v19, %v5435_v47  ;;  %v3144_v56 = vpop.f32.mrb[93].mxu0  ;;  %v3882_v59 = vpop.f32.mrb[93].mxu1 }
 0x1f4   : > { %v5089_v60 = vpack.c.bf16 %v4113_v20, %v4113_v20  ;;  %v3891_v49 = vadd.f32 %v6583_v19, %v5503_v40  ;;  %v3145_v50 = vadd.f32 %v6583_v19, %v3144_v56  ;;  %v3883_v48 = vadd.f32 %v6583_v19, %v3882_v59  ;;  %v5436_v3 = vpop.f32.mrb[94].mxu0  ;;  %v5504_v2 = vpop.f32.mrb[94].mxu1 }
 0x1f5   : > { %4436 = vst.msk [vmem:[%s6577_s14 + $0x68] sm:$0xf] %vm4409_vm3, %v5091_v42  ;;  %v5092_v15 = vpack.c.bf16 %v4116_v45, %v4116_v45  ;;  %v4114_v51 = vmax.f32 %v3376_v39, %v4050_v1  ;;  %v3317_v54 = vmax.f32 %v3153_v46, 0.0  ;;  %v3156_v5 = vadd.f32 %v6583_v19, %v5436_v3  ;;  %v3147_v17 = vpop.f32.mrb[95].mxu0  ;;  %v3885_v21 = vpop.f32.mrb[95].mxu1 }
 0x1f6   : > { %4434 = vst.msk [vmem:[%s6577_s14 + $0x60] sm:$0xf] %vm4409_vm3, %v5089_v60  ;;  %v4055_v29 = vmax.f32 %v3891_v49, 0.0  ;;  %v3315_v55 = vmax.f32 %v3145_v50, 0.0  ;;  %v4053_v8 = vmax.f32 %v3883_v48, 0.0  ;;  %v3894_v41 = vadd.f32 %v6583_v19, %v5504_v2 }
 0x1f7   : > { %4437 = vst.msk [vmem:[%s6577_s14 + $0x6c] sm:$0xf] %vm4409_vm3, %v5092_v15  ;;  %v5090_v32 = vpack.c.bf16 %v4114_v51, %v4114_v51  ;;  %v3381_v43 = vmax.f32 %v6425_v27, %v3317_v54  ;;  %v3318_v58 = vmax.f32 %v3156_v5, 0.0  ;;  %v3148_v52 = vadd.f32 %v6583_v19, %v3147_v17 }
 0x1f8   : > { %v3379_v9 = vmax.f32 %v6427_v31, %v3315_v55  ;;  %v3886_v10 = vadd.f32 %v6583_v19, %v3885_v21  ;;  %v4056_v53 = vmax.f32 %v3894_v41, 0.0 }
 0x1f9   : > { %4435 = vst.msk [vmem:[%s6577_s14 + $0x64] sm:$0xf] %vm4409_vm3, %v5090_v32  ;;  %v4119_v35 = vmax.f32 %v3381_v43, %v4055_v29  ;;  %v3382_v24 = vmax.f32 %v6429_v37, %v3318_v58  ;;  %v3316_v61 = vmax.f32 %v3148_v52, 0.0 }
 0x1fa   : > { %v4117_v13 = vmax.f32 %v3379_v9, %v4053_v8  ;;  %v4054_v22 = vmax.f32 %v3886_v10, 0.0  ;;  %v5439_v36 = vpop.f32.mrb[96].mxu0  ;;  %v5507_v34 = vpop.f32.mrb[96].mxu1 }
 0x1fb   : > { %v5095_v27 = vpack.c.bf16 %v4119_v35, %v4119_v35  ;;  %v4120_v16 = vmax.f32 %v3382_v24, %v4056_v53  ;;  %v3380_v25 = vmax.f32 %v6431_v38, %v3316_v61  ;;  %v3169_v31 = vadd.f32 %v6583_v19, %v5439_v36  ;;  %v3160_v62 = vpop.f32.mrb[97].mxu0  ;;  %v3898_v33 = vpop.f32.mrb[97].mxu1 }
 0x1fc   : > { %v5093_v44 = vpack.c.bf16 %v4117_v13, %v4117_v13  ;;  %v3907_v0 = vadd.f32 %v6583_v19, %v5507_v34  ;;  %v3161_v37 = vadd.f32 %v6583_v19, %v3160_v62  ;;  %v3899_v6 = vadd.f32 %v6583_v19, %v3898_v33  ;;  %v5440_v57 = vpop.f32.mrb[98].mxu0  ;;  %v5508_v20 = vpop.f32.mrb[98].mxu1 }
 0x1fd   : > { %4440 = vst.msk [vmem:[%s6577_s14 + $0x78] sm:$0xf] %vm4409_vm3, %v5095_v27  ;;  %v5096_v1 = vpack.c.bf16 %v4120_v16, %v4120_v16  ;;  %v4118_v47 = vmax.f32 %v3380_v25, %v4054_v22  ;;  %v3321_v38 = vmax.f32 %v3169_v31, 0.0  ;;  %v3172_v40 = vadd.f32 %v6583_v19, %v5440_v57  ;;  %v3163_v42 = vpop.f32.mrb[99].mxu0  ;;  %v3901_v45 = vpop.f32.mrb[99].mxu1 }
 0x1fe   : > { %4438 = vst.msk [vmem:[%s6577_s14 + $0x70] sm:$0xf] %vm4409_vm3, %v5093_v44  ;;  %v4059_v39 = vmax.f32 %v3907_v0, 0.0  ;;  %v3319_v46 = vmax.f32 %v3161_v37, 0.0  ;;  %v4057_v56 = vmax.f32 %v3899_v6, 0.0  ;;  %v3910_v59 = vadd.f32 %v6583_v19, %v5508_v20 }
 0x1ff   : > { %4441 = vst.msk [vmem:[%s6577_s14 + $0x7c] sm:$0xf] %vm4409_vm3, %v5096_v1  ;;  %v5094_v60 = vpack.c.bf16 %v4118_v47, %v4118_v47  ;;  %v3385_v49 = vmax.f32 %v6441_v12, %v3321_v38  ;;  %v3322_v50 = vmax.f32 %v3172_v40, 0.0  ;;  %v3164_v48 = vadd.f32 %v6583_v19, %v3163_v42 }
 0x200   : > { %v3383_v3 = vmax.f32 %v6443_v18, %v3319_v46  ;;  %v3902_v2 = vadd.f32 %v6583_v19, %v3901_v45  ;;  %v4060_v54 = vmax.f32 %v3910_v59, 0.0 }
 0x201   : > { %4439 = vst.msk [vmem:[%s6577_s14 + $0x74] sm:$0xf] %vm4409_vm3, %v5094_v60  ;;  %v4123_v15 = vmax.f32 %v3385_v49, %v4059_v39  ;;  %v3386_v51 = vmax.f32 %v6445_v26, %v3322_v50  ;;  %v3320_v5 = vmax.f32 %v3164_v48, 0.0 }
 0x202   : > { %v4121_v17 = vmax.f32 %v3383_v3, %v4057_v56  ;;  %v4058_v21 = vmax.f32 %v3902_v2, 0.0  ;;  %v5443_v29 = vpop.f32.mrb[100].mxu0  ;;  %v5511_v55 = vpop.f32.mrb[100].mxu1 }
 0x203   : > { %v5099_v12 = vpack.c.bf16 %v4123_v15, %v4123_v15  ;;  %v4124_v8 = vmax.f32 %v3386_v51, %v4060_v54  ;;  %v3384_v41 = vmax.f32 %v6447_v28, %v3320_v5  ;;  %v3185_v18 = vadd.f32 %v6583_v19, %v5443_v29  ;;  %v3176_v32 = vpop.f32.mrb[101].mxu0  ;;  %v3914_v43 = vpop.f32.mrb[101].mxu1 }
 0x204   : > { %v5097_v58 = vpack.c.bf16 %v4121_v17, %v4121_v17  ;;  %v3923_v52 = vadd.f32 %v6583_v19, %v5511_v55  ;;  %v3177_v26 = vadd.f32 %v6583_v19, %v3176_v32  ;;  %v3915_v9 = vadd.f32 %v6583_v19, %v3914_v43  ;;  %v5444_v10 = vpop.f32.mrb[102].mxu0  ;;  %v5512_v35 = vpop.f32.mrb[102].mxu1 }
 0x205   : > { %4444 = vst.msk [vmem:[%s6577_s14 + $0x88] sm:$0xf] %vm4409_vm3, %v5099_v12  ;;  %v5100_v24 = vpack.c.bf16 %v4124_v8, %v4124_v8  ;;  %v4122_v53 = vmax.f32 %v3384_v41, %v4058_v21  ;;  %v3325_v28 = vmax.f32 %v3185_v18, 0.0  ;;  %v3188_v61 = vadd.f32 %v6583_v19, %v5444_v10  ;;  %v3179_v13 = vpop.f32.mrb[103].mxu0  ;;  %v3917_v22 = vpop.f32.mrb[103].mxu1  ;;  %v6933_v41 = vld [vmem:[#allocation3_spill] sm:$0xff] }
 0x206   : > { %4442 = vst.msk [vmem:[%s6577_s14 + $0x80] sm:$0xf] %vm4409_vm3, %v5097_v58  ;;  %v4063_v36 = vmax.f32 %v3923_v52, 0.0  ;;  %v3323_v34 = vmax.f32 %v3177_v26, 0.0  ;;  %v4061_v27 = vmax.f32 %v3915_v9, 0.0  ;;  %v3926_v16 = vadd.f32 %v6583_v19, %v5512_v35  ;;  %v6934_v58 = vld [vmem:[#allocation4_spill] sm:$0xff] }
 0x207   : > { %4445 = vst.msk [vmem:[%s6577_s14 + $0x8c] sm:$0xf] %vm4409_vm3, %v5100_v24  ;;  %v5098_v25 = vpack.c.bf16 %v4122_v53, %v4122_v53  ;;  %v3389_v31 = vmax.f32 %v6457_v7, %v3325_v28  ;;  %v3326_v62 = vmax.f32 %v3188_v61, 0.0  ;;  %v3180_v33 = vadd.f32 %v6583_v19, %v3179_v13  ;;  %v6935_v61 = vld [vmem:[#allocation5_spill] sm:$0xff] }
 0x208   : > { %v3387_v44 = vmax.f32 %v6459_v14, %v3323_v34  ;;  %v3918_v0 = vadd.f32 %v6583_v19, %v3917_v22  ;;  %v4064_v57 = vmax.f32 %v3926_v16, 0.0 }
 0x209   : > { %4443 = vst.msk [vmem:[%s6577_s14 + $0x84] sm:$0xf] %vm4409_vm3, %v5098_v25  ;;  %v4127_v37 = vmax.f32 %v3389_v31, %v4063_v36  ;;  %v3390_v6 = vmax.f32 %v6461_v23, %v3326_v62  ;;  %v3324_v20 = vmax.f32 %v3180_v33, 0.0 }
 0x20a   : > { %v4125_v1 = vmax.f32 %v3387_v44, %v4061_v27  ;;  %v4062_v47 = vmax.f32 %v3918_v0, 0.0  ;;  %v5447_v38 = vpop.f32.mrb[104].mxu0  ;;  %v5515_v40 = vpop.f32.mrb[104].mxu1 }
 0x20b   : > { %v5103_v7 = vpack.c.bf16 %v4127_v37, %v4127_v37  ;;  %v4128_v42 = vmax.f32 %v3390_v6, %v4064_v57  ;;  %v3388_v45 = vmax.f32 %v6463_v30, %v3324_v20  ;;  %v3201_v14 = vadd.f32 %v6583_v19, %v5447_v38  ;;  %v3192_v39 = vpop.f32.mrb[105].mxu0  ;;  %v3930_v46 = vpop.f32.mrb[105].mxu1 }
 0x20c   : > { %v5101_v56 = vpack.c.bf16 %v4125_v1, %v4125_v1  ;;  %v3939_v59 = vadd.f32 %v6583_v19, %v5515_v40  ;;  %v3193_v23 = vadd.f32 %v6583_v19, %v3192_v39  ;;  %v3931_v60 = vadd.f32 %v6583_v19, %v3930_v46  ;;  %v5448_v49 = vpop.f32.mrb[106].mxu0  ;;  %v5516_v50 = vpop.f32.mrb[106].mxu1  ;;  %v6937_v46 = vld [vmem:[#allocation7_spill] sm:$0xff] }
 0x20d   : > { %4448 = vst.msk [vmem:[%s6577_s14 + $0x98] sm:$0xf] %vm4409_vm3, %v5103_v7  ;;  %v5104_v48 = vpack.c.bf16 %v4128_v42, %v4128_v42  ;;  %v4126_v3 = vmax.f32 %v3388_v45, %v4062_v47  ;;  %v3329_v30 = vmax.f32 %v3201_v14, 0.0  ;;  %v3204_v2 = vadd.f32 %v6583_v19, %v5448_v49  ;;  %v3195_v15 = vpop.f32.mrb[107].mxu0  ;;  %v3933_v51 = vpop.f32.mrb[107].mxu1  ;;  %v6936_v42 = vld [vmem:[#allocation6_spill] sm:$0xff] }
 0x20e   : > { %4446 = vst.msk [vmem:[%s6577_s14 + $0x90] sm:$0xf] %vm4409_vm3, %v5101_v56  ;;  %v4067_v54 = vmax.f32 %v3939_v59, 0.0  ;;  %v3327_v5 = vmax.f32 %v3193_v23, 0.0  ;;  %v4065_v17 = vmax.f32 %v3931_v60, 0.0  ;;  %v3942_v21 = vadd.f32 %v6583_v19, %v5516_v50  ;;  %v6938_v60 = vld [vmem:[#allocation8_spill] sm:$0xff] }
 0x20f   : > { %4449 = vst.msk [vmem:[%s6577_s14 + $0x9c] sm:$0xf] %vm4409_vm3, %v5104_v48  ;;  %v5102_v29 = vpack.c.bf16 %v4126_v3, %v4126_v3  ;;  %v3393_v55 = vmax.f32 %v6473_v11, %v3329_v30  ;;  %v3330_v12 = vmax.f32 %v3204_v2, 0.0  ;;  %v3196_v8 = vadd.f32 %v6583_v19, %v3195_v15 }
 0x210   : > { %v3391_v18 = vmax.f32 %v6933_v41, %v3327_v5  ;;  %v3934_v32 = vadd.f32 %v6583_v19, %v3933_v51  ;;  %v4068_v26 = vmax.f32 %v3942_v21, 0.0  ;;  %v6939_v5 = vld [vmem:[#allocation9_spill] sm:$0xff] }
 0x211   : > { %4447 = vst.msk [vmem:[%s6577_s14 + $0x94] sm:$0xf] %vm4409_vm3, %v5102_v29  ;;  %v4131_v43 = vmax.f32 %v3393_v55, %v4067_v54  ;;  %v3394_v52 = vmax.f32 %v6934_v58, %v3330_v12  ;;  %v3328_v9 = vmax.f32 %v3196_v8, 0.0 }
 0x212   : > { %v4129_v10 = vmax.f32 %v3391_v18, %v4065_v17  ;;  %v4066_v35 = vmax.f32 %v3934_v32, 0.0  ;;  %v5451_v24 = vpop.f32.mrb[108].mxu0  ;;  %v5519_v53 = vpop.f32.mrb[108].mxu1 }
 0x213   : > { %v5107_v11 = vpack.c.bf16 %v4131_v43, %v4131_v43  ;;  %v4132_v28 = vmax.f32 %v3394_v52, %v4068_v26  ;;  %v3392_v13 = vmax.f32 %v6935_v61, %v3328_v9  ;;  %v3217_v22 = vadd.f32 %v6583_v19, %v5451_v24  ;;  %v3208_v36 = vpop.f32.mrb[109].mxu0  ;;  %v3946_v34 = vpop.f32.mrb[109].mxu1 }
 0x214   : > { %v5105_v27 = vpack.c.bf16 %v4129_v10, %v4129_v10  ;;  %v3955_v16 = vadd.f32 %v6583_v19, %v5519_v53  ;;  %v3209_v25 = vadd.f32 %v6583_v19, %v3208_v36  ;;  %v3947_v31 = vadd.f32 %v6583_v19, %v3946_v34  ;;  %v5452_v62 = vpop.f32.mrb[110].mxu0  ;;  %v5520_v33 = vpop.f32.mrb[110].mxu1 }
 0x215   : > { %4452 = vst.msk [vmem:[%s6577_s14 + $0xa8] sm:$0xf] %vm4409_vm3, %v5107_v11  ;;  %v5108_v44 = vpack.c.bf16 %v4132_v28, %v4132_v28  ;;  %v4130_v0 = vmax.f32 %v3392_v13, %v4066_v35  ;;  %v3333_v37 = vmax.f32 %v3217_v22, 0.0  ;;  %v3220_v6 = vadd.f32 %v6583_v19, %v5452_v62  ;;  %v3211_v57 = vpop.f32.mrb[111].mxu0  ;;  %v3949_v20 = vpop.f32.mrb[111].mxu1  ;;  %v6940_v13 = vld [vmem:[#allocation10_spill] sm:$0xff] }
 0x216   : > { %4450 = vst.msk [vmem:[%s6577_s14 + $0xa0] sm:$0xf] %vm4409_vm3, %v5105_v27  ;;  %v4071_v1 = vmax.f32 %v3955_v16, 0.0  ;;  %v3331_v47 = vmax.f32 %v3209_v25, 0.0  ;;  %v4069_v38 = vmax.f32 %v3947_v31, 0.0  ;;  %v3958_v40 = vadd.f32 %v6583_v19, %v5520_v33  ;;  %v6941_v27 = vld [vmem:[#allocation11_spill] sm:$0xff] }
 0x217   : > { %4453 = vst.msk [vmem:[%s6577_s14 + $0xac] sm:$0xf] %vm4409_vm3, %v5108_v44  ;;  %v5106_v7 = vpack.c.bf16 %v4130_v0, %v4130_v0  ;;  %v3397_v45 = vmax.f32 %v6936_v42, %v3333_v37  ;;  %v3334_v14 = vmax.f32 %v3220_v6, 0.0  ;;  %v3212_v39 = vadd.f32 %v6583_v19, %v3211_v57  ;;  %v6942_v62 = vld [vmem:[#allocation12_spill] sm:$0xff] }
 0x218   : > { %v3395_v56 = vmax.f32 %v6937_v46, %v3331_v47  ;;  %v3950_v59 = vadd.f32 %v6583_v19, %v3949_v20  ;;  %v4072_v50 = vmax.f32 %v3958_v40, 0.0 }
 0x219   : > { %4451 = vst.msk [vmem:[%s6577_s14 + $0xa4] sm:$0xf] %vm4409_vm3, %v5106_v7  ;;  %v4135_v23 = vmax.f32 %v3397_v45, %v4071_v1  ;;  %v3398_v49 = vmax.f32 %v6938_v60, %v3334_v14  ;;  %v3332_v48 = vmax.f32 %v3212_v39, 0.0 }
 0x21a   : > { %v4133_v3 = vmax.f32 %v3395_v56, %v4069_v38  ;;  %v4070_v30 = vmax.f32 %v3950_v59, 0.0  ;;  %v5455_v2 = vpop.f32.mrb[112].mxu0  ;;  %v5523_v15 = vpop.f32.mrb[112].mxu1  ;;  %v6943_v38 = vld [vmem:[#allocation13_spill] sm:$0xff] }
 0x21b   : > { %v5111_v51 = vpack.c.bf16 %v4135_v23, %v4135_v23  ;;  %v4136_v54 = vmax.f32 %v3398_v49, %v4072_v50  ;;  %v3396_v17 = vmax.f32 %v6939_v5, %v3332_v48  ;;  %v3233_v21 = vadd.f32 %v6583_v19, %v5455_v2  ;;  %v3224_v29 = vpop.f32.mrb[113].mxu0  ;;  %v3962_v55 = vpop.f32.mrb[113].mxu1 }
 0x21c   : > { %v5109_v12 = vpack.c.bf16 %v4133_v3, %v4133_v3  ;;  %v3971_v8 = vadd.f32 %v6583_v19, %v5523_v15  ;;  %v3225_v41 = vadd.f32 %v6583_v19, %v3224_v29  ;;  %v3963_v18 = vadd.f32 %v6583_v19, %v3962_v55  ;;  %v5456_v32 = vpop.f32.mrb[114].mxu0  ;;  %v5524_v43 = vpop.f32.mrb[114].mxu1  ;;  %v6944_v55 = vld [vmem:[#allocation14_spill] sm:$0xff] }
 0x21d   : > { %4456 = vst.msk [vmem:[%s6577_s14 + $0xb8] sm:$0xf] %vm4409_vm3, %v5111_v51  ;;  %v5112_v58 = vpack.c.bf16 %v4136_v54, %v4136_v54  ;;  %v4134_v52 = vmax.f32 %v3396_v17, %v4070_v30  ;;  %v3337_v26 = vmax.f32 %v3233_v21, 0.0  ;;  %v3236_v9 = vadd.f32 %v6583_v19, %v5456_v32  ;;  %v3227_v10 = vpop.f32.mrb[115].mxu0  ;;  %v3965_v35 = vpop.f32.mrb[115].mxu1 }
 0x21e   : > { %4454 = vst.msk [vmem:[%s6577_s14 + $0xb0] sm:$0xf] %vm4409_vm3, %v5109_v12  ;;  %v4075_v24 = vmax.f32 %v3971_v8, 0.0  ;;  %v3335_v53 = vmax.f32 %v3225_v41, 0.0  ;;  %v4073_v11 = vmax.f32 %v3963_v18, 0.0  ;;  %v3974_v28 = vadd.f32 %v6583_v19, %v5524_v43  ;;  %v6945_v18 = vld [vmem:[#allocation15_spill] sm:$0xff] }
 0x21f   : > { %4457 = vst.msk [vmem:[%s6577_s14 + $0xbc] sm:$0xf] %vm4409_vm3, %v5112_v58  ;;  %v5110_v61 = vpack.c.bf16 %v4134_v52, %v4134_v52  ;;  %v3401_v22 = vmax.f32 %v6940_v13, %v3337_v26  ;;  %v3338_v36 = vmax.f32 %v3236_v9, 0.0  ;;  %v3228_v34 = vadd.f32 %v6583_v19, %v3227_v10 }
 0x220   : > { %v3399_v16 = vmax.f32 %v6941_v27, %v3335_v53  ;;  %v3966_v25 = vadd.f32 %v6583_v19, %v3965_v35  ;;  %v4076_v44 = vmax.f32 %v3974_v28, 0.0 }
 0x221   : > { %4455 = vst.msk [vmem:[%s6577_s14 + $0xb4] sm:$0xf] %vm4409_vm3, %v5110_v61  ;;  %v4139_v31 = vmax.f32 %v3401_v22, %v4075_v24  ;;  %v3402_v33 = vmax.f32 %v6942_v62, %v3338_v36  ;;  %v3336_v0 = vmax.f32 %v3228_v34, 0.0  ;;  %v6946_v24 = vld [vmem:[#allocation16_spill] sm:$0xff] }
 0x222   : > { %v4137_v37 = vmax.f32 %v3399_v16, %v4073_v11  ;;  %v4074_v6 = vmax.f32 %v3966_v25, 0.0  ;;  %v5459_v57 = vpop.f32.mrb[116].mxu0  ;;  %v5527_v20 = vpop.f32.mrb[116].mxu1 }
 0x223   : > { %v5115_v1 = vpack.c.bf16 %v4139_v31, %v4139_v31  ;;  %v4140_v47 = vmax.f32 %v3402_v33, %v4076_v44  ;;  %v3400_v40 = vmax.f32 %v6943_v38, %v3336_v0  ;;  %v3249_v7 = vadd.f32 %v6583_v19, %v5459_v57  ;;  %v3240_v42 = vpop.f32.mrb[117].mxu0  ;;  %v3978_v45 = vpop.f32.mrb[117].mxu1 }
 0x224   : > { %v5113_v14 = vpack.c.bf16 %v4137_v37, %v4137_v37  ;;  %v3987_v39 = vadd.f32 %v6583_v19, %v5527_v20  ;;  %v3241_v46 = vadd.f32 %v6583_v19, %v3240_v42  ;;  %v3979_v56 = vadd.f32 %v6583_v19, %v3978_v45  ;;  %v5460_v59 = vpop.f32.mrb[118].mxu0  ;;  %v5528_v23 = vpop.f32.mrb[118].mxu1  ;;  %v6948_v42 = vld [vmem:[#allocation18_spill] sm:$0xff] }
 0x225   : > { %4460 = vst.msk [vmem:[%s6577_s14 + $0xc8] sm:$0xf] %vm4409_vm3, %v5115_v1  ;;  %v5116_v60 = vpack.c.bf16 %v4140_v47, %v4140_v47  ;;  %v4138_v49 = vmax.f32 %v3400_v40, %v4074_v6  ;;  %v3341_v50 = vmax.f32 %v3249_v7, 0.0  ;;  %v3252_v48 = vadd.f32 %v6583_v19, %v5460_v59  ;;  %v3243_v3 = vpop.f32.mrb[119].mxu0  ;;  %v3981_v30 = vpop.f32.mrb[119].mxu1  ;;  %v6947_v47 = vld [vmem:[#allocation17_spill] sm:$0xff] }
 0x226   : > { %4458 = vst.msk [vmem:[%s6577_s14 + $0xc0] sm:$0xf] %vm4409_vm3, %v5113_v14  ;;  %v4079_v2 = vmax.f32 %v3987_v39, 0.0  ;;  %v3339_v15 = vmax.f32 %v3241_v46, 0.0  ;;  %v4077_v51 = vmax.f32 %v3979_v56, 0.0  ;;  %v3990_v54 = vadd.f32 %v6583_v19, %v5528_v23  ;;  %v6949_v46 = vld [vmem:[#allocation19_spill] sm:$0xff] }
 0x227   : > { %4461 = vst.msk [vmem:[%s6577_s14 + $0xcc] sm:$0xf] %vm4409_vm3, %v5116_v60  ;;  %v5114_v5 = vpack.c.bf16 %v4138_v49, %v4138_v49  ;;  %v3405_v17 = vmax.f32 %v6521_v4, %v3341_v50  ;;  %v3342_v21 = vmax.f32 %v3252_v48, 0.0  ;;  %v3244_v29 = vadd.f32 %v6583_v19, %v3243_v3 }
 0x228   : > { %v3403_v12 = vmax.f32 %v6944_v55, %v3339_v15  ;;  %v3982_v8 = vadd.f32 %v6583_v19, %v3981_v30  ;;  %v4080_v43 = vmax.f32 %v3990_v54, 0.0  ;;  %v6848_v19 = vld [vmem:[%s6910_s2] ss:$0 sm:$0xff] }
 0x229   : > { %4459 = vst.msk [vmem:[%s6577_s14 + $0xc4] sm:$0xf] %vm4409_vm3, %v5114_v5  ;;  %v4143_v41 = vmax.f32 %v3405_v17, %v4079_v2  ;;  %v3406_v32 = vmax.f32 %v6945_v18, %v3342_v21  ;;  %v3340_v58 = vmax.f32 %v3244_v29, 0.0  ;;  %v6950_v2 = vld [vmem:[#allocation20_spill] sm:$0xff] }
 0x22a   : > { %v4141_v52 = vmax.f32 %v3403_v12, %v4077_v51  ;;  %v4078_v26 = vmax.f32 %v3982_v8, 0.0  ;;  %v5463_v9 = vpop.f32.mrb[120].mxu0  ;;  %v5531_v10 = vpop.f32.mrb[120].mxu1 }
 0x22b   : > { %v5119_v4 = vpack.c.bf16 %v4143_v41, %v4143_v41  ;;  %v4144_v35 = vmax.f32 %v3406_v32, %v4080_v43  ;;  %v3404_v53 = vmax.f32 %v6946_v24, %v3340_v58  ;;  %v3265_v11 = vadd.f32 %v6848_v19, %v5463_v9  ;;  %v3256_v28 = vpop.f32.mrb[121].mxu0  ;;  %v3994_v61 = vpop.f32.mrb[121].mxu1 }
 0x22c   : > { %v5117_v13 = vpack.c.bf16 %v4141_v52, %v4141_v52  ;;  %v4003_v22 = vadd.f32 %v6848_v19, %v5531_v10  ;;  %v3257_v36 = vadd.f32 %v6848_v19, %v3256_v28  ;;  %v3995_v34 = vadd.f32 %v6848_v19, %v3994_v61  ;;  %v5464_v27 = vpop.f32.mrb[122].mxu0  ;;  %v5532_v16 = vpop.f32.mrb[122].mxu1  ;;  %v6951_v28 = vld [vmem:[#allocation21_spill] sm:$0xff] }
 0x22d   : > { %4464 = vst.msk [vmem:[%s6577_s14 + $0xd8] sm:$0xf] %vm4409_vm3, %v5119_v4  ;;  %v5120_v25 = vpack.c.bf16 %v4144_v35, %v4144_v35  ;;  %v4142_v31 = vmax.f32 %v3404_v53, %v4078_v26  ;;  %v3345_v62 = vmax.f32 %v3265_v11, 0.0  ;;  %v3268_v33 = vadd.f32 %v6848_v19, %v5464_v27  ;;  %v3259_v44 = vpop.f32.mrb[123].mxu0  ;;  %v3997_v0 = vpop.f32.mrb[123].mxu1 }
 0x22e   : > { %4462 = vst.msk [vmem:[%s6577_s14 + $0xd0] sm:$0xf] %vm4409_vm3, %v5117_v13  ;;  %v4083_v37 = vmax.f32 %v4003_v22, 0.0  ;;  %v3343_v6 = vmax.f32 %v3257_v36, 0.0  ;;  %v4081_v57 = vmax.f32 %v3995_v34, 0.0  ;;  %v4006_v20 = vadd.f32 %v6848_v19, %v5532_v16  ;;  %v6952_v36 = vld [vmem:[#allocation22_spill] sm:$0xff] }
 0x22f   : > { %4465 = vst.msk [vmem:[%s6577_s14 + $0xdc] sm:$0xf] %vm4409_vm3, %v5120_v25  ;;  %v5118_v1 = vpack.c.bf16 %v4142_v31, %v4142_v31  ;;  %v3409_v38 = vmax.f32 %v6947_v47, %v3345_v62  ;;  %v3346_v40 = vmax.f32 %v3268_v33, 0.0  ;;  %v3260_v7 = vadd.f32 %v6848_v19, %v3259_v44  ;;  %v6953_v62 = vld [vmem:[#allocation23_spill] sm:$0xff] }
 0x230   : > { %v3407_v45 = vmax.f32 %v6948_v42, %v3343_v6  ;;  %v3998_v14 = vadd.f32 %v6848_v19, %v3997_v0  ;;  %v4084_v59 = vmax.f32 %v4006_v20, 0.0 }
 0x231   : > { %4463 = vst.msk [vmem:[%s6577_s14 + $0xd4] sm:$0xf] %vm4409_vm3, %v5118_v1  ;;  %v4147_v39 = vmax.f32 %v3409_v38, %v4083_v37  ;;  %v3410_v56 = vmax.f32 %v6949_v46, %v3346_v40  ;;  %v3344_v23 = vmax.f32 %v3260_v7, 0.0 }
 0x232   : > { %v4145_v60 = vmax.f32 %v3407_v45, %v4081_v57  ;;  %v4082_v49 = vmax.f32 %v3998_v14, 0.0  ;;  %v5467_v50 = vpop.f32.mrb[124].mxu0  ;;  %v5535_v48 = vpop.f32.mrb[124].mxu1 }
 0x233   : > { %v5123_v3 = vpack.c.bf16 %v4147_v39, %v4147_v39  ;;  %v4148_v30 = vmax.f32 %v3410_v56, %v4084_v59  ;;  %v3408_v15 = vmax.f32 %v6950_v2, %v3344_v23  ;;  %v3281_v51 = vadd.f32 %v6848_v19, %v5467_v50  ;;  %v3272_v54 = vpop.f32.mrb[125].mxu0  ;;  %v4010_v5 = vpop.f32.mrb[125].mxu1 }
 0x234   : > { %v5121_v17 = vpack.c.bf16 %v4145_v60, %v4145_v60  ;;  %v4019_v21 = vadd.f32 %v6848_v19, %v5535_v48  ;;  %v3273_v29 = vadd.f32 %v6848_v19, %v3272_v54  ;;  %v4011_v55 = vadd.f32 %v6848_v19, %v4010_v5  ;;  %v5468_v12 = vpop.f32.mrb[126].mxu0  ;;  %v5536_v8 = vpop.f32.mrb[126].mxu1 }
 0x235   : > { %4468 = vst.msk [vmem:[%s6577_s14 + $0xe8] sm:$0xf] %vm4409_vm3, %v5123_v3  ;;  %v5124_v41 = vpack.c.bf16 %v4148_v30, %v4148_v30  ;;  %v4146_v18 = vmax.f32 %v3408_v15, %v4082_v49  ;;  %v3349_v32 = vmax.f32 %v3281_v51, 0.0  ;;  %v3284_v43 = vadd.f32 %v6848_v19, %v5468_v12  ;;  %v3275_v58 = vpop.f32.mrb[127].mxu0  ;;  %v4013_v52 = vpop.f32.mrb[127].mxu1 }
 0x236   : > { %4466 = vst.msk [vmem:[%s6577_s14 + $0xe0] sm:$0xf] %vm4409_vm3, %v5121_v17  ;;  %v4087_v26 = vmax.f32 %v4019_v21, 0.0  ;;  %v3347_v9 = vmax.f32 %v3273_v29, 0.0  ;;  %v4085_v10 = vmax.f32 %v4011_v55, 0.0  ;;  %v4022_v4 = vadd.f32 %v6848_v19, %v5536_v8 }
 0x237   : > { %4469 = vst.msk [vmem:[%s6577_s14 + $0xec] sm:$0xf] %vm4409_vm3, %v5124_v41  ;;  %v5122_v35 = vpack.c.bf16 %v4146_v18, %v4146_v18  ;;  %v3413_v24 = vmax.f32 %v6555_v63, %v3349_v32  ;;  %v3350_v53 = vmax.f32 %v3284_v43, 0.0  ;;  %v3276_v11 = vadd.f32 %v6848_v19, %v3275_v58 }
 0x238   : > { %v3411_v61 = vmax.f32 %v6951_v28, %v3347_v9  ;;  %v4014_v13 = vadd.f32 %v6848_v19, %v4013_v52  ;;  %v4088_v27 = vmax.f32 %v4022_v4, 0.0 }
 0x239   : > { %4467 = vst.msk [vmem:[%s6577_s14 + $0xe4] sm:$0xf] %vm4409_vm3, %v5122_v35  ;;  %v4151_v22 = vmax.f32 %v3413_v24, %v4087_v26  ;;  %v3414_v34 = vmax.f32 %v6952_v36, %v3350_v53  ;;  %v3348_v16 = vmax.f32 %v3276_v11, 0.0 }
 0x23a   : > { %v4149_v25 = vmax.f32 %v3411_v61, %v4085_v10  ;;  %v4086_v44 = vmax.f32 %v4014_v13, 0.0 }
 0x23b   : > { %v5127_v63 = vpack.c.bf16 %v4151_v22, %v4151_v22  ;;  %v4152_v31 = vmax.f32 %v3414_v34, %v4088_v27  ;;  %v3412_v33 = vmax.f32 %v6953_v62, %v3348_v16 }
 0x23c   : > { %v5125_v0 = vpack.c.bf16 %v4149_v25, %v4149_v25 }
 0x23d   : > { %4472 = vst.msk [vmem:[%s6577_s14 + $0xf8] sm:$0xf] %vm4409_vm3, %v5127_v63  ;;  %v5128_v37 = vpack.c.bf16 %v4152_v31, %v4152_v31  ;;  %v4150_v19 = vmax.f32 %v3412_v33, %v4086_v44 }
 0x23e   : > { %4470 = vst.msk [vmem:[%s6577_s14 + $0xf0] sm:$0xf] %vm4409_vm3, %v5125_v0 }
 0x23f   : > { %4473 = vst.msk [vmem:[%s6577_s14 + $0xfc] sm:$0xf] %vm4409_vm3, %v5128_v37  ;;  %v5126_v6 = vpack.c.bf16 %v4150_v19, %v4150_v19 }
 0x241   : > { %4471 = vst.msk [vmem:[%s6577_s14 + $0xf4] sm:$0xf] %vm4409_vm3, %v5126_v6 }
 0x242 PF: > { %p10_p9 = scmp.ge.s32.totalorder %s5756_s16, 6   ;;  %s6954_s12 = smov %s5712_s13 }
 0x243   : > { %s6955_s13 = smov %s5765_s19  ;;  %s6956_s14 = smov %s5756_s16 }
 0x244   :  { %12 = sbr.rel (!%p10_p9) target bundleno = 2 (0x2), region = 111 }

// kernel: _lambda_.13
= control target key start
LH: loop header
LB: loop body
LE: loop exit
PB: predicated region body
PF: predicated region fallthrough
CT: control target
= control target key end

     0   :  { %s5848_s12 = smov 0   ;;  %s5850_s13 = smov 0   ;;  %s7657_s0 = inlined_call_operand.vmem [shape: bf16[4,512,288], index: 0, kind: input, shape index: {}]   ;;  %s7658_s1 = inlined_call_operand.vmem [shape: bf16[288,16], index: 1, kind: input, shape index: {}]   ;;  %s7659_s2 = inlined_call_operand.vmem [shape: f32[1,16], index: 2, kind: input, shape index: {}]   ;;  %s7660_s3 = inlined_call_operand.vmem [shape: bf16[512,16], index: 3, kind: output, shape index: {}]  }
   0x1   :  { %s5852_s14 = smov 0  }
   0x2 LB: > { %s4016_s15 = sadd.s32 4294967295, %s5826_s14   ;;  %s5865_s16 = sadd.s32 1, %s5826_s14   ;;  %s5826_s14 = sphi %s5852_s14, %s7689_s14   ;;  %s5822_s13 = sphi %s5850_s13, %s7688_s13   ;;  %s5818_s12 = sphi %s5848_s12, %s7687_s12  }
   0x3   : > { %s17_s17 = ssub.s32 %s5826_s14, %s5865_s16  ;;  %s20_s18 = sadd.s32 1, %s5822_s13 }
   0x4   : > { %p18_p0 = scmp.eq.s32.totalorder %s17_s17, 0  ;;  %p27_p1 = scmp.ne.s32.totalorder %s5822_s13, %s5818_s12 }
   0x5   : > { %p28_p2 = scmp.eq.s32.totalorder %s5826_s14, 0  ;;  %p4019_p4 = scmp.ge.s32.totalorder %s5826_s14, 2 }
   0x6   : > { %s5874_s19 = scalar_select %p18_p0, %s5822_s13, %s20_s18  }
   0x7   : > { %p29_p3 = por %p28_p2, %p27_p1  ;;  %127 = sbr.rel (%p4019_p4) target bundleno = 168 (0xa8), region = 24 }
   0xe   : > { %130 = sbr.rel (!%p29_p3) target bundleno = 168 (0xa8), region = 28  ;;  %s132_s20 = sand.u32 (%p29_p3), 1, %s5822_s13  }
   0xf   : > { %s5484_s21 = smul.u32 (%p29_p3), 384, %s5826_s14 }
  0x10   : > { %s5483_s22 = smul.u32 (%p29_p3), 1536, %s132_s20 }
  0x11   : > { %s5882_s25 = scalar_lea.vmem (%p29_p3), %s7657_s0, %s5484_s21 }
  0x12   : > { %v153_v0 = vld [vmem:[%s5882_s25] sm:$0xff] (%p29_p3)  ;;  %v155_v1 = vld [vmem:[%s5882_s25 + $0xc] sm:$0xff] (%p29_p3)  ;;  %v157_v2 = vld [vmem:[%s5882_s25 + $0x18] sm:$0xff] (%p29_p3)  ;;  %s5887_s26 = scalar_lea.vmem (%p29_p3), [#allocation2], %s5483_s22 }
  0x13   : > { %154 = vst [vmem:[%s5887_s26] sm:$0xff] (%p29_p3), %v153_v0  ;;  %156 = vst [vmem:[%s5887_s26 + $0xc] sm:$0xff] (%p29_p3), %v155_v1  ;;  %v159_v3 = vld [vmem:[%s5882_s25 + $0x24] sm:$0xff] (%p29_p3)  ;;  %v161_v4 = vld [vmem:[%s5882_s25 + $0x30] sm:$0xff] (%p29_p3) }
  0x14   : > { %158 = vst [vmem:[%s5887_s26 + $0x18] sm:$0xff] (%p29_p3), %v157_v2  ;;  %v163_v5 = vld [vmem:[%s5882_s25 + $0x3c] sm:$0xff] (%p29_p3)  ;;  %160 = vst [vmem:[%s5887_s26 + $0x24] sm:$0xff] (%p29_p3), %v159_v3  ;;  %v165_v6 = vld [vmem:[%s5882_s25 + $0x48] sm:$0xff] (%p29_p3) }
  0x15   : > { %162 = vst [vmem:[%s5887_s26 + $0x30] sm:$0xff] %v161_v4  ;;  %164 = vst [vmem:[%s5887_s26 + $0x3c] sm:$0xff] %v163_v5  ;;  %v167_v7 = vld [vmem:[%s5882_s25 + $0x54] sm:$0xff]  ;;  %v169_v8 = vld [vmem:[%s5882_s25 + $0x60] sm:$0xff] }
  0x16   : > { %166 = vst [vmem:[%s5887_s26 + $0x48] sm:$0xff] %v165_v6  ;;  %168 = vst [vmem:[%s5887_s26 + $0x54] sm:$0xff] %v167_v7  ;;  %v171_v9 = vld [vmem:[%s5882_s25 + $0x6c] sm:$0xff]  ;;  %v173_v10 = vld [vmem:[%s5882_s25 + $0x78] sm:$0xff] }
  0x17   : > { %170 = vst [vmem:[%s5887_s26 + $0x60] sm:$0xff] %v169_v8  ;;  %v175_v11 = vld [vmem:[%s5882_s25 + $0x84] sm:$0xff]  ;;  %172 = vst [vmem:[%s5887_s26 + $0x6c] sm:$0xff] %v171_v9  ;;  %v177_v12 = vld [vmem:[%s5882_s25 + $0x90] sm:$0xff] }
  0x18   : > { %174 = vst [vmem:[%s5887_s26 + $0x78] sm:$0xff] %v173_v10  ;;  %176 = vst [vmem:[%s5887_s26 + $0x84] sm:$0xff] %v175_v11  ;;  %v179_v13 = vld [vmem:[%s5882_s25 + $0x9c] sm:$0xff]  ;;  %v181_v14 = vld [vmem:[%s5882_s25 + $0xa8] sm:$0xff] }
  0x19   : > { %178 = vst [vmem:[%s5887_s26 + $0x90] sm:$0xff] %v177_v12  ;;  %180 = vst [vmem:[%s5887_s26 + $0x9c] sm:$0xff] %v179_v13  ;;  %v183_v15 = vld [vmem:[%s5882_s25 + $0xb4] sm:$0xff]  ;;  %v185_v16 = vld [vmem:[%s5882_s25 + $0xc0] sm:$0xff] }
  0x1a   : > { %182 = vst [vmem:[%s5887_s26 + $0xa8] sm:$0xff] %v181_v14  ;;  %v187_v17 = vld [vmem:[%s5882_s25 + $0xcc] sm:$0xff]  ;;  %184 = vst [vmem:[%s5887_s26 + $0xb4] sm:$0xff] %v183_v15  ;;  %v189_v18 = vld [vmem:[%s5882_s25 + $0xd8] sm:$0xff] }
  0x1b   : > { %186 = vst [vmem:[%s5887_s26 + $0xc0] sm:$0xff] %v185_v16  ;;  %188 = vst [vmem:[%s5887_s26 + $0xcc] sm:$0xff] %v187_v17  ;;  %v191_v19 = vld [vmem:[%s5882_s25 + $0xe4] sm:$0xff]  ;;  %v193_v20 = vld [vmem:[%s5882_s25 + $0xf0] sm:$0xff] }
  0x1c   : > { %190 = vst [vmem:[%s5887_s26 + $0xd8] sm:$0xff] %v189_v18  ;;  %192 = vst [vmem:[%s5887_s26 + $0xe4] sm:$0xff] %v191_v19  ;;  %v195_v21 = vld [vmem:[%s5882_s25 + $0xfc] sm:$0xff]  ;;  %v197_v22 = vld [vmem:[%s5882_s25 + $0x108] sm:$0xff] }
  0x1d   : > { %194 = vst [vmem:[%s5887_s26 + $0xf0] sm:$0xff] %v193_v20  ;;  %v199_v23 = vld [vmem:[%s5882_s25 + $0x114] sm:$0xff]  ;;  %196 = vst [vmem:[%s5887_s26 + $0xfc] sm:$0xff] %v195_v21  ;;  %v201_v24 = vld [vmem:[%s5882_s25 + $0x120] sm:$0xff] }
  0x1e   : > { %198 = vst [vmem:[%s5887_s26 + $0x108] sm:$0xff] %v197_v22  ;;  %200 = vst [vmem:[%s5887_s26 + $0x114] sm:$0xff] %v199_v23  ;;  %v203_v25 = vld [vmem:[%s5882_s25 + $0x12c] sm:$0xff]  ;;  %v205_v26 = vld [vmem:[%s5882_s25 + $0x138] sm:$0xff] }
  0x1f   : > { %202 = vst [vmem:[%s5887_s26 + $0x120] sm:$0xff] %v201_v24  ;;  %204 = vst [vmem:[%s5887_s26 + $0x12c] sm:$0xff] %v203_v25  ;;  %v207_v27 = vld [vmem:[%s5882_s25 + $0x144] sm:$0xff]  ;;  %v209_v28 = vld [vmem:[%s5882_s25 + $0x150] sm:$0xff] }
  0x20   : > { %206 = vst [vmem:[%s5887_s26 + $0x138] sm:$0xff] %v205_v26  ;;  %v211_v29 = vld [vmem:[%s5882_s25 + $0x15c] sm:$0xff]  ;;  %208 = vst [vmem:[%s5887_s26 + $0x144] sm:$0xff] %v207_v27  ;;  %v213_v30 = vld [vmem:[%s5882_s25 + $0x168] sm:$0xff] }
  0x21   : > { %210 = vst [vmem:[%s5887_s26 + $0x150] sm:$0xff] %v209_v28  ;;  %212 = vst [vmem:[%s5887_s26 + $0x15c] sm:$0xff] %v211_v29  ;;  %v215_v31 = vld [vmem:[%s5882_s25 + $0x174] sm:$0xff]  ;;  %v217_v32 = vld [vmem:[%s5882_s25 + $0x300] sm:$0xff] }
  0x22   : > { %214 = vst [vmem:[%s5887_s26 + $0x168] sm:$0xff] %v213_v30  ;;  %216 = vst [vmem:[%s5887_s26 + $0x174] sm:$0xff] %v215_v31  ;;  %v219_v33 = vld [vmem:[%s5882_s25 + $0x30c] sm:$0xff]  ;;  %v221_v34 = vld [vmem:[%s5882_s25 + $0x318] sm:$0xff] }
  0x23   : > { %218 = vst [vmem:[%s5887_s26 + $0x180] sm:$0xff] %v217_v32  ;;  %v223_v35 = vld [vmem:[%s5882_s25 + $0x324] sm:$0xff]  ;;  %220 = vst [vmem:[%s5887_s26 + $0x18c] sm:$0xff] %v219_v33  ;;  %v225_v36 = vld [vmem:[%s5882_s25 + $0x330] sm:$0xff] }
  0x24   : > { %222 = vst [vmem:[%s5887_s26 + $0x198] sm:$0xff] %v221_v34  ;;  %224 = vst [vmem:[%s5887_s26 + $0x1a4] sm:$0xff] %v223_v35  ;;  %v227_v37 = vld [vmem:[%s5882_s25 + $0x33c] sm:$0xff]  ;;  %v229_v38 = vld [vmem:[%s5882_s25 + $0x348] sm:$0xff] }
  0x25   : > { %226 = vst [vmem:[%s5887_s26 + $0x1b0] sm:$0xff] %v225_v36  ;;  %228 = vst [vmem:[%s5887_s26 + $0x1bc] sm:$0xff] %v227_v37  ;;  %v231_v39 = vld [vmem:[%s5882_s25 + $0x354] sm:$0xff]  ;;  %v233_v40 = vld [vmem:[%s5882_s25 + $0x360] sm:$0xff] }
  0x26   : > { %230 = vst [vmem:[%s5887_s26 + $0x1c8] sm:$0xff] %v229_v38  ;;  %v235_v41 = vld [vmem:[%s5882_s25 + $0x36c] sm:$0xff]  ;;  %232 = vst [vmem:[%s5887_s26 + $0x1d4] sm:$0xff] %v231_v39  ;;  %v237_v42 = vld [vmem:[%s5882_s25 + $0x378] sm:$0xff] }
  0x27   : > { %234 = vst [vmem:[%s5887_s26 + $0x1e0] sm:$0xff] %v233_v40  ;;  %236 = vst [vmem:[%s5887_s26 + $0x1ec] sm:$0xff] %v235_v41  ;;  %v239_v43 = vld [vmem:[%s5882_s25 + $0x384] sm:$0xff]  ;;  %v241_v44 = vld [vmem:[%s5882_s25 + $0x390] sm:$0xff] }
  0x28   : > { %238 = vst [vmem:[%s5887_s26 + $0x1f8] sm:$0xff] %v237_v42  ;;  %240 = vst [vmem:[%s5887_s26 + $0x204] sm:$0xff] %v239_v43  ;;  %v243_v45 = vld [vmem:[%s5882_s25 + $0x39c] sm:$0xff]  ;;  %v245_v46 = vld [vmem:[%s5882_s25 + $0x3a8] sm:$0xff] }
  0x29   : > { %242 = vst [vmem:[%s5887_s26 + $0x210] sm:$0xff] %v241_v44  ;;  %v247_v47 = vld [vmem:[%s5882_s25 + $0x3b4] sm:$0xff]  ;;  %244 = vst [vmem:[%s5887_s26 + $0x21c] sm:$0xff] %v243_v45  ;;  %v249_v48 = vld [vmem:[%s5882_s25 + $0x3c0] sm:$0xff] }
  0x2a   : > { %246 = vst [vmem:[%s5887_s26 + $0x228] sm:$0xff] %v245_v46  ;;  %248 = vst [vmem:[%s5887_s26 + $0x234] sm:$0xff] %v247_v47  ;;  %v251_v49 = vld [vmem:[%s5882_s25 + $0x3cc] sm:$0xff]  ;;  %v253_v50 = vld [vmem:[%s5882_s25 + $0x3d8] sm:$0xff] }
  0x2b   : > { %250 = vst [vmem:[%s5887_s26 + $0x240] sm:$0xff] %v249_v48  ;;  %252 = vst [vmem:[%s5887_s26 + $0x24c] sm:$0xff] %v251_v49  ;;  %v255_v51 = vld [vmem:[%s5882_s25 + $0x3e4] sm:$0xff]  ;;  %v257_v52 = vld [vmem:[%s5882_s25 + $0x3f0] sm:$0xff] }
  0x2c   : > { %254 = vst [vmem:[%s5887_s26 + $0x258] sm:$0xff] %v253_v50  ;;  %v259_v53 = vld [vmem:[%s5882_s25 + $0x3fc] sm:$0xff]  ;;  %256 = vst [vmem:[%s5887_s26 + $0x264] sm:$0xff] %v255_v51  ;;  %v261_v54 = vld [vmem:[%s5882_s25 + $0x408] sm:$0xff] }
  0x2d   : > { %258 = vst [vmem:[%s5887_s26 + $0x270] sm:$0xff] %v257_v52  ;;  %260 = vst [vmem:[%s5887_s26 + $0x27c] sm:$0xff] %v259_v53  ;;  %v263_v55 = vld [vmem:[%s5882_s25 + $0x414] sm:$0xff]  ;;  %v265_v56 = vld [vmem:[%s5882_s25 + $0x420] sm:$0xff] }
  0x2e   : > { %262 = vst [vmem:[%s5887_s26 + $0x288] sm:$0xff] %v261_v54  ;;  %264 = vst [vmem:[%s5887_s26 + $0x294] sm:$0xff] %v263_v55  ;;  %v267_v57 = vld [vmem:[%s5882_s25 + $0x42c] sm:$0xff]  ;;  %v269_v58 = vld [vmem:[%s5882_s25 + $0x438] sm:$0xff] }
  0x2f   : > { %266 = vst [vmem:[%s5887_s26 + $0x2a0] sm:$0xff] %v265_v56  ;;  %v271_v59 = vld [vmem:[%s5882_s25 + $0x444] sm:$0xff]  ;;  %268 = vst [vmem:[%s5887_s26 + $0x2ac] sm:$0xff] %v267_v57  ;;  %v273_v60 = vld [vmem:[%s5882_s25 + $0x450] sm:$0xff] }
  0x30   : > { %270 = vst [vmem:[%s5887_s26 + $0x2b8] sm:$0xff] %v269_v58  ;;  %272 = vst [vmem:[%s5887_s26 + $0x2c4] sm:$0xff] %v271_v59  ;;  %v275_v61 = vld [vmem:[%s5882_s25 + $0x45c] sm:$0xff]  ;;  %v277_v62 = vld [vmem:[%s5882_s25 + $0x468] sm:$0xff] }
  0x31   : > { %274 = vst [vmem:[%s5887_s26 + $0x2d0] sm:$0xff] %v273_v60  ;;  %276 = vst [vmem:[%s5887_s26 + $0x2dc] sm:$0xff] %v275_v61  ;;  %v279_v63 = vld [vmem:[%s5882_s25 + $0x474] sm:$0xff]  ;;  %v281_v0 = vld [vmem:[%s5882_s25 + $0x600] sm:$0xff] }
  0x32   : > { %278 = vst [vmem:[%s5887_s26 + $0x2e8] sm:$0xff] %v277_v62  ;;  %v283_v1 = vld [vmem:[%s5882_s25 + $0x60c] sm:$0xff]  ;;  %280 = vst [vmem:[%s5887_s26 + $0x2f4] sm:$0xff] %v279_v63  ;;  %v285_v2 = vld [vmem:[%s5882_s25 + $0x618] sm:$0xff] }
  0x33   : > { %282 = vst [vmem:[%s5887_s26 + $0x300] sm:$0xff] %v281_v0  ;;  %284 = vst [vmem:[%s5887_s26 + $0x30c] sm:$0xff] %v283_v1  ;;  %v287_v3 = vld [vmem:[%s5882_s25 + $0x624] sm:$0xff]  ;;  %v289_v4 = vld [vmem:[%s5882_s25 + $0x630] sm:$0xff] }
  0x34   : > { %286 = vst [vmem:[%s5887_s26 + $0x318] sm:$0xff] %v285_v2  ;;  %288 = vst [vmem:[%s5887_s26 + $0x324] sm:$0xff] %v287_v3  ;;  %v291_v5 = vld [vmem:[%s5882_s25 + $0x63c] sm:$0xff]  ;;  %v293_v6 = vld [vmem:[%s5882_s25 + $0x648] sm:$0xff] }
  0x35   : > { %290 = vst [vmem:[%s5887_s26 + $0x330] sm:$0xff] %v289_v4  ;;  %v295_v7 = vld [vmem:[%s5882_s25 + $0x654] sm:$0xff]  ;;  %292 = vst [vmem:[%s5887_s26 + $0x33c] sm:$0xff] %v291_v5  ;;  %v297_v8 = vld [vmem:[%s5882_s25 + $0x660] sm:$0xff] }
  0x36   : > { %294 = vst [vmem:[%s5887_s26 + $0x348] sm:$0xff] %v293_v6  ;;  %296 = vst [vmem:[%s5887_s26 + $0x354] sm:$0xff] %v295_v7  ;;  %v299_v9 = vld [vmem:[%s5882_s25 + $0x66c] sm:$0xff]  ;;  %v301_v10 = vld [vmem:[%s5882_s25 + $0x678] sm:$0xff] }
  0x37   : > { %298 = vst [vmem:[%s5887_s26 + $0x360] sm:$0xff] %v297_v8  ;;  %300 = vst [vmem:[%s5887_s26 + $0x36c] sm:$0xff] %v299_v9  ;;  %v303_v11 = vld [vmem:[%s5882_s25 + $0x684] sm:$0xff]  ;;  %v305_v12 = vld [vmem:[%s5882_s25 + $0x690] sm:$0xff] }
  0x38   : > { %302 = vst [vmem:[%s5887_s26 + $0x378] sm:$0xff] %v301_v10  ;;  %v307_v13 = vld [vmem:[%s5882_s25 + $0x69c] sm:$0xff]  ;;  %304 = vst [vmem:[%s5887_s26 + $0x384] sm:$0xff] %v303_v11  ;;  %v309_v14 = vld [vmem:[%s5882_s25 + $0x6a8] sm:$0xff] }
  0x39   : > { %306 = vst [vmem:[%s5887_s26 + $0x390] sm:$0xff] %v305_v12  ;;  %308 = vst [vmem:[%s5887_s26 + $0x39c] sm:$0xff] %v307_v13  ;;  %v311_v15 = vld [vmem:[%s5882_s25 + $0x6b4] sm:$0xff]  ;;  %v313_v16 = vld [vmem:[%s5882_s25 + $0x6c0] sm:$0xff] }
  0x3a   : > { %310 = vst [vmem:[%s5887_s26 + $0x3a8] sm:$0xff] %v309_v14  ;;  %312 = vst [vmem:[%s5887_s26 + $0x3b4] sm:$0xff] %v311_v15  ;;  %v315_v17 = vld [vmem:[%s5882_s25 + $0x6cc] sm:$0xff]  ;;  %v317_v18 = vld [vmem:[%s5882_s25 + $0x6d8] sm:$0xff] }
  0x3b   : > { %314 = vst [vmem:[%s5887_s26 + $0x3c0] sm:$0xff] %v313_v16  ;;  %v319_v19 = vld [vmem:[%s5882_s25 + $0x6e4] sm:$0xff]  ;;  %316 = vst [vmem:[%s5887_s26 + $0x3cc] sm:$0xff] %v315_v17  ;;  %v321_v20 = vld [vmem:[%s5882_s25 + $0x6f0] sm:$0xff] }
  0x3c   : > { %318 = vst [vmem:[%s5887_s26 + $0x3d8] sm:$0xff] %v317_v18  ;;  %320 = vst [vmem:[%s5887_s26 + $0x3e4] sm:$0xff] %v319_v19  ;;  %v323_v21 = vld [vmem:[%s5882_s25 + $0x6fc] sm:$0xff]  ;;  %v325_v22 = vld [vmem:[%s5882_s25 + $0x708] sm:$0xff] }
  0x3d   : > { %322 = vst [vmem:[%s5887_s26 + $0x3f0] sm:$0xff] %v321_v20  ;;  %324 = vst [vmem:[%s5887_s26 + $0x3fc] sm:$0xff] %v323_v21  ;;  %v327_v23 = vld [vmem:[%s5882_s25 + $0x714] sm:$0xff]  ;;  %v329_v24 = vld [vmem:[%s5882_s25 + $0x720] sm:$0xff] }
  0x3e   : > { %326 = vst [vmem:[%s5887_s26 + $0x408] sm:$0xff] %v325_v22  ;;  %v331_v25 = vld [vmem:[%s5882_s25 + $0x72c] sm:$0xff]  ;;  %328 = vst [vmem:[%s5887_s26 + $0x414] sm:$0xff] %v327_v23  ;;  %v333_v26 = vld [vmem:[%s5882_s25 + $0x738] sm:$0xff] }
  0x3f   : > { %330 = vst [vmem:[%s5887_s26 + $0x420] sm:$0xff] %v329_v24  ;;  %332 = vst [vmem:[%s5887_s26 + $0x42c] sm:$0xff] %v331_v25  ;;  %v335_v27 = vld [vmem:[%s5882_s25 + $0x744] sm:$0xff]  ;;  %v337_v28 = vld [vmem:[%s5882_s25 + $0x750] sm:$0xff] }
  0x40   : > { %334 = vst [vmem:[%s5887_s26 + $0x438] sm:$0xff] %v333_v26  ;;  %336 = vst [vmem:[%s5887_s26 + $0x444] sm:$0xff] %v335_v27  ;;  %v339_v29 = vld [vmem:[%s5882_s25 + $0x75c] sm:$0xff]  ;;  %v341_v30 = vld [vmem:[%s5882_s25 + $0x768] sm:$0xff] }
  0x41   : > { %338 = vst [vmem:[%s5887_s26 + $0x450] sm:$0xff] %v337_v28  ;;  %v343_v31 = vld [vmem:[%s5882_s25 + $0x774] sm:$0xff]  ;;  %340 = vst [vmem:[%s5887_s26 + $0x45c] sm:$0xff] %v339_v29  ;;  %v345_v32 = vld [vmem:[%s5882_s25 + $0x900] sm:$0xff] }
  0x42   : > { %342 = vst [vmem:[%s5887_s26 + $0x468] sm:$0xff] %v341_v30  ;;  %344 = vst [vmem:[%s5887_s26 + $0x474] sm:$0xff] %v343_v31  ;;  %v347_v33 = vld [vmem:[%s5882_s25 + $0x90c] sm:$0xff]  ;;  %v349_v34 = vld [vmem:[%s5882_s25 + $0x918] sm:$0xff] }
  0x43   : > { %346 = vst [vmem:[%s5887_s26 + $0x480] sm:$0xff] %v345_v32  ;;  %348 = vst [vmem:[%s5887_s26 + $0x48c] sm:$0xff] %v347_v33  ;;  %v351_v35 = vld [vmem:[%s5882_s25 + $0x924] sm:$0xff]  ;;  %v353_v36 = vld [vmem:[%s5882_s25 + $0x930] sm:$0xff] }
  0x44   : > { %350 = vst [vmem:[%s5887_s26 + $0x498] sm:$0xff] %v349_v34  ;;  %v355_v37 = vld [vmem:[%s5882_s25 + $0x93c] sm:$0xff]  ;;  %352 = vst [vmem:[%s5887_s26 + $0x4a4] sm:$0xff] %v351_v35  ;;  %v357_v38 = vld [vmem:[%s5882_s25 + $0x948] sm:$0xff] }
  0x45   : > { %354 = vst [vmem:[%s5887_s26 + $0x4b0] sm:$0xff] %v353_v36  ;;  %356 = vst [vmem:[%s5887_s26 + $0x4bc] sm:$0xff] %v355_v37  ;;  %v359_v39 = vld [vmem:[%s5882_s25 + $0x954] sm:$0xff]  ;;  %v361_v40 = vld [vmem:[%s5882_s25 + $0x960] sm:$0xff] }
  0x46   : > { %358 = vst [vmem:[%s5887_s26 + $0x4c8] sm:$0xff] %v357_v38  ;;  %360 = vst [vmem:[%s5887_s26 + $0x4d4] sm:$0xff] %v359_v39  ;;  %v363_v41 = vld [vmem:[%s5882_s25 + $0x96c] sm:$0xff]  ;;  %v365_v42 = vld [vmem:[%s5882_s25 + $0x978] sm:$0xff] }
  0x47   : > { %362 = vst [vmem:[%s5887_s26 + $0x4e0] sm:$0xff] %v361_v40  ;;  %v367_v43 = vld [vmem:[%s5882_s25 + $0x984] sm:$0xff]  ;;  %364 = vst [vmem:[%s5887_s26 + $0x4ec] sm:$0xff] %v363_v41  ;;  %v369_v44 = vld [vmem:[%s5882_s25 + $0x990] sm:$0xff] }
  0x48   : > { %366 = vst [vmem:[%s5887_s26 + $0x4f8] sm:$0xff] %v365_v42  ;;  %368 = vst [vmem:[%s5887_s26 + $0x504] sm:$0xff] %v367_v43  ;;  %v371_v45 = vld [vmem:[%s5882_s25 + $0x99c] sm:$0xff]  ;;  %v373_v46 = vld [vmem:[%s5882_s25 + $0x9a8] sm:$0xff] }
  0x49   : > { %370 = vst [vmem:[%s5887_s26 + $0x510] sm:$0xff] %v369_v44  ;;  %372 = vst [vmem:[%s5887_s26 + $0x51c] sm:$0xff] %v371_v45  ;;  %v375_v47 = vld [vmem:[%s5882_s25 + $0x9b4] sm:$0xff]  ;;  %v377_v48 = vld [vmem:[%s5882_s25 + $0x9c0] sm:$0xff] }
  0x4a   : > { %374 = vst [vmem:[%s5887_s26 + $0x528] sm:$0xff] %v373_v46  ;;  %v379_v49 = vld [vmem:[%s5882_s25 + $0x9cc] sm:$0xff]  ;;  %376 = vst [vmem:[%s5887_s26 + $0x534] sm:$0xff] %v375_v47  ;;  %v381_v50 = vld [vmem:[%s5882_s25 + $0x9d8] sm:$0xff] }
  0x4b   : > { %378 = vst [vmem:[%s5887_s26 + $0x540] sm:$0xff] %v377_v48  ;;  %380 = vst [vmem:[%s5887_s26 + $0x54c] sm:$0xff] %v379_v49  ;;  %v383_v51 = vld [vmem:[%s5882_s25 + $0x9e4] sm:$0xff]  ;;  %v385_v52 = vld [vmem:[%s5882_s25 + $0x9f0] sm:$0xff] }
  0x4c   : > { %382 = vst [vmem:[%s5887_s26 + $0x558] sm:$0xff] %v381_v50  ;;  %384 = vst [vmem:[%s5887_s26 + $0x564] sm:$0xff] %v383_v51  ;;  %v387_v53 = vld [vmem:[%s5882_s25 + $0x9fc] sm:$0xff]  ;;  %v389_v54 = vld [vmem:[%s5882_s25 + $0xa08] sm:$0xff] }
  0x4d   : > { %386 = vst [vmem:[%s5887_s26 + $0x570] sm:$0xff] %v385_v52  ;;  %v391_v55 = vld [vmem:[%s5882_s25 + $0xa14] sm:$0xff]  ;;  %388 = vst [vmem:[%s5887_s26 + $0x57c] sm:$0xff] %v387_v53  ;;  %v393_v56 = vld [vmem:[%s5882_s25 + $0xa20] sm:$0xff] }
  0x4e   : > { %390 = vst [vmem:[%s5887_s26 + $0x588] sm:$0xff] %v389_v54  ;;  %392 = vst [vmem:[%s5887_s26 + $0x594] sm:$0xff] %v391_v55  ;;  %v395_v57 = vld [vmem:[%s5882_s25 + $0xa2c] sm:$0xff]  ;;  %v397_v58 = vld [vmem:[%s5882_s25 + $0xa38] sm:$0xff] }
  0x4f   : > { %394 = vst [vmem:[%s5887_s26 + $0x5a0] sm:$0xff] %v393_v56  ;;  %396 = vst [vmem:[%s5887_s26 + $0x5ac] sm:$0xff] %v395_v57  ;;  %v399_v59 = vld [vmem:[%s5882_s25 + $0xa44] sm:$0xff]  ;;  %v401_v60 = vld [vmem:[%s5882_s25 + $0xa50] sm:$0xff] }
  0x50   : > { %398 = vst [vmem:[%s5887_s26 + $0x5b8] sm:$0xff] %v397_v58  ;;  %v403_v61 = vld [vmem:[%s5882_s25 + $0xa5c] sm:$0xff]  ;;  %400 = vst [vmem:[%s5887_s26 + $0x5c4] sm:$0xff] %v399_v59  ;;  %v405_v62 = vld [vmem:[%s5882_s25 + $0xa68] sm:$0xff] }
  0x51   : > { %402 = vst [vmem:[%s5887_s26 + $0x5d0] sm:$0xff] %v401_v60  ;;  %404 = vst [vmem:[%s5887_s26 + $0x5dc] sm:$0xff] %v403_v61  ;;  %v407_v63 = vld [vmem:[%s5882_s25 + $0xa74] sm:$0xff]  ;;  %v4023_v0 = vld [vmem:[%s5882_s25 + $0x8] sm:$0xf] }
  0x52   : > { %406 = vst [vmem:[%s5887_s26 + $0x5e8] sm:$0xff] %v405_v62  ;;  %408 = vst [vmem:[%s5887_s26 + $0x5f4] sm:$0xff] %v407_v63  ;;  %v4025_v1 = vld [vmem:[%s5882_s25 + $0x14] sm:$0xf]  ;;  %v4027_v2 = vld [vmem:[%s5882_s25 + $0x20] sm:$0xf] }
  0x53   : > { %4024 = vst [vmem:[%s5887_s26 + $0x8] sm:$0xf] %v4023_v0  ;;  %v4029_v3 = vld [vmem:[%s5882_s25 + $0x2c] sm:$0xf]  ;;  %4026 = vst [vmem:[%s5887_s26 + $0x14] sm:$0xf] %v4025_v1 }
  0x54   : > { %4028 = vst [vmem:[%s5887_s26 + $0x20] sm:$0xf] %v4027_v2  ;;  %4030 = vst [vmem:[%s5887_s26 + $0x2c] sm:$0xf] %v4029_v3  ;;  %v4031_v4 = vld [vmem:[%s5882_s25 + $0x38] sm:$0xf] }
  0x55   : > { %v4033_v5 = vld [vmem:[%s5882_s25 + $0x44] sm:$0xf]  ;;  %v4035_v6 = vld [vmem:[%s5882_s25 + $0x50] sm:$0xf]  ;;  %4032 = vst [vmem:[%s5887_s26 + $0x38] sm:$0xf] %v4031_v4 }
  0x56   : > { %4034 = vst [vmem:[%s5887_s26 + $0x44] sm:$0xf] %v4033_v5  ;;  %4036 = vst [vmem:[%s5887_s26 + $0x50] sm:$0xf] %v4035_v6  ;;  %v4037_v7 = vld [vmem:[%s5882_s25 + $0x5c] sm:$0xf] }
  0x57   : > { %v4039_v8 = vld [vmem:[%s5882_s25 + $0x68] sm:$0xf]  ;;  %v4041_v9 = vld [vmem:[%s5882_s25 + $0x74] sm:$0xf]  ;;  %4038 = vst [vmem:[%s5887_s26 + $0x5c] sm:$0xf] %v4037_v7 }
  0x58   : > { %4040 = vst [vmem:[%s5887_s26 + $0x68] sm:$0xf] %v4039_v8  ;;  %4042 = vst [vmem:[%s5887_s26 + $0x74] sm:$0xf] %v4041_v9  ;;  %v4043_v10 = vld [vmem:[%s5882_s25 + $0x80] sm:$0xf] }
  0x59   : > { %v4045_v11 = vld [vmem:[%s5882_s25 + $0x8c] sm:$0xf]  ;;  %v4047_v12 = vld [vmem:[%s5882_s25 + $0x98] sm:$0xf]  ;;  %4044 = vst [vmem:[%s5887_s26 + $0x80] sm:$0xf] %v4043_v10 }
  0x5a   : > { %4046 = vst [vmem:[%s5887_s26 + $0x8c] sm:$0xf] %v4045_v11  ;;  %4048 = vst [vmem:[%s5887_s26 + $0x98] sm:$0xf] %v4047_v12  ;;  %v4049_v13 = vld [vmem:[%s5882_s25 + $0xa4] sm:$0xf] }
  0x5b   : > { %v4051_v14 = vld [vmem:[%s5882_s25 + $0xb0] sm:$0xf]  ;;  %v4053_v15 = vld [vmem:[%s5882_s25 + $0xbc] sm:$0xf]  ;;  %4050 = vst [vmem:[%s5887_s26 + $0xa4] sm:$0xf] %v4049_v13 }
  0x5c   : > { %4052 = vst [vmem:[%s5887_s26 + $0xb0] sm:$0xf] %v4051_v14  ;;  %4054 = vst [vmem:[%s5887_s26 + $0xbc] sm:$0xf] %v4053_v15  ;;  %v4055_v16 = vld [vmem:[%s5882_s25 + $0xc8] sm:$0xf] }
  0x5d   : > { %v4057_v17 = vld [vmem:[%s5882_s25 + $0xd4] sm:$0xf]  ;;  %v4059_v18 = vld [vmem:[%s5882_s25 + $0xe0] sm:$0xf]  ;;  %4056 = vst [vmem:[%s5887_s26 + $0xc8] sm:$0xf] %v4055_v16 }
  0x5e   : > { %4058 = vst [vmem:[%s5887_s26 + $0xd4] sm:$0xf] %v4057_v17  ;;  %4060 = vst [vmem:[%s5887_s26 + $0xe0] sm:$0xf] %v4059_v18  ;;  %v4061_v19 = vld [vmem:[%s5882_s25 + $0xec] sm:$0xf] }
  0x5f   : > { %v4063_v20 = vld [vmem:[%s5882_s25 + $0xf8] sm:$0xf]  ;;  %v4065_v21 = vld [vmem:[%s5882_s25 + $0x104] sm:$0xf]  ;;  %4062 = vst [vmem:[%s5887_s26 + $0xec] sm:$0xf] %v4061_v19 }
  0x60   : > { %4064 = vst [vmem:[%s5887_s26 + $0xf8] sm:$0xf] %v4063_v20  ;;  %4066 = vst [vmem:[%s5887_s26 + $0x104] sm:$0xf] %v4065_v21  ;;  %v4067_v22 = vld [vmem:[%s5882_s25 + $0x110] sm:$0xf] }
  0x61   : > { %v4069_v23 = vld [vmem:[%s5882_s25 + $0x11c] sm:$0xf]  ;;  %v4071_v24 = vld [vmem:[%s5882_s25 + $0x128] sm:$0xf]  ;;  %4068 = vst [vmem:[%s5887_s26 + $0x110] sm:$0xf] %v4067_v22 }
  0x62   : > { %4070 = vst [vmem:[%s5887_s26 + $0x11c] sm:$0xf] %v4069_v23  ;;  %4072 = vst [vmem:[%s5887_s26 + $0x128] sm:$0xf] %v4071_v24  ;;  %v4073_v25 = vld [vmem:[%s5882_s25 + $0x134] sm:$0xf] }
  0x63   : > { %v4075_v26 = vld [vmem:[%s5882_s25 + $0x140] sm:$0xf]  ;;  %v4077_v27 = vld [vmem:[%s5882_s25 + $0x14c] sm:$0xf]  ;;  %4074 = vst [vmem:[%s5887_s26 + $0x134] sm:$0xf] %v4073_v25 }
  0x64   : > { %4076 = vst [vmem:[%s5887_s26 + $0x140] sm:$0xf] %v4075_v26  ;;  %4078 = vst [vmem:[%s5887_s26 + $0x14c] sm:$0xf] %v4077_v27  ;;  %v4079_v28 = vld [vmem:[%s5882_s25 + $0x158] sm:$0xf] }
  0x65   : > { %v4081_v29 = vld [vmem:[%s5882_s25 + $0x164] sm:$0xf]  ;;  %v4083_v30 = vld [vmem:[%s5882_s25 + $0x170] sm:$0xf]  ;;  %4080 = vst [vmem:[%s5887_s26 + $0x158] sm:$0xf] %v4079_v28 }
  0x66   : > { %4082 = vst [vmem:[%s5887_s26 + $0x164] sm:$0xf] %v4081_v29  ;;  %4084 = vst [vmem:[%s5887_s26 + $0x170] sm:$0xf] %v4083_v30  ;;  %v4085_v31 = vld [vmem:[%s5882_s25 + $0x17c] sm:$0xf] }
  0x67   : > { %v4087_v32 = vld [vmem:[%s5882_s25 + $0x308] sm:$0xf]  ;;  %v4089_v33 = vld [vmem:[%s5882_s25 + $0x314] sm:$0xf]  ;;  %4086 = vst [vmem:[%s5887_s26 + $0x17c] sm:$0xf] %v4085_v31 }
  0x68   : > { %4088 = vst [vmem:[%s5887_s26 + $0x188] sm:$0xf] %v4087_v32  ;;  %4090 = vst [vmem:[%s5887_s26 + $0x194] sm:$0xf] %v4089_v33  ;;  %v4091_v34 = vld [vmem:[%s5882_s25 + $0x320] sm:$0xf] }
  0x69   : > { %v4093_v35 = vld [vmem:[%s5882_s25 + $0x32c] sm:$0xf]  ;;  %v4095_v36 = vld [vmem:[%s5882_s25 + $0x338] sm:$0xf]  ;;  %4092 = vst [vmem:[%s5887_s26 + $0x1a0] sm:$0xf] %v4091_v34 }
  0x6a   : > { %4094 = vst [vmem:[%s5887_s26 + $0x1ac] sm:$0xf] %v4093_v35  ;;  %4096 = vst [vmem:[%s5887_s26 + $0x1b8] sm:$0xf] %v4095_v36  ;;  %v4097_v37 = vld [vmem:[%s5882_s25 + $0x344] sm:$0xf] }
  0x6b   : > { %v4099_v38 = vld [vmem:[%s5882_s25 + $0x350] sm:$0xf]  ;;  %v4101_v39 = vld [vmem:[%s5882_s25 + $0x35c] sm:$0xf]  ;;  %4098 = vst [vmem:[%s5887_s26 + $0x1c4] sm:$0xf] %v4097_v37 }
  0x6c   : > { %4100 = vst [vmem:[%s5887_s26 + $0x1d0] sm:$0xf] %v4099_v38  ;;  %4102 = vst [vmem:[%s5887_s26 + $0x1dc] sm:$0xf] %v4101_v39  ;;  %v4103_v40 = vld [vmem:[%s5882_s25 + $0x368] sm:$0xf] }
  0x6d   : > { %v4105_v41 = vld [vmem:[%s5882_s25 + $0x374] sm:$0xf]  ;;  %v4107_v42 = vld [vmem:[%s5882_s25 + $0x380] sm:$0xf]  ;;  %4104 = vst [vmem:[%s5887_s26 + $0x1e8] sm:$0xf] %v4103_v40 }
  0x6e   : > { %4106 = vst [vmem:[%s5887_s26 + $0x1f4] sm:$0xf] %v4105_v41  ;;  %4108 = vst [vmem:[%s5887_s26 + $0x200] sm:$0xf] %v4107_v42  ;;  %v4109_v43 = vld [vmem:[%s5882_s25 + $0x38c] sm:$0xf] }
  0x6f   : > { %v4111_v44 = vld [vmem:[%s5882_s25 + $0x398] sm:$0xf]  ;;  %v4113_v45 = vld [vmem:[%s5882_s25 + $0x3a4] sm:$0xf]  ;;  %4110 = vst [vmem:[%s5887_s26 + $0x20c] sm:$0xf] %v4109_v43 }
  0x70   : > { %4112 = vst [vmem:[%s5887_s26 + $0x218] sm:$0xf] %v4111_v44  ;;  %4114 = vst [vmem:[%s5887_s26 + $0x224] sm:$0xf] %v4113_v45  ;;  %v4115_v46 = vld [vmem:[%s5882_s25 + $0x3b0] sm:$0xf] }
  0x71   : > { %v4117_v47 = vld [vmem:[%s5882_s25 + $0x3bc] sm:$0xf]  ;;  %v4119_v48 = vld [vmem:[%s5882_s25 + $0x3c8] sm:$0xf]  ;;  %4116 = vst [vmem:[%s5887_s26 + $0x230] sm:$0xf] %v4115_v46 }
  0x72   : > { %4118 = vst [vmem:[%s5887_s26 + $0x23c] sm:$0xf] %v4117_v47  ;;  %4120 = vst [vmem:[%s5887_s26 + $0x248] sm:$0xf] %v4119_v48  ;;  %v4121_v49 = vld [vmem:[%s5882_s25 + $0x3d4] sm:$0xf] }
  0x73   : > { %v4123_v50 = vld [vmem:[%s5882_s25 + $0x3e0] sm:$0xf]  ;;  %v4125_v51 = vld [vmem:[%s5882_s25 + $0x3ec] sm:$0xf]  ;;  %4122 = vst [vmem:[%s5887_s26 + $0x254] sm:$0xf] %v4121_v49 }
  0x74   : > { %4124 = vst [vmem:[%s5887_s26 + $0x260] sm:$0xf] %v4123_v50  ;;  %4126 = vst [vmem:[%s5887_s26 + $0x26c] sm:$0xf] %v4125_v51  ;;  %v4127_v52 = vld [vmem:[%s5882_s25 + $0x3f8] sm:$0xf] }
  0x75   : > { %v4129_v53 = vld [vmem:[%s5882_s25 + $0x404] sm:$0xf]  ;;  %v4131_v54 = vld [vmem:[%s5882_s25 + $0x410] sm:$0xf]  ;;  %4128 = vst [vmem:[%s5887_s26 + $0x278] sm:$0xf] %v4127_v52 }
  0x76   : > { %4130 = vst [vmem:[%s5887_s26 + $0x284] sm:$0xf] %v4129_v53  ;;  %4132 = vst [vmem:[%s5887_s26 + $0x290] sm:$0xf] %v4131_v54  ;;  %v4133_v55 = vld [vmem:[%s5882_s25 + $0x41c] sm:$0xf] }
  0x77   : > { %v4135_v56 = vld [vmem:[%s5882_s25 + $0x428] sm:$0xf]  ;;  %v4137_v57 = vld [vmem:[%s5882_s25 + $0x434] sm:$0xf]  ;;  %4134 = vst [vmem:[%s5887_s26 + $0x29c] sm:$0xf] %v4133_v55 }
  0x78   : > { %4136 = vst [vmem:[%s5887_s26 + $0x2a8] sm:$0xf] %v4135_v56  ;;  %4138 = vst [vmem:[%s5887_s26 + $0x2b4] sm:$0xf] %v4137_v57  ;;  %v4139_v58 = vld [vmem:[%s5882_s25 + $0x440] sm:$0xf] }
  0x79   : > { %v4141_v59 = vld [vmem:[%s5882_s25 + $0x44c] sm:$0xf]  ;;  %v4143_v60 = vld [vmem:[%s5882_s25 + $0x458] sm:$0xf]  ;;  %4140 = vst [vmem:[%s5887_s26 + $0x2c0] sm:$0xf] %v4139_v58 }
  0x7a   : > { %4142 = vst [vmem:[%s5887_s26 + $0x2cc] sm:$0xf] %v4141_v59  ;;  %4144 = vst [vmem:[%s5887_s26 + $0x2d8] sm:$0xf] %v4143_v60  ;;  %v4145_v61 = vld [vmem:[%s5882_s25 + $0x464] sm:$0xf] }
  0x7b   : > { %v4147_v62 = vld [vmem:[%s5882_s25 + $0x470] sm:$0xf]  ;;  %v4149_v63 = vld [vmem:[%s5882_s25 + $0x47c] sm:$0xf]  ;;  %4146 = vst [vmem:[%s5887_s26 + $0x2e4] sm:$0xf] %v4145_v61 }
  0x7c   : > { %4148 = vst [vmem:[%s5887_s26 + $0x2f0] sm:$0xf] %v4147_v62  ;;  %4150 = vst [vmem:[%s5887_s26 + $0x2fc] sm:$0xf] %v4149_v63  ;;  %v4151_v0 = vld [vmem:[%s5882_s25 + $0x608] sm:$0xf] }
  0x7d   : > { %v4153_v1 = vld [vmem:[%s5882_s25 + $0x614] sm:$0xf]  ;;  %v4155_v2 = vld [vmem:[%s5882_s25 + $0x620] sm:$0xf]  ;;  %4152 = vst [vmem:[%s5887_s26 + $0x308] sm:$0xf] %v4151_v0 }
  0x7e   : > { %4154 = vst [vmem:[%s5887_s26 + $0x314] sm:$0xf] %v4153_v1  ;;  %4156 = vst [vmem:[%s5887_s26 + $0x320] sm:$0xf] %v4155_v2  ;;  %v4157_v3 = vld [vmem:[%s5882_s25 + $0x62c] sm:$0xf] }
  0x7f   : > { %v4159_v4 = vld [vmem:[%s5882_s25 + $0x638] sm:$0xf]  ;;  %v4161_v5 = vld [vmem:[%s5882_s25 + $0x644] sm:$0xf]  ;;  %4158 = vst [vmem:[%s5887_s26 + $0x32c] sm:$0xf] %v4157_v3 }
  0x80   : > { %4160 = vst [vmem:[%s5887_s26 + $0x338] sm:$0xf] %v4159_v4  ;;  %4162 = vst [vmem:[%s5887_s26 + $0x344] sm:$0xf] %v4161_v5  ;;  %v4163_v6 = vld [vmem:[%s5882_s25 + $0x650] sm:$0xf] }
  0x81   : > { %v4165_v7 = vld [vmem:[%s5882_s25 + $0x65c] sm:$0xf]  ;;  %v4167_v8 = vld [vmem:[%s5882_s25 + $0x668] sm:$0xf]  ;;  %4164 = vst [vmem:[%s5887_s26 + $0x350] sm:$0xf] %v4163_v6 }
  0x82   : > { %4166 = vst [vmem:[%s5887_s26 + $0x35c] sm:$0xf] %v4165_v7  ;;  %4168 = vst [vmem:[%s5887_s26 + $0x368] sm:$0xf] %v4167_v8  ;;  %v4169_v9 = vld [vmem:[%s5882_s25 + $0x674] sm:$0xf] }
  0x83   : > { %v4171_v10 = vld [vmem:[%s5882_s25 + $0x680] sm:$0xf]  ;;  %v4173_v11 = vld [vmem:[%s5882_s25 + $0x68c] sm:$0xf]  ;;  %4170 = vst [vmem:[%s5887_s26 + $0x374] sm:$0xf] %v4169_v9 }
  0x84   : > { %4172 = vst [vmem:[%s5887_s26 + $0x380] sm:$0xf] %v4171_v10  ;;  %4174 = vst [vmem:[%s5887_s26 + $0x38c] sm:$0xf] %v4173_v11  ;;  %v4175_v12 = vld [vmem:[%s5882_s25 + $0x698] sm:$0xf] }
  0x85   : > { %v4177_v13 = vld [vmem:[%s5882_s25 + $0x6a4] sm:$0xf]  ;;  %v4179_v14 = vld [vmem:[%s5882_s25 + $0x6b0] sm:$0xf]  ;;  %4176 = vst [vmem:[%s5887_s26 + $0x398] sm:$0xf] %v4175_v12 }
  0x86   : > { %4178 = vst [vmem:[%s5887_s26 + $0x3a4] sm:$0xf] %v4177_v13  ;;  %4180 = vst [vmem:[%s5887_s26 + $0x3b0] sm:$0xf] %v4179_v14  ;;  %v4181_v15 = vld [vmem:[%s5882_s25 + $0x6bc] sm:$0xf] }
  0x87   : > { %v4183_v16 = vld [vmem:[%s5882_s25 + $0x6c8] sm:$0xf]  ;;  %v4185_v17 = vld [vmem:[%s5882_s25 + $0x6d4] sm:$0xf]  ;;  %4182 = vst [vmem:[%s5887_s26 + $0x3bc] sm:$0xf] %v4181_v15 }
  0x88   : > { %4184 = vst [vmem:[%s5887_s26 + $0x3c8] sm:$0xf] %v4183_v16  ;;  %4186 = vst [vmem:[%s5887_s26 + $0x3d4] sm:$0xf] %v4185_v17  ;;  %v4187_v18 = vld [vmem:[%s5882_s25 + $0x6e0] sm:$0xf] }
  0x89   : > { %v4189_v19 = vld [vmem:[%s5882_s25 + $0x6ec] sm:$0xf]  ;;  %v4191_v20 = vld [vmem:[%s5882_s25 + $0x6f8] sm:$0xf]  ;;  %4188 = vst [vmem:[%s5887_s26 + $0x3e0] sm:$0xf] %v4187_v18 }
  0x8a   : > { %4190 = vst [vmem:[%s5887_s26 + $0x3ec] sm:$0xf] %v4189_v19  ;;  %4192 = vst [vmem:[%s5887_s26 + $0x3f8] sm:$0xf] %v4191_v20  ;;  %v4193_v21 = vld [vmem:[%s5882_s25 + $0x704] sm:$0xf] }
  0x8b   : > { %v4195_v22 = vld [vmem:[%s5882_s25 + $0x710] sm:$0xf]  ;;  %v4197_v23 = vld [vmem:[%s5882_s25 + $0x71c] sm:$0xf]  ;;  %4194 = vst [vmem:[%s5887_s26 + $0x404] sm:$0xf] %v4193_v21 }
  0x8c   : > { %4196 = vst [vmem:[%s5887_s26 + $0x410] sm:$0xf] %v4195_v22  ;;  %4198 = vst [vmem:[%s5887_s26 + $0x41c] sm:$0xf] %v4197_v23  ;;  %v4199_v24 = vld [vmem:[%s5882_s25 + $0x728] sm:$0xf] }
  0x8d   : > { %v4201_v25 = vld [vmem:[%s5882_s25 + $0x734] sm:$0xf]  ;;  %v4203_v26 = vld [vmem:[%s5882_s25 + $0x740] sm:$0xf]  ;;  %4200 = vst [vmem:[%s5887_s26 + $0x428] sm:$0xf] %v4199_v24 }
  0x8e   : > { %4202 = vst [vmem:[%s5887_s26 + $0x434] sm:$0xf] %v4201_v25  ;;  %4204 = vst [vmem:[%s5887_s26 + $0x440] sm:$0xf] %v4203_v26  ;;  %v4205_v27 = vld [vmem:[%s5882_s25 + $0x74c] sm:$0xf] }
  0x8f   : > { %v4207_v28 = vld [vmem:[%s5882_s25 + $0x758] sm:$0xf]  ;;  %v4209_v29 = vld [vmem:[%s5882_s25 + $0x764] sm:$0xf]  ;;  %4206 = vst [vmem:[%s5887_s26 + $0x44c] sm:$0xf] %v4205_v27 }
  0x90   : > { %4208 = vst [vmem:[%s5887_s26 + $0x458] sm:$0xf] %v4207_v28  ;;  %4210 = vst [vmem:[%s5887_s26 + $0x464] sm:$0xf] %v4209_v29  ;;  %v4211_v30 = vld [vmem:[%s5882_s25 + $0x770] sm:$0xf] }
  0x91   : > { %v4213_v31 = vld [vmem:[%s5882_s25 + $0x77c] sm:$0xf]  ;;  %v4215_v32 = vld [vmem:[%s5882_s25 + $0x908] sm:$0xf]  ;;  %4212 = vst [vmem:[%s5887_s26 + $0x470] sm:$0xf] %v4211_v30 }
  0x92   : > { %4214 = vst [vmem:[%s5887_s26 + $0x47c] sm:$0xf] %v4213_v31  ;;  %4216 = vst [vmem:[%s5887_s26 + $0x488] sm:$0xf] %v4215_v32  ;;  %v4217_v33 = vld [vmem:[%s5882_s25 + $0x914] sm:$0xf] }
  0x93   : > { %v4219_v34 = vld [vmem:[%s5882_s25 + $0x920] sm:$0xf]  ;;  %v4221_v35 = vld [vmem:[%s5882_s25 + $0x92c] sm:$0xf]  ;;  %4218 = vst [vmem:[%s5887_s26 + $0x494] sm:$0xf] %v4217_v33 }
  0x94   : > { %4220 = vst [vmem:[%s5887_s26 + $0x4a0] sm:$0xf] %v4219_v34  ;;  %4222 = vst [vmem:[%s5887_s26 + $0x4ac] sm:$0xf] %v4221_v35  ;;  %v4223_v36 = vld [vmem:[%s5882_s25 + $0x938] sm:$0xf] }
  0x95   : > { %v4225_v37 = vld [vmem:[%s5882_s25 + $0x944] sm:$0xf]  ;;  %v4227_v38 = vld [vmem:[%s5882_s25 + $0x950] sm:$0xf]  ;;  %4224 = vst [vmem:[%s5887_s26 + $0x4b8] sm:$0xf] %v4223_v36 }
  0x96   : > { %4226 = vst [vmem:[%s5887_s26 + $0x4c4] sm:$0xf] %v4225_v37  ;;  %4228 = vst [vmem:[%s5887_s26 + $0x4d0] sm:$0xf] %v4227_v38  ;;  %v4229_v39 = vld [vmem:[%s5882_s25 + $0x95c] sm:$0xf] }
  0x97   : > { %v4231_v40 = vld [vmem:[%s5882_s25 + $0x968] sm:$0xf]  ;;  %v4233_v41 = vld [vmem:[%s5882_s25 + $0x974] sm:$0xf]  ;;  %4230 = vst [vmem:[%s5887_s26 + $0x4dc] sm:$0xf] %v4229_v39 }
  0x98   : > { %4232 = vst [vmem:[%s5887_s26 + $0x4e8] sm:$0xf] %v4231_v40  ;;  %4234 = vst [vmem:[%s5887_s26 + $0x4f4] sm:$0xf] %v4233_v41  ;;  %v4235_v42 = vld [vmem:[%s5882_s25 + $0x980] sm:$0xf] }
  0x99   : > { %v4237_v43 = vld [vmem:[%s5882_s25 + $0x98c] sm:$0xf]  ;;  %v4239_v44 = vld [vmem:[%s5882_s25 + $0x998] sm:$0xf]  ;;  %4236 = vst [vmem:[%s5887_s26 + $0x500] sm:$0xf] %v4235_v42 }
  0x9a   : > { %4238 = vst [vmem:[%s5887_s26 + $0x50c] sm:$0xf] %v4237_v43  ;;  %4240 = vst [vmem:[%s5887_s26 + $0x518] sm:$0xf] %v4239_v44  ;;  %v4241_v45 = vld [vmem:[%s5882_s25 + $0x9a4] sm:$0xf] }
  0x9b   : > { %v4243_v46 = vld [vmem:[%s5882_s25 + $0x9b0] sm:$0xf]  ;;  %v4245_v47 = vld [vmem:[%s5882_s25 + $0x9bc] sm:$0xf]  ;;  %4242 = vst [vmem:[%s5887_s26 + $0x524] sm:$0xf] %v4241_v45 }
  0x9c   : > { %4244 = vst [vmem:[%s5887_s26 + $0x530] sm:$0xf] %v4243_v46  ;;  %4246 = vst [vmem:[%s5887_s26 + $0x53c] sm:$0xf] %v4245_v47  ;;  %v4247_v48 = vld [vmem:[%s5882_s25 + $0x9c8] sm:$0xf] }
  0x9d   : > { %v4249_v49 = vld [vmem:[%s5882_s25 + $0x9d4] sm:$0xf]  ;;  %v4251_v50 = vld [vmem:[%s5882_s25 + $0x9e0] sm:$0xf]  ;;  %4248 = vst [vmem:[%s5887_s26 + $0x548] sm:$0xf] %v4247_v48 }
  0x9e   : > { %4250 = vst [vmem:[%s5887_s26 + $0x554] sm:$0xf] %v4249_v49  ;;  %4252 = vst [vmem:[%s5887_s26 + $0x560] sm:$0xf] %v4251_v50  ;;  %v4253_v51 = vld [vmem:[%s5882_s25 + $0x9ec] sm:$0xf] }
  0x9f   : > { %v4255_v52 = vld [vmem:[%s5882_s25 + $0x9f8] sm:$0xf]  ;;  %v4257_v53 = vld [vmem:[%s5882_s25 + $0xa04] sm:$0xf]  ;;  %4254 = vst [vmem:[%s5887_s26 + $0x56c] sm:$0xf] %v4253_v51 }
  0xa0   : > { %4256 = vst [vmem:[%s5887_s26 + $0x578] sm:$0xf] %v4255_v52  ;;  %4258 = vst [vmem:[%s5887_s26 + $0x584] sm:$0xf] %v4257_v53  ;;  %v4259_v54 = vld [vmem:[%s5882_s25 + $0xa10] sm:$0xf] }
  0xa1   : > { %v4261_v55 = vld [vmem:[%s5882_s25 + $0xa1c] sm:$0xf]  ;;  %v4263_v56 = vld [vmem:[%s5882_s25 + $0xa28] sm:$0xf]  ;;  %4260 = vst [vmem:[%s5887_s26 + $0x590] sm:$0xf] %v4259_v54 }
  0xa2   : > { %4262 = vst [vmem:[%s5887_s26 + $0x59c] sm:$0xf] %v4261_v55  ;;  %4264 = vst [vmem:[%s5887_s26 + $0x5a8] sm:$0xf] %v4263_v56  ;;  %v4265_v57 = vld [vmem:[%s5882_s25 + $0xa34] sm:$0xf] }
  0xa3   : > { %v4267_v58 = vld [vmem:[%s5882_s25 + $0xa40] sm:$0xf]  ;;  %v4269_v59 = vld [vmem:[%s5882_s25 + $0xa4c] sm:$0xf]  ;;  %4266 = vst [vmem:[%s5887_s26 + $0x5b4] sm:$0xf] %v4265_v57 }
  0xa4   : > { %4268 = vst [vmem:[%s5887_s26 + $0x5c0] sm:$0xf] %v4267_v58  ;;  %4270 = vst [vmem:[%s5887_s26 + $0x5cc] sm:$0xf] %v4269_v59  ;;  %v4271_v60 = vld [vmem:[%s5882_s25 + $0xa58] sm:$0xf] }
  0xa5   : > { %v4273_v61 = vld [vmem:[%s5882_s25 + $0xa64] sm:$0xf]  ;;  %v4275_v62 = vld [vmem:[%s5882_s25 + $0xa70] sm:$0xf]  ;;  %4272 = vst [vmem:[%s5887_s26 + $0x5d8] sm:$0xf] %v4271_v60 }
  0xa6   : > { %4274 = vst [vmem:[%s5887_s26 + $0x5e4] sm:$0xf] %v4273_v61  ;;  %4276 = vst [vmem:[%s5887_s26 + $0x5f0] sm:$0xf] %v4275_v62  ;;  %v4277_v63 = vld [vmem:[%s5882_s25 + $0xa7c] sm:$0xf] }
  0xa7   : > { %4278 = vst [vmem:[%s5887_s26 + $0x5fc] sm:$0xf] %v4277_v63 }
  0xa8 PF: > { %p4279_p5 = scmp.ge.s32.totalorder %s5826_s14, 1  ;;  %p676_p6 = scmp.lt.s32.totalorder %s5826_s14, 3 }
  0xaa   : > { %p677_p7 = pnand %p4279_p5, %p676_p6 }
  0xac   : > { %680 = sbr.rel (%p677_p7) target bundleno = 809 (0x329), region = 54 }
  0xb3   : > { %v6403_v0 = vld [vmem:[%s7658_s1 + $0x40] sm:$0xff]   ;;  %s683_s29 = sand.u32 1, %s5818_s12   ;;  %v6421_v3 = vld [vmem:[%s7658_s1 + $0x48] sm:$0xff]   ;;  %vm1169_vm0 = vcmask 261120   ;;  %v6443_v7 = vld [vmem:[%s7658_s1 + $0x50] sm:$0xff]   ;;  %s4280_s20 = sshll.u32 %s4016_s15, 5 }
  0xb4   : > { %v6409_v1 = vld [vmem:[%s7658_s1 + $0x80] sm:$0xff]   ;;  %s5485_s5 = smul.u32 1536, %s683_s29  ;;  %4815 = vmatprep.subr.bf16.mxu0 %v6403_v0  ;;  %v6428_v4 = vld [vmem:[%s7658_s1 + $0x88] sm:$0xff]   ;;  %v6453_v9 = vld [vmem:[%s7658_s1 + $0x10] sm:$0xff]   ;;  %p708_p8 = scmp.lt.s32.totalorder %s4280_s20, 63  ;;  %vm3917_vm1 = vcmask 125952  }
  0xb5   : > { %v6415_v2 = vld [vmem:[%s7658_s1] sm:$0xff]   ;;  %5335 = vmatprep.subr.bf16.mxu1 %v6409_v1  ;;  %v6434_v5 = vld [vmem:[%s7658_s1 + $0x8] sm:$0xff]   ;;  %v6458_v10 = vld [vmem:[%s7658_s1 + $0x58] sm:$0xff]  }
  0xb6   : > { %4816 = vmatpush3.bf16.msra.mxu0 %v6415_v2  ;;  %5336 = vmatpush3.bf16.msra.mxu1 %v6409_v1  ;;  %s6437_s18 = scalar_lea.vmem [#allocation2], %s5485_s5  ;;  %v6465_v11 = vld [vmem:[%s7658_s1 + $0x18] sm:$0xff]   ;;  %v6474_v13 = vld [vmem:[%s7658_s1 + $0x60] sm:$0xff]   ;;  %v6490_v16 = vld [vmem:[%s7658_s1 + $0x68] sm:$0xff]   ;;  %s7691_s20 = smov (!%p708_p8, %s4280_s20), 63 }
  0xb7   : > { %4817 = vmatprep.subr.bf16.mxu0 %v6421_v3  ;;  %5337 = vmatprep.subr.bf16.mxu1 %v6428_v4  ;;  %v5516_v6 = vld [vmem:[%s6437_s18 + $0x8] ss:$12 sps:$4 sm:$0xff]   ;;  %v5518_v8 = vld [vmem:[%s6437_s18 + $0x20] ss:$12 sps:$4 sm:$0xff]   ;;  %v5522_v12 = vld [vmem:[%s6437_s18 + $0x38] ss:$12 sps:$4 sm:$0xff]  }
  0xb8   : > { %5339 = vmatprep.mubr.msk.bf16.mxu1 %vm1169_vm0, %v5516_v6  ;;  %v5524_v14 = vld [vmem:[%s6437_s18 + $0x50] ss:$12 sps:$4 sm:$0xff]   ;;  %v6483_v15 = vld [vmem:[%s7658_s1 + $0x20] sm:$0xff]   ;;  %v5528_v17 = vld [vmem:[%s6437_s18 + $0x68] ss:$12 sps:$4 sm:$0xff]   ;;  %s4281_s14 = sshll.u32 %s7691_s20, 2 }
  0xb9   : > { %v6499_v18 = vld [vmem:[%s7658_s1 + $0x28] sm:$0xff]   ;;  %v6506_v19 = vld [vmem:[%s7658_s1 + $0x70] sm:$0xff]   ;;  %v6520_v22 = vld [vmem:[%s7658_s1 + $0x78] sm:$0xff]   ;;  %s7499_s22 = scalar_lea.vmem %s7660_s3, %s4281_s14 }
  0xba   : > { %4818 = vmatpush3.bf16.msra.mxu0 %v6434_v5  ;;  %5338 = vmatpush3.bf16.msra.mxu1 %v6428_v4  ;;  %v5530_v20 = vld [vmem:[%s6437_s18 + $0x80] ss:$12 sps:$4 sm:$0xff]   ;;  %v6514_v21 = vld [vmem:[%s7658_s1 + $0x30] sm:$0xff]   ;;  %v5537_v24 = vld [vmem:[%s6437_s18 + $0x98] ss:$12 sps:$4 sm:$0xff]  }
  0xbb   : > { %4819 = vmatprep.subr.bf16.mxu0 %v6443_v7  ;;  %4945 = vmatprep.subr.bf16.mxu1 %v6403_v0  ;;  %v5536_v23 = vld [vmem:[%s6437_s18 + $0x4] ss:$12 sps:$4 sm:$0xff]   ;;  %v6532_v25 = vld [vmem:[%s7658_s1 + $0x38] sm:$0xff]   ;;  %v5534_v26 = vld [vmem:[%s6437_s18] ss:$12 sps:$4 sm:$0xff]  }
  0xbc   : > { %1250 = vmatprep.mubr.bf16.mxu0 %v5536_v23  ;;  %v5538_v27 = vld [vmem:[%s6437_s18 + $0xb0] ss:$12 sps:$4 sm:$0xff]   ;;  %v5541_v29 = vld [vmem:[%s6437_s18 + $0xc8] ss:$12 sps:$4 sm:$0xff]   ;;  %v5542_v30 = vld [vmem:[%s6437_s18 + $0x18] ss:$12 sps:$4 sm:$0xff]  }
  0xbd   : > { %5340 = vmatmul.mubr.msk.bf16.vlgmr.msra.gmra.mrb[0].mxu1 %vm1169_vm0, %v5518_v8  ;;  %v5539_v28 = vld [vmem:[%s6437_s18 + $0x1c] ss:$12 sps:$4 sm:$0xff]   ;;  %v5543_v31 = vld [vmem:[%s6437_s18 + $0xe0] ss:$12 sps:$4 sm:$0xff]   ;;  %v5546_v33 = vld [vmem:[%s6437_s18 + $0xf8] ss:$12 sps:$4 sm:$0xff]  }
  0xbe   : > { %4820 = vmatpush3.bf16.msra.mxu0 %v6453_v9  ;;  %4946 = vmatpush3.bf16.msra.mxu1 %v6415_v2  ;;  %v5544_v32 = vld [vmem:[%s6437_s18 + $0x34] ss:$12 sps:$4 sm:$0xff]   ;;  %v5547_v34 = vld [vmem:[%s6437_s18 + $0x30] ss:$12 sps:$4 sm:$0xff]   ;;  %v5549_v36 = vld [vmem:[%s6437_s18 + $0x4c] ss:$12 sps:$4 sm:$0xff]  }
  0xbf   : > { %4821 = vmatprep.subr.bf16.mxu0 %v6458_v10  ;;  %4947 = vmatprep.subr.bf16.mxu1 %v6421_v3  ;;  %v5548_v35 = vld [vmem:[%s6437_s18 + $0x110] ss:$12 sps:$4 sm:$0xff]   ;;  %v5551_v37 = vld [vmem:[%s6437_s18 + $0x128] ss:$12 sps:$4 sm:$0xff]   ;;  %v5553_v39 = vld [vmem:[%s6437_s18 + $0x140] ss:$12 sps:$4 sm:$0xff]  }
  0xc0   : > { %5343 = vmatprep.mubr.msk.bf16.mxu1 %vm1169_vm0, %v5522_v12  ;;  %v5552_v38 = vld [vmem:[%s6437_s18 + $0x48] ss:$12 sps:$4 sm:$0xff]   ;;  %v5554_v40 = vld [vmem:[%s6437_s18 + $0x64] ss:$12 sps:$4 sm:$0xff]   ;;  %v5557_v42 = vld [vmem:[%s6437_s18 + $0x60] ss:$12 sps:$4 sm:$0xff]  }
  0xc1   : > { %v5556_v41 = vld [vmem:[%s6437_s18 + $0x158] ss:$12 sps:$4 sm:$0xff]   ;;  %v5558_v43 = vld [vmem:[%s6437_s18 + $0x170] ss:$12 sps:$4 sm:$0xff]   ;;  %v5561_v46 = vld [vmem:[%s6437_s18 + $0x180] ss:$12 sps:$4 sm:$0xff]  }
  0xc2   : > { %4822 = vmatpush3.bf16.msra.mxu0 %v6465_v11  ;;  %4948 = vmatpush3.bf16.msra.mxu1 %v6434_v5  ;;  %v5559_v44 = vld [vmem:[%s6437_s18 + $0x7c] ss:$12 sps:$4 sm:$0xff]   ;;  %v5563_v45 = vld [vmem:[%s6437_s18 + $0x184] ss:$12 sps:$4 sm:$0xff]   ;;  %v5565_v48 = vld [vmem:[%s6437_s18 + $0x94] ss:$12 sps:$4 sm:$0xff]  }
  0xc3   : > { %4823 = vmatprep.subr.bf16.mxu0 %v6474_v13  ;;  %4949 = vmatprep.subr.bf16.mxu1 %v6443_v7  ;;  %v5564_v47 = vld [vmem:[%s6437_s18 + $0x78] ss:$12 sps:$4 sm:$0xff]   ;;  %v5567_v49 = vld [vmem:[%s6437_s18 + $0x19c] ss:$12 sps:$4 sm:$0xff]   ;;  %v5573_v53 = vld [vmem:[%s6437_s18 + $0x1b4] ss:$12 sps:$4 sm:$0xff]  }
  0xc4   : > { %v5569_v50 = vld [vmem:[%s6437_s18 + $0x90] ss:$12 sps:$4 sm:$0xff]   ;;  %v5570_v51 = vld [vmem:[%s6437_s18 + $0x198] ss:$12 sps:$4 sm:$0xff]   ;;  %v5575_v54 = vld [vmem:[%s6437_s18 + $0xa8] ss:$12 sps:$4 sm:$0xff]  }
  0xc5   : > { %5344 = vmatmul.mubr.msk.bf16.gmra.mrb[4].mxu1 %vm1169_vm0, %v5524_v14  ;;  %v5571_v52 = vld [vmem:[%s6437_s18 + $0xac] ss:$12 sps:$4 sm:$0xff]   ;;  %v5576_v55 = vld [vmem:[%s6437_s18 + $0x1b0] ss:$12 sps:$4 sm:$0xff]   ;;  %v5582_v59 = vld [vmem:[%s6437_s18 + $0x1c8] ss:$12 sps:$4 sm:$0xff]  }
  0xc6   : > { %4824 = vmatpush3.bf16.msra.mxu0 %v6483_v15  ;;  %5347 = vmatprep.mubr.msk.bf16.mxu1 %vm1169_vm0, %v5528_v17  ;;  %v5577_v56 = vld [vmem:[%s6437_s18 + $0xc4] ss:$12 sps:$4 sm:$0xff]   ;;  %v5579_v57 = vld [vmem:[%s6437_s18 + $0x1cc] ss:$12 sps:$4 sm:$0xff]   ;;  %v5583_v60 = vld [vmem:[%s6437_s18 + $0xdc] ss:$12 sps:$4 sm:$0xff]  }
  0xc7   : > { %4825 = vmatprep.subr.bf16.mxu0 %v6490_v16  ;;  %4950 = vmatpush3.bf16.msra.mxu1 %v6453_v9  ;;  %v5581_v58 = vld [vmem:[%s6437_s18 + $0xc0] ss:$12 sps:$4 sm:$0xff]   ;;  %v5585_v61 = vld [vmem:[%s6437_s18 + $0x1e4] ss:$12 sps:$4 sm:$0xff]   ;;  %v5599_v8 = vld [vmem:[%s6437_s18 + $0x108] ss:$12 sps:$4 sm:$0xff]  }
  0xc8   : > { %4951 = vmatprep.subr.bf16.mxu1 %v6458_v10  ;;  %v5587_v62 = vld [vmem:[%s6437_s18 + $0xd8] ss:$12 sps:$4 sm:$0xff]   ;;  %v5588_v63 = vld [vmem:[%s6437_s18 + $0x1e0] ss:$12 sps:$4 sm:$0xff]   ;;  %v5606_v12 = vld [vmem:[%s6437_s18 + $0x228] ss:$12 sps:$4 sm:$0xff]  }
  0xc9   : > { %v5595_v6 = vld [vmem:[%s6437_s18 + $0x10c] ss:$12 sps:$4 sm:$0xff]   ;;  %v5609_v14 = vld [vmem:[%s6437_s18 + $0x244] ss:$12 sps:$4 sm:$0xff]   ;;  %v5613_v17 = vld [vmem:[%s6437_s18 + $0x154] ss:$12 sps:$4 sm:$0xff]  }
  0xca   : > { %4826 = vmatpush3.bf16.msra.mxu0 %v6499_v18  ;;  %v5623_v23 = vld [vmem:[%s6437_s18 + $0x168] ss:$12 sps:$4 sm:$0xff]  }
  0xcb   : > { %4827 = vmatprep.subr.bf16.mxu0 %v6506_v19  ;;  %4952 = vmatpush3.bf16.msra.mxu1 %v6465_v11 }
  0xcc   : > { %4953 = vmatprep.subr.bf16.mxu1 %v6474_v13 }
  0xcd   : > { %5348 = vmatmul.mubr.msk.bf16.gmra.mrb[8].mxu1 %vm1169_vm0, %v5530_v20  ;;  %v5618_v20 = vld [vmem:[%s6437_s18 + $0x258] ss:$12 sps:$4 sm:$0xff]  }
  0xce   : > { %4828 = vmatpush3.bf16.msra.mxu0 %v6514_v21  ;;  %5351 = vmatprep.mubr.msk.bf16.mxu1 %vm1169_vm0, %v5537_v24  ;;  %v5624_v24 = vld [vmem:[%s6437_s18 + $0x270] ss:$12 sps:$4 sm:$0xff]  }
  0xcf   : > { %4829 = vmatprep.subr.bf16.mxu0 %v6520_v22  ;;  %4954 = vmatpush3.bf16.msra.mxu1 %v6483_v15 }
  0xd0   : > { %4955 = vmatprep.subr.bf16.mxu1 %v6490_v16 }
  0xd2   : > { %4830 = vmatpush3.bf16.msra.mxu0 %v6532_v25 }
  0xd3   : > { %5371 = vmatprep.subr.bf16.mxu0 %v6409_v1  ;;  %4956 = vmatpush3.bf16.msra.mxu1 %v6499_v18 }
  0xd4   : > { %4957 = vmatprep.subr.bf16.mxu1 %v6506_v19 }
  0xd5   : > { %1251 = vmatmul.mubr.bf16.vlgmr.msra.gmra.mrb[0].mxu0 %v5534_v26  ;;  %5352 = vmatmul.mubr.msk.bf16.gmra.mrb[12].mxu1 %vm1169_vm0, %v5538_v27  ;;  %v5627_v26 = vld [vmem:[%s6437_s18 + $0x188] ss:$12 sps:$4 sm:$0xff]  }
  0xd6   : > { %5372 = vmatpush3.bf16.msra.mxu0 %v6409_v1  ;;  %1258 = vmatprep.mubr.bf16.mxu0 %v5539_v28  ;;  %v5628_v27 = vld [vmem:[%s6437_s18 + $0x288] ss:$12 sps:$4 sm:$0xff]   ;;  %v5629_v28 = vld [vmem:[%s6437_s18 + $0x1a0] ss:$12 sps:$4 sm:$0xff]  }
  0xd7   : > { %5355 = vmatprep.mubr.msk.bf16.mxu1 %vm1169_vm0, %v5541_v29  ;;  %4958 = vmatpush3.bf16.msra.mxu1 %v6514_v21  ;;  %v5630_v29 = vld [vmem:[%s6437_s18 + $0x2a4] ss:$12 sps:$4 sm:$0xff]  }
  0xd8   : > { %4959 = vmatprep.subr.bf16.mxu1 %v6520_v22  ;;  %5373 = vmatprep.subr.bf16.mxu0 %v6428_v4 }
  0xda   : > { %5374 = vmatpush3.bf16.msra.mxu0 %v6428_v4 }
  0xdb   : > { %4960 = vmatpush3.bf16.msra.mxu1 %v6532_v25  ;;  %5407 = vmatprep.subr.bf16.mxu0 %v6409_v1 }
  0xdc   : > { %5075 = vmatprep.subr.bf16.mxu1 %v6403_v0  ;;  %v5589_v0 = vld [vmem:[%s6437_s18 + $0xf4] ss:$12 sps:$4 sm:$0xff]  }
  0xdd   : > { %1259 = vmatmul.mubr.bf16.gmra.mrb[4].mxu0 %v5542_v30  ;;  %5356 = vmatmul.mubr.msk.bf16.gmra.mrb[16].mxu1 %vm1169_vm0, %v5543_v31  ;;  %v5632_v30 = vld [vmem:[%s6437_s18 + $0x1b8] ss:$12 sps:$4 sm:$0xff]  }
  0xde   : > { %1266 = vmatprep.mubr.bf16.mxu0 %v5544_v32  ;;  %5359 = vmatprep.mubr.msk.bf16.mxu1 %vm1169_vm0, %v5546_v33  ;;  %v6648_v31 = vld [vmem:[%s7658_s1 + $0x80] sm:$0xff]   ;;  %v5634_v33 = vld [vmem:[%s6437_s18 + $0x1d0] ss:$12 sps:$4 sm:$0xff]  }
  0xdf   : > { %v5633_v32 = vld [vmem:[%s6437_s18 + $0x2a0] ss:$12 sps:$4 sm:$0xff]  }
  0xe5   : > { %1267 = vmatmul.mubr.bf16.gmra.mrb[8].mxu0 %v5547_v34  ;;  %5360 = vmatmul.mubr.msk.bf16.gmra.mrb[20].mxu1 %vm1169_vm0, %v5548_v35  ;;  %v5635_v34 = vld [vmem:[%s6437_s18 + $0x2bc] ss:$12 sps:$4 sm:$0xff]  }
  0xe6   : > { %1274 = vmatprep.mubr.bf16.mxu0 %v5549_v36  ;;  %5363 = vmatprep.mubr.msk.bf16.mxu1 %vm1169_vm0, %v5551_v37  ;;  %v5637_v35 = vld [vmem:[%s6437_s18 + $0x1e8] ss:$12 sps:$4 sm:$0xff]   ;;  %v5785_v36 = vld [vmem:[%s7658_s1 + $0x40] sm:$0xff]  }
  0xe7   : > { %v5638_v37 = vld [vmem:[%s6437_s18 + $0x2b8] ss:$12 sps:$4 sm:$0xff]  }
  0xed   : > { %1275 = vmatmul.mubr.bf16.gmra.mrb[12].mxu0 %v5552_v38  ;;  %5364 = vmatmul.mubr.msk.bf16.gmra.mrb[24].mxu1 %vm1169_vm0, %v5553_v39  ;;  %v5639_v38 = vld [vmem:[%s6437_s18 + $0x200] ss:$12 sps:$4 sm:$0xff]  }
  0xee   : > { %1282 = vmatprep.mubr.bf16.mxu0 %v5554_v40  ;;  %5367 = vmatprep.mubr.msk.bf16.mxu1 %vm1169_vm0, %v5556_v41  ;;  %v5640_v39 = vld [vmem:[%s6437_s18 + $0x2d4] ss:$12 sps:$4 sm:$0xff]   ;;  %v5643_v40 = vld [vmem:[%s6437_s18 + $0x2d0] ss:$12 sps:$4 sm:$0xff]  }
  0xef   : > { %v5644_v41 = vld [vmem:[%s6437_s18 + $0x230] ss:$12 sps:$4 sm:$0xff]  }
  0xf5   : > { %1283 = vmatmul.mubr.bf16.gmra.mrb[16].mxu0 %v5557_v42  ;;  %5368 = vmatmul.mubr.msk.bf16.gmra.mrb[28].mxu1 %vm1169_vm0, %v5558_v43  ;;  %v5645_v42 = vld [vmem:[%s6437_s18 + $0x2ec] ss:$12 sps:$4 sm:$0xff]   ;;  %v5647_v43 = vld [vmem:[%s6437_s18 + $0x248] ss:$12 sps:$4 sm:$0xff]  }
  0xf6   : > { %1290 = vmatprep.mubr.bf16.mxu0 %v5559_v44  ;;  %1957 = vmatprep.mubr.bf16.mxu1 %v5563_v45  ;;  %v5648_v44 = vld [vmem:[%s6437_s18 + $0x2e8] ss:$12 sps:$4 sm:$0xff]   ;;  %v5649_v45 = vld [vmem:[%s6437_s18 + $0x260] ss:$12 sps:$4 sm:$0xff]  }
  0xfd   : > { %1291 = vmatmul.mubr.bf16.gmra.mrb[20].mxu0 %v5564_v47  ;;  %1958 = vmatmul.mubr.bf16.vlgmr.msra.gmra.mrb[32].mxu1 %v5561_v46  ;;  %v5650_v46 = vld [vmem:[%s6437_s18 + $0x278] ss:$12 sps:$4 sm:$0xff]  }
  0xfe   : > { %1298 = vmatprep.mubr.bf16.mxu0 %v5565_v48  ;;  %1965 = vmatprep.mubr.bf16.mxu1 %v5567_v49  ;;  %v5653_v47 = vld [vmem:[%s6437_s18 + $0x304] ss:$12 sps:$4 sm:$0xff]   ;;  %v5651_v48 = vld [vmem:[%s6437_s18 + $0x300] ss:$12 sps:$4 sm:$0xff]  }
  0xff   : > { %5076 = vmatpush3.bf16.msra.mxu1 %v6415_v2  ;;  %v5591_v2 = vld [vmem:[%s6437_s18 + $0x1fc] ss:$12 sps:$4 sm:$0xff]  }
 0x100   : > { %5077 = vmatprep.subr.bf16.mxu1 %v6421_v3  ;;  %v5593_v3 = vld [vmem:[%s6437_s18 + $0xf0] ss:$12 sps:$4 sm:$0xff]  }
 0x101   : > { %v5654_v49 = vld [vmem:[%s6437_s18 + $0x290] ss:$12 sps:$4 sm:$0xff]  }
 0x103   : > { %5078 = vmatpush3.bf16.msra.mxu1 %v6434_v5  ;;  %v5594_v5 = vld [vmem:[%s6437_s18 + $0x1f8] ss:$12 sps:$4 sm:$0xff]  }
 0x104   : > { %5079 = vmatprep.subr.bf16.mxu1 %v6443_v7  ;;  %v5597_v7 = vld [vmem:[%s6437_s18 + $0x214] ss:$12 sps:$4 sm:$0xff]  }
 0x105   : > { %1299 = vmatmul.mubr.bf16.gmra.mrb[24].mxu0 %v5569_v50  ;;  %1966 = vmatmul.mubr.bf16.gmra.mrb[36].mxu1 %v5570_v51  ;;  %v5655_v50 = vld [vmem:[%s6437_s18 + $0x2a8] ss:$12 sps:$4 sm:$0xff]  }
 0x106   : > { %1306 = vmatprep.mubr.bf16.mxu0 %v5571_v52  ;;  %1973 = vmatprep.mubr.bf16.mxu1 %v5573_v53  ;;  %v5656_v51 = vld [vmem:[%s6437_s18 + $0x31c] ss:$12 sps:$4 sm:$0xff]   ;;  %v5658_v53 = vld [vmem:[%s6437_s18 + $0x2c0] ss:$12 sps:$4 sm:$0xff]  }
 0x107   : > { %5080 = vmatpush3.bf16.msra.mxu1 %v6453_v9  ;;  %v5601_v9 = vld [vmem:[%s6437_s18 + $0x124] ss:$12 sps:$4 sm:$0xff]   ;;  %v6691_v52 = vld [vmem:[%s7658_s1 + $0x88] sm:$0xff]  }
 0x108   : > { %5081 = vmatprep.subr.bf16.mxu1 %v6458_v10  ;;  %v5603_v10 = vld [vmem:[%s6437_s18 + $0x22c] ss:$12 sps:$4 sm:$0xff]  }
 0x10b   : > { %5082 = vmatpush3.bf16.msra.mxu1 %v6465_v11  ;;  %v5605_v11 = vld [vmem:[%s6437_s18 + $0x120] ss:$12 sps:$4 sm:$0xff]  }
 0x10c   : > { %5083 = vmatprep.subr.bf16.mxu1 %v6474_v13  ;;  %v5607_v13 = vld [vmem:[%s6437_s18 + $0x13c] ss:$12 sps:$4 sm:$0xff]  }
 0x10d   : > { %1307 = vmatmul.mubr.bf16.gmra.mrb[28].mxu0 %v5575_v54  ;;  %1974 = vmatmul.mubr.bf16.gmra.mrb[40].mxu1 %v5576_v55  ;;  %v5659_v54 = vld [vmem:[%s6437_s18 + $0x318] ss:$12 sps:$4 sm:$0xff]  }
 0x10e   : > { %1314 = vmatprep.mubr.bf16.mxu0 %v5577_v56  ;;  %1981 = vmatprep.mubr.bf16.mxu1 %v5579_v57  ;;  %v5660_v55 = vld [vmem:[%s6437_s18 + $0x2d8] ss:$12 sps:$4 sm:$0xff]   ;;  %v5661_v56 = vld [vmem:[%s6437_s18 + $0x334] ss:$12 sps:$4 sm:$0xff]   ;;  %v5663_v57 = vld [vmem:[%s6437_s18 + $0x2f0] ss:$12 sps:$4 sm:$0xff]  }
 0x10f   : > { %5084 = vmatpush3.bf16.msra.mxu1 %v6483_v15  ;;  %v5611_v15 = vld [vmem:[%s6437_s18 + $0x138] ss:$12 sps:$4 sm:$0xff]  }
 0x110   : > { %5085 = vmatprep.subr.bf16.mxu1 %v6490_v16  ;;  %v5612_v16 = vld [vmem:[%s6437_s18 + $0x240] ss:$12 sps:$4 sm:$0xff]  }
 0x113   : > { %5086 = vmatpush3.bf16.msra.mxu1 %v6499_v18  ;;  %v5615_v18 = vld [vmem:[%s6437_s18 + $0x25c] ss:$12 sps:$4 sm:$0xff]  }
 0x114   : > { %5087 = vmatprep.subr.bf16.mxu1 %v6506_v19  ;;  %v5617_v19 = vld [vmem:[%s6437_s18 + $0x150] ss:$12 sps:$4 sm:$0xff]  }
 0x115   : > { %1315 = vmatmul.mubr.bf16.gmra.mrb[32].mxu0 %v5581_v58  ;;  %1982 = vmatmul.mubr.bf16.gmra.mrb[44].mxu1 %v5582_v59  ;;  %v5664_v58 = vld [vmem:[%s6437_s18 + $0x330] ss:$12 sps:$4 sm:$0xff]   ;;  %v5665_v59 = vld [vmem:[%s6437_s18 + $0x34c] ss:$12 sps:$4 sm:$0xff]  }
 0x116   : > { %1322 = vmatprep.mubr.bf16.mxu0 %v5583_v60  ;;  %1989 = vmatprep.mubr.bf16.mxu1 %v5585_v61  ;;  %v5667_v60 = vld [vmem:[%s6437_s18 + $0x308] ss:$12 sps:$4 sm:$0xff]  }
 0x117   : > { %5088 = vmatpush3.bf16.msra.mxu1 %v6514_v21  ;;  %v5619_v21 = vld [vmem:[%s6437_s18 + $0x16c] ss:$12 sps:$4 sm:$0xff]  }
 0x118   : > { %5089 = vmatprep.subr.bf16.mxu1 %v6520_v22  ;;  %v5621_v22 = vld [vmem:[%s6437_s18 + $0x274] ss:$12 sps:$4 sm:$0xff]  }
 0x11b   : > { %5090 = vmatpush3.bf16.msra.mxu1 %v6532_v25  ;;  %v5625_v25 = vld [vmem:[%s6437_s18 + $0x28c] ss:$12 sps:$4 sm:$0xff]  }
 0x11c   : > { %5479 = vmatprep.subr.bf16.mxu1 %v6409_v1  ;;  %v5600_v1 = vld [vmem:[%s6437_s18 + $0x210] ss:$12 sps:$4 sm:$0xff]  }
 0x11d   : > { %1323 = vmatmul.mubr.bf16.gmra.mrb[36].mxu0 %v5587_v62  ;;  %1990 = vmatmul.mubr.bf16.gmra.mrb[48].mxu1 %v5588_v63  ;;  %v5668_v62 = vld [vmem:[%s6437_s18 + $0x348] ss:$12 sps:$4 sm:$0xff]   ;;  %v5669_v63 = vld [vmem:[%s6437_s18 + $0x320] ss:$12 sps:$4 sm:$0xff]  }
 0x11e   : > { %1330 = vmatprep.mubr.bf16.mxu0 %v5589_v0  ;;  %1997 = vmatprep.mubr.bf16.mxu1 %v5591_v2 }
 0x125   : > { %1331 = vmatmul.mubr.bf16.gmra.mrb[40].mxu0 %v5593_v3  ;;  %1998 = vmatmul.mubr.bf16.gmra.mrb[52].mxu1 %v5594_v5  ;;  %v5670_v3 = vld [vmem:[%s6437_s18 + $0x364] ss:$12 sps:$4 sm:$0xff]  }
 0x126   : > { %1338 = vmatprep.mubr.bf16.mxu0 %v5595_v6  ;;  %2005 = vmatprep.mubr.bf16.mxu1 %v5597_v7  ;;  %v5672_v5 = vld [vmem:[%s6437_s18 + $0x338] ss:$12 sps:$4 sm:$0xff]  }
 0x127   : > { %v5787_v7 = vld [vmem:[%s7658_s1] sm:$0xff]  }
 0x12d   : > { %1339 = vmatmul.mubr.bf16.gmra.mrb[44].mxu0 %v5599_v8  ;;  %2006 = vmatmul.mubr.bf16.gmra.mrb[56].mxu1 %v5600_v1  ;;  %v5788_v8 = vld [vmem:[%s7658_s1 + $0x48] sm:$0xff]  }
 0x12e   : > { %1346 = vmatprep.mubr.bf16.mxu0 %v5601_v9  ;;  %2013 = vmatprep.mubr.bf16.mxu1 %v5603_v10  ;;  %v5673_v9 = vld [vmem:[%s6437_s18 + $0x360] ss:$12 sps:$4 sm:$0xff]   ;;  %v5674_v10 = vld [vmem:[%s6437_s18 + $0x350] ss:$12 sps:$4 sm:$0xff]  }
 0x135   : > { %1347 = vmatmul.mubr.bf16.gmra.mrb[48].mxu0 %v5605_v11  ;;  %2014 = vmatmul.mubr.bf16.gmra.mrb[60].mxu1 %v5606_v12  ;;  %v5789_v12 = vld [vmem:[%s7658_s1 + $0x8] sm:$0xff]  }
 0x136   : > { %1354 = vmatprep.mubr.bf16.mxu0 %v5607_v13  ;;  %2021 = vmatprep.mubr.bf16.mxu1 %v5609_v14  ;;  %v5675_v14 = vld [vmem:[%s6437_s18 + $0x37c] ss:$12 sps:$4 sm:$0xff]  }
 0x13d   : > { %1355 = vmatmul.mubr.bf16.gmra.mrb[52].mxu0 %v5611_v15  ;;  %2022 = vmatmul.mubr.bf16.gmra.mrb[64].mxu1 %v5612_v16  ;;  %v5677_v15 = vld [vmem:[%s6437_s18 + $0x368] ss:$12 sps:$4 sm:$0xff]  }
 0x13e   : > { %1362 = vmatprep.mubr.bf16.mxu0 %v5613_v17  ;;  %2029 = vmatprep.mubr.bf16.mxu1 %v5615_v18  ;;  %v5790_v16 = vld [vmem:[%s7658_s1 + $0x50] sm:$0xff]  }
 0x13f   : > { %v5791_v18 = vld [vmem:[%s7658_s1 + $0x10] sm:$0xff]  }
 0x145   : > { %1363 = vmatmul.mubr.bf16.gmra.mrb[56].mxu0 %v5617_v19  ;;  %2030 = vmatmul.mubr.bf16.gmra.mrb[68].mxu1 %v5618_v20  ;;  %v5792_v20 = vld [vmem:[%s7658_s1 + $0x58] sm:$0xff]  }
 0x146   : > { %1370 = vmatprep.mubr.bf16.mxu0 %v5619_v21  ;;  %2037 = vmatprep.mubr.bf16.mxu1 %v5621_v22  ;;  %v5678_v21 = vld [vmem:[%s6437_s18 + $0x378] ss:$12 sps:$4 sm:$0xff]   ;;  %v5679_v22 = vld [vmem:[%s6437_s18 + $0x380] ss:$12 sps:$4 sm:$0xff]  }
 0x14d   : > { %1371 = vmatmul.mubr.bf16.gmra.mrb[60].mxu0 %v5623_v23  ;;  %2038 = vmatmul.mubr.bf16.gmra.mrb[72].mxu1 %v5624_v24 }
 0x14e   : > { %2045 = vmatprep.mubr.bf16.mxu1 %v5625_v25  ;;  %5375 = vmatprep.mubr.msk.bf16.mxu0 %vm1169_vm0, %v5627_v26  ;;  %v5680_v25 = vld [vmem:[%s6437_s18 + $0x394] ss:$12 sps:$4 sm:$0xff]   ;;  %v5682_v26 = vld [vmem:[%s6437_s18 + $0x398] ss:$12 sps:$4 sm:$0xff]  }
 0x155   : > { %2046 = vmatmul.mubr.bf16.gmra.mrb[76].mxu1 %v5628_v27  ;;  %5376 = vmatmul.mubr.msk.bf16.vlgmr.msra.gmra.mrb[64].mxu0 %vm1169_vm0, %v5629_v28  ;;  %v5793_v27 = vld [vmem:[%s7658_s1 + $0x18] sm:$0xff]  }
 0x156   : > { %5408 = vmatpush3.bf16.msra.mxu0 %v6648_v31  ;;  %2053 = vmatprep.mubr.bf16.mxu1 %v5630_v29  ;;  %v5794_v29 = vld [vmem:[%s7658_s1 + $0x60] sm:$0xff]  }
 0x157   : > { %5379 = vmatprep.mubr.msk.bf16.mxu0 %vm1169_vm0, %v5632_v30  ;;  %5409 = vmatprep.subr.bf16.mxu0 %v6428_v4  ;;  %v5795_v30 = vld [vmem:[%s7658_s1 + $0x20] sm:$0xff]  }
 0x15a   : > { %5410 = vmatpush3.bf16.msra.mxu0 %v6428_v4  ;;  %v5642_v4 = vld [vmem:[%s6437_s18 + $0x218] ss:$12 sps:$4 sm:$0xff]  }
 0x15b   : > { %5205 = vmatprep.subr.bf16.mxu0 %v5785_v36 }
 0x15d   : > { %2054 = vmatmul.mubr.bf16.gmra.mrb[80].mxu1 %v5633_v32  ;;  %5380 = vmatmul.mubr.msk.bf16.gmra.mrb[68].mxu0 %vm1169_vm0, %v5634_v33  ;;  %v6780_v33 = vld [vmem:[%s7659_s2] ss:$0 sm:$0xff] }
 0x15e   : > { %2061 = vmatprep.mubr.bf16.mxu1 %v5635_v34  ;;  %5383 = vmatprep.mubr.msk.bf16.mxu0 %vm1169_vm0, %v5637_v35  ;;  %v5796_v35 = vld [vmem:[%s7658_s1 + $0x68] sm:$0xff]  }
 0x165   : > { %2062 = vmatmul.mubr.bf16.gmra.mrb[84].mxu1 %v5638_v37  ;;  %5384 = vmatmul.mubr.msk.bf16.gmra.mrb[72].mxu0 %vm1169_vm0, %v5639_v38  ;;  %v5683_v37 = vld [vmem:[%s6437_s18 + $0x390] ss:$12 sps:$4 sm:$0xff]  }
 0x166   : > { %2069 = vmatprep.mubr.bf16.mxu1 %v5640_v39  ;;  %5387 = vmatprep.mubr.msk.bf16.mxu0 %vm1169_vm0, %v5642_v4  ;;  %v5684_v38 = vld [vmem:[%s6437_s18 + $0x3b0] ss:$12 sps:$4 sm:$0xff]  }
 0x16d   : > { %2070 = vmatmul.mubr.bf16.gmra.mrb[88].mxu1 %v5643_v40  ;;  %5388 = vmatmul.mubr.msk.bf16.gmra.mrb[76].mxu0 %vm1169_vm0, %v5644_v41 }
 0x16e   : > { %2077 = vmatprep.mubr.bf16.mxu1 %v5645_v42  ;;  %5391 = vmatprep.mubr.msk.bf16.mxu0 %vm1169_vm0, %v5647_v43  ;;  %v5685_v42 = vld [vmem:[%s6437_s18 + $0x3ac] ss:$12 sps:$4 sm:$0xff]   ;;  %v5687_v43 = vld [vmem:[%s6437_s18 + $0x3c8] ss:$12 sps:$4 sm:$0xff]  }
 0x175   : > { %2078 = vmatmul.mubr.bf16.gmra.mrb[92].mxu1 %v5648_v44  ;;  %5392 = vmatmul.mubr.msk.bf16.gmra.mrb[80].mxu0 %vm1169_vm0, %v5649_v45 }
 0x176   : > { %5395 = vmatprep.mubr.msk.bf16.mxu0 %vm1169_vm0, %v5650_v46  ;;  %2696 = vmatprep.mubr.bf16.mxu1 %v5653_v47  ;;  %v5797_v46 = vld [vmem:[%s7658_s1 + $0x28] sm:$0xff]  }
 0x17d   : > { %5396 = vmatmul.mubr.msk.bf16.gmra.mrb[84].mxu0 %vm1169_vm0, %v5654_v49  ;;  %2697 = vmatmul.mubr.bf16.vlgmr.msra.gmra.mrb[96].mxu1 %v5651_v48  ;;  %v5798_v49 = vld [vmem:[%s7658_s1 + $0x70] sm:$0xff]  }
 0x17e   : > { %5399 = vmatprep.mubr.msk.bf16.mxu0 %vm1169_vm0, %v5655_v50  ;;  %2704 = vmatprep.mubr.bf16.mxu1 %v5656_v51 }
 0x17f   : > { %5481 = vmatpush3.bf16.msra.mxu1 %v6648_v31 }
 0x180   : > { %5480 = vmatprep.subr.bf16.mxu1 %v6691_v52 }
 0x183   : > { %5482 = vmatpush3.bf16.msra.mxu1 %v6691_v52 }
 0x184   : > { %5443 = vmatprep.subr.bf16.mxu1 %v6648_v31 }
 0x185   : > { %5400 = vmatmul.mubr.msk.bf16.gmra.mrb[88].mxu0 %vm1169_vm0, %v5658_v53  ;;  %2705 = vmatmul.mubr.bf16.gmra.mrb[100].mxu1 %v5659_v54  ;;  %v5799_v53 = vld [vmem:[%s7658_s1 + $0x30] sm:$0xff]  }
 0x186   : > { %5403 = vmatprep.mubr.msk.bf16.mxu0 %vm1169_vm0, %v5660_v55  ;;  %2712 = vmatprep.mubr.bf16.mxu1 %v5661_v56 }
 0x18d   : > { %5404 = vmatmul.mubr.msk.bf16.gmra.mrb[92].mxu0 %vm1169_vm0, %v5663_v57  ;;  %2713 = vmatmul.mubr.bf16.gmra.mrb[104].mxu1 %v5664_v58  ;;  %v5800_v57 = vld [vmem:[%s7658_s1 + $0x78] sm:$0xff]  }
 0x18e   : > { %2720 = vmatprep.mubr.bf16.mxu1 %v5665_v59  ;;  %5411 = vmatprep.mubr.msk.bf16.mxu0 %vm1169_vm0, %v5667_v60  ;;  %v5688_v59 = vld [vmem:[%s6437_s18 + $0x3a8] ss:$12 sps:$4 sm:$0xff]   ;;  %v5689_v60 = vld [vmem:[%s6437_s18 + $0x3e0] ss:$12 sps:$4 sm:$0xff]  }
 0x190   : > { %v6708_v61 = vpop.f32.mrb[0].mxu1 }
 0x191   : > { %v6712_v0 = vpop.f32.mrb[1].mxu1 }
 0x192   : > { %v6714_v2 = vpop.f32.mrb[2].mxu1 }
 0x193   : > { %v6718_v6 = vpop.f32.mrb[3].mxu1 }
 0x195   : > { %2721 = vmatmul.mubr.bf16.gmra.mrb[108].mxu1 %v5668_v62  ;;  %5412 = vmatmul.mubr.msk.bf16.vlgmr.msra.gmra.mrb[96].mxu0 %vm1169_vm0, %v5669_v63 }
 0x196   : > { %5206 = vmatpush3.bf16.msra.mxu0 %v5787_v7  ;;  %2728 = vmatprep.mubr.bf16.mxu1 %v5670_v3 }
 0x197   : > { %5415 = vmatprep.mubr.msk.bf16.mxu0 %vm1169_vm0, %v5672_v5  ;;  %5207 = vmatprep.subr.bf16.mxu0 %v5788_v8  ;;  %v5690_v5 = vld [vmem:[%s6437_s18 + $0x3c4] ss:$12 sps:$4 sm:$0xff]  }
 0x198   : > { %v6728_v1 = vpop.f32.mrb[4].mxu1 }
 0x199   : > { %v6732_v11 = vpop.f32.mrb[5].mxu1 }
 0x19a   : > { %5208 = vmatpush3.bf16.msra.mxu0 %v5789_v12  ;;  %v6737_v13 = vpop.f32.mrb[6].mxu1 }
 0x19b   : > { %5209 = vmatprep.subr.bf16.mxu0 %v5790_v16  ;;  %v6744_v17 = vpop.f32.mrb[7].mxu1 }
 0x19d   : > { %2729 = vmatmul.mubr.bf16.gmra.mrb[112].mxu1 %v5673_v9  ;;  %5416 = vmatmul.mubr.msk.bf16.gmra.mrb[100].mxu0 %vm1169_vm0, %v5674_v10  ;;  %v5801_v9 = vld [vmem:[%s7658_s1 + $0x38] sm:$0xff]  }
 0x19e   : > { %2736 = vmatprep.mubr.bf16.mxu1 %v5675_v14  ;;  %5419 = vmatprep.mubr.msk.bf16.mxu0 %vm1169_vm0, %v5677_v15 }
 0x19f   : > { %5210 = vmatpush3.bf16.msra.mxu0 %v5791_v18 }
 0x1a0   : > { %v6751_v19 = vpop.f32.mrb[8].mxu1  ;;  %5211 = vmatprep.subr.bf16.mxu0 %v5792_v20 }
 0x1a1   : > { %v6758_v23 = vpop.f32.mrb[9].mxu1 }
 0x1a2   : > { %v6760_v24 = vpop.f32.mrb[10].mxu1 }
 0x1a3   : > { %5212 = vmatpush3.bf16.msra.mxu0 %v5793_v27  ;;  %v6767_v28 = vpop.f32.mrb[11].mxu1 }
 0x1a4   : > { %5213 = vmatprep.subr.bf16.mxu0 %v5794_v29 }
 0x1a5   : > { %2737 = vmatmul.mubr.bf16.gmra.mrb[116].mxu1 %v5678_v21  ;;  %5420 = vmatmul.mubr.msk.bf16.gmra.mrb[104].mxu0 %vm1169_vm0, %v5679_v22  ;;  %v5693_v22 = vld [vmem:[%s6437_s18 + $0x3c0] ss:$12 sps:$4 sm:$0xff]  }
 0x1a6   : > { %2744 = vmatprep.mubr.bf16.mxu1 %v5680_v25  ;;  %5423 = vmatprep.mubr.msk.bf16.mxu0 %vm1169_vm0, %v5682_v26  ;;  %v5694_v25 = vld [vmem:[%s6437_s18 + $0x410] ss:$12 sps:$4 sm:$0xff]  }
 0x1a7   : > { %5214 = vmatpush3.bf16.msra.mxu0 %v5795_v30  ;;  %v5695_v30 = vld [vmem:[%s6437_s18 + $0x3dc] ss:$12 sps:$4 sm:$0xff]  }
 0x1a8   : > { %v4831_v32 = vpop.f32.mrb[0].mxu0  ;;  %v6782_v34 = vpop.f32.mrb[12].mxu1  ;;  %5215 = vmatprep.subr.bf16.mxu0 %v5796_v35 }
 0x1a9   : > { %v4832_v36 = vpop.f32.mrb[1].mxu0  ;;  %v6789_v39 = vpop.f32.mrb[13].mxu1 }
 0x1aa   : > { %v4833_v4 = vadd.f32 %v4832_v36, %v4831_v32  ;;  %v4834_v40 = vpop.f32.mrb[2].mxu0  ;;  %v6791_v41 = vpop.f32.mrb[14].mxu1  ;;  %v5697_v32 = vld [vmem:[%s6437_s18 + $0x428] ss:$12 sps:$4 sm:$0xff]  }
 0x1ab   : > { %v4835_v44 = vpop.f32.mrb[3].mxu0  ;;  %v6795_v45 = vpop.f32.mrb[15].mxu1  ;;  %5216 = vmatpush3.bf16.msra.mxu0 %v5797_v46  ;;  %v5698_v46 = vld [vmem:[%s6437_s18 + $0x3d8] ss:$12 sps:$4 sm:$0xff]  }
 0x1ac   : > { %v1253_v47 = vadd.f32 %v4833_v4, %v6780_v33  ;;  %v4836_v48 = vadd.f32 %v4835_v44, %v4834_v40  ;;  %5217 = vmatprep.subr.bf16.mxu0 %v5798_v49 }
 0x1ad   : > { %2745 = vmatmul.mubr.bf16.gmra.mrb[120].mxu1 %v5683_v37  ;;  %5424 = vmatmul.mubr.msk.bf16.gmra.mrb[108].mxu0 %vm1169_vm0, %v5684_v38 }
 0x1ae   : > { %v6806_v50 = vadd.f32 %v6712_v0, %v1253_v47  ;;  %v1256_v51 = vadd.f32 %v4836_v48, %v6780_v33  ;;  %2752 = vmatprep.mubr.bf16.mxu1 %v5685_v42  ;;  %5427 = vmatprep.mubr.msk.bf16.mxu0 %vm1169_vm0, %v5687_v43  ;;  %v5699_v47 = vld [vmem:[%s6437_s18 + $0x440] ss:$12 sps:$4 sm:$0xff]  }
 0x1af   : > { %5218 = vmatpush3.bf16.msra.mxu0 %v5799_v53  ;;  %v5700_v53 = vld [vmem:[%s6437_s18 + $0x3f4] ss:$12 sps:$4 sm:$0xff]  }
 0x1b0   : > { %v6814_v54 = vadd.f32 %v6718_v6, %v1256_v51  ;;  %v4837_v55 = vpop.f32.mrb[4].mxu0  ;;  %v6816_v56 = vpop.f32.mrb[16].mxu1  ;;  %5219 = vmatprep.subr.bf16.mxu0 %v5800_v57  ;;  %v5692_v6 = vld [vmem:[%s6437_s18 + $0x3f8] ss:$12 sps:$4 sm:$0xff]  }
 0x1b1   : > { %v4838_v58 = vpop.f32.mrb[5].mxu0  ;;  %v6823_v62 = vpop.f32.mrb[17].mxu1 }
 0x1b2   : > { %v4839_v63 = vadd.f32 %v4838_v58, %v4837_v55  ;;  %v4840_v0 = vpop.f32.mrb[6].mxu0  ;;  %v6825_v3 = vpop.f32.mrb[18].mxu1  ;;  %v5704_v55 = vld [vmem:[%s6437_s18 + $0x484] ss:$12 sps:$4 sm:$0xff]  }
 0x1b3   : > { %v4841_v7 = vpop.f32.mrb[7].mxu0  ;;  %v6829_v8 = vpop.f32.mrb[19].mxu1  ;;  %5220 = vmatpush3.bf16.msra.mxu0 %v5801_v9  ;;  %v5702_v9 = vld [vmem:[%s6437_s18 + $0x480] ss:$12 sps:$4 sm:$0xff]  }
 0x1b4   : > { %v1261_v10 = vadd.f32 %v4839_v63, %v6780_v33  ;;  %v4842_v12 = vadd.f32 %v4841_v7, %v4840_v0 }
 0x1b5   : > { %2753 = vmatmul.mubr.bf16.gmra.mrb[124].mxu1 %v5688_v59  ;;  %5428 = vmatmul.mubr.msk.bf16.gmra.mrb[112].mxu0 %vm1169_vm0, %v5689_v60 }
 0x1b6   : > { %v6837_v14 = vadd.f32 %v6708_v61, %v1261_v10  ;;  %v1264_v15 = vadd.f32 %v4842_v12, %v6780_v33  ;;  %2760 = vmatprep.mubr.bf16.mxu1 %v5690_v5  ;;  %5431 = vmatprep.mubr.msk.bf16.mxu0 %vm1169_vm0, %v5692_v6  ;;  %v5705_v10 = vld [vmem:[%s6437_s18 + $0x3f0] ss:$12 sps:$4 sm:$0xff]  }
 0x1b8   : > { %v6842_v16 = vadd.f32 %v6714_v2, %v1264_v15  ;;  %v4843_v18 = vpop.f32.mrb[8].mxu0  ;;  %v6844_v20 = vpop.f32.mrb[20].mxu1 }
 0x1b9   : > { %v4844_v21 = vpop.f32.mrb[9].mxu0  ;;  %v6848_v26 = vpop.f32.mrb[21].mxu1 }
 0x1ba   : > { %v4845_v27 = vadd.f32 %v4844_v21, %v4843_v18  ;;  %v4846_v29 = vpop.f32.mrb[10].mxu0  ;;  %v6850_v61 = vpop.f32.mrb[22].mxu1 }
 0x1bb   : > { %v4847_v35 = vpop.f32.mrb[11].mxu0  ;;  %v6854_v36 = vpop.f32.mrb[23].mxu1 }
 0x1bc   : > { %v1269_v2 = vadd.f32 %v4845_v27, %v6780_v33  ;;  %v4848_v37 = vadd.f32 %v4847_v35, %v4846_v29 }
 0x1bd   : > { %2761 = vmatmul.mubr.bf16.gmra.mrb[128].mxu1 %v5693_v22  ;;  %5432 = vmatmul.mubr.msk.bf16.gmra.mrb[116].mxu0 %vm1169_vm0, %v5694_v25  ;;  %v5708_v22 = vld [vmem:[%s6437_s18 + $0x49c] ss:$12 sps:$4 sm:$0xff]  }
 0x1be   : > { %v6859_v38 = vadd.f32 %v6732_v11, %v1269_v2  ;;  %v1272_v4 = vadd.f32 %v4848_v37, %v6780_v33  ;;  %2768 = vmatprep.mubr.bf16.mxu1 %v5695_v30  ;;  %5435 = vmatprep.mubr.msk.bf16.mxu0 %vm1169_vm0, %v5697_v32 }
 0x1c0   : > { %v6864_v40 = vadd.f32 %v6744_v17, %v1272_v4  ;;  %v4849_v42 = vpop.f32.mrb[12].mxu0  ;;  %v6866_v43 = vpop.f32.mrb[24].mxu1 }
 0x1c1   : > { %v4850_v44 = vpop.f32.mrb[13].mxu0  ;;  %v6870_v48 = vpop.f32.mrb[25].mxu1 }
 0x1c2   : > { %v4851_v49 = vadd.f32 %v4850_v44, %v4849_v42  ;;  %v4852_v51 = vpop.f32.mrb[14].mxu0  ;;  %v6872_v11 = vpop.f32.mrb[26].mxu1  ;;  %v5710_v42 = vld [vmem:[%s6437_s18 + $0x408] ss:$12 sps:$4 sm:$0xff]   ;;  %v5711_v44 = vld [vmem:[%s6437_s18 + $0x498] ss:$12 sps:$4 sm:$0xff]  }
 0x1c3   : > { %v4853_v57 = vpop.f32.mrb[15].mxu0  ;;  %v6876_v58 = vpop.f32.mrb[27].mxu1 }
 0x1c4   : > { %v1277_v17 = vadd.f32 %v4851_v49, %v6780_v33  ;;  %v4854_v59 = vadd.f32 %v4853_v57, %v4852_v51 }
 0x1c5   : > { %2769 = vmatmul.mubr.bf16.gmra.mrb[132].mxu1 %v5698_v46  ;;  %5436 = vmatmul.mubr.msk.bf16.gmra.mrb[120].mxu0 %vm1169_vm0, %v5699_v47 }
 0x1c6   : > { %v6881_v60 = vadd.f32 %v6728_v1, %v1277_v17  ;;  %v1280_v63 = vadd.f32 %v4854_v59, %v6780_v33  ;;  %2776 = vmatprep.mubr.bf16.mxu1 %v5700_v53  ;;  %3435 = vmatprep.mubr.bf16.mxu0 %v5704_v55  ;;  %v5706_v1 = vld [vmem:[%s6437_s18 + $0x40c] ss:$12 sps:$4 sm:$0xff]   ;;  %v5712_v53 = vld [vmem:[%s6437_s18 + $0x424] ss:$12 sps:$4 sm:$0xff]   ;;  %v5714_v55 = vld [vmem:[%s6437_s18 + $0x4b4] ss:$12 sps:$4 sm:$0xff]  }
 0x1c8   : > { %v6885_v0 = vadd.f32 %v6737_v13, %v1280_v63  ;;  %v4855_v5 = vpop.f32.mrb[16].mxu0  ;;  %v6887_v6 = vpop.f32.mrb[28].mxu1 }
 0x1c9   : > { %v4856_v7 = vpop.f32.mrb[17].mxu0  ;;  %v6891_v12 = vpop.f32.mrb[29].mxu1 }
 0x1ca   : > { %v4857_v15 = vadd.f32 %v4856_v7, %v4855_v5  ;;  %v4858_v18 = vpop.f32.mrb[18].mxu0  ;;  %v6893_v21 = vpop.f32.mrb[30].mxu1 }
 0x1cb   : > { %v4859_v25 = vpop.f32.mrb[19].mxu0  ;;  %v6897_v27 = vpop.f32.mrb[31].mxu1 }
 0x1cc   : > { %v1285_v13 = vadd.f32 %v4857_v15, %v6780_v33  ;;  %v4860_v29 = vadd.f32 %v4859_v25, %v4858_v18 }
 0x1cd   : > { %2777 = vmatmul.mubr.bf16.gmra.mrb[136].mxu1 %v5705_v10  ;;  %3436 = vmatmul.mubr.bf16.vlgmr.msra.gmra.mrb[124].mxu0 %v5702_v9 }
 0x1ce   : > { %v6901_v30 = vadd.f32 %v6758_v23, %v1285_v13  ;;  %v1288_v32 = vadd.f32 %v4860_v29, %v6780_v33  ;;  %2784 = vmatprep.mubr.bf16.mxu1 %v5706_v1  ;;  %3443 = vmatprep.mubr.bf16.mxu0 %v5708_v22  ;;  %v5716_v1 = vld [vmem:[%s6437_s18 + $0x420] ss:$12 sps:$4 sm:$0xff]   ;;  %v5717_v22 = vld [vmem:[%s6437_s18 + $0x4b0] ss:$12 sps:$4 sm:$0xff]  }
 0x1d0   : > { %v6905_v35 = vadd.f32 %v6767_v28, %v1288_v32  ;;  %v4861_v2 = vpop.f32.mrb[20].mxu0  ;;  %v4961_v37 = vpop.f32.mrb[32].mxu1 }
 0x1d1   : > { %v4862_v4 = vpop.f32.mrb[21].mxu0  ;;  %v4962_v46 = vpop.f32.mrb[33].mxu1 }
 0x1d2   : > { %v4863_v47 = vadd.f32 %v4862_v4, %v4861_v2  ;;  %v4864_v49 = vpop.f32.mrb[22].mxu0  ;;  %v6909_v51 = vadd.f32 %v4962_v46, %v4961_v37  ;;  %v4964_v23 = vpop.f32.mrb[34].mxu1  ;;  %v5718_v2 = vld [vmem:[%s6437_s18 + $0x43c] ss:$12 sps:$4 sm:$0xff]   ;;  %v5720_v37 = vld [vmem:[%s6437_s18 + $0x4cc] ss:$12 sps:$4 sm:$0xff]  }
 0x1d3   : > { %v4865_v57 = vpop.f32.mrb[23].mxu0  ;;  %v4965_v17 = vpop.f32.mrb[35].mxu1 }
 0x1d4   : > { %v1293_v28 = vadd.f32 %v4863_v47, %v6780_v33  ;;  %v4866_v59 = vadd.f32 %v4865_v57, %v4864_v49  ;;  %v6914_v63 = vadd.f32 %v4965_v17, %v4964_v23  ;;  %v5722_v17 = vld [vmem:[%s6437_s18 + $0x438] ss:$12 sps:$4 sm:$0xff]  }
 0x1d5   : > { %2785 = vmatmul.mubr.bf16.gmra.mrb[140].mxu1 %v5710_v42  ;;  %3444 = vmatmul.mubr.bf16.gmra.mrb[128].mxu0 %v5711_v44 }
 0x1d6   : > { %v6917_v5 = vadd.f32 %v6751_v19, %v1293_v28  ;;  %v1296_v7 = vadd.f32 %v4866_v59, %v6780_v33  ;;  %2792 = vmatprep.mubr.bf16.mxu1 %v5712_v53  ;;  %3451 = vmatprep.mubr.bf16.mxu0 %v5714_v55  ;;  %v5723_v28 = vld [vmem:[%s6437_s18 + $0x4c8] ss:$12 sps:$4 sm:$0xff]  }
 0x1d8   : > { %v6921_v9 = vadd.f32 %v6760_v24, %v1296_v7  ;;  %v4867_v10 = vpop.f32.mrb[24].mxu0  ;;  %v4967_v15 = vpop.f32.mrb[36].mxu1 }
 0x1d9   : > { %v4868_v18 = vpop.f32.mrb[25].mxu0  ;;  %v4968_v25 = vpop.f32.mrb[37].mxu1 }
 0x1da   : > { %v4869_v13 = vadd.f32 %v4868_v18, %v4867_v10  ;;  %v4870_v29 = vpop.f32.mrb[26].mxu0  ;;  %v6925_v32 = vadd.f32 %v4968_v25, %v4967_v15  ;;  %v4970_v19 = vpop.f32.mrb[38].mxu1  ;;  %v5724_v18 = vld [vmem:[%s6437_s18 + $0x454] ss:$12 sps:$4 sm:$0xff]  }
 0x1db   : > { %v4871_v4 = vpop.f32.mrb[27].mxu0  ;;  %v4971_v42 = vpop.f32.mrb[39].mxu1 }
 0x1dc   : > { %v1301_v24 = vadd.f32 %v4869_v13, %v6780_v33  ;;  %v4872_v44 = vadd.f32 %v4871_v4, %v4870_v29  ;;  %v6930_v46 = vadd.f32 %v4971_v42, %v4970_v19 }
 0x1dd   : > { %2793 = vmatmul.mubr.bf16.gmra.mrb[144].mxu1 %v5716_v1  ;;  %3452 = vmatmul.mubr.bf16.gmra.mrb[132].mxu0 %v5717_v22  ;;  %v5726_v1 = vld [vmem:[%s6437_s18 + $0x4e4] ss:$12 sps:$4 sm:$0xff]  }
 0x1de   : > { %v6933_v47 = vadd.f32 %v6789_v39, %v1301_v24  ;;  %v1304_v49 = vadd.f32 %v4872_v44, %v6780_v33  ;;  %2800 = vmatprep.mubr.bf16.mxu1 %v5718_v2  ;;  %3459 = vmatprep.mubr.bf16.mxu0 %v5720_v37  ;;  %v5728_v44 = vld [vmem:[%s6437_s18 + $0x450] ss:$12 sps:$4 sm:$0xff]  }
 0x1e0   : > { %v6937_v23 = vadd.f32 %v6795_v45, %v1304_v49  ;;  %v4873_v53 = vpop.f32.mrb[28].mxu0  ;;  %v4973_v55 = vpop.f32.mrb[40].mxu1  ;;  %v5729_v49 = vld [vmem:[%s6437_s18 + $0x4e0] ss:$12 sps:$4 sm:$0xff]  }
 0x1e1   : > { %v4874_v57 = vpop.f32.mrb[29].mxu0  ;;  %v4974_v59 = vpop.f32.mrb[41].mxu1 }
 0x1e2   : > { %v4875_v7 = vadd.f32 %v4874_v57, %v4873_v53  ;;  %v4876_v10 = vpop.f32.mrb[30].mxu0  ;;  %v6941_v15 = vadd.f32 %v4974_v59, %v4973_v55  ;;  %v4976_v39 = vpop.f32.mrb[42].mxu1  ;;  %v5732_v59 = vld [vmem:[%s6437_s18 + $0x4fc] ss:$12 sps:$4 sm:$0xff]  }
 0x1e3   : > { %v4877_v22 = vpop.f32.mrb[31].mxu0  ;;  %v4977_v25 = vpop.f32.mrb[43].mxu1 }
 0x1e4   : > { %v1309_v45 = vadd.f32 %v4875_v7, %v6780_v33  ;;  %v4878_v13 = vadd.f32 %v4877_v22, %v4876_v10  ;;  %v6946_v29 = vadd.f32 %v4977_v25, %v4976_v39 }
 0x1e5   : > { %2801 = vmatmul.mubr.bf16.gmra.mrb[148].mxu1 %v5722_v17  ;;  %3460 = vmatmul.mubr.bf16.gmra.mrb[136].mxu0 %v5723_v28  ;;  %v5730_v28 = vld [vmem:[%s6437_s18 + $0x46c] ss:$12 sps:$4 sm:$0xff]  }
 0x1e6   : > { %v6949_v19 = vadd.f32 %v6782_v34, %v1309_v45  ;;  %v1312_v2 = vadd.f32 %v4878_v13, %v6780_v33  ;;  %2808 = vmatprep.mubr.bf16.mxu1 %v5724_v18  ;;  %3467 = vmatprep.mubr.bf16.mxu0 %v5726_v1 }
 0x1e8   : > { %v6953_v37 = vadd.f32 %v6791_v41, %v1312_v2  ;;  %v4879_v4 = vpop.f32.mrb[32].mxu0  ;;  %v4979_v42 = vpop.f32.mrb[44].mxu1 }
 0x1e9   : > { %v4880_v24 = vpop.f32.mrb[33].mxu0  ;;  %v4980_v53 = vpop.f32.mrb[45].mxu1 }
 0x1ea   : > { %v4881_v55 = vadd.f32 %v4880_v24, %v4879_v4  ;;  %v4882_v57 = vpop.f32.mrb[34].mxu0  ;;  %v6957_v17 = vadd.f32 %v4980_v53, %v4979_v42  ;;  %v4982_v34 = vpop.f32.mrb[46].mxu1  ;;  %v5734_v4 = vld [vmem:[%s6437_s18 + $0x468] ss:$12 sps:$4 sm:$0xff]   ;;  %v5735_v42 = vld [vmem:[%s6437_s18 + $0x4f8] ss:$12 sps:$4 sm:$0xff]  }
 0x1eb   : > { %v4883_v7 = vpop.f32.mrb[35].mxu0  ;;  %v4983_v10 = vpop.f32.mrb[47].mxu1 }
 0x1ec   : > { %v1317_v41 = vadd.f32 %v4881_v55, %v6780_v33  ;;  %v4884_v39 = vadd.f32 %v4883_v7, %v4882_v57  ;;  %v6962_v18 = vadd.f32 %v4983_v10, %v4982_v34  ;;  %v5736_v55 = vld [vmem:[%s6437_s18 + $0x458] ss:$12 sps:$4 sm:$0xff]   ;;  %v5737_v57 = vld [vmem:[%s6437_s18 + $0x514] ss:$12 sps:$4 sm:$0xff]  }
 0x1ed   : > { %2809 = vmatmul.mubr.bf16.gmra.mrb[152].mxu1 %v5728_v44  ;;  %3468 = vmatmul.mubr.bf16.gmra.mrb[140].mxu0 %v5729_v49 }
 0x1ee   : > { %v6965_v1 = vadd.f32 %v6823_v62, %v1317_v41  ;;  %v1320_v22 = vadd.f32 %v4884_v39, %v6780_v33  ;;  %2816 = vmatprep.mubr.bf16.mxu1 %v5730_v28  ;;  %3475 = vmatprep.mubr.bf16.mxu0 %v5732_v59 }
 0x1f0   : > { %v6969_v25 = vadd.f32 %v6829_v8, %v1320_v22  ;;  %v4885_v45 = vpop.f32.mrb[36].mxu0  ;;  %v4985_v13 = vpop.f32.mrb[48].mxu1 }
 0x1f1   : > { %v4886_v2 = vpop.f32.mrb[37].mxu0  ;;  %v4986_v24 = vpop.f32.mrb[49].mxu1 }
 0x1f2   : > { %v4887_v44 = vadd.f32 %v4886_v2, %v4885_v45  ;;  %v4888_v49 = vpop.f32.mrb[38].mxu0  ;;  %v6973_v53 = vadd.f32 %v4986_v24, %v4985_v13  ;;  %v4988_v62 = vpop.f32.mrb[50].mxu1  ;;  %v5739_v2 = vld [vmem:[%s6437_s18 + $0x470] ss:$12 sps:$4 sm:$0xff]  }
 0x1f3   : > { %v4889_v34 = vpop.f32.mrb[39].mxu0  ;;  %v4989_v28 = vpop.f32.mrb[51].mxu1  ;;  %v5740_v24 = vld [vmem:[%s6437_s18 + $0x510] ss:$12 sps:$4 sm:$0xff]  }
 0x1f4   : > { %v1325_v8 = vadd.f32 %v4887_v44, %v6780_v33  ;;  %v4890_v59 = vadd.f32 %v4889_v34, %v4888_v49  ;;  %v6978_v7 = vadd.f32 %v4989_v28, %v4988_v62  ;;  %v5741_v62 = vld [vmem:[%s6437_s18 + $0x52c] ss:$12 sps:$4 sm:$0xff]   ;;  %v5743_v28 = vld [vmem:[%s6437_s18 + $0x488] ss:$12 sps:$4 sm:$0xff]  }
 0x1f5   : > { %2817 = vmatmul.mubr.bf16.gmra.mrb[156].mxu1 %v5734_v4  ;;  %3476 = vmatmul.mubr.bf16.gmra.mrb[144].mxu0 %v5735_v42 }
 0x1f6   : > { %v6981_v10 = vadd.f32 %v6816_v56, %v1325_v8  ;;  %v1328_v41 = vadd.f32 %v4890_v59, %v6780_v33  ;;  %5439 = vmatprep.mubr.msk.bf16.mxu1 %vm1169_vm0, %v5736_v55  ;;  %3483 = vmatprep.mubr.bf16.mxu0 %v5737_v57 }
 0x1f8   : > { %v6986_v39 = vadd.f32 %v6825_v3, %v1328_v41  ;;  %v4891_v22 = vpop.f32.mrb[40].mxu0  ;;  %v4991_v45 = vpop.f32.mrb[52].mxu1 }
 0x1f9   : > { %v4892_v13 = vpop.f32.mrb[41].mxu0  ;;  %v4992_v4 = vpop.f32.mrb[53].mxu1 }
 0x1fa   : > { %v4893_v42 = vadd.f32 %v4892_v13, %v4891_v22  ;;  %v4894_v44 = vpop.f32.mrb[42].mxu0  ;;  %v6990_v49 = vadd.f32 %v4992_v4, %v4991_v45  ;;  %v4994_v56 = vpop.f32.mrb[54].mxu1 }
 0x1fb   : > { %v4895_v34 = vpop.f32.mrb[43].mxu0  ;;  %v4995_v8 = vpop.f32.mrb[55].mxu1 }
 0x1fc   : > { %v1333_v55 = vadd.f32 %v4893_v42, %v6780_v33  ;;  %v4896_v3 = vadd.f32 %v4895_v34, %v4894_v44  ;;  %v6995_v57 = vadd.f32 %v4995_v8, %v4994_v56  ;;  %v5748_v34 = vld [vmem:[%s6437_s18 + $0x4b8] ss:$12 sps:$4 sm:$0xff]  }
 0x1fd   : > { %5440 = vmatmul.mubr.msk.bf16.vlgmr.msra.gmra.mrb[160].mxu1 %vm1169_vm0, %v5739_v2  ;;  %3484 = vmatmul.mubr.bf16.gmra.mrb[148].mxu0 %v5740_v24  ;;  %v5744_v24 = vld [vmem:[%s6437_s18 + $0x528] ss:$12 sps:$4 sm:$0xff]  }
 0x1fe   : > { %v6999_v59 = vadd.f32 %v6848_v26, %v1333_v55  ;;  %v1336_v41 = vadd.f32 %v4896_v3, %v6780_v33  ;;  %5444 = vmatpush3.bf16.msra.mxu1 %v6648_v31  ;;  %3491 = vmatprep.mubr.bf16.mxu0 %v5741_v62  ;;  %v5745_v26 = vld [vmem:[%s6437_s18 + $0x4a0] ss:$12 sps:$4 sm:$0xff]   ;;  %v5746_v62 = vld [vmem:[%s6437_s18 + $0x544] ss:$12 sps:$4 sm:$0xff]  }
 0x1ff   : > { %5445 = vmatprep.subr.bf16.mxu1 %v6691_v52  ;;  %5447 = vmatprep.mubr.msk.bf16.mxu1 %vm1169_vm0, %v5743_v28 }
 0x200   : > { %7661 = vst [vmem:[#allocation3_spill] sm:$0xff] %v6999_v59  ;;  %v7006_v22 = vadd.f32 %v6854_v36, %v1336_v41  ;;  %v4897_v45 = vpop.f32.mrb[44].mxu0  ;;  %v4997_v13 = vpop.f32.mrb[56].mxu1 }
 0x201   : > { %v4898_v2 = vpop.f32.mrb[45].mxu0  ;;  %v4998_v4 = vpop.f32.mrb[57].mxu1 }
 0x202   : > { %7662 = vst [vmem:[#allocation4_spill] sm:$0xff] %v7006_v22  ;;  %v4899_v42 = vadd.f32 %v4898_v2, %v4897_v45  ;;  %v4900_v44 = vpop.f32.mrb[46].mxu0  ;;  %5446 = vmatpush3.bf16.msra.mxu1 %v6691_v52  ;;  %v7011_v31 = vadd.f32 %v4998_v4, %v4997_v13  ;;  %v5000_v56 = vpop.f32.mrb[58].mxu1 }
 0x203   : > { %v4901_v28 = vpop.f32.mrb[47].mxu0  ;;  %v5001_v36 = vpop.f32.mrb[59].mxu1 }
 0x204   : > { %v1341_v8 = vadd.f32 %v4899_v42, %v6780_v33  ;;  %v4902_v55 = vadd.f32 %v4901_v28, %v4900_v44  ;;  %v7016_v3 = vadd.f32 %v5001_v36, %v5000_v56  ;;  %v5749_v42 = vld [vmem:[%s6437_s18 + $0x540] ss:$12 sps:$4 sm:$0xff]   ;;  %v5751_v36 = vld [vmem:[%s6437_s18 + $0x55c] ss:$12 sps:$4 sm:$0xff]  }
 0x205   : > { %3492 = vmatmul.mubr.bf16.gmra.mrb[152].mxu0 %v5744_v24  ;;  %5448 = vmatmul.mubr.msk.bf16.vlgmr.msra.gmra.mrb[164].mxu1 %vm1169_vm0, %v5745_v26  ;;  %v5750_v24 = vld [vmem:[%s6437_s18 + $0x4d0] ss:$12 sps:$4 sm:$0xff]  }
 0x206   : > { %v7020_v52 = vadd.f32 %v6844_v20, %v1341_v8  ;;  %v1344_v41 = vadd.f32 %v4902_v55, %v6780_v33  ;;  %3499 = vmatprep.mubr.bf16.mxu0 %v5746_v62  ;;  %5451 = vmatprep.mubr.msk.bf16.mxu1 %vm1169_vm0, %v5748_v34  ;;  %v5753_v8 = vld [vmem:[%s6437_s18 + $0x4e8] ss:$12 sps:$4 sm:$0xff]  }
 0x208   : > { %v7025_v45 = vadd.f32 %v6850_v61, %v1344_v41  ;;  %v4903_v13 = vpop.f32.mrb[48].mxu0  ;;  %v5003_v2 = vpop.f32.mrb[60].mxu1 }
 0x209   : > { %v4904_v4 = vpop.f32.mrb[49].mxu0  ;;  %v5004_v44 = vpop.f32.mrb[61].mxu1 }
 0x20a   : > { %7663 = vst [vmem:[#allocation5_spill] sm:$0xff] %v7025_v45  ;;  %v4905_v26 = vadd.f32 %v4904_v4, %v4903_v13  ;;  %v4906_v56 = vpop.f32.mrb[50].mxu0  ;;  %v7029_v28 = vadd.f32 %v5004_v44, %v5003_v2  ;;  %v5006_v20 = vpop.f32.mrb[62].mxu1 }
 0x20b   : > { %v4907_v62 = vpop.f32.mrb[51].mxu0  ;;  %v5007_v34 = vpop.f32.mrb[63].mxu1 }
 0x20c   : > { %v1349_v61 = vadd.f32 %v4905_v26, %v6780_v33  ;;  %v4908_v55 = vadd.f32 %v4907_v62, %v4906_v56  ;;  %v7034_v41 = vadd.f32 %v5007_v34, %v5006_v20  ;;  %v5754_v20 = vld [vmem:[%s6437_s18 + $0x558] ss:$12 sps:$4 sm:$0xff]  }
 0x20d   : > { %3500 = vmatmul.mubr.bf16.gmra.mrb[156].mxu0 %v5749_v42  ;;  %5452 = vmatmul.mubr.msk.bf16.gmra.mrb[168].mxu1 %vm1169_vm0, %v5750_v24  ;;  %v5755_v42 = vld [vmem:[%s6437_s18 + $0x500] ss:$12 sps:$4 sm:$0xff]  }
 0x20e   : > { %v7038_v13 = vadd.f32 %v6870_v48, %v1349_v61  ;;  %v1352_v2 = vadd.f32 %v4908_v55, %v6780_v33  ;;  %3507 = vmatprep.mubr.bf16.mxu0 %v5751_v36  ;;  %5455 = vmatprep.mubr.msk.bf16.mxu1 %vm1169_vm0, %v5753_v8  ;;  %v5756_v61 = vld [vmem:[%s6437_s18 + $0x574] ss:$12 sps:$4 sm:$0xff]  }
 0x210   : > { %7664 = vst [vmem:[#allocation6_spill] sm:$0xff] %v7038_v13  ;;  %v7043_v4 = vadd.f32 %v6876_v58, %v1352_v2  ;;  %v4909_v44 = vpop.f32.mrb[52].mxu0  ;;  %v5009_v26 = vpop.f32.mrb[64].mxu1  ;;  %v5758_v13 = vld [vmem:[%s6437_s18 + $0x518] ss:$12 sps:$4 sm:$0xff]  }
 0x211   : > { %v4910_v56 = vpop.f32.mrb[53].mxu0  ;;  %v5010_v62 = vpop.f32.mrb[65].mxu1 }
 0x212   : > { %7665 = vst [vmem:[#allocation7_spill] sm:$0xff] %v7043_v4  ;;  %v4911_v24 = vadd.f32 %v4910_v56, %v4909_v44  ;;  %v4912_v34 = vpop.f32.mrb[54].mxu0  ;;  %v7047_v22 = vadd.f32 %v5010_v62, %v5009_v26  ;;  %v5012_v48 = vpop.f32.mrb[66].mxu1 }
 0x213   : > { %v4913_v36 = vpop.f32.mrb[55].mxu0  ;;  %v5013_v8 = vpop.f32.mrb[67].mxu1 }
 0x214   : > { %v1357_v58 = vadd.f32 %v4911_v24, %v6780_v33  ;;  %v4914_v55 = vadd.f32 %v4913_v36, %v4912_v34  ;;  %v7052_v2 = vadd.f32 %v5013_v8, %v5012_v48  ;;  %v5759_v48 = vld [vmem:[%s6437_s18 + $0x570] ss:$12 sps:$4 sm:$0xff]  }
 0x215   : > { %3508 = vmatmul.mubr.bf16.gmra.mrb[160].mxu0 %v5754_v20  ;;  %5456 = vmatmul.mubr.msk.bf16.gmra.mrb[172].mxu1 %vm1169_vm0, %v5755_v42  ;;  %v5760_v20 = vld [vmem:[%s6437_s18 + $0x530] ss:$12 sps:$4 sm:$0xff]  }
 0x216   : > { %v7056_v44 = vadd.f32 %v6866_v43, %v1357_v58  ;;  %v1360_v26 = vadd.f32 %v4914_v55, %v6780_v33  ;;  %3515 = vmatprep.mubr.bf16.mxu0 %v5756_v61  ;;  %5459 = vmatprep.mubr.msk.bf16.mxu1 %vm1169_vm0, %v5758_v13  ;;  %v5761_v58 = vld [vmem:[%s6437_s18 + $0x58c] ss:$12 sps:$4 sm:$0xff]  }
 0x218   : > { %7666 = vst [vmem:[#allocation8_spill] sm:$0xff] %v7056_v44  ;;  %v7061_v56 = vadd.f32 %v6872_v11, %v1360_v26  ;;  %v4915_v62 = vpop.f32.mrb[56].mxu0  ;;  %v5015_v24 = vpop.f32.mrb[68].mxu1  ;;  %v5763_v44 = vld [vmem:[%s6437_s18 + $0x548] ss:$12 sps:$4 sm:$0xff]  }
 0x219   : > { %v4916_v34 = vpop.f32.mrb[57].mxu0  ;;  %v5016_v36 = vpop.f32.mrb[69].mxu1 }
 0x21a   : > { %7667 = vst [vmem:[#allocation9_spill] sm:$0xff] %v7061_v56  ;;  %v4917_v42 = vadd.f32 %v4916_v34, %v4915_v62  ;;  %v4918_v8 = vpop.f32.mrb[58].mxu0  ;;  %v7065_v4 = vadd.f32 %v5016_v36, %v5015_v24  ;;  %v5018_v43 = vpop.f32.mrb[70].mxu1 }
 0x21b   : > { %v4919_v61 = vpop.f32.mrb[59].mxu0  ;;  %v5019_v13 = vpop.f32.mrb[71].mxu1 }
 0x21c   : > { %v1365_v11 = vadd.f32 %v4917_v42, %v6780_v33  ;;  %v4920_v55 = vadd.f32 %v4919_v61, %v4918_v8  ;;  %v7070_v26 = vadd.f32 %v5019_v13, %v5018_v43  ;;  %v5764_v43 = vld [vmem:[%s6437_s18 + $0x588] ss:$12 sps:$4 sm:$0xff]  }
 0x21d   : > { %3516 = vmatmul.mubr.bf16.gmra.mrb[164].mxu0 %v5759_v48  ;;  %5460 = vmatmul.mubr.msk.bf16.gmra.mrb[176].mxu1 %vm1169_vm0, %v5760_v20  ;;  %v5765_v48 = vld [vmem:[%s6437_s18 + $0x560] ss:$12 sps:$4 sm:$0xff]  }
 0x21e   : > { %v7074_v62 = vadd.f32 %v6891_v12, %v1365_v11  ;;  %v1368_v24 = vadd.f32 %v4920_v55, %v6780_v33  ;;  %3523 = vmatprep.mubr.bf16.mxu0 %v5761_v58  ;;  %5463 = vmatprep.mubr.msk.bf16.mxu1 %vm1169_vm0, %v5763_v44  ;;  %v5766_v11 = vld [vmem:[%s6437_s18 + $0x5a4] ss:$12 sps:$4 sm:$0xff]  }
 0x220   : > { %7668 = vst [vmem:[#allocation10_spill] sm:$0xff] %v7074_v62  ;;  %v7079_v34 = vadd.f32 %v6897_v27, %v1368_v24  ;;  %v4921_v36 = vpop.f32.mrb[60].mxu0  ;;  %v5021_v42 = vpop.f32.mrb[72].mxu1  ;;  %v5768_v62 = vld [vmem:[%s6437_s18 + $0x578] ss:$12 sps:$4 sm:$0xff]  }
 0x221   : > { %v4922_v8 = vpop.f32.mrb[61].mxu0  ;;  %v5022_v61 = vpop.f32.mrb[73].mxu1 }
 0x222   : > { %7669 = vst [vmem:[#allocation11_spill] sm:$0xff] %v7079_v34  ;;  %v4923_v20 = vadd.f32 %v4922_v8, %v4921_v36  ;;  %v4924_v13 = vpop.f32.mrb[62].mxu0  ;;  %v7083_v56 = vadd.f32 %v5022_v61, %v5021_v42  ;;  %v5024_v12 = vpop.f32.mrb[74].mxu1  ;;  %v1968_v42 = vadd.f32 %v6925_v32, %v6780_v33 }
 0x223   : > { %v4925_v55 = vpop.f32.mrb[63].mxu0  ;;  %v5025_v58 = vpop.f32.mrb[75].mxu1 }
 0x224   : > { %v1373_v44 = vadd.f32 %v4923_v20, %v6780_v33  ;;  %v4926_v45 = vadd.f32 %v4925_v55, %v4924_v13  ;;  %v7088_v27 = vadd.f32 %v5025_v58, %v5024_v12  ;;  %v5769_v13 = vld [vmem:[%s6437_s18 + $0x5a0] ss:$12 sps:$4 sm:$0xff]  }
 0x225   : > { %3524 = vmatmul.mubr.bf16.gmra.mrb[168].mxu0 %v5764_v43  ;;  %5464 = vmatmul.mubr.msk.bf16.gmra.mrb[180].mxu1 %vm1169_vm0, %v5765_v48  ;;  %v1960_v43 = vadd.f32 %v6909_v51, %v6780_v33  ;;  %v1542_v51 = vmax.f32 %v6837_v14, 0.0 }
 0x226   : > { %v7092_v24 = vadd.f32 %v6887_v6, %v1373_v44  ;;  %v1376_v36 = vadd.f32 %v4926_v45, %v6780_v33  ;;  %3531 = vmatprep.mubr.bf16.mxu0 %v5766_v11  ;;  %5467 = vmatprep.mubr.msk.bf16.mxu1 %vm1169_vm0, %v5768_v62  ;;  %v1971_v45 = vadd.f32 %v6930_v46, %v6780_v33  ;;  %v5770_v62 = vld [vmem:[%s6437_s18 + $0x590] ss:$12 sps:$4 sm:$0xff]   ;;  %v1540_v46 = vmax.f32 %v6806_v50, 0.0 }
 0x227   : > { %v5771_v44 = vld [vmem:[%s6437_s18 + $0x5bc] ss:$12 sps:$4 sm:$0xff]  }
 0x228   : > { %7670 = vst [vmem:[#allocation12_spill] sm:$0xff] %v7092_v24  ;;  %v7099_v8 = vadd.f32 %v6893_v21, %v1376_v36  ;;  %v5377_v61 = vpop.f32.mrb[64].mxu0  ;;  %v5027_v48 = vpop.f32.mrb[76].mxu1  ;;  %v1963_v21 = vadd.f32 %v6914_v63, %v6780_v33  ;;  %v5773_v36 = vld [vmem:[%s6437_s18 + $0x5a8] ss:$12 sps:$4 sm:$0xff]   ;;  %v1543_v63 = vmax.f32 %v6842_v16, 0.0 }
 0x229   : > { %v2129_v6 = vadd.f32 %v5377_v61, %v1968_v42  ;;  %v2120_v20 = vpop.f32.mrb[65].mxu0  ;;  %v5028_v12 = vpop.f32.mrb[77].mxu1 }
 0x22a   : > { %7671 = vst [vmem:[#allocation13_spill] sm:$0xff] %v7099_v8  ;;  %v2121_v11 = vadd.f32 %v2120_v20, %v1960_v43  ;;  %v5378_v32 = vpop.f32.mrb[66].mxu0  ;;  %v7109_v55 = vadd.f32 %v5028_v12, %v5027_v48  ;;  %v5030_v58 = vpop.f32.mrb[78].mxu1  ;;  %v5774_v12 = vld [vmem:[%s6437_s18 + $0x5b8] ss:$12 sps:$4 sm:$0xff]  }
 0x22b   : > { %v2249_v42 = vmax.f32 %v2129_v6, 0.0  ;;  %v2132_v61 = vadd.f32 %v5378_v32, %v1971_v45  ;;  %v2123_v34 = vpop.f32.mrb[67].mxu0  ;;  %v5031_v8 = vpop.f32.mrb[79].mxu1  ;;  %v1541_v6 = vmax.f32 %v6814_v54, 0.0 }
 0x22c   : > { %v2247_v24 = vmax.f32 %v2121_v11, 0.0  ;;  %v2124_v59 = vadd.f32 %v2123_v34, %v1963_v21  ;;  %v7115_v43 = vadd.f32 %v5031_v8, %v5030_v58  ;;  %v1984_v34 = vadd.f32 %v6957_v17, %v6780_v33  ;;  %v5775_v11 = vld [vmem:[%s6437_s18 + $0x5c0] ss:$12 sps:$4 sm:$0xff]  }
 0x22d   : > { %v7117_v20 = vmax.f32 %v1542_v51, %v2249_v42  ;;  %v2250_v48 = vmax.f32 %v2132_v61, 0.0  ;;  %3532 = vmatmul.mubr.bf16.gmra.mrb[172].mxu0 %v5769_v13  ;;  %5468 = vmatmul.mubr.msk.bf16.gmra.mrb[184].mxu1 %vm1169_vm0, %v5770_v62  ;;  %v1979_v17 = vadd.f32 %v6946_v29, %v6780_v33  ;;  %v5776_v51 = vld [vmem:[%s6437_s18 + $0x5d4] ss:$12 sps:$4 sm:$0xff]   ;;  %v5779_v42 = vld [vmem:[%s6437_s18 + $0x5d8] ss:$12 sps:$4 sm:$0xff]   ;;  %v1547_v29 = vmax.f32 %v6885_v0, 0.0 }
 0x22e   : > { %v7121_v14 = vmax.f32 %v1540_v46, %v2247_v24  ;;  %v2248_v45 = vmax.f32 %v2124_v59, 0.0  ;;  %3539 = vmatprep.mubr.bf16.mxu0 %v5771_v44  ;;  %5471 = vmatprep.mubr.msk.bf16.mxu1 %vm1169_vm0, %v5773_v36  ;;  %v1976_v24 = vadd.f32 %v6941_v15, %v6780_v33  ;;  %v1987_v59 = vadd.f32 %v6962_v18, %v6780_v33 }
 0x22f   : > { %v7125_v50 = vmax.f32 %v1543_v63, %v2250_v48  ;;  %v1546_v15 = vmax.f32 %v6881_v60, 0.0  ;;  %v1544_v18 = vmax.f32 %v6859_v38, 0.0 }
 0x230   : > { %v7129_v16 = vmax.f32 %v1541_v6, %v2248_v45  ;;  %v5381_v8 = vpop.f32.mrb[68].mxu0  ;;  %v5033_v13 = vpop.f32.mrb[80].mxu1 }
 0x231   : > { %v2145_v62 = vadd.f32 %v5381_v8, %v1984_v34  ;;  %v2136_v54 = vpop.f32.mrb[69].mxu0  ;;  %v5034_v32 = vpop.f32.mrb[81].mxu1 }
 0x232   : > { %v2137_v21 = vadd.f32 %v2136_v54, %v1976_v24  ;;  %v5382_v58 = vpop.f32.mrb[70].mxu0  ;;  %v7139_v44 = vadd.f32 %v5034_v32, %v5033_v13  ;;  %v5036_v36 = vpop.f32.mrb[82].mxu1  ;;  %v1545_v13 = vmax.f32 %v6864_v40, 0.0  ;;  %v2000_v54 = vadd.f32 %v6990_v49, %v6780_v33 }
 0x233   : > { %v2253_v61 = vmax.f32 %v2145_v62, 0.0  ;;  %v2148_v46 = vadd.f32 %v5382_v58, %v1987_v59  ;;  %v2139_v63 = vpop.f32.mrb[71].mxu0  ;;  %v5037_v48 = vpop.f32.mrb[83].mxu1  ;;  %v2003_v40 = vadd.f32 %v6995_v57, %v6780_v33  ;;  %v5778_v58 = vld [vmem:[%s6437_s18 + $0x5d0] ss:$12 sps:$4 sm:$0xff]   ;;  %v1995_v49 = vadd.f32 %v6978_v7, %v6780_v33 }
 0x234   : > { %v2251_v6 = vmax.f32 %v2137_v21, 0.0  ;;  %v2140_v45 = vadd.f32 %v2139_v63, %v1979_v17  ;;  %v7145_v34 = vadd.f32 %v5037_v48, %v5036_v36  ;;  %v5780_v17 = vld [vmem:[%s6437_s18 + $0x5f0] ss:$12 sps:$4 sm:$0xff]   ;;  %v1548_v57 = vmax.f32 %v6901_v30, 0.0 }
 0x235   : > { %v7147_v8 = vmax.f32 %v1546_v15, %v2253_v61  ;;  %v2254_v24 = vmax.f32 %v2148_v46, 0.0  ;;  %3540 = vmatmul.mubr.bf16.gmra.mrb[176].mxu0 %v5774_v12  ;;  %5472 = vmatmul.mubr.msk.bf16.gmra.mrb[188].mxu1 %vm1169_vm0, %v5775_v11  ;;  %v1992_v12 = vadd.f32 %v6973_v53, %v6780_v33  ;;  %v5781_v46 = vld [vmem:[%s6437_s18 + $0x5ec] ss:$12 sps:$4 sm:$0xff]   ;;  %v1550_v53 = vmax.f32 %v6917_v5, 0.0 }
 0x236   : > { %v7151_v60 = vmax.f32 %v1544_v18, %v2251_v6  ;;  %v2252_v62 = vmax.f32 %v2140_v45, 0.0  ;;  %3547 = vmatprep.mubr.bf16.mxu0 %v5776_v51  ;;  %5475 = vmatprep.mubr.msk.bf16.mxu1 %vm1169_vm0, %v5779_v42  ;;  %v1551_v7 = vmax.f32 %v6921_v9, 0.0  ;;  %v2008_v9 = vadd.f32 %v7011_v31, %v6780_v33 }
 0x237   : > { %v7155_v38 = vmax.f32 %v1547_v29, %v2254_v24 }
 0x238   : > { %v7159_v0 = vmax.f32 %v1545_v13, %v2252_v62  ;;  %v5385_v59 = vpop.f32.mrb[72].mxu0  ;;  %v5039_v11 = vpop.f32.mrb[84].mxu1 }
 0x239   : > { %v2161_v32 = vadd.f32 %v5385_v59, %v2000_v54  ;;  %v2152_v21 = vpop.f32.mrb[73].mxu0  ;;  %v5040_v36 = vpop.f32.mrb[85].mxu1  ;;  %v1549_v54 = vmax.f32 %v6905_v35, 0.0  ;;  %v5783_v35 = vld [vmem:[%s6437_s18 + $0x5e8] ss:$12 sps:$4 sm:$0xff]  }
 0x23a   : > { %v2153_v51 = vadd.f32 %v2152_v21, %v1992_v12  ;;  %v5386_v42 = vpop.f32.mrb[74].mxu0  ;;  %v7169_v15 = vadd.f32 %v5040_v36, %v5039_v11  ;;  %v5042_v61 = vpop.f32.mrb[86].mxu1  ;;  %v2016_v12 = vadd.f32 %v7029_v28, %v6780_v33 }
 0x23b   : > { %v2257_v63 = vmax.f32 %v2161_v32, 0.0  ;;  %v2164_v48 = vadd.f32 %v5386_v42, %v2003_v40  ;;  %v2155_v18 = vpop.f32.mrb[75].mxu0  ;;  %v5043_v6 = vpop.f32.mrb[87].mxu1 }
 0x23c   : > { %v2255_v45 = vmax.f32 %v2153_v51, 0.0  ;;  %v2156_v29 = vadd.f32 %v2155_v18, %v1995_v49  ;;  %v7174_v24 = vadd.f32 %v5043_v6, %v5042_v61  ;;  %v2011_v49 = vadd.f32 %v7016_v3, %v6780_v33 }
 0x23d   : > { %v7176_v13 = vmax.f32 %v1550_v53, %v2257_v63  ;;  %v2258_v62 = vmax.f32 %v2164_v48, 0.0  ;;  %3548 = vmatmul.mubr.bf16.gmra.mrb[180].mxu0 %v5778_v58  ;;  %5476 = vmatmul.mubr.msk.bf16.gmra.mrb[192].mxu1 %vm1169_vm0, %v5780_v17  ;;  %v2019_v17 = vadd.f32 %v7034_v41, %v6780_v33  ;;  %v1552_v18 = vmax.f32 %v6933_v47, 0.0  ;;  %v7213_v47 = vld [vmem:[%s7659_s2] ss:$0 sm:$0xff] }
 0x23e   : > { %v7180_v5 = vmax.f32 %v1548_v57, %v2255_v45  ;;  %v2256_v59 = vmax.f32 %v2156_v29, 0.0  ;;  %3555 = vmatprep.mubr.bf16.mxu0 %v5781_v46  ;;  %v1554_v46 = vmax.f32 %v6949_v19, 0.0  ;;  %v1555_v29 = vmax.f32 %v6953_v37, 0.0 }
 0x23f   : > { %v7183_v30 = vmax.f32 %v1551_v7, %v2258_v62  ;;  %v1553_v19 = vmax.f32 %v6937_v23, 0.0 }
 0x240   : > { %v7187_v11 = vmax.f32 %v1549_v54, %v2256_v59  ;;  %v5389_v32 = vpop.f32.mrb[76].mxu0  ;;  %v5045_v21 = vpop.f32.mrb[88].mxu1  ;;  %v2032_v54 = vadd.f32 %v7213_v47, %v7065_v4 }
 0x241   : > { %v2177_v40 = vadd.f32 %v5389_v32, %v2016_v12  ;;  %v2168_v58 = vpop.f32.mrb[77].mxu0  ;;  %v5046_v36 = vpop.f32.mrb[89].mxu1  ;;  %v2024_v12 = vadd.f32 %v7213_v47, %v7047_v22 }
 0x242   : > { %v2169_v51 = vadd.f32 %v2168_v58, %v2008_v9  ;;  %v5390_v42 = vpop.f32.mrb[78].mxu0  ;;  %v7196_v28 = vadd.f32 %v5046_v36, %v5045_v21  ;;  %v5048_v61 = vpop.f32.mrb[90].mxu1  ;;  %v2035_v21 = vadd.f32 %v7213_v47, %v7070_v26 }
 0x243   : > { %v2261_v53 = vmax.f32 %v2177_v40, 0.0  ;;  %v2180_v31 = vadd.f32 %v5390_v42, %v2019_v17  ;;  %v2171_v63 = vpop.f32.mrb[79].mxu0  ;;  %v5049_v48 = vpop.f32.mrb[91].mxu1 }
 0x244   : > { %v2259_v6 = vmax.f32 %v2169_v51, 0.0  ;;  %v2172_v41 = vadd.f32 %v2171_v63, %v2011_v49  ;;  %v7200_v57 = vadd.f32 %v5049_v48, %v5048_v61  ;;  %v1558_v51 = vmax.f32 %v6981_v10, 0.0 }
 0x245   : > { %v7202_v45 = vmax.f32 %v1554_v46, %v2261_v53  ;;  %v2262_v33 = vmax.f32 %v2180_v31, 0.0  ;;  %3556 = vmatmul.mubr.bf16.gmra.mrb[184].mxu0 %v5783_v35  ;;  %v2027_v35 = vadd.f32 %v7213_v47, %v7052_v2  ;;  %v1556_v46 = vmax.f32 %v6965_v1, 0.0 }
 0x246   : > { %v7205_v3 = vmax.f32 %v1552_v18, %v2259_v6  ;;  %v2260_v7 = vmax.f32 %v2172_v41, 0.0  ;;  %v1559_v48 = vmax.f32 %v6986_v39, 0.0  ;;  %v1557_v6 = vmax.f32 %v6969_v25, 0.0 }
 0x247   : > { %v7208_v62 = vmax.f32 %v1555_v29, %v2262_v33  ;;  %v2048_v29 = vadd.f32 %v7213_v47, %v7109_v55 }
 0x248   : > { %v7217_v59 = vmax.f32 %v1553_v19, %v2260_v7  ;;  %v5393_v37 = vpop.f32.mrb[80].mxu0  ;;  %v5051_v32 = vpop.f32.mrb[92].mxu1  ;;  %v2040_v19 = vadd.f32 %v7213_v47, %v7083_v56 }
 0x249   : > { %v2193_v9 = vadd.f32 %v5393_v37, %v2032_v54  ;;  %v2184_v23 = vpop.f32.mrb[81].mxu0  ;;  %v5052_v40 = vpop.f32.mrb[93].mxu1  ;;  %v2051_v37 = vadd.f32 %v7213_v47, %v7115_v43 }
 0x24a   : > { %v2185_v58 = vadd.f32 %v2184_v23, %v2024_v12  ;;  %v5394_v17 = vpop.f32.mrb[82].mxu0  ;;  %v7225_v36 = vadd.f32 %v5052_v40, %v5051_v32  ;;  %v5054_v4 = vpop.f32.mrb[94].mxu1 }
 0x24b   : > { %v2265_v42 = vmax.f32 %v2193_v9, 0.0  ;;  %v2196_v49 = vadd.f32 %v5394_v17, %v2035_v21  ;;  %v2187_v22 = vpop.f32.mrb[83].mxu0  ;;  %v5055_v61 = vpop.f32.mrb[95].mxu1  ;;  %v2043_v9 = vadd.f32 %v7213_v47, %v7088_v27  ;;  %v1562_v21 = vmax.f32 %v7020_v52, 0.0 }
 0x24c   : > { %v2263_v53 = vmax.f32 %v2185_v58, 0.0  ;;  %v2188_v31 = vadd.f32 %v2187_v22, %v2027_v35  ;;  %v7229_v26 = vadd.f32 %v5055_v61, %v5054_v4  ;;  %v7672_v35 = vld [vmem:[#allocation3_spill] sm:$0xff]  ;;  %v7673_v22 = vld [vmem:[#allocation5_spill] sm:$0xff] }
 0x24d   : > { %v7231_v63 = vmax.f32 %v1558_v51, %v2265_v42  ;;  %v2266_v2 = vmax.f32 %v2196_v49, 0.0  ;;  %v1560_v4 = vmax.f32 %v7672_v35, 0.0  ;;  %v1563_v61 = vmax.f32 %v7673_v22, 0.0 }
 0x24e   : > { %v7234_v18 = vmax.f32 %v1556_v46, %v2263_v53  ;;  %v2264_v10 = vmax.f32 %v2188_v31, 0.0  ;;  %v7674_v53 = vld [vmem:[#allocation4_spill] sm:$0xff] }
 0x24f   : > { %v7237_v41 = vmax.f32 %v1559_v48, %v2266_v2  ;;  %v1561_v31 = vmax.f32 %v7674_v53, 0.0  ;;  %v2064_v2 = vadd.f32 %v7213_v47, %v7169_v15 }
 0x250   : > { %v7241_v1 = vmax.f32 %v1557_v6, %v2264_v10  ;;  %v5397_v33 = vpop.f32.mrb[84].mxu0  ;;  %v5091_v7 = vpop.f32.mrb[96].mxu1 }
 0x251   : > { %v2209_v54 = vadd.f32 %v5397_v33, %v2048_v29  ;;  %v2200_v39 = vpop.f32.mrb[85].mxu0  ;;  %v5092_v12 = vpop.f32.mrb[97].mxu1  ;;  %v2056_v29 = vadd.f32 %v7213_v47, %v7139_v44 }
 0x252   : > { %v2201_v25 = vadd.f32 %v2200_v39, %v2040_v19  ;;  %v5398_v32 = vpop.f32.mrb[86].mxu0  ;;  %v7249_v23 = vadd.f32 %v5092_v12, %v5091_v7  ;;  %v5094_v55 = vpop.f32.mrb[98].mxu1 }
 0x253   : > { %v2269_v40 = vmax.f32 %v2209_v54, 0.0  ;;  %v2212_v58 = vadd.f32 %v5398_v32, %v2051_v37  ;;  %v2203_v56 = vpop.f32.mrb[87].mxu0  ;;  %v5095_v17 = vpop.f32.mrb[99].mxu1  ;;  %v2067_v54 = vadd.f32 %v7213_v47, %v7174_v24 }
 0x254   : > { %v2267_v51 = vmax.f32 %v2201_v25, 0.0  ;;  %v2204_v42 = vadd.f32 %v2203_v56, %v2043_v9  ;;  %v7253_v43 = vadd.f32 %v5095_v17, %v5094_v55  ;;  %v2059_v25 = vadd.f32 %v7213_v47, %v7145_v34  ;;  %v7675_v9 = vld [vmem:[#allocation8_spill] sm:$0xff]  ;;  %v7676_v56 = vld [vmem:[#allocation6_spill] sm:$0xff]  ;;  %v7678_v34 = vld [vmem:[#allocation7_spill] sm:$0xff] }
 0x255   : > { %v7255_v49 = vmax.f32 %v1562_v21, %v2269_v40  ;;  %v2270_v27 = vmax.f32 %v2212_v58, 0.0  ;;  %v1566_v55 = vmax.f32 %v7675_v9, 0.0  ;;  %v1564_v17 = vmax.f32 %v7676_v56, 0.0  ;;  %v7680_v56 = vld [vmem:[#allocation10_spill] sm:$0xff] }
 0x256   : > { %v7258_v46 = vmax.f32 %v1560_v4, %v2267_v51  ;;  %v2268_v52 = vmax.f32 %v2204_v42, 0.0  ;;  %v7677_v42 = vld [vmem:[#allocation9_spill] sm:$0xff]  ;;  %v1565_v53 = vmax.f32 %v7678_v34, 0.0 }
 0x257   : > { %v7261_v48 = vmax.f32 %v1563_v61, %v2270_v27  ;;  %v1567_v22 = vmax.f32 %v7677_v42, 0.0 }
 0x258   : > { %v7265_v6 = vmax.f32 %v1561_v31, %v2268_v52  ;;  %v5401_v10 = vpop.f32.mrb[88].mxu0  ;;  %v5097_v33 = vpop.f32.mrb[100].mxu1 }
 0x259   : > { %v2225_v19 = vadd.f32 %v5401_v10, %v2064_v2  ;;  %v2216_v7 = vpop.f32.mrb[89].mxu0  ;;  %v5098_v39 = vpop.f32.mrb[101].mxu1  ;;  %v2080_v2 = vadd.f32 %v7213_v47, %v7225_v36 }
 0x25a   : > { %v2217_v37 = vadd.f32 %v2216_v7, %v2056_v29  ;;  %v5402_v12 = vpop.f32.mrb[90].mxu0  ;;  %v5099_v32 = vadd.f32 %v5098_v39, %v5097_v33  ;;  %v5100_v15 = vpop.f32.mrb[102].mxu1  ;;  %v2072_v33 = vadd.f32 %v7213_v47, %v7196_v28  ;;  %v2083_v39 = vadd.f32 %v7213_v47, %v7229_v26 }
 0x25b   : > { %v2273_v21 = vmax.f32 %v2225_v19, 0.0  ;;  %v2228_v40 = vadd.f32 %v5402_v12, %v2067_v54  ;;  %v2219_v58 = vpop.f32.mrb[91].mxu0  ;;  %v5101_v44 = vpop.f32.mrb[103].mxu1 }
 0x25c   : > { %v2271_v35 = vmax.f32 %v2217_v37, 0.0  ;;  %v2220_v4 = vadd.f32 %v2219_v58, %v2059_v25  ;;  %v5102_v51 = vadd.f32 %v5101_v44, %v5100_v15  ;;  %v2075_v15 = vadd.f32 %v7213_v47, %v7200_v57 }
 0x25d   : > { %v7275_v24 = vmax.f32 %v1566_v55, %v2273_v21  ;;  %v2274_v61 = vmax.f32 %v2228_v40, 0.0  ;;  %v7679_v55 = vld [vmem:[#allocation12_spill] sm:$0xff]  ;;  %v2707_v57 = vadd.f32 %v7213_v47, %v5099_v32 }
 0x25e   : > { %v7278_v27 = vmax.f32 %v1564_v17, %v2271_v35  ;;  %v2272_v31 = vmax.f32 %v2220_v4, 0.0  ;;  %v1570_v21 = vmax.f32 %v7679_v55, 0.0  ;;  %v1568_v17 = vmax.f32 %v7680_v56, 0.0 }
 0x25f   : > { %v7281_v52 = vmax.f32 %v1567_v22, %v2274_v61  ;;  %v7681_v22 = vld [vmem:[#allocation13_spill] sm:$0xff]  ;;  %v2702_v55 = vadd.f32 %v7213_v47, %v7253_v43 }
 0x260   : > { %v7285_v10 = vmax.f32 %v1565_v53, %v2272_v31  ;;  %v5405_v29 = vpop.f32.mrb[92].mxu0  ;;  %v5103_v19 = vpop.f32.mrb[104].mxu1  ;;  %v1571_v61 = vmax.f32 %v7681_v22, 0.0  ;;  %v7682_v31 = vld [vmem:[#allocation11_spill] sm:$0xff] }
 0x261   : > { %v2241_v7 = vadd.f32 %v5405_v29, %v2080_v2  ;;  %v2232_v54 = vpop.f32.mrb[93].mxu0  ;;  %v5104_v37 = vpop.f32.mrb[105].mxu1  ;;  %v1569_v2 = vmax.f32 %v7682_v31, 0.0 }
 0x262   : > { %v2233_v12 = vadd.f32 %v2232_v54, %v2072_v33  ;;  %v5406_v25 = vpop.f32.mrb[94].mxu0  ;;  %v5105_v9 = vadd.f32 %v5104_v37, %v5103_v19  ;;  %v5106_v36 = vpop.f32.mrb[106].mxu1  ;;  %v2699_v54 = vadd.f32 %v7213_v47, %v7249_v23 }
 0x263   : > { %v2277_v40 = vmax.f32 %v2241_v7, 0.0  ;;  %v2244_v58 = vadd.f32 %v5406_v25, %v2083_v39  ;;  %v2235_v44 = vpop.f32.mrb[95].mxu0  ;;  %v5107_v28 = vpop.f32.mrb[107].mxu1  ;;  %v2710_v25 = vadd.f32 %v7213_v47, %v5102_v51 }
 0x264   : > { %v2275_v35 = vmax.f32 %v2233_v12, 0.0  ;;  %v2236_v4 = vadd.f32 %v2235_v44, %v2075_v15  ;;  %v5108_v42 = vadd.f32 %v5107_v28, %v5106_v36  ;;  %v2715_v43 = vadd.f32 %v7213_v47, %v5105_v9 }
 0x265   : > { %v7295_v26 = vmax.f32 %v1570_v21, %v2277_v40  ;;  %v2278_v34 = vmax.f32 %v2244_v58, 0.0 }
 0x266   : > { %v7299_v53 = vmax.f32 %v1568_v17, %v2275_v35  ;;  %v2276_v29 = vmax.f32 %v2236_v4, 0.0 }
 0x267   : > { %v7302_v33 = vmax.f32 %v1571_v61, %v2278_v34 }
 0x268   : > { %v7304_v19 = vmax.f32 %v1569_v2, %v2276_v29  ;;  %v5413_v7 = vpop.f32.mrb[96].mxu0  ;;  %v5109_v39 = vpop.f32.mrb[108].mxu1 }
 0x269   : > { %v2868_v37 = vadd.f32 %v5413_v7, %v2707_v57  ;;  %v2859_v12 = vpop.f32.mrb[97].mxu0  ;;  %v5110_v15 = vpop.f32.mrb[109].mxu1 }
 0x26a   : > { %v2860_v32 = vadd.f32 %v2859_v12, %v2699_v54  ;;  %v5414_v36 = vpop.f32.mrb[98].mxu0  ;;  %v5111_v21 = vadd.f32 %v5110_v15, %v5109_v39  ;;  %v5112_v40 = vpop.f32.mrb[110].mxu1 }
 0x26b   : > { %v2988_v58 = vmax.f32 %v2868_v37, 0.0  ;;  %v2871_v44 = vadd.f32 %v5414_v36, %v2710_v25  ;;  %v2862_v28 = vpop.f32.mrb[99].mxu0  ;;  %v5113_v56 = vpop.f32.mrb[111].mxu1 }
 0x26c   : > { %v2986_v17 = vmax.f32 %v2860_v32, 0.0  ;;  %v2863_v35 = vadd.f32 %v2862_v28, %v2702_v55  ;;  %v5114_v23 = vadd.f32 %v5113_v56, %v5112_v40  ;;  %v2723_v51 = vadd.f32 %v7213_v47, %v5111_v21 }
 0x26d   : > { %v7312_v4 = vmax.f32 %v7117_v20, %v2988_v58  ;;  %v2989_v22 = vmax.f32 %v2871_v44, 0.0 }
 0x26e   : > { %v7316_v61 = vmax.f32 %v7121_v14, %v2986_v17  ;;  %v2987_v34 = vmax.f32 %v2863_v35, 0.0  ;;  %v2726_v31 = vadd.f32 %v7213_v47, %v5114_v23  ;;  %v2718_v14 = vadd.f32 %v7213_v47, %v5108_v42 }
 0x26f   : > { %v7320_v57 = vmax.f32 %v7125_v50, %v2989_v22 }
 0x270   : > { %v7324_v2 = vmax.f32 %v7129_v16, %v2987_v34  ;;  %v5417_v29 = vpop.f32.mrb[100].mxu0  ;;  %v5115_v20 = vpop.f32.mrb[112].mxu1 }
 0x271   : > { %v2884_v7 = vadd.f32 %v5417_v29, %v2723_v51  ;;  %v2875_v54 = vpop.f32.mrb[101].mxu0  ;;  %v5116_v39 = vpop.f32.mrb[113].mxu1 }
 0x272   : > { %v2876_v37 = vadd.f32 %v2875_v54, %v2715_v43  ;;  %v5418_v12 = vpop.f32.mrb[102].mxu0  ;;  %v5117_v25 = vadd.f32 %v5116_v39, %v5115_v20  ;;  %v5118_v15 = vpop.f32.mrb[114].mxu1 }
 0x273   : > { %v2992_v9 = vmax.f32 %v2884_v7, 0.0  ;;  %v2887_v32 = vadd.f32 %v5418_v12, %v2726_v31  ;;  %v2878_v50 = vpop.f32.mrb[103].mxu0  ;;  %v5119_v36 = vpop.f32.mrb[115].mxu1 }
 0x274   : > { %v2990_v55 = vmax.f32 %v2876_v37, 0.0  ;;  %v2879_v21 = vadd.f32 %v2878_v50, %v2718_v14  ;;  %v5120_v40 = vadd.f32 %v5119_v36, %v5118_v15  ;;  %v2731_v56 = vadd.f32 %v7213_v47, %v5117_v25 }
 0x275   : > { %v7328_v16 = vmax.f32 %v7147_v8, %v2992_v9  ;;  %v2993_v58 = vmax.f32 %v2887_v32, 0.0 }
 0x276   : > { %v7331_v44 = vmax.f32 %v7151_v60, %v2990_v55  ;;  %v2991_v28 = vmax.f32 %v2879_v21, 0.0  ;;  %v2734_v22 = vadd.f32 %v7213_v47, %v5120_v40 }
 0x277   : > { %v7335_v42 = vmax.f32 %v7155_v38, %v2993_v58 }
 0x278   : > { %v7338_v17 = vmax.f32 %v7159_v0, %v2991_v28  ;;  %v5121_v35 = vpop.f32.mrb[116].mxu1  ;;  %v5421_v23 = vpop.f32.mrb[104].mxu0 }
 0x279   : > { %v5122_v51 = vpop.f32.mrb[117].mxu1  ;;  %v2891_v8 = vpop.f32.mrb[105].mxu0 }
 0x27a   : > { %v5123_v34 = vadd.f32 %v5122_v51, %v5121_v35  ;;  %v2892_v43 = vadd.f32 %v2891_v8, %v2731_v56  ;;  %v5124_v31 = vpop.f32.mrb[118].mxu1  ;;  %v5422_v60 = vpop.f32.mrb[106].mxu0 }
 0x27b   : > { %v5125_v29 = vpop.f32.mrb[119].mxu1  ;;  %v2894_v20 = vpop.f32.mrb[107].mxu0 }
 0x27c   : > { %v2739_v7 = vadd.f32 %v7213_v47, %v5123_v34  ;;  %v2994_v54 = vmax.f32 %v2892_v43, 0.0  ;;  %v5126_v38 = vadd.f32 %v5125_v29, %v5124_v31  ;;  %v2895_v39 = vadd.f32 %v2894_v20, %v2734_v22 }
 0x27e   : > { %v2900_v37 = vadd.f32 %v5421_v23, %v2739_v7  ;;  %v7343_v0 = vmax.f32 %v7180_v5, %v2994_v54  ;;  %v2742_v12 = vadd.f32 %v7213_v47, %v5126_v38  ;;  %v2995_v14 = vmax.f32 %v2895_v39, 0.0 }
 0x280   : > { %v2996_v25 = vmax.f32 %v2900_v37, 0.0  ;;  %v2903_v15 = vadd.f32 %v5422_v60, %v2742_v12  ;;  %v7347_v9 = vmax.f32 %v7187_v11, %v2995_v14  ;;  %v5127_v32 = vpop.f32.mrb[120].mxu1  ;;  %v5425_v50 = vpop.f32.mrb[108].mxu0 }
 0x281   : > { %v5128_v36 = vpop.f32.mrb[121].mxu1  ;;  %v2907_v55 = vpop.f32.mrb[109].mxu0 }
 0x282   : > { %v2997_v21 = vmax.f32 %v2903_v15, 0.0  ;;  %v5129_v40 = vadd.f32 %v5128_v36, %v5127_v32  ;;  %v5130_v58 = vpop.f32.mrb[122].mxu1  ;;  %v5426_v28 = vpop.f32.mrb[110].mxu0  ;;  %v7350_v56 = vmax.f32 %v7176_v13, %v2996_v25 }
 0x283   : > { %v5131_v5 = vpop.f32.mrb[123].mxu1  ;;  %v2910_v35 = vpop.f32.mrb[111].mxu0 }
 0x284   : > { %v2747_v23 = vadd.f32 %v7213_v47, %v5129_v40  ;;  %v5132_v22 = vadd.f32 %v5131_v5, %v5130_v58  ;;  %v7354_v51 = vmax.f32 %v7183_v30, %v2997_v21 }
 0x286   : > { %v2908_v11 = vadd.f32 %v2907_v55, %v2747_v23  ;;  %v2750_v8 = vadd.f32 %v7213_v47, %v5132_v22 }
 0x288   : > { %v2998_v34 = vmax.f32 %v2908_v11, 0.0  ;;  %v2911_v43 = vadd.f32 %v2910_v35, %v2750_v8  ;;  %v5133_v31 = vpop.f32.mrb[124].mxu1  ;;  %v5429_v60 = vpop.f32.mrb[112].mxu0 }
 0x289   : > { %v5134_v29 = vpop.f32.mrb[125].mxu1  ;;  %v2923_v20 = vpop.f32.mrb[113].mxu0 }
 0x28a   : > { %v7358_v13 = vmax.f32 %v7205_v3, %v2998_v34  ;;  %v2999_v7 = vmax.f32 %v2911_v43, 0.0  ;;  %v5135_v54 = vadd.f32 %v5134_v29, %v5133_v31  ;;  %v5136_v38 = vpop.f32.mrb[126].mxu1  ;;  %v5430_v39 = vpop.f32.mrb[114].mxu0 }
 0x28b   : > { %v5137_v37 = vpop.f32.mrb[127].mxu1  ;;  %v2926_v12 = vpop.f32.mrb[115].mxu0 }
 0x28c   : > { %v7361_v30 = vmax.f32 %v7217_v59, %v2999_v7  ;;  %v2755_v14 = vadd.f32 %v7213_v47, %v5135_v54  ;;  %v5138_v25 = vadd.f32 %v5137_v37, %v5136_v38 }
 0x28e   : > { %v2916_v15 = vadd.f32 %v5425_v50, %v2755_v14  ;;  %v2758_v32 = vadd.f32 %v7213_v47, %v5138_v25 }
 0x290   : > { %v3000_v36 = vmax.f32 %v2916_v15, 0.0  ;;  %v2919_v55 = vadd.f32 %v5426_v28, %v2758_v32  ;;  %v5139_v21 = vpop.f32.mrb[128].mxu1  ;;  %v7365_v3 = vpop.f32.mrb[116].mxu0 }
 0x291   : > { %v5140_v40 = vpop.f32.mrb[129].mxu1  ;;  %v2939_v58 = vpop.f32.mrb[117].mxu0 }
 0x292   : > { %v3001_v5 = vmax.f32 %v2919_v55, 0.0  ;;  %v5141_v35 = vadd.f32 %v5140_v40, %v5139_v21  ;;  %v5142_v23 = vpop.f32.mrb[130].mxu1  ;;  %v7367_v22 = vpop.f32.mrb[118].mxu0  ;;  %v7370_v59 = vmax.f32 %v7202_v45, %v3000_v36 }
 0x293   : > { %v5143_v11 = vpop.f32.mrb[131].mxu1  ;;  %v2942_v8 = vpop.f32.mrb[119].mxu0 }
 0x294   : > { %v2763_v50 = vadd.f32 %v7213_v47, %v5141_v35  ;;  %v5144_v34 = vadd.f32 %v5143_v11, %v5142_v23  ;;  %v7374_v28 = vmax.f32 %v7208_v62, %v3001_v5 }
 0x296   : > { %v2924_v43 = vadd.f32 %v2923_v20, %v2763_v50  ;;  %v2766_v31 = vadd.f32 %v7213_v47, %v5144_v34 }
 0x298   : > { %v3002_v29 = vmax.f32 %v2924_v43, 0.0  ;;  %v2927_v7 = vadd.f32 %v2926_v12, %v2766_v31  ;;  %v5145_v54 = vpop.f32.mrb[132].mxu1  ;;  %v7377_v38 = vpop.f32.mrb[120].mxu0 }
 0x299   : > { %v5146_v37 = vpop.f32.mrb[133].mxu1  ;;  %v7379_v14 = vpop.f32.mrb[121].mxu0 }
 0x29a   : > { %v3003_v45 = vmax.f32 %v2927_v7, 0.0  ;;  %v5147_v25 = vadd.f32 %v5146_v37, %v5145_v54  ;;  %v5148_v15 = vpop.f32.mrb[134].mxu1  ;;  %v7381_v32 = vpop.f32.mrb[122].mxu0  ;;  %v7384_v36 = vmax.f32 %v7234_v18, %v3002_v29 }
 0x29b   : > { %v5149_v62 = vpop.f32.mrb[135].mxu1  ;;  %v7386_v20 = vpop.f32.mrb[123].mxu0 }
 0x29c   : > { %v2771_v55 = vadd.f32 %v7213_v47, %v5147_v25  ;;  %v5150_v12 = vadd.f32 %v5149_v62, %v5148_v15  ;;  %v7390_v21 = vmax.f32 %v7241_v1, %v3003_v45 }
 0x29e   : > { %v2932_v40 = vadd.f32 %v5429_v60, %v2771_v55  ;;  %v2774_v5 = vadd.f32 %v7213_v47, %v5150_v12 }
 0x2a0   : > { %v3004_v35 = vmax.f32 %v2932_v40, 0.0  ;;  %v2935_v23 = vadd.f32 %v5430_v39, %v2774_v5  ;;  %v5151_v11 = vpop.f32.mrb[136].mxu1  ;;  %v5221_v50 = vpop.f32.mrb[124].mxu0 }
 0x2a1   : > { %v5152_v34 = vpop.f32.mrb[137].mxu1  ;;  %v5222_v43 = vpop.f32.mrb[125].mxu0 }
 0x2a2   : > { %v3005_v18 = vmax.f32 %v2935_v23, 0.0  ;;  %v5153_v31 = vadd.f32 %v5152_v34, %v5151_v11  ;;  %v7393_v29 = vadd.f32 %v5222_v43, %v5221_v50  ;;  %v5154_v7 = vpop.f32.mrb[138].mxu1  ;;  %v5224_v54 = vpop.f32.mrb[126].mxu0  ;;  %v7396_v37 = vmax.f32 %v7231_v63, %v3004_v35 }
 0x2a3   : > { %v5155_v1 = vpop.f32.mrb[139].mxu1  ;;  %v5225_v45 = vpop.f32.mrb[127].mxu0 }
 0x2a4   : > { %v2779_v60 = vadd.f32 %v7213_v47, %v5153_v31  ;;  %v5156_v25 = vadd.f32 %v5155_v1, %v5154_v7  ;;  %v7399_v15 = vadd.f32 %v5225_v45, %v5224_v54  ;;  %v7402_v39 = vmax.f32 %v7237_v41, %v3005_v18 }
 0x2a6   : > { %v2940_v62 = vadd.f32 %v2939_v58, %v2779_v60  ;;  %v2782_v55 = vadd.f32 %v7213_v47, %v5156_v25 }
 0x2a8   : > { %v3006_v12 = vmax.f32 %v2940_v62, 0.0  ;;  %v2943_v40 = vadd.f32 %v2942_v8, %v2782_v55  ;;  %v5157_v5 = vpop.f32.mrb[140].mxu1  ;;  %v5227_v23 = vpop.f32.mrb[128].mxu0 }
 0x2a9   : > { %v5158_v11 = vpop.f32.mrb[141].mxu1  ;;  %v5228_v63 = vpop.f32.mrb[129].mxu0 }
 0x2aa   : > { %v3007_v35 = vmax.f32 %v2943_v40, 0.0  ;;  %v5159_v50 = vadd.f32 %v5158_v11, %v5157_v5  ;;  %v7405_v34 = vadd.f32 %v5228_v63, %v5227_v23  ;;  %v5160_v43 = vpop.f32.mrb[142].mxu1  ;;  %v5230_v31 = vpop.f32.mrb[130].mxu0  ;;  %v7408_v7 = vmax.f32 %v7258_v46, %v3006_v12 }
 0x2ab   : > { %v5161_v41 = vpop.f32.mrb[143].mxu1  ;;  %v5231_v18 = vpop.f32.mrb[131].mxu0 }
 0x2ac   : > { %v2787_v58 = vadd.f32 %v7213_v47, %v5159_v50  ;;  %v5162_v54 = vadd.f32 %v5161_v41, %v5160_v43  ;;  %v7411_v1 = vadd.f32 %v5231_v18, %v5230_v31  ;;  %v7414_v8 = vmax.f32 %v7265_v6, %v3007_v35 }
 0x2ae   : > { %v2948_v45 = vadd.f32 %v7365_v3, %v2787_v58  ;;  %v2790_v60 = vadd.f32 %v7213_v47, %v5162_v54 }
 0x2b0   : > { %v3008_v25 = vmax.f32 %v2948_v45, 0.0  ;;  %v2951_v62 = vadd.f32 %v7367_v22, %v2790_v60  ;;  %v5163_v55 = vpop.f32.mrb[144].mxu1  ;;  %v5233_v46 = vpop.f32.mrb[132].mxu0 }
 0x2b1   : > { %v5164_v12 = vpop.f32.mrb[145].mxu1  ;;  %v5234_v40 = vpop.f32.mrb[133].mxu0 }
 0x2b2   : > { %v3009_v5 = vmax.f32 %v2951_v62, 0.0  ;;  %v5165_v23 = vadd.f32 %v5164_v12, %v5163_v55  ;;  %v7419_v11 = vadd.f32 %v5234_v40, %v5233_v46  ;;  %v5166_v63 = vpop.f32.mrb[146].mxu1  ;;  %v5236_v50 = vpop.f32.mrb[134].mxu0  ;;  %v7422_v6 = vmax.f32 %v7255_v49, %v3008_v25 }
 0x2b3   : > { %v5167_v35 = vpop.f32.mrb[147].mxu1  ;;  %v5237_v3 = vpop.f32.mrb[135].mxu0 }
 0x2b4   : > { %v2795_v43 = vadd.f32 %v7213_v47, %v5165_v23  ;;  %v5168_v31 = vadd.f32 %v5167_v35, %v5166_v63  ;;  %v7425_v41 = vadd.f32 %v5237_v3, %v5236_v50  ;;  %v7428_v22 = vmax.f32 %v7261_v48, %v3009_v5 }
 0x2b6   : > { %v2956_v18 = vadd.f32 %v7379_v14, %v2795_v43  ;;  %v2798_v58 = vadd.f32 %v7213_v47, %v5168_v31 }
 0x2b8   : > { %v3010_v54 = vmax.f32 %v2956_v18, 0.0  ;;  %v2959_v45 = vadd.f32 %v7386_v20, %v2798_v58  ;;  %v5169_v60 = vpop.f32.mrb[148].mxu1  ;;  %v5239_v49 = vpop.f32.mrb[136].mxu0 }
 0x2b9   : > { %v5170_v25 = vpop.f32.mrb[149].mxu1  ;;  %v5240_v62 = vpop.f32.mrb[137].mxu0 }
 0x2ba   : > { %v3011_v55 = vmax.f32 %v2959_v45, 0.0  ;;  %v5171_v46 = vadd.f32 %v5170_v25, %v5169_v60  ;;  %v7433_v12 = vadd.f32 %v5240_v62, %v5239_v49  ;;  %v5172_v40 = vpop.f32.mrb[150].mxu1  ;;  %v5242_v23 = vpop.f32.mrb[138].mxu0  ;;  %v7436_v48 = vmax.f32 %v7278_v27, %v3010_v54 }
 0x2bb   : > { %v5173_v5 = vpop.f32.mrb[151].mxu1  ;;  %v5243_v14 = vpop.f32.mrb[139].mxu0 }
 0x2bc   : > { %v2803_v63 = vadd.f32 %v7213_v47, %v5171_v46  ;;  %v5174_v50 = vadd.f32 %v5173_v5, %v5172_v40  ;;  %v7439_v35 = vadd.f32 %v5243_v14, %v5242_v23  ;;  %v7442_v20 = vmax.f32 %v7285_v10, %v3011_v55 }
 0x2be   : > { %v2964_v3 = vadd.f32 %v7377_v38, %v2803_v63  ;;  %v2806_v43 = vadd.f32 %v7213_v47, %v5174_v50 }
 0x2c0   : > { %v3012_v31 = vmax.f32 %v2964_v3, 0.0  ;;  %v2967_v18 = vadd.f32 %v7381_v32, %v2806_v43  ;;  %v5245_v58 = vpop.f32.mrb[140].mxu0  ;;  %v5175_v27 = vpop.f32.mrb[152].mxu1 }
 0x2c1   : > { %v5246_v54 = vpop.f32.mrb[141].mxu0  ;;  %v5176_v45 = vpop.f32.mrb[153].mxu1 }
 0x2c2   : > { %v7448_v60 = vmax.f32 %v7275_v24, %v3012_v31  ;;  %v3013_v49 = vmax.f32 %v2967_v18, 0.0  ;;  %v7450_v25 = vadd.f32 %v5246_v54, %v5245_v58  ;;  %v5248_v62 = vpop.f32.mrb[142].mxu0  ;;  %v5177_v10 = vadd.f32 %v5176_v45, %v5175_v27  ;;  %v5178_v55 = vpop.f32.mrb[154].mxu1 }
 0x2c3   : > { %v5249_v46 = vpop.f32.mrb[143].mxu0  ;;  %v5179_v38 = vpop.f32.mrb[155].mxu1 }
 0x2c4   : > { %7683 = vst [vmem:[#allocation3_spill] sm:$0xff] %v7448_v60  ;;  %v7453_v40 = vmax.f32 %v7281_v52, %v3013_v49  ;;  %v7455_v23 = vadd.f32 %v5249_v46, %v5248_v62  ;;  %v5180_v32 = vadd.f32 %v5179_v38, %v5178_v55  ;;  %v2811_v45 = vadd.f32 %v7213_v47, %v5177_v10 }
 0x2c6   : > { %7684 = vst [vmem:[#allocation5_spill] sm:$0xff] %v7453_v40 }
 0x2c8   : > { %v5251_v5 = vpop.f32.mrb[144].mxu0  ;;  %v5181_v14 = vpop.f32.mrb[156].mxu1 }
 0x2c9   : > { %v5252_v63 = vpop.f32.mrb[145].mxu0  ;;  %v5182_v24 = vpop.f32.mrb[157].mxu1 }
 0x2ca   : > { %v7457_v50 = vadd.f32 %v5252_v63, %v5251_v5  ;;  %v5254_v3 = vpop.f32.mrb[146].mxu0  ;;  %v5183_v43 = vadd.f32 %v5182_v24, %v5181_v14  ;;  %v5184_v31 = vpop.f32.mrb[158].mxu1 }
 0x2cb   : > { %v5255_v18 = vpop.f32.mrb[147].mxu0  ;;  %v5185_v58 = vpop.f32.mrb[159].mxu1 }
 0x2cc   : > { %v7459_v27 = vadd.f32 %v5255_v18, %v5254_v3  ;;  %v5186_v54 = vadd.f32 %v5185_v58, %v5184_v31  ;;  %v2819_v52 = vadd.f32 %v7213_v47, %v5183_v43  ;;  %v2814_v31 = vadd.f32 %v7213_v47, %v5180_v32 }
 0x2cd   : > { %v3446_v32 = vadd.f32 %v7213_v47, %v7405_v34 }
 0x2ce   : > { %v2822_v49 = vadd.f32 %v7213_v47, %v5186_v54 }
 0x2d0   : > { %v5441_v62 = vpop.f32.mrb[160].mxu1  ;;  %v5257_v55 = vpop.f32.mrb[148].mxu0 }
 0x2d1   : > { %v2980_v46 = vadd.f32 %v5441_v62, %v2819_v52  ;;  %v2971_v38 = vpop.f32.mrb[161].mxu1  ;;  %v5258_v5 = vpop.f32.mrb[149].mxu0 }
 0x2d2   : > { %v2972_v14 = vadd.f32 %v2971_v38, %v2811_v45  ;;  %v7466_v63 = vadd.f32 %v5258_v5, %v5257_v55  ;;  %v5442_v24 = vpop.f32.mrb[162].mxu1  ;;  %v5260_v3 = vpop.f32.mrb[150].mxu0 }
 0x2d3   : > { %v3016_v18 = vmax.f32 %v2980_v46, 0.0  ;;  %v2983_v43 = vadd.f32 %v5442_v24, %v2822_v49  ;;  %v2974_v58 = vpop.f32.mrb[163].mxu1  ;;  %v5261_v10 = vpop.f32.mrb[151].mxu0 }
 0x2d4   : > { %v3014_v54 = vmax.f32 %v2972_v14, 0.0  ;;  %v2975_v40 = vadd.f32 %v2974_v58, %v2814_v31  ;;  %v7469_v60 = vadd.f32 %v5261_v10, %v5260_v3 }
 0x2d5   : > { %v7472_v52 = vmax.f32 %v7295_v26, %v3016_v18  ;;  %v3017_v62 = vmax.f32 %v2983_v43, 0.0  ;;  %v3438_v26 = vadd.f32 %v7213_v47, %v7393_v29 }
 0x2d6   : > { %v7475_v45 = vmax.f32 %v7299_v53, %v3014_v54  ;;  %v3015_v55 = vmax.f32 %v2975_v40, 0.0  ;;  %v3449_v40 = vadd.f32 %v7213_v47, %v7411_v1 }
 0x2d7   : > { %v7478_v38 = vmax.f32 %v7302_v33, %v3017_v62 }
 0x2d8   : > { %v7483_v49 = vmax.f32 %v7304_v19, %v3015_v55  ;;  %v5263_v46 = vpop.f32.mrb[152].mxu0  ;;  %v5449_v5 = vpop.f32.mrb[164].mxu1  ;;  %v3441_v19 = vadd.f32 %v7213_v47, %v7399_v15 }
 0x2d9   : > { %v3607_v14 = vadd.f32 %v5449_v5, %v3446_v32  ;;  %v5264_v24 = vpop.f32.mrb[153].mxu0  ;;  %v3598_v53 = vpop.f32.mrb[165].mxu1 }
 0x2da   : > { %v7489_v33 = vadd.f32 %v5264_v24, %v5263_v46  ;;  %v3599_v3 = vadd.f32 %v3598_v53, %v3438_v26  ;;  %v5266_v31 = vpop.f32.mrb[154].mxu0  ;;  %v5450_v18 = vpop.f32.mrb[166].mxu1  ;;  %v3462_v26 = vadd.f32 %v7213_v47, %v7433_v12 }
 0x2db   : > { %v3727_v34 = vmax.f32 %v3607_v14, 0.0  ;;  %v3610_v43 = vadd.f32 %v5450_v18, %v3449_v40  ;;  %v5267_v58 = vpop.f32.mrb[155].mxu0  ;;  %v3601_v10 = vpop.f32.mrb[167].mxu1  ;;  %v3454_v40 = vadd.f32 %v7213_v47, %v7419_v11  ;;  %v3457_v11 = vadd.f32 %v7213_v47, %v7425_v41 }
 0x2dc   : > { %v3725_v29 = vmax.f32 %v3599_v3, 0.0  ;;  %v7493_v54 = vadd.f32 %v5267_v58, %v5266_v31  ;;  %v3602_v62 = vadd.f32 %v3601_v10, %v3441_v19 }
 0x2dd   : > { %v3759_v55 = vmax.f32 %v7312_v4, %v3727_v34  ;;  %v3728_v1 = vmax.f32 %v3610_v43, 0.0 }
 0x2de   : > { %v3757_v15 = vmax.f32 %v7316_v61, %v3725_v29  ;;  %v3726_v32 = vmax.f32 %v3602_v62, 0.0 }
 0x2df   : > { %v4785_v46 = vpack.c.bf16 %v3759_v55, %v3759_v55  ;;  %v3760_v5 = vmax.f32 %v7320_v57, %v3728_v1  ;;  %v3465_v57 = vadd.f32 %v7213_v47, %v7439_v35 }
 0x2e0   : > { %v4783_v14 = vpack.c.bf16 %v3757_v15, %v3757_v15  ;;  %v3758_v4 = vmax.f32 %v7324_v2, %v3726_v32  ;;  %v5269_v24 = vpop.f32.mrb[156].mxu0  ;;  %v5453_v53 = vpop.f32.mrb[168].mxu1 }
 0x2e1   : > { %3920 = vst.msk [vmem:[%s7499_s22 + $0x8] sm:$0xf] %vm3917_vm1, %v4785_v46  ;;  %v4786_v61 = vpack.c.bf16 %v3760_v5, %v3760_v5  ;;  %v3623_v3 = vadd.f32 %v5453_v53, %v3462_v26  ;;  %v5270_v31 = vpop.f32.mrb[157].mxu0  ;;  %v3614_v18 = vpop.f32.mrb[169].mxu1 }
 0x2e2   : > { %3918 = vst.msk [vmem:[%s7499_s22] sm:$0xf] %vm3917_vm1, %v4783_v14  ;;  %v4784_v12 = vpack.c.bf16 %v3758_v4, %v3758_v4  ;;  %v7514_v2 = vadd.f32 %v5270_v31, %v5269_v24  ;;  %v3615_v19 = vadd.f32 %v3614_v18, %v3454_v40  ;;  %v5272_v34 = vpop.f32.mrb[158].mxu0  ;;  %v5454_v43 = vpop.f32.mrb[170].mxu1  ;;  %v3478_v14 = vadd.f32 %v7213_v47, %v7457_v50 }
 0x2e3   : > { %3921 = vst.msk [vmem:[%s7499_s22 + $0xc] sm:$0xf] %vm3917_vm1, %v4786_v61  ;;  %v3731_v58 = vmax.f32 %v3623_v3, 0.0  ;;  %v3626_v10 = vadd.f32 %v5454_v43, %v3465_v57  ;;  %v5273_v29 = vpop.f32.mrb[159].mxu0  ;;  %v3617_v62 = vpop.f32.mrb[171].mxu1 }
 0x2e4   : > { %3919 = vst.msk [vmem:[%s7499_s22 + $0x4] sm:$0xf] %vm3917_vm1, %v4784_v12  ;;  %v3729_v35 = vmax.f32 %v3615_v19, 0.0  ;;  %v7522_v55 = vadd.f32 %v5273_v29, %v5272_v34  ;;  %v3618_v1 = vadd.f32 %v3617_v62, %v3457_v11 }
 0x2e5   : > { %v3763_v15 = vmax.f32 %v7328_v16, %v3731_v58  ;;  %v3732_v32 = vmax.f32 %v3626_v10, 0.0  ;;  %v3470_v16 = vadd.f32 %v7213_v47, %v7450_v25  ;;  %v3473_v25 = vadd.f32 %v7213_v47, %v7455_v23 }
 0x2e6   : > { %v3761_v46 = vmax.f32 %v7331_v44, %v3729_v35  ;;  %v3730_v41 = vmax.f32 %v3618_v1, 0.0 }
 0x2e7   : > { %v4789_v5 = vpack.c.bf16 %v3763_v15, %v3763_v15  ;;  %v3764_v26 = vmax.f32 %v7335_v42, %v3732_v32  ;;  %v3481_v42 = vadd.f32 %v7213_v47, %v7459_v27  ;;  %v3494_v32 = vadd.f32 %v7213_v47, %v7489_v33 }
 0x2e8   : > { %v4787_v4 = vpack.c.bf16 %v3761_v46, %v3761_v46  ;;  %v3762_v24 = vmax.f32 %v7338_v17, %v3730_v41  ;;  %v5275_v53 = vpop.f32.mrb[160].mxu0  ;;  %v5457_v40 = vpop.f32.mrb[172].mxu1 }
 0x2e9   : > { %3924 = vst.msk [vmem:[%s7499_s22 + $0x18] sm:$0xf] %vm3917_vm1, %v4789_v5  ;;  %v4790_v44 = vpack.c.bf16 %v3764_v26, %v3764_v26  ;;  %v3639_v61 = vadd.f32 %v5457_v40, %v3478_v14  ;;  %v5276_v3 = vpop.f32.mrb[161].mxu0  ;;  %v3630_v31 = vpop.f32.mrb[173].mxu1 }
 0x2ea   : > { %3922 = vst.msk [vmem:[%s7499_s22 + $0x10] sm:$0xf] %vm3917_vm1, %v4787_v4  ;;  %v4788_v50 = vpack.c.bf16 %v3762_v24, %v3762_v24  ;;  %v5277_v17 = vadd.f32 %v5276_v3, %v5275_v53  ;;  %v3631_v18 = vadd.f32 %v3630_v31, %v3470_v16  ;;  %v5278_v57 = vpop.f32.mrb[162].mxu0  ;;  %v5458_v12 = vpop.f32.mrb[174].mxu1 }
 0x2eb   : > { %3925 = vst.msk [vmem:[%s7499_s22 + $0x1c] sm:$0xf] %vm3917_vm1, %v4790_v44  ;;  %v3735_v19 = vmax.f32 %v3639_v61, 0.0  ;;  %v3642_v34 = vadd.f32 %v5458_v12, %v3481_v42  ;;  %v5279_v43 = vpop.f32.mrb[163].mxu0  ;;  %v3633_v11 = vpop.f32.mrb[175].mxu1 }
 0x2ec   : > { %3923 = vst.msk [vmem:[%s7499_s22 + $0x14] sm:$0xf] %vm3917_vm1, %v4788_v50  ;;  %v3733_v27 = vmax.f32 %v3631_v18, 0.0  ;;  %v5280_v58 = vadd.f32 %v5279_v43, %v5278_v57  ;;  %v3634_v10 = vadd.f32 %v3633_v11, %v3473_v25 }
 0x2ed   : > { %v3767_v29 = vmax.f32 %v7350_v56, %v3735_v19  ;;  %v3736_v62 = vmax.f32 %v3642_v34, 0.0  ;;  %v3486_v56 = vadd.f32 %v7213_v47, %v7466_v63 }
 0x2ee   : > { %v3765_v35 = vmax.f32 %v7343_v0, %v3733_v27  ;;  %v3734_v1 = vmax.f32 %v3634_v10, 0.0 }
 0x2ef   : > { %v4793_v23 = vpack.c.bf16 %v3767_v29, %v3767_v29  ;;  %v3768_v15 = vmax.f32 %v7354_v51, %v3736_v62  ;;  %v7557_v51 = vld [vmem:[%s7659_s2] ss:$0 sm:$0xff] }
 0x2f0   : > { %v4791_v46 = vpack.c.bf16 %v3765_v35, %v3765_v35  ;;  %v3766_v41 = vmax.f32 %v7347_v9, %v3734_v1  ;;  %v5281_v5 = vpop.f32.mrb[164].mxu0  ;;  %v5461_v26 = vpop.f32.mrb[176].mxu1  ;;  %v3497_v9 = vadd.f32 %v7557_v51, %v7493_v54  ;;  %v3489_v16 = vadd.f32 %v7557_v51, %v7469_v60 }
 0x2f1   : > { %3928 = vst.msk [vmem:[%s7499_s22 + $0x28] sm:$0xf] %vm3917_vm1, %v4793_v23  ;;  %v4794_v0 = vpack.c.bf16 %v3768_v15, %v3768_v15  ;;  %v3655_v14 = vadd.f32 %v5461_v26, %v3494_v32  ;;  %v5282_v4 = vpop.f32.mrb[165].mxu0  ;;  %v3646_v24 = vpop.f32.mrb[177].mxu1  ;;  %v3510_v34 = vadd.f32 %v7557_v51, %v5277_v17  ;;  %v3502_v29 = vadd.f32 %v7557_v51, %v7514_v2 }
 0x2f2   : > { %3926 = vst.msk [vmem:[%s7499_s22 + $0x20] sm:$0xf] %vm3917_vm1, %v4791_v46  ;;  %v4792_v33 = vpack.c.bf16 %v3766_v41, %v3766_v41  ;;  %v5283_v53 = vadd.f32 %v5282_v4, %v5281_v5  ;;  %v3647_v47 = vadd.f32 %v3646_v24, %v3486_v56  ;;  %v5284_v63 = vpop.f32.mrb[166].mxu0  ;;  %v5462_v40 = vpop.f32.mrb[178].mxu1  ;;  %v3505_v32 = vadd.f32 %v7557_v51, %v7522_v55 }
 0x2f3   : > { %3929 = vst.msk [vmem:[%s7499_s22 + $0x2c] sm:$0xf] %vm3917_vm1, %v4794_v0  ;;  %v3739_v44 = vmax.f32 %v3655_v14, 0.0  ;;  %v3658_v61 = vadd.f32 %v5462_v40, %v3497_v9  ;;  %v5285_v3 = vpop.f32.mrb[167].mxu0  ;;  %v3649_v31 = vpop.f32.mrb[179].mxu1 }
 0x2f4   : > { %3927 = vst.msk [vmem:[%s7499_s22 + $0x24] sm:$0xf] %vm3917_vm1, %v4792_v33  ;;  %v3737_v54 = vmax.f32 %v3647_v47, 0.0  ;;  %v5286_v42 = vadd.f32 %v5285_v3, %v5284_v63  ;;  %v3650_v50 = vadd.f32 %v3649_v31, %v3489_v16 }
 0x2f5   : > { %v3771_v18 = vmax.f32 %v7370_v59, %v3739_v44  ;;  %v3740_v57 = vmax.f32 %v3658_v61, 0.0  ;;  %v3518_v44 = vadd.f32 %v7557_v51, %v5283_v53 }
 0x2f6   : > { %v3769_v12 = vmax.f32 %v7358_v13, %v3737_v54  ;;  %v3738_v25 = vmax.f32 %v3650_v50, 0.0 }
 0x2f7   : > { %v4797_v60 = vpack.c.bf16 %v3771_v18, %v3771_v18  ;;  %v3772_v19 = vmax.f32 %v7374_v28, %v3740_v57  ;;  %v3513_v28 = vadd.f32 %v7557_v51, %v5280_v58  ;;  %v3521_v57 = vadd.f32 %v7557_v51, %v5286_v42 }
 0x2f8   : > { %v4795_v43 = vpack.c.bf16 %v3769_v12, %v3769_v12  ;;  %v3770_v11 = vmax.f32 %v7361_v30, %v3738_v25  ;;  %v5287_v27 = vpop.f32.mrb[168].mxu0  ;;  %v5465_v10 = vpop.f32.mrb[180].mxu1 }
 0x2f9   : > { %3932 = vst.msk [vmem:[%s7499_s22 + $0x38] sm:$0xf] %vm3917_vm1, %v4797_v60  ;;  %v4798_v59 = vpack.c.bf16 %v3772_v19, %v3772_v19  ;;  %v3671_v13 = vadd.f32 %v5465_v10, %v3510_v34  ;;  %v5288_v62 = vpop.f32.mrb[169].mxu0  ;;  %v3662_v35 = vpop.f32.mrb[181].mxu1 }
 0x2fa   : > { %3930 = vst.msk [vmem:[%s7499_s22 + $0x30] sm:$0xf] %vm3917_vm1, %v4795_v43  ;;  %v4796_v17 = vpack.c.bf16 %v3770_v11, %v3770_v11  ;;  %v5289_v1 = vadd.f32 %v5288_v62, %v5287_v27  ;;  %v3663_v30 = vadd.f32 %v3662_v35, %v3502_v29  ;;  %v5290_v23 = vpop.f32.mrb[170].mxu0  ;;  %v5466_v15 = vpop.f32.mrb[182].mxu1 }
 0x2fb   : > { %3933 = vst.msk [vmem:[%s7499_s22 + $0x3c] sm:$0xf] %vm3917_vm1, %v4798_v59  ;;  %v3743_v2 = vmax.f32 %v3671_v13, 0.0  ;;  %v3674_v46 = vadd.f32 %v5466_v15, %v3513_v28  ;;  %v5291_v41 = vpop.f32.mrb[171].mxu0  ;;  %v3665_v5 = vpop.f32.mrb[183].mxu1 }
 0x2fc   : > { %3931 = vst.msk [vmem:[%s7499_s22 + $0x34] sm:$0xf] %vm3917_vm1, %v4796_v17  ;;  %v3741_v58 = vmax.f32 %v3663_v30, 0.0  ;;  %v5292_v26 = vadd.f32 %v5291_v41, %v5290_v23  ;;  %v3666_v56 = vadd.f32 %v3665_v5, %v3505_v32  ;;  %v3526_v33 = vadd.f32 %v7557_v51, %v5289_v1 }
 0x2fd   : > { %v3775_v0 = vmax.f32 %v7396_v37, %v3743_v2  ;;  %v3744_v14 = vmax.f32 %v3674_v46, 0.0 }
 0x2fe   : > { %v3773_v4 = vmax.f32 %v7384_v36, %v3741_v58  ;;  %v3742_v24 = vmax.f32 %v3666_v56, 0.0  ;;  %v3529_v31 = vadd.f32 %v7557_v51, %v5292_v26 }
 0x2ff   : > { %v4801_v55 = vpack.c.bf16 %v3775_v0, %v3775_v0  ;;  %v3776_v9 = vmax.f32 %v7402_v39, %v3744_v14 }
 0x300   : > { %v4799_v47 = vpack.c.bf16 %v3773_v4, %v3773_v4  ;;  %v3774_v63 = vmax.f32 %v7390_v21, %v3742_v24  ;;  %v5293_v40 = vpop.f32.mrb[172].mxu0  ;;  %v5469_v16 = vpop.f32.mrb[184].mxu1 }
 0x301   : > { %3936 = vst.msk [vmem:[%s7499_s22 + $0x48] sm:$0xf] %vm3917_vm1, %v4801_v55  ;;  %v4802_v37 = vpack.c.bf16 %v3776_v9, %v3776_v9  ;;  %v3687_v61 = vadd.f32 %v5469_v16, %v3526_v33  ;;  %v5294_v36 = vpop.f32.mrb[173].mxu0  ;;  %v3678_v3 = vpop.f32.mrb[185].mxu1 }
 0x302   : > { %3934 = vst.msk [vmem:[%s7499_s22 + $0x40] sm:$0xf] %vm3917_vm1, %v4799_v47  ;;  %v4800_v39 = vpack.c.bf16 %v3774_v63, %v3774_v63  ;;  %v5295_v54 = vadd.f32 %v5294_v36, %v5293_v40  ;;  %v3679_v50 = vadd.f32 %v3678_v3, %v3518_v44  ;;  %v5296_v21 = vpop.f32.mrb[174].mxu0  ;;  %v5470_v18 = vpop.f32.mrb[186].mxu1  ;;  %v7685_v44 = vld [vmem:[#allocation3_spill] sm:$0xff] }
 0x303   : > { %3937 = vst.msk [vmem:[%s7499_s22 + $0x4c] sm:$0xf] %vm3917_vm1, %v4802_v37  ;;  %v3747_v53 = vmax.f32 %v3687_v61, 0.0  ;;  %v3690_v12 = vadd.f32 %v5470_v18, %v3529_v31  ;;  %v5297_v25 = vpop.f32.mrb[175].mxu0  ;;  %v3681_v60 = vpop.f32.mrb[187].mxu1 }
 0x304   : > { %3935 = vst.msk [vmem:[%s7499_s22 + $0x44] sm:$0xf] %vm3917_vm1, %v4800_v39  ;;  %v3745_v19 = vmax.f32 %v3679_v50, 0.0  ;;  %v5298_v34 = vadd.f32 %v5297_v25, %v5296_v21  ;;  %v3682_v43 = vadd.f32 %v3681_v60, %v3521_v57  ;;  %v3534_v17 = vadd.f32 %v7557_v51, %v5295_v54 }
 0x305   : > { %v3779_v11 = vmax.f32 %v7422_v6, %v3747_v53  ;;  %v3748_v27 = vmax.f32 %v3690_v12, 0.0 }
 0x306   : > { %v3777_v10 = vmax.f32 %v7408_v7, %v3745_v19  ;;  %v3746_v29 = vmax.f32 %v3682_v43, 0.0  ;;  %v3537_v2 = vadd.f32 %v7557_v51, %v5298_v34 }
 0x307   : > { %v4805_v42 = vpack.c.bf16 %v3779_v11, %v3779_v11  ;;  %v3780_v59 = vmax.f32 %v7428_v22, %v3748_v27 }
 0x308   : > { %v4803_v13 = vpack.c.bf16 %v3777_v10, %v3777_v10  ;;  %v3778_v62 = vmax.f32 %v7414_v8, %v3746_v29  ;;  %v5299_v35 = vpop.f32.mrb[176].mxu0  ;;  %v5473_v28 = vpop.f32.mrb[188].mxu1 }
 0x309   : > { %3940 = vst.msk [vmem:[%s7499_s22 + $0x58] sm:$0xf] %vm3917_vm1, %v4805_v42  ;;  %v4806_v1 = vpack.c.bf16 %v3780_v59, %v3780_v59  ;;  %v5300_v6 = vpop.f32.mrb[177].mxu0  ;;  %v3694_v30 = vpop.f32.mrb[189].mxu1 }
 0x30a   : > { %3938 = vst.msk [vmem:[%s7499_s22 + $0x50] sm:$0xf] %vm3917_vm1, %v4803_v13  ;;  %v4804_v7 = vpack.c.bf16 %v3778_v62, %v3778_v62  ;;  %v5301_v23 = vadd.f32 %v5300_v6, %v5299_v35  ;;  %v3695_v15 = vadd.f32 %v3694_v30, %v3534_v17  ;;  %v5302_v22 = vpop.f32.mrb[178].mxu0  ;;  %v5474_v32 = vpop.f32.mrb[190].mxu1 }
 0x30b   : > { %3941 = vst.msk [vmem:[%s7499_s22 + $0x5c] sm:$0xf] %vm3917_vm1, %v4806_v1  ;;  %v5303_v8 = vpop.f32.mrb[179].mxu0  ;;  %v3697_v46 = vpop.f32.mrb[191].mxu1 }
 0x30c   : > { %3939 = vst.msk [vmem:[%s7499_s22 + $0x54] sm:$0xf] %vm3917_vm1, %v4804_v7  ;;  %v3542_v41 = vadd.f32 %v7557_v51, %v5301_v23  ;;  %v3749_v5 = vmax.f32 %v3695_v15, 0.0  ;;  %v5304_v58 = vadd.f32 %v5303_v8, %v5302_v22  ;;  %v3698_v26 = vadd.f32 %v3697_v46, %v3537_v2 }
 0x30e   : > { %v3703_v56 = vadd.f32 %v5473_v28, %v3542_v41  ;;  %v3781_v0 = vmax.f32 %v7436_v48, %v3749_v5  ;;  %v3545_v14 = vadd.f32 %v7557_v51, %v5304_v58  ;;  %v3750_v4 = vmax.f32 %v3698_v26, 0.0 }
 0x310   : > { %v3751_v24 = vmax.f32 %v3703_v56, 0.0  ;;  %v4807_v55 = vpack.c.bf16 %v3781_v0, %v3781_v0  ;;  %v3706_v9 = vadd.f32 %v5474_v32, %v3545_v14  ;;  %v3782_v33 = vmax.f32 %v7442_v20, %v3750_v4  ;;  %v5305_v47 = vpop.f32.mrb[180].mxu0  ;;  %v5477_v63 = vpop.f32.mrb[192].mxu1  ;;  %v7686_v20 = vld [vmem:[#allocation5_spill] sm:$0xff] }
 0x311   : > { %v5306_v40 = vpop.f32.mrb[181].mxu0  ;;  %v3710_v16 = vpop.f32.mrb[193].mxu1 }
 0x312   : > { %v3783_v37 = vmax.f32 %v7685_v44, %v3751_v24  ;;  %3942 = vst.msk [vmem:[%s7499_s22 + $0x60] sm:$0xf] %vm3917_vm1, %v4807_v55  ;;  %v3752_v61 = vmax.f32 %v3706_v9, 0.0  ;;  %v4808_v48 = vpack.c.bf16 %v3782_v33, %v3782_v33  ;;  %v5307_v36 = vadd.f32 %v5306_v40, %v5305_v47  ;;  %v5308_v3 = vpop.f32.mrb[182].mxu0  ;;  %v5478_v31 = vpop.f32.mrb[194].mxu1 }
 0x313   : > { %v5309_v39 = vpop.f32.mrb[183].mxu0  ;;  %v3713_v54 = vpop.f32.mrb[195].mxu1 }
 0x314   : > { %v4809_v50 = vpack.c.bf16 %v3783_v37, %v3783_v37  ;;  %v3784_v21 = vmax.f32 %v7686_v20, %v3752_v61  ;;  %3943 = vst.msk [vmem:[%s7499_s22 + $0x64] sm:$0xf] %vm3917_vm1, %v4808_v48  ;;  %v5310_v18 = vadd.f32 %v5309_v39, %v5308_v3  ;;  %v3550_v57 = vadd.f32 %v7557_v51, %v5307_v36 }
 0x316   : > { %3944 = vst.msk [vmem:[%s7499_s22 + $0x68] sm:$0xf] %vm3917_vm1, %v4809_v50  ;;  %v4810_v53 = vpack.c.bf16 %v3784_v21, %v3784_v21  ;;  %v3711_v12 = vadd.f32 %v3710_v16, %v3550_v57  ;;  %v3553_v25 = vadd.f32 %v7557_v51, %v5310_v18 }
 0x318   : > { %3945 = vst.msk [vmem:[%s7499_s22 + $0x6c] sm:$0xf] %vm3917_vm1, %v4810_v53  ;;  %v3753_v60 = vmax.f32 %v3711_v12, 0.0  ;;  %v3714_v19 = vadd.f32 %v3713_v54, %v3553_v25  ;;  %v5311_v34 = vpop.f32.mrb[184].mxu0 }
 0x319   : > { %v5312_v43 = vpop.f32.mrb[185].mxu0 }
 0x31a   : > { %v3785_v11 = vmax.f32 %v7475_v45, %v3753_v60  ;;  %v3754_v27 = vmax.f32 %v3714_v19, 0.0  ;;  %v5313_v10 = vadd.f32 %v5312_v43, %v5311_v34  ;;  %v5314_v29 = vpop.f32.mrb[186].mxu0 }
 0x31b   : > { %v5315_v42 = vpop.f32.mrb[187].mxu0 }
 0x31c   : > { %v4811_v59 = vpack.c.bf16 %v3785_v11, %v3785_v11  ;;  %v3786_v13 = vmax.f32 %v7483_v49, %v3754_v27  ;;  %v3558_v62 = vadd.f32 %v7557_v51, %v5313_v10  ;;  %v5316_v35 = vadd.f32 %v5315_v42, %v5314_v29 }
 0x31e   : > { %3946 = vst.msk [vmem:[%s7499_s22 + $0x70] sm:$0xf] %vm3917_vm1, %v4811_v59  ;;  %v4812_v28 = vpack.c.bf16 %v3786_v13, %v3786_v13  ;;  %v3719_v17 = vadd.f32 %v5477_v63, %v3558_v62  ;;  %v3561_v1 = vadd.f32 %v7557_v51, %v5316_v35 }
 0x320   : > { %3947 = vst.msk [vmem:[%s7499_s22 + $0x74] sm:$0xf] %vm3917_vm1, %v4812_v28  ;;  %v3755_v45 = vmax.f32 %v3719_v17, 0.0  ;;  %v3722_v6 = vadd.f32 %v5478_v31, %v3561_v1 }
 0x322   : > { %v3787_v30 = vmax.f32 %v7472_v52, %v3755_v45  ;;  %v3756_v7 = vmax.f32 %v3722_v6, 0.0 }
 0x324   : > { %v4813_v23 = vpack.c.bf16 %v3787_v30, %v3787_v30  ;;  %v3788_v49 = vmax.f32 %v7478_v38, %v3756_v7 }
 0x326   : > { %3948 = vst.msk [vmem:[%s7499_s22 + $0x78] sm:$0xf] %vm3917_vm1, %v4813_v23  ;;  %v4814_v15 = vpack.c.bf16 %v3788_v49, %v3788_v49 }
 0x328   : > { %3949 = vst.msk [vmem:[%s7499_s22 + $0x7c] sm:$0xf] %vm3917_vm1, %v4814_v15 }
 0x329 PF: > { %p10_p9 = scmp.ge.s32.totalorder %s5865_s16, 4   ;;  %s7687_s12 = smov %s5822_s13 }
 0x32a   : > { %s7688_s13 = smov %s5874_s19  ;;  %s7689_s14 = smov %s5865_s16 }
 0x32b   :  { %12 = sbr.rel (!%p10_p9) target bundleno = 2 (0x2), region = 102 }

// kernel: _lambda_.14
= control target key start
LH: loop header
LB: loop body
LE: loop exit
PB: predicated region body
PF: predicated region fallthrough
CT: control target
= control target key end

     0   :  { %s1301_s12 = smov 0   ;;  %s1303_s13 = smov 0   ;;  %s1661_s0 = inlined_call_operand.vmem [shape: bf16[4,128,144], index: 0, kind: input, shape index: {}]   ;;  %s1662_s1 = inlined_call_operand.vmem [shape: bf16[144,8], index: 1, kind: input, shape index: {}]   ;;  %s1663_s2 = inlined_call_operand.vmem [shape: f32[1,8], index: 2, kind: input, shape index: {}]   ;;  %s1664_s3 = inlined_call_operand.vmem [shape: bf16[128,8], index: 3, kind: output, shape index: {}]  }
   0x1   :  { %s1305_s14 = smov 0  }
   0x2 LB: > { %s1060_s15 = sadd.s32 4294967295, %s1278_s14   ;;  %s1318_s16 = sadd.s32 1, %s1278_s14   ;;  %s1278_s14 = sphi %s1305_s14, %s1667_s14   ;;  %s1274_s13 = sphi %s1303_s13, %s1666_s13   ;;  %s1270_s12 = sphi %s1301_s12, %s1665_s12  }
   0x3   : > { %s17_s17 = ssub.s32 %s1278_s14, %s1318_s16  ;;  %s20_s18 = sadd.s32 1, %s1274_s13 }
   0x4   : > { %p18_p0 = scmp.eq.s32.totalorder %s17_s17, 0  ;;  %p27_p1 = scmp.ne.s32.totalorder %s1274_s13, %s1270_s12 }
   0x5   : > { %p28_p2 = scmp.eq.s32.totalorder %s1278_s14, 0  ;;  %p1063_p4 = scmp.ge.s32.totalorder %s1278_s14, 2 }
   0x6   : > { %s1327_s19 = scalar_select %p18_p0, %s1274_s13, %s20_s18  }
   0x7   : > { %p29_p3 = por %p28_p2, %p27_p1  ;;  %127 = sbr.rel (%p1063_p4) target bundleno = 34 (0x22), region = 24 }
   0xe   : > { %130 = sbr.rel (!%p29_p3) target bundleno = 34 (0x22), region = 28  ;;  %s132_s20 = sand.u32 (%p29_p3), 1, %s1274_s13  }
   0xf   : > { %s1165_s21 = sshll.u32 (%p29_p3), %s1278_s14, 6  ;;  %s1064_s22 = sshll.u32 (%p29_p3), %s132_s20, 8 }
  0x10   : > { %s1335_s25 = scalar_lea.vmem (%p29_p3), %s1661_s0, %s1165_s21  ;;  %s1340_s26 = scalar_lea.vmem (%p29_p3), [#allocation2], %s1064_s22 }
  0x11   : > { %v228_v0 = vld [vmem:[%s1335_s25] sm:$0xff] (%p29_p3)  ;;  %v230_v1 = vld [vmem:[%s1335_s25 + $0x8] sm:$0xff] (%p29_p3)  ;;  %v232_v2 = vld [vmem:[%s1335_s25 + $0x10] sm:$0xff] (%p29_p3) }
  0x12   : > { %229 = vst [vmem:[%s1340_s26] sm:$0xff] (%p29_p3), %v228_v0  ;;  %231 = vst [vmem:[%s1340_s26 + $0x8] sm:$0xff] (%p29_p3), %v230_v1  ;;  %v234_v3 = vld [vmem:[%s1335_s25 + $0x18] sm:$0xff] (%p29_p3)  ;;  %v236_v4 = vld [vmem:[%s1335_s25 + $0x20] sm:$0xff] (%p29_p3) }
  0x13   : > { %233 = vst [vmem:[%s1340_s26 + $0x10] sm:$0xff] (%p29_p3), %v232_v2  ;;  %v238_v5 = vld [vmem:[%s1335_s25 + $0x28] sm:$0xff] (%p29_p3)  ;;  %235 = vst [vmem:[%s1340_s26 + $0x18] sm:$0xff] (%p29_p3), %v234_v3  ;;  %v240_v6 = vld [vmem:[%s1335_s25 + $0x30] sm:$0xff] (%p29_p3) }
  0x14   : > { %237 = vst [vmem:[%s1340_s26 + $0x20] sm:$0xff] (%p29_p3), %v236_v4  ;;  %239 = vst [vmem:[%s1340_s26 + $0x28] sm:$0xff] (%p29_p3), %v238_v5  ;;  %v242_v7 = vld [vmem:[%s1335_s25 + $0x38] sm:$0xff] (%p29_p3)  ;;  %v244_v8 = vld [vmem:[%s1335_s25 + $0x80] sm:$0xff] (%p29_p3) }
  0x15   : > { %241 = vst [vmem:[%s1340_s26 + $0x30] sm:$0xff] %v240_v6  ;;  %243 = vst [vmem:[%s1340_s26 + $0x38] sm:$0xff] %v242_v7  ;;  %v246_v9 = vld [vmem:[%s1335_s25 + $0x88] sm:$0xff]  ;;  %v248_v10 = vld [vmem:[%s1335_s25 + $0x90] sm:$0xff] }
  0x16   : > { %245 = vst [vmem:[%s1340_s26 + $0x40] sm:$0xff] %v244_v8  ;;  %v250_v11 = vld [vmem:[%s1335_s25 + $0x98] sm:$0xff]  ;;  %247 = vst [vmem:[%s1340_s26 + $0x48] sm:$0xff] %v246_v9  ;;  %v252_v12 = vld [vmem:[%s1335_s25 + $0xa0] sm:$0xff] }
  0x17   : > { %249 = vst [vmem:[%s1340_s26 + $0x50] sm:$0xff] %v248_v10  ;;  %251 = vst [vmem:[%s1340_s26 + $0x58] sm:$0xff] %v250_v11  ;;  %v254_v13 = vld [vmem:[%s1335_s25 + $0xa8] sm:$0xff]  ;;  %v256_v14 = vld [vmem:[%s1335_s25 + $0xb0] sm:$0xff] }
  0x18   : > { %253 = vst [vmem:[%s1340_s26 + $0x60] sm:$0xff] %v252_v12  ;;  %255 = vst [vmem:[%s1340_s26 + $0x68] sm:$0xff] %v254_v13  ;;  %v258_v15 = vld [vmem:[%s1335_s25 + $0xb8] sm:$0xff]  ;;  %v260_v16 = vld [vmem:[%s1335_s25 + $0x100] sm:$0xff] }
  0x19   : > { %257 = vst [vmem:[%s1340_s26 + $0x70] sm:$0xff] %v256_v14  ;;  %v262_v17 = vld [vmem:[%s1335_s25 + $0x108] sm:$0xff]  ;;  %259 = vst [vmem:[%s1340_s26 + $0x78] sm:$0xff] %v258_v15  ;;  %v264_v18 = vld [vmem:[%s1335_s25 + $0x110] sm:$0xff] }
  0x1a   : > { %261 = vst [vmem:[%s1340_s26 + $0x80] sm:$0xff] %v260_v16  ;;  %263 = vst [vmem:[%s1340_s26 + $0x88] sm:$0xff] %v262_v17  ;;  %v266_v19 = vld [vmem:[%s1335_s25 + $0x118] sm:$0xff]  ;;  %v268_v20 = vld [vmem:[%s1335_s25 + $0x120] sm:$0xff] }
  0x1b   : > { %265 = vst [vmem:[%s1340_s26 + $0x90] sm:$0xff] %v264_v18  ;;  %267 = vst [vmem:[%s1340_s26 + $0x98] sm:$0xff] %v266_v19  ;;  %v270_v21 = vld [vmem:[%s1335_s25 + $0x128] sm:$0xff]  ;;  %v272_v22 = vld [vmem:[%s1335_s25 + $0x130] sm:$0xff] }
  0x1c   : > { %269 = vst [vmem:[%s1340_s26 + $0xa0] sm:$0xff] %v268_v20  ;;  %v274_v23 = vld [vmem:[%s1335_s25 + $0x138] sm:$0xff]  ;;  %271 = vst [vmem:[%s1340_s26 + $0xa8] sm:$0xff] %v270_v21  ;;  %v276_v24 = vld [vmem:[%s1335_s25 + $0x180] sm:$0xff] }
  0x1d   : > { %273 = vst [vmem:[%s1340_s26 + $0xb0] sm:$0xff] %v272_v22  ;;  %275 = vst [vmem:[%s1340_s26 + $0xb8] sm:$0xff] %v274_v23  ;;  %v278_v25 = vld [vmem:[%s1335_s25 + $0x188] sm:$0xff]  ;;  %v280_v26 = vld [vmem:[%s1335_s25 + $0x190] sm:$0xff] }
  0x1e   : > { %277 = vst [vmem:[%s1340_s26 + $0xc0] sm:$0xff] %v276_v24  ;;  %279 = vst [vmem:[%s1340_s26 + $0xc8] sm:$0xff] %v278_v25  ;;  %v282_v27 = vld [vmem:[%s1335_s25 + $0x198] sm:$0xff]  ;;  %v284_v28 = vld [vmem:[%s1335_s25 + $0x1a0] sm:$0xff] }
  0x1f   : > { %281 = vst [vmem:[%s1340_s26 + $0xd0] sm:$0xff] %v280_v26  ;;  %v286_v29 = vld [vmem:[%s1335_s25 + $0x1a8] sm:$0xff]  ;;  %283 = vst [vmem:[%s1340_s26 + $0xd8] sm:$0xff] %v282_v27  ;;  %v288_v30 = vld [vmem:[%s1335_s25 + $0x1b0] sm:$0xff] }
  0x20   : > { %285 = vst [vmem:[%s1340_s26 + $0xe0] sm:$0xff] %v284_v28  ;;  %287 = vst [vmem:[%s1340_s26 + $0xe8] sm:$0xff] %v286_v29  ;;  %v290_v31 = vld [vmem:[%s1335_s25 + $0x1b8] sm:$0xff] }
  0x21   : > { %289 = vst [vmem:[%s1340_s26 + $0xf0] sm:$0xff] %v288_v30  ;;  %291 = vst [vmem:[%s1340_s26 + $0xf8] sm:$0xff] %v290_v31 }
  0x22 PF: > { %p1068_p5 = scmp.ge.s32.totalorder %s1278_s14, 1  ;;  %p296_p6 = scmp.lt.s32.totalorder %s1278_s14, 3 }
  0x24   : > { %p297_p7 = pnand %p1068_p5, %p296_p6 }
  0x25   : > { %v1199_v32 = vld [vmem:[%s1662_s1] sm:$0xff] (!%p297_p7)   ;;  %v1280_v33 = vmov (!%p297_p7), 0   ;;  %s303_s29 = sand.u32 (!%p297_p7), 1, %s1270_s12   ;;  %v1414_v34 = vld [vmem:[%s1662_s1 + $0x8] sm:$0xff] (!%p297_p7)   ;;  %v1423_v35 = vld [vmem:[%s1662_s1 + $0x10] sm:$0xff] (!%p297_p7)   ;;  %vm457_vm0 = vcmask (!%p297_p7), 130048  }
  0x26   : > { %300 = sbr.rel (%p297_p7) target bundleno = 359 (0x167), region = 66  ;;  %470 = vmatprep.subr.bf16.mxu0 (!%p297_p7), %v1280_v33  ;;  %600 = vmatprep.subr.bf16.mxu1 (!%p297_p7), %v1280_v33  ;;  %s1069_s5 = sshll.u32 (!%p297_p7), %s303_s29, 8  ;;  %v1430_v36 = vld [vmem:[%s1662_s1 + $0x18] sm:$0xff] (!%p297_p7)   ;;  %v1447_v39 = vld [vmem:[%s1662_s1 + $0x20] sm:$0xff] (!%p297_p7)   ;;  %v1456_v40 = vld [vmem:[%s1662_s1 + $0x28] sm:$0xff] (!%p297_p7)   ;;  %vm989_vm1 = vcmask (!%p297_p7), 60416  }
  0x27   : > { %471 = vmatpush1.bf16.msra.mxu0 (!%p297_p7), %v1199_v32  ;;  %601 = vmatpush1.bf16.msra.mxu1 (!%p297_p7), %v1199_v32  ;;  %s1432_s10 = scalar_lea.vmem (!%p297_p7), [#allocation2], %s1069_s5  ;;  %v1465_v41 = vld [vmem:[%s1662_s1 + $0x30] sm:$0xff] (!%p297_p7)   ;;  %v1474_v42 = vld [vmem:[%s1662_s1 + $0x38] sm:$0xff] (!%p297_p7)   ;;  %v1483_v43 = vld [vmem:[%s1662_s1 + $0x40] sm:$0xff] (!%p297_p7)   ;;  %s1070_s28 = sshll.u32 (!%p297_p7), %s1060_s15, 3 }
  0x28   : > { %472 = vmatprep.subr.bf16.mxu0 (!%p297_p7), %v1280_v33  ;;  %602 = vmatprep.subr.bf16.mxu1 (!%p297_p7), %v1280_v33  ;;  %v1210_v37 = vld [vmem:[%s1432_s10 + $0x4] ss:$8 sps:$4 sm:$0xff] (!%p297_p7)   ;;  %v1208_v44 = vld [vmem:[%s1432_s10] ss:$8 sps:$4 sm:$0xff] (!%p297_p7)   ;;  %v1214_v46 = vld [vmem:[%s1432_s10 + $0x14] ss:$8 sps:$4 sm:$0xff] (!%p297_p7)  }
  0x29   : > { %v1213_v38 = vld [vmem:[%s1432_s10 + $0x44] ss:$8 sps:$4 sm:$0xff] (!%p297_p7)   ;;  %1090 = vmatprep.mubr.msk.bf16.mxu0 (!%p297_p7), %vm457_vm0, %v1210_v37  ;;  %v1211_v45 = vld [vmem:[%s1432_s10 + $0x40] ss:$8 sps:$4 sm:$0xff] (!%p297_p7)   ;;  %v1217_v47 = vld [vmem:[%s1432_s10 + $0x54] ss:$8 sps:$4 sm:$0xff] (!%p297_p7)  }
  0x2a   : > { %1110 = vmatprep.mubr.msk.bf16.mxu1 (!%p297_p7), %vm457_vm0, %v1213_v38  ;;  %v1216_v48 = vld [vmem:[%s1432_s10 + $0x10] ss:$8 sps:$4 sm:$0xff] (!%p297_p7)   ;;  %v1220_v50 = vld [vmem:[%s1432_s10 + $0x24] ss:$8 sps:$4 sm:$0xff] (!%p297_p7)   ;;  %v1222_v52 = vld [vmem:[%s1432_s10 + $0x20] ss:$8 sps:$4 sm:$0xff] (!%p297_p7)  }
  0x2b   : > { %473 = vmatpush1.bf16.msra.mxu0 (!%p297_p7), %v1414_v34  ;;  %603 = vmatpush1.bf16.msra.mxu1 (!%p297_p7), %v1414_v34  ;;  %v1219_v49 = vld [vmem:[%s1432_s10 + $0x50] ss:$8 sps:$4 sm:$0xff] (!%p297_p7)   ;;  %v1223_v51 = vld [vmem:[%s1432_s10 + $0x64] ss:$8 sps:$4 sm:$0xff] (!%p297_p7)   ;;  %v1225_v53 = vld [vmem:[%s1432_s10 + $0x60] ss:$8 sps:$4 sm:$0xff] (!%p297_p7)  }
  0x2c   : > { %474 = vmatprep.subr.bf16.mxu0 (!%p297_p7), %v1280_v33  ;;  %604 = vmatprep.subr.bf16.mxu1 (!%p297_p7), %v1280_v33  ;;  %v1226_v54 = vld [vmem:[%s1432_s10 + $0x34] ss:$8 sps:$4 sm:$0xff] (!%p297_p7)   ;;  %v1228_v56 = vld [vmem:[%s1432_s10 + $0x30] ss:$8 sps:$4 sm:$0xff] (!%p297_p7)   ;;  %v1234_v58 = vld [vmem:[%s1432_s10 + $0x84] ss:$8 sps:$4 sm:$0xff] (!%p297_p7)  }
  0x2d   : > { %v1229_v55 = vld [vmem:[%s1432_s10 + $0x74] ss:$8 sps:$4 sm:$0xff]   ;;  %v1231_v57 = vld [vmem:[%s1432_s10 + $0x70] ss:$8 sps:$4 sm:$0xff]   ;;  %v1237_v59 = vld [vmem:[%s1432_s10 + $0xc4] ss:$8 sps:$4 sm:$0xff]  }
  0x2e   : > { %v1232_v60 = vld [vmem:[%s1432_s10 + $0x80] ss:$8 sps:$4 sm:$0xff]   ;;  %v1238_v62 = vld [vmem:[%s1432_s10 + $0x94] ss:$8 sps:$4 sm:$0xff]   ;;  %v1242_v0 = vld [vmem:[%s1432_s10 + $0x90] ss:$8 sps:$4 sm:$0xff]  }
  0x2f   : > { %475 = vmatpush1.bf16.msra.mxu0 %v1423_v35  ;;  %605 = vmatpush1.bf16.msra.mxu1 %v1423_v35  ;;  %v1235_v61 = vld [vmem:[%s1432_s10 + $0xc0] ss:$8 sps:$4 sm:$0xff]   ;;  %v1240_v63 = vld [vmem:[%s1432_s10 + $0xd4] ss:$8 sps:$4 sm:$0xff]   ;;  %v1243_v1 = vld [vmem:[%s1432_s10 + $0xd0] ss:$8 sps:$4 sm:$0xff]  }
  0x30   : > { %476 = vmatprep.subr.bf16.mxu0 %v1280_v33  ;;  %606 = vmatprep.subr.bf16.mxu1 %v1280_v33  ;;  %v1244_v2 = vld [vmem:[%s1432_s10 + $0xa4] ss:$8 sps:$4 sm:$0xff]   ;;  %v1248_v4 = vld [vmem:[%s1432_s10 + $0xa0] ss:$8 sps:$4 sm:$0xff]   ;;  %v1250_v6 = vld [vmem:[%s1432_s10 + $0xb4] ss:$8 sps:$4 sm:$0xff]  }
  0x31   : > { %v1246_v3 = vld [vmem:[%s1432_s10 + $0xe4] ss:$8 sps:$4 sm:$0xff]   ;;  %v1249_v5 = vld [vmem:[%s1432_s10 + $0xe0] ss:$8 sps:$4 sm:$0xff]   ;;  %v1252_v7 = vld [vmem:[%s1432_s10 + $0xf4] ss:$8 sps:$4 sm:$0xff]  }
  0x32   : > { %v1254_v8 = vld [vmem:[%s1432_s10 + $0xb0] ss:$8 sps:$4 sm:$0xff]   ;;  %v1570_v10 = vld [vmem:[%s1663_s2] ss:$0 sm:$0xff]  ;;  %p328_p8 = scmp.lt.s32.totalorder %s1070_s28, 15 }
  0x33   : > { %477 = vmatpush1.bf16.msra.mxu0 %v1430_v36  ;;  %607 = vmatpush1.bf16.msra.mxu1 %v1430_v36  ;;  %v1255_v9 = vld [vmem:[%s1432_s10 + $0xf0] ss:$8 sps:$4 sm:$0xff]  }
  0x34   : > { %478 = vmatprep.subr.bf16.mxu0 %v1280_v33  ;;  %608 = vmatprep.subr.bf16.mxu1 %v1280_v33  ;;  %s1669_s28 = smov (!%p328_p8, %s1070_s28), 15 }
  0x35   : > { %s1071_s14 = sshll.u32 %s1669_s28, 2 }
  0x36   : > { %s1615_s30 = scalar_lea.vmem %s1664_s3, %s1071_s14 }
  0x37   : > { %479 = vmatpush1.bf16.msra.mxu0 %v1447_v39  ;;  %609 = vmatpush1.bf16.msra.mxu1 %v1447_v39 }
  0x38   : > { %480 = vmatprep.subr.bf16.mxu0 %v1280_v33  ;;  %610 = vmatprep.subr.bf16.mxu1 %v1280_v33 }
  0x3b   : > { %481 = vmatpush1.bf16.msra.mxu0 %v1456_v40  ;;  %611 = vmatpush1.bf16.msra.mxu1 %v1456_v40 }
  0x3c   : > { %482 = vmatprep.subr.bf16.mxu0 %v1280_v33  ;;  %612 = vmatprep.subr.bf16.mxu1 %v1280_v33 }
  0x3f   : > { %483 = vmatpush1.bf16.msra.mxu0 %v1465_v41  ;;  %613 = vmatpush1.bf16.msra.mxu1 %v1465_v41 }
  0x40   : > { %484 = vmatprep.subr.bf16.mxu0 %v1280_v33  ;;  %614 = vmatprep.subr.bf16.mxu1 %v1280_v33 }
  0x43   : > { %485 = vmatpush1.bf16.msra.mxu0 %v1474_v42  ;;  %615 = vmatpush1.bf16.msra.mxu1 %v1474_v42 }
  0x44   : > { %486 = vmatprep.subr.bf16.mxu0 %v1280_v33  ;;  %616 = vmatprep.subr.bf16.mxu1 %v1280_v33 }
  0x47   : > { %487 = vmatpush1.bf16.msra.mxu0 %v1483_v43  ;;  %617 = vmatpush1.bf16.msra.mxu1 %v1483_v43 }
  0x48   : > { %738 = vmatprep.subr.bf16.mxu0 %v1280_v33  ;;  %876 = vmatprep.subr.bf16.mxu1 %v1280_v33 }
  0x4a   : > { %503 = vmatmul.mubr.bf16.vlgmr.msra.gmra.mrb[0].mxu0 %v1208_v44  ;;  %633 = vmatmul.mubr.bf16.vlgmr.msra.gmra.mrb[0].mxu1 %v1211_v45 }
  0x4b   : > { %739 = vmatpush1.bf16.msra.mxu0 %v1199_v32  ;;  %877 = vmatpush1.bf16.msra.mxu1 %v1199_v32 }
  0x4c   : > { %740 = vmatprep.subr.bf16.mxu0 %v1280_v33  ;;  %878 = vmatprep.subr.bf16.mxu1 %v1280_v33 }
  0x4d   : > { %1091 = vmatprep.mubr.msk.bf16.mxu0 %vm457_vm0, %v1214_v46  ;;  %1111 = vmatprep.mubr.msk.bf16.mxu1 %vm457_vm0, %v1217_v47 }
  0x4f   : > { %741 = vmatpush1.bf16.msra.mxu0 %v1414_v34  ;;  %879 = vmatpush1.bf16.msra.mxu1 %v1414_v34 }
  0x50   : > { %742 = vmatprep.subr.bf16.mxu0 %v1280_v33  ;;  %880 = vmatprep.subr.bf16.mxu1 %v1280_v33 }
  0x52   : > { %511 = vmatmul.mubr.bf16.gmra.mrb[4].mxu0 %v1216_v48  ;;  %641 = vmatmul.mubr.bf16.gmra.mrb[4].mxu1 %v1219_v49 }
  0x53   : > { %743 = vmatpush1.bf16.msra.mxu0 %v1423_v35  ;;  %881 = vmatpush1.bf16.msra.mxu1 %v1423_v35 }
  0x54   : > { %744 = vmatprep.subr.bf16.mxu0 %v1280_v33  ;;  %882 = vmatprep.subr.bf16.mxu1 %v1280_v33 }
  0x55   : > { %1092 = vmatprep.mubr.msk.bf16.mxu0 %vm457_vm0, %v1220_v50  ;;  %1112 = vmatprep.mubr.msk.bf16.mxu1 %vm457_vm0, %v1223_v51 }
  0x57   : > { %745 = vmatpush1.bf16.msra.mxu0 %v1430_v36  ;;  %883 = vmatpush1.bf16.msra.mxu1 %v1430_v36 }
  0x58   : > { %746 = vmatprep.subr.bf16.mxu0 %v1280_v33  ;;  %884 = vmatprep.subr.bf16.mxu1 %v1280_v33 }
  0x5a   : > { %519 = vmatmul.mubr.bf16.gmra.mrb[8].mxu0 %v1222_v52  ;;  %649 = vmatmul.mubr.bf16.gmra.mrb[8].mxu1 %v1225_v53 }
  0x5b   : > { %747 = vmatpush1.bf16.msra.mxu0 %v1447_v39  ;;  %885 = vmatpush1.bf16.msra.mxu1 %v1447_v39 }
  0x5c   : > { %748 = vmatprep.subr.bf16.mxu0 %v1280_v33  ;;  %886 = vmatprep.subr.bf16.mxu1 %v1280_v33 }
  0x5d   : > { %1093 = vmatprep.mubr.msk.bf16.mxu0 %vm457_vm0, %v1226_v54  ;;  %1113 = vmatprep.mubr.msk.bf16.mxu1 %vm457_vm0, %v1229_v55 }
  0x5f   : > { %749 = vmatpush1.bf16.msra.mxu0 %v1456_v40  ;;  %887 = vmatpush1.bf16.msra.mxu1 %v1456_v40 }
  0x60   : > { %750 = vmatprep.subr.bf16.mxu0 %v1280_v33  ;;  %888 = vmatprep.subr.bf16.mxu1 %v1280_v33 }
  0x62   : > { %527 = vmatmul.mubr.bf16.gmra.mrb[12].mxu0 %v1228_v56  ;;  %657 = vmatmul.mubr.bf16.gmra.mrb[12].mxu1 %v1231_v57 }
  0x63   : > { %751 = vmatpush1.bf16.msra.mxu0 %v1465_v41  ;;  %889 = vmatpush1.bf16.msra.mxu1 %v1465_v41 }
  0x64   : > { %752 = vmatprep.subr.bf16.mxu0 %v1280_v33  ;;  %890 = vmatprep.subr.bf16.mxu1 %v1280_v33 }
  0x65   : > { %1130 = vmatprep.mubr.msk.bf16.mxu0 %vm457_vm0, %v1234_v58  ;;  %1150 = vmatprep.mubr.msk.bf16.mxu1 %vm457_vm0, %v1237_v59 }
  0x67   : > { %753 = vmatpush1.bf16.msra.mxu0 %v1474_v42  ;;  %891 = vmatpush1.bf16.msra.mxu1 %v1474_v42 }
  0x68   : > { %754 = vmatprep.subr.bf16.mxu0 %v1280_v33  ;;  %892 = vmatprep.subr.bf16.mxu1 %v1280_v33 }
  0x6b   : > { %755 = vmatpush1.bf16.msra.mxu0 %v1483_v43  ;;  %893 = vmatpush1.bf16.msra.mxu1 %v1483_v43 }
  0x6e   : > { %771 = vmatmul.mubr.bf16.vlgmr.msra.gmra.mrb[16].mxu0 %v1232_v60  ;;  %909 = vmatmul.mubr.bf16.vlgmr.msra.gmra.mrb[16].mxu1 %v1235_v61 }
  0x6f   : > { %1131 = vmatprep.mubr.msk.bf16.mxu0 %vm457_vm0, %v1238_v62  ;;  %1151 = vmatprep.mubr.msk.bf16.mxu1 %vm457_vm0, %v1240_v63 }
  0x76   : > { %779 = vmatmul.mubr.bf16.gmra.mrb[20].mxu0 %v1242_v0  ;;  %917 = vmatmul.mubr.bf16.gmra.mrb[20].mxu1 %v1243_v1 }
  0x77   : > { %1132 = vmatprep.mubr.msk.bf16.mxu0 %vm457_vm0, %v1244_v2  ;;  %1152 = vmatprep.mubr.msk.bf16.mxu1 %vm457_vm0, %v1246_v3 }
  0x7e   : > { %787 = vmatmul.mubr.bf16.gmra.mrb[24].mxu0 %v1248_v4  ;;  %925 = vmatmul.mubr.bf16.gmra.mrb[24].mxu1 %v1249_v5 }
  0x7f   : > { %1133 = vmatprep.mubr.msk.bf16.mxu0 %vm457_vm0, %v1250_v6  ;;  %1153 = vmatprep.mubr.msk.bf16.mxu1 %vm457_vm0, %v1252_v7 }
  0x86   : > { %795 = vmatmul.mubr.bf16.gmra.mrb[28].mxu0 %v1254_v8  ;;  %933 = vmatmul.mubr.bf16.gmra.mrb[28].mxu1 %v1255_v9 }
 0x11d   : > { %v504_v11 = vpop.f32.mrb[0].mxu0  ;;  %v634_v12 = vpop.f32.mrb[0].mxu1 }
 0x11e   : > { %v505_v13 = vadd.f32 %v1570_v10, %v504_v11  ;;  %v635_v14 = vadd.f32 %v1570_v10, %v634_v12  ;;  %v506_v15 = vpop.f32.mrb[1].mxu0  ;;  %v636_v16 = vpop.f32.mrb[1].mxu1 }
 0x11f   : > { %v507_v17 = vpop.f32.mrb[2].mxu0  ;;  %v637_v18 = vpop.f32.mrb[2].mxu1 }
 0x120   : > { %v535_v19 = vmax.f32 %v505_v13, 0.0  ;;  %v665_v20 = vmax.f32 %v635_v14, 0.0  ;;  %v508_v21 = vadd.f32 %v1570_v10, %v507_v17  ;;  %v638_v22 = vadd.f32 %v1570_v10, %v637_v18  ;;  %v509_v23 = vpop.f32.mrb[3].mxu0  ;;  %v639_v24 = vpop.f32.mrb[3].mxu1 }
 0x122   : > { %v1576_v25 = vmax.f32 %v535_v19, %v665_v20  ;;  %v536_v26 = vmax.f32 %v508_v21, 0.0  ;;  %v666_v27 = vmax.f32 %v638_v22, 0.0 }
 0x124   : > { %v1578_v28 = vmax.f32 %v536_v26, %v666_v27 }
 0x125   : > { %v512_v29 = vpop.f32.mrb[4].mxu0  ;;  %v642_v30 = vpop.f32.mrb[4].mxu1 }
 0x126   : > { %v513_v31 = vadd.f32 %v1570_v10, %v512_v29  ;;  %v514_v32 = vpop.f32.mrb[5].mxu0  ;;  %v643_v33 = vadd.f32 %v1570_v10, %v642_v30  ;;  %v644_v34 = vpop.f32.mrb[5].mxu1 }
 0x127   : > { %v515_v35 = vpop.f32.mrb[6].mxu0  ;;  %v645_v36 = vpop.f32.mrb[6].mxu1 }
 0x128   : > { %v537_v37 = vmax.f32 %v513_v31, 0.0  ;;  %v667_v38 = vmax.f32 %v643_v33, 0.0  ;;  %v516_v39 = vadd.f32 %v1570_v10, %v515_v35  ;;  %v517_v40 = vpop.f32.mrb[7].mxu0  ;;  %v646_v41 = vadd.f32 %v1570_v10, %v645_v36  ;;  %v647_v42 = vpop.f32.mrb[7].mxu1 }
 0x12a   : > { %v1584_v43 = vmax.f32 %v537_v37, %v667_v38  ;;  %v538_v44 = vmax.f32 %v516_v39, 0.0  ;;  %v668_v45 = vmax.f32 %v646_v41, 0.0 }
 0x12c   : > { %v1586_v46 = vmax.f32 %v538_v44, %v668_v45 }
 0x12d   : > { %v520_v47 = vpop.f32.mrb[8].mxu0  ;;  %v650_v48 = vpop.f32.mrb[8].mxu1 }
 0x12e   : > { %v521_v49 = vadd.f32 %v1570_v10, %v520_v47  ;;  %v522_v50 = vpop.f32.mrb[9].mxu0  ;;  %v651_v51 = vadd.f32 %v1570_v10, %v650_v48  ;;  %v652_v52 = vpop.f32.mrb[9].mxu1 }
 0x12f   : > { %v523_v53 = vpop.f32.mrb[10].mxu0  ;;  %v653_v54 = vpop.f32.mrb[10].mxu1 }
 0x130   : > { %v539_v55 = vmax.f32 %v521_v49, 0.0  ;;  %v669_v56 = vmax.f32 %v651_v51, 0.0  ;;  %v524_v57 = vadd.f32 %v1570_v10, %v523_v53  ;;  %v525_v58 = vpop.f32.mrb[11].mxu0  ;;  %v654_v59 = vadd.f32 %v1570_v10, %v653_v54  ;;  %v655_v60 = vpop.f32.mrb[11].mxu1 }
 0x132   : > { %v1592_v61 = vmax.f32 %v539_v55, %v669_v56  ;;  %v540_v62 = vmax.f32 %v524_v57, 0.0  ;;  %v670_v63 = vmax.f32 %v654_v59, 0.0 }
 0x134   : > { %v1594_v0 = vmax.f32 %v540_v62, %v670_v63 }
 0x135   : > { %v528_v1 = vpop.f32.mrb[12].mxu0  ;;  %v658_v2 = vpop.f32.mrb[12].mxu1 }
 0x136   : > { %v529_v3 = vadd.f32 %v1570_v10, %v528_v1  ;;  %v530_v4 = vpop.f32.mrb[13].mxu0  ;;  %v659_v5 = vadd.f32 %v1570_v10, %v658_v2  ;;  %v660_v6 = vpop.f32.mrb[13].mxu1 }
 0x137   : > { %v531_v7 = vpop.f32.mrb[14].mxu0  ;;  %v661_v8 = vpop.f32.mrb[14].mxu1 }
 0x138   : > { %v541_v9 = vmax.f32 %v529_v3, 0.0  ;;  %v671_v11 = vmax.f32 %v659_v5, 0.0  ;;  %v532_v12 = vadd.f32 %v1570_v10, %v531_v7  ;;  %v533_v13 = vpop.f32.mrb[15].mxu0  ;;  %v662_v14 = vadd.f32 %v1570_v10, %v661_v8  ;;  %v663_v15 = vpop.f32.mrb[15].mxu1 }
 0x13a   : > { %v1600_v16 = vmax.f32 %v541_v9, %v671_v11  ;;  %v542_v17 = vmax.f32 %v532_v12, 0.0  ;;  %v672_v18 = vmax.f32 %v662_v14, 0.0 }
 0x13c   : > { %v1604_v19 = vmax.f32 %v542_v17, %v672_v18 }
 0x141   : > { %v772_v20 = vpop.f32.mrb[16].mxu0  ;;  %v910_v21 = vpop.f32.mrb[16].mxu1 }
 0x142   : > { %v773_v22 = vadd.f32 %v1570_v10, %v772_v20  ;;  %v911_v23 = vadd.f32 %v1570_v10, %v910_v21  ;;  %v774_v24 = vpop.f32.mrb[17].mxu0  ;;  %v912_v26 = vpop.f32.mrb[17].mxu1 }
 0x143   : > { %v775_v27 = vpop.f32.mrb[18].mxu0  ;;  %v913_v29 = vpop.f32.mrb[18].mxu1 }
 0x144   : > { %v803_v30 = vmax.f32 %v773_v22, 0.0  ;;  %v941_v31 = vmax.f32 %v911_v23, 0.0  ;;  %v776_v32 = vadd.f32 %v1570_v10, %v775_v27  ;;  %v914_v33 = vadd.f32 %v1570_v10, %v913_v29  ;;  %v777_v34 = vpop.f32.mrb[19].mxu0  ;;  %v915_v35 = vpop.f32.mrb[19].mxu1 }
 0x146   : > { %v811_v36 = vmax.f32 %v1576_v25, %v803_v30  ;;  %v804_v37 = vmax.f32 %v776_v32, 0.0  ;;  %v942_v40 = vmax.f32 %v914_v33, 0.0 }
 0x148   : > { %v949_v38 = vmax.f32 %v811_v36, %v941_v31  ;;  %v812_v39 = vmax.f32 %v1578_v28, %v804_v37 }
 0x149   : > { %v780_v41 = vpop.f32.mrb[20].mxu0  ;;  %v918_v42 = vpop.f32.mrb[20].mxu1 }
 0x14a   : > { %v1166_v44 = vpack.c.bf16 %v949_v38, %v949_v38  ;;  %v950_v45 = vmax.f32 %v812_v39, %v942_v40  ;;  %v781_v25 = vadd.f32 %v1570_v10, %v780_v41  ;;  %v919_v47 = vadd.f32 %v1570_v10, %v918_v42  ;;  %v782_v48 = vpop.f32.mrb[21].mxu0  ;;  %v920_v49 = vpop.f32.mrb[21].mxu1 }
 0x14b   : > { %v783_v28 = vpop.f32.mrb[22].mxu0  ;;  %v921_v50 = vpop.f32.mrb[22].mxu1 }
 0x14c   : > { %990 = vst.msk [vmem:[%s1615_s30] sm:$0xf] %vm989_vm1, %v1166_v44  ;;  %v1167_v51 = vpack.c.bf16 %v950_v45, %v950_v45  ;;  %v805_v52 = vmax.f32 %v781_v25, 0.0  ;;  %v943_v53 = vmax.f32 %v919_v47, 0.0  ;;  %v784_v54 = vadd.f32 %v1570_v10, %v783_v28  ;;  %v785_v55 = vpop.f32.mrb[23].mxu0  ;;  %v923_v56 = vpop.f32.mrb[23].mxu1 }
 0x14d   : > { %v922_v57 = vadd.f32 %v1570_v10, %v921_v50 }
 0x14e   : > { %991 = vst.msk [vmem:[%s1615_s30 + $0x4] sm:$0xf] %vm989_vm1, %v1167_v51  ;;  %v813_v58 = vmax.f32 %v1584_v43, %v805_v52  ;;  %v806_v59 = vmax.f32 %v784_v54, 0.0 }
 0x14f   : > { %v944_v63 = vmax.f32 %v922_v57, 0.0 }
 0x150   : > { %v951_v60 = vmax.f32 %v813_v58, %v943_v53  ;;  %v814_v62 = vmax.f32 %v1586_v46, %v806_v59 }
 0x151   : > { %v788_v1 = vpop.f32.mrb[24].mxu0  ;;  %v926_v2 = vpop.f32.mrb[24].mxu1 }
 0x152   : > { %v1168_v3 = vpack.c.bf16 %v951_v60, %v951_v60  ;;  %v952_v4 = vmax.f32 %v814_v62, %v944_v63  ;;  %v789_v5 = vadd.f32 %v1570_v10, %v788_v1  ;;  %v927_v6 = vadd.f32 %v1570_v10, %v926_v2  ;;  %v790_v7 = vpop.f32.mrb[25].mxu0  ;;  %v928_v8 = vpop.f32.mrb[25].mxu1 }
 0x153   : > { %v791_v9 = vpop.f32.mrb[26].mxu0  ;;  %v929_v11 = vpop.f32.mrb[26].mxu1 }
 0x154   : > { %992 = vst.msk [vmem:[%s1615_s30 + $0x8] sm:$0xf] %vm989_vm1, %v1168_v3  ;;  %v1169_v43 = vpack.c.bf16 %v952_v4, %v952_v4  ;;  %v807_v12 = vmax.f32 %v789_v5, 0.0  ;;  %v945_v13 = vmax.f32 %v927_v6, 0.0  ;;  %v792_v46 = vadd.f32 %v1570_v10, %v791_v9  ;;  %v793_v14 = vpop.f32.mrb[27].mxu0  ;;  %v931_v15 = vpop.f32.mrb[27].mxu1 }
 0x155   : > { %v930_v17 = vadd.f32 %v1570_v10, %v929_v11 }
 0x156   : > { %993 = vst.msk [vmem:[%s1615_s30 + $0xc] sm:$0xf] %vm989_vm1, %v1169_v43  ;;  %v815_v18 = vmax.f32 %v1592_v61, %v807_v12  ;;  %v808_v20 = vmax.f32 %v792_v46, 0.0 }
 0x157   : > { %v946_v23 = vmax.f32 %v930_v17, 0.0 }
 0x158   : > { %v953_v21 = vmax.f32 %v815_v18, %v945_v13  ;;  %v816_v22 = vmax.f32 %v1594_v0, %v808_v20 }
 0x159   : > { %v796_v24 = vpop.f32.mrb[28].mxu0  ;;  %v934_v26 = vpop.f32.mrb[28].mxu1 }
 0x15a   : > { %v1170_v27 = vpack.c.bf16 %v953_v21, %v953_v21  ;;  %v954_v29 = vmax.f32 %v816_v22, %v946_v23  ;;  %v797_v30 = vadd.f32 %v1570_v10, %v796_v24  ;;  %v935_v31 = vadd.f32 %v1570_v10, %v934_v26  ;;  %v798_v32 = vpop.f32.mrb[29].mxu0  ;;  %v936_v33 = vpop.f32.mrb[29].mxu1 }
 0x15b   : > { %v799_v34 = vpop.f32.mrb[30].mxu0  ;;  %v937_v35 = vpop.f32.mrb[30].mxu1 }
 0x15c   : > { %994 = vst.msk [vmem:[%s1615_s30 + $0x10] sm:$0xf] %vm989_vm1, %v1170_v27  ;;  %v1171_v61 = vpack.c.bf16 %v954_v29, %v954_v29  ;;  %v809_v36 = vmax.f32 %v797_v30, 0.0  ;;  %v947_v0 = vmax.f32 %v935_v31, 0.0  ;;  %v800_v37 = vadd.f32 %v1570_v10, %v799_v34  ;;  %v801_v38 = vpop.f32.mrb[31].mxu0  ;;  %v939_v39 = vpop.f32.mrb[31].mxu1 }
 0x15d   : > { %v938_v40 = vadd.f32 %v1570_v10, %v937_v35 }
 0x15e   : > { %995 = vst.msk [vmem:[%s1615_s30 + $0x14] sm:$0xf] %vm989_vm1, %v1171_v61  ;;  %v817_v41 = vmax.f32 %v1600_v16, %v809_v36  ;;  %v810_v42 = vmax.f32 %v800_v37, 0.0 }
 0x15f   : > { %v948_v25 = vmax.f32 %v938_v40, 0.0 }
 0x160   : > { %v955_v44 = vmax.f32 %v817_v41, %v947_v0  ;;  %v818_v45 = vmax.f32 %v1604_v19, %v810_v42 }
 0x162   : > { %v1172_v47 = vpack.c.bf16 %v955_v44, %v955_v44  ;;  %v956_v48 = vmax.f32 %v818_v45, %v948_v25 }
 0x164   : > { %996 = vst.msk [vmem:[%s1615_s30 + $0x18] sm:$0xf] %vm989_vm1, %v1172_v47  ;;  %v1173_v49 = vpack.c.bf16 %v956_v48, %v956_v48 }
 0x166   : > { %997 = vst.msk [vmem:[%s1615_s30 + $0x1c] sm:$0xf] %vm989_vm1, %v1173_v49 }
 0x167 PF: > { %p10_p9 = scmp.ge.s32.totalorder %s1318_s16, 4   ;;  %s1665_s12 = smov %s1274_s13 }
 0x168   : > { %s1666_s13 = smov %s1327_s19  ;;  %s1667_s14 = smov %s1318_s16 }
 0x169   :  { %12 = sbr.rel (!%p10_p9) target bundleno = 2 (0x2), region = 108 }

// kernel: _lambda_.15
= control target key start
LH: loop header
LB: loop body
LE: loop exit
PB: predicated region body
PF: predicated region fallthrough
CT: control target
= control target key end

     0   :  { %s785_s12 = smov 0   ;;  %s787_s13 = smov 0   ;;  %s869_s0 = inlined_call_operand.vmem [shape: bf16[4,32,72], index: 0, kind: input, shape index: {}]   ;;  %s870_s1 = inlined_call_operand.vmem [shape: bf16[72,4], index: 1, kind: input, shape index: {}]   ;;  %s871_s2 = inlined_call_operand.vmem [shape: f32[1,4], index: 2, kind: input, shape index: {}]   ;;  %s872_s3 = inlined_call_operand.vmem [shape: bf16[32,4], index: 3, kind: output, shape index: {}]  }
   0x1   :  { %s789_s14 = smov 0  }
   0x2 LB: > { %s586_s15 = sadd.s32 4294967295, %s761_s14   ;;  %s802_s16 = sadd.s32 1, %s761_s14   ;;  %s761_s14 = sphi %s789_s14, %s875_s14   ;;  %s757_s13 = sphi %s787_s13, %s874_s13   ;;  %s753_s12 = sphi %s785_s12, %s873_s12  }
   0x3   : > { %s17_s17 = ssub.s32 %s761_s14, %s802_s16  ;;  %s20_s18 = sadd.s32 1, %s757_s13 }
   0x4   : > { %p18_p0 = scmp.eq.s32.totalorder %s17_s17, 0  ;;  %p27_p1 = scmp.ne.s32.totalorder %s757_s13, %s753_s12 }
   0x5   : > { %p28_p2 = scmp.eq.s32.totalorder %s761_s14, 0  ;;  %p589_p4 = scmp.ge.s32.totalorder %s761_s14, 2 }
   0x6   : > { %s811_s19 = scalar_select %p18_p0, %s757_s13, %s20_s18  }
   0x7   : > { %p29_p3 = por %p28_p2, %p27_p1  ;;  %127 = sbr.rel (%p589_p4) target bundleno = 21 (0x15), region = 24 }
   0xe   : > { %130 = sbr.rel (!%p29_p3) target bundleno = 21 (0x15), region = 28  ;;  %s132_s20 = sand.u32 (%p29_p3), 1, %s757_s13  }
   0xf   : > { %s621_s21 = sshll.u32 (%p29_p3), %s761_s14, 3  ;;  %s590_s22 = sshll.u32 (%p29_p3), %s132_s20, 5 }
  0x10   : > { %s137_s25 = scalar_lea.vmem (%p29_p3), %s869_s0, %s621_s21  ;;  %s134_s26 = scalar_lea.vmem (%p29_p3), [#allocation2], %s590_s22 }
  0x11   : > { %v153_v0 = vld [vmem:[%s137_s25] sm:$0xff] (%p29_p3)   ;;  %v157_v1 = vld [vmem:[%s137_s25 + $0x10] sm:$0xff] (%p29_p3)  }
  0x12   : > { %v161_v2 = vld [vmem:[%s137_s25 + $0x20] sm:$0xff] (%p29_p3)   ;;  %154 = vst [vmem:[%s134_s26] sm:$0xff] (%p29_p3), %v153_v0   ;;  %158 = vst [vmem:[%s134_s26 + $0x8] sm:$0xff] (%p29_p3), %v157_v1   ;;  %v165_v3 = vld [vmem:[%s137_s25 + $0x30] sm:$0xff] (%p29_p3)  }
  0x13   : > { %162 = vst [vmem:[%s134_s26 + $0x10] sm:$0xff] (%p29_p3), %v161_v2   ;;  %166 = vst [vmem:[%s134_s26 + $0x18] sm:$0xff] (%p29_p3), %v165_v3  }
  0x15 PF: > { %p593_p5 = scmp.ge.s32.totalorder %s761_s14, 1  ;;  %p206_p6 = scmp.lt.s32.totalorder %s761_s14, 3 }
  0x17   : > { %p207_p7 = pnand %p593_p5, %p206_p6 }
  0x18   : > { %v730_v4 = vld [vmem:[%s870_s1] sm:$0xff] (!%p207_p7)   ;;  %v763_v5 = vmov (!%p207_p7), 0.0   ;;  %v731_v6 = vld [vmem:[%s870_s1 + $0x8] sm:$0xff] (!%p207_p7)   ;;  %s213_s4 = sand.u32 (!%p207_p7), 1, %s753_s12   ;;  %vm764_vm0 = vmmov (!%p207_p7), 0   ;;  %v732_v7 = vld [vmem:[%s870_s1 + $0x10] sm:$0xff] (!%p207_p7)  }
  0x19   : > { %210 = sbr.rel (%p207_p7) target bundleno = 290 (0x122), region = 69  ;;  %648 = vmatprep.subr.bf16.mxu0 (!%p207_p7), %v763_v5  ;;  %662 = vmatprep.subr.bf16.mxu1 (!%p207_p7), %v763_v5  ;;  %s594_s5 = sshll.u32 (!%p207_p7), %s213_s4, 5  ;;  %v733_v8 = vld [vmem:[%s870_s1 + $0x18] sm:$0xff] (!%p207_p7)   ;;  %v734_v9 = vld [vmem:[%s870_s1 + $0x20] ss:$0 sps:$4 sm:$0xff] (!%p207_p7)   ;;  %vm298_vm1 = vcmask (!%p207_p7), 1043456  }
  0x1a   : > { %649 = vmatpush3.bf16.msra.mxu0 (!%p207_p7), %v730_v4  ;;  %663 = vmatpush3.bf16.msra.mxu1 (!%p207_p7), %v730_v4  ;;  %s833_s8 = scalar_lea.vmem (!%p207_p7), [#allocation2], %s594_s5  ;;  %v300_v10 = vsel (!%p207_p7), %vm298_vm1, %v734_v9, 0  ;;  %vm294_vm2 = vcmask (!%p207_p7), 588800   ;;  %v597_v15 = vld [vmem:[%s871_s2] ss:$0 sm:$0xff] (!%p207_p7)  ;;  %s595_s20 = sshll.u32 (!%p207_p7), %s586_s15, 1 }
  0x1b   : > { %650 = vmatprep.subr.bf16.mxu0 (!%p207_p7), %v763_v5  ;;  %664 = vmatprep.subr.bf16.mxu1 (!%p207_p7), %v763_v5  ;;  %v735_v11 = vld [vmem:[%s833_s8] sm:$0xff] (!%p207_p7)   ;;  %v736_v12 = vld [vmem:[%s833_s8 + $0x8] sm:$0xff] (!%p207_p7)   ;;  %v737_v13 = vld [vmem:[%s833_s8 + $0x10] sm:$0xff] (!%p207_p7)   ;;  %p238_p8 = scmp.lt.s32.totalorder (!%p207_p7), %s595_s20, 3  ;;  %vm521_vm3 = vcmask (!%p207_p7), 27648  }
  0x1c   : > { %658 = vmatprep.mubr.msk.bf16.mxu0 (!%p207_p7), %vm764_vm0, %v763_v5  ;;  %672 = vmatprep.mubr.msk.bf16.mxu1 (!%p207_p7), %vm764_vm0, %v763_v5  ;;  %v738_v14 = vld [vmem:[%s833_s8 + $0x18] sm:$0xff] (!%p207_p7)  }
  0x1e   : > { %651 = vmatpush3.bf16.msra.mxu0 (!%p207_p7), %v731_v6  ;;  %665 = vmatpush3.bf16.msra.mxu1 (!%p207_p7), %v731_v6 }
  0x1f   : > { %652 = vmatprep.subr.bf16.mxu0 (!%p207_p7), %v763_v5  ;;  %666 = vmatprep.subr.bf16.mxu1 (!%p207_p7), %v763_v5 }
  0x20   : > { %s877_s20 = smov (!%p238_p8, %s595_s20), 3 }
  0x21   : > { %s596_s21 = sshll.u32 %s877_s20, 2 }
  0x22   : > { %653 = vmatpush3.bf16.msra.mxu0 %v732_v7  ;;  %667 = vmatpush3.bf16.msra.mxu1 %v732_v7  ;;  %s241_s22 = scalar_lea.vmem %s872_s3, %s596_s21 }
  0x23   : > { %654 = vmatprep.subr.bf16.mxu0 %v763_v5  ;;  %668 = vmatprep.subr.bf16.mxu1 %v763_v5 }
  0x26   : > { %655 = vmatpush3.bf16.msra.mxu0 %v733_v8  ;;  %669 = vmatpush3.bf16.msra.mxu1 %v733_v8 }
  0x27   : > { %656 = vmatprep.subr.bf16.mxu0 %v763_v5  ;;  %670 = vmatprep.subr.bf16.mxu1 %v763_v5 }
  0x2a   : > { %657 = vmatpush3.bf16.msra.mxu0 %v300_v10  ;;  %671 = vmatpush3.bf16.msra.mxu1 %v300_v10 }
  0x2b   : > { %676 = vmatprep.subr.bf16.mxu0 %v763_v5  ;;  %690 = vmatprep.subr.bf16.mxu1 %v763_v5 }
  0x2d   : > { %659 = vmatmul.mubr.msk.bf16.vlgmr.msra.gmra.mrb[0].mxu0 %vm294_vm2, %v735_v11  ;;  %673 = vmatmul.mubr.msk.bf16.vlgmr.msra.gmra.mrb[0].mxu1 %vm294_vm2, %v736_v12 }
  0x2e   : > { %677 = vmatpush3.bf16.msra.mxu0 %v730_v4  ;;  %691 = vmatpush3.bf16.msra.mxu1 %v730_v4 }
  0x2f   : > { %678 = vmatprep.subr.bf16.mxu0 %v763_v5  ;;  %692 = vmatprep.subr.bf16.mxu1 %v763_v5 }
  0x30   : > { %686 = vmatprep.mubr.msk.bf16.mxu0 %vm764_vm0, %v763_v5  ;;  %700 = vmatprep.mubr.msk.bf16.mxu1 %vm764_vm0, %v763_v5 }
  0x32   : > { %679 = vmatpush3.bf16.msra.mxu0 %v731_v6  ;;  %693 = vmatpush3.bf16.msra.mxu1 %v731_v6 }
  0x33   : > { %680 = vmatprep.subr.bf16.mxu0 %v763_v5  ;;  %694 = vmatprep.subr.bf16.mxu1 %v763_v5 }
  0x36   : > { %681 = vmatpush3.bf16.msra.mxu0 %v732_v7  ;;  %695 = vmatpush3.bf16.msra.mxu1 %v732_v7 }
  0x37   : > { %682 = vmatprep.subr.bf16.mxu0 %v763_v5  ;;  %696 = vmatprep.subr.bf16.mxu1 %v763_v5 }
  0x3a   : > { %683 = vmatpush3.bf16.msra.mxu0 %v733_v8  ;;  %697 = vmatpush3.bf16.msra.mxu1 %v733_v8 }
  0x3b   : > { %684 = vmatprep.subr.bf16.mxu0 %v763_v5  ;;  %698 = vmatprep.subr.bf16.mxu1 %v763_v5 }
  0x3e   : > { %685 = vmatpush3.bf16.msra.mxu0 %v300_v10  ;;  %699 = vmatpush3.bf16.msra.mxu1 %v300_v10 }
  0x41   : > { %687 = vmatmul.mubr.msk.bf16.vlgmr.msra.gmra.mrb[4].mxu0 %vm294_vm2, %v737_v13  ;;  %701 = vmatmul.mubr.msk.bf16.vlgmr.msra.gmra.mrb[4].mxu1 %vm294_vm2, %v738_v14 }
 0x100   : > { %v336_v16 = vpop.f32.mrb[0].mxu0  ;;  %v390_v17 = vpop.f32.mrb[0].mxu1 }
 0x101   : > { %v337_v18 = vadd.f32 %v597_v15, %v336_v16  ;;  %v391_v19 = vadd.f32 %v597_v15, %v390_v17  ;;  %v660_v20 = vpop.f32.mrb[1].mxu0  ;;  %v674_v21 = vpop.f32.mrb[1].mxu1 }
 0x102   : > { %v339_v22 = vpop.f32.mrb[2].mxu0  ;;  %v393_v23 = vpop.f32.mrb[2].mxu1 }
 0x103   : > { %v343_v24 = vmax.f32 %v337_v18, 0.0  ;;  %v397_v25 = vmax.f32 %v391_v19, 0.0  ;;  %v340_v26 = vadd.f32 %v597_v15, %v339_v22  ;;  %v394_v27 = vadd.f32 %v597_v15, %v393_v23  ;;  %v661_v28 = vpop.f32.mrb[3].mxu0  ;;  %v675_v29 = vpop.f32.mrb[3].mxu1 }
 0x105   : > { %v399_v30 = vmax.f32 %v343_v24, %v397_v25  ;;  %v344_v31 = vmax.f32 %v340_v26, 0.0  ;;  %v398_v32 = vmax.f32 %v394_v27, 0.0 }
 0x107   : > { %v400_v33 = vmax.f32 %v344_v31, %v398_v32 }
 0x114   : > { %v446_v34 = vpop.f32.mrb[4].mxu0  ;;  %v502_v35 = vpop.f32.mrb[4].mxu1 }
 0x115   : > { %v447_v36 = vadd.f32 %v597_v15, %v446_v34  ;;  %v503_v37 = vadd.f32 %v597_v15, %v502_v35  ;;  %v688_v38 = vpop.f32.mrb[5].mxu0  ;;  %v702_v39 = vpop.f32.mrb[5].mxu1 }
 0x116   : > { %v449_v40 = vpop.f32.mrb[6].mxu0  ;;  %v505_v41 = vpop.f32.mrb[6].mxu1 }
 0x117   : > { %v453_v42 = vmax.f32 %v447_v36, 0.0  ;;  %v509_v43 = vmax.f32 %v503_v37, 0.0  ;;  %v450_v44 = vadd.f32 %v597_v15, %v449_v40  ;;  %v506_v45 = vadd.f32 %v597_v15, %v505_v41  ;;  %v689_v46 = vpop.f32.mrb[7].mxu0  ;;  %v703_v47 = vpop.f32.mrb[7].mxu1 }
 0x119   : > { %v455_v48 = vmax.f32 %v399_v30, %v453_v42  ;;  %v454_v49 = vmax.f32 %v450_v44, 0.0  ;;  %v510_v52 = vmax.f32 %v506_v45, 0.0 }
 0x11b   : > { %v511_v50 = vmax.f32 %v455_v48, %v509_v43  ;;  %v456_v51 = vmax.f32 %v400_v33, %v454_v49 }
 0x11d   : > { %v622_v53 = vpack.c.bf16 %v511_v50, %v511_v50  ;;  %v512_v54 = vmax.f32 %v456_v51, %v510_v52 }
 0x11f   : > { %522 = vst.msk [vmem:[%s241_s22] sm:$0xf] %vm521_vm3, %v622_v53  ;;  %v623_v55 = vpack.c.bf16 %v512_v54, %v512_v54 }
 0x121   : > { %523 = vst.msk [vmem:[%s241_s22 + $0x4] sm:$0xf] %vm521_vm3, %v623_v55 }
 0x122 PF: > { %p10_p9 = scmp.ge.s32.totalorder %s802_s16, 4   ;;  %s873_s12 = smov %s757_s13 }
 0x123   : > { %s874_s13 = smov %s811_s19  ;;  %s875_s14 = smov %s802_s16 }
 0x124   :  { %12 = sbr.rel (!%p10_p9) target bundleno = 2 (0x2), region = 111 }

// kernel: _lambda_.22
= control target key start
LH: loop header
LB: loop body
LE: loop exit
PB: predicated region body
PF: predicated region fallthrough
CT: control target
= control target key end

     0   :  { %v138_v1 = vmov 0.0   ;;  %vm139_vm0 = vmmov 0   ;;  %vm29_vm1 = vcmask 523264   ;;  %vm75_vm2 = vcmask 253952   ;;  %s186_s0 = inlined_call_operand.vmem [shape: bf16[2,1,1,9,32], index: 0, kind: input, shape index: {}, may-alias: {0,4}]   ;;  %s187_s1 = inlined_call_operand.vmem [shape: bf16[1,2,64], index: 1, kind: input, shape index: {}]   ;;  %s188_s2 = inlined_call_operand.vmem [shape: bf16[64,32], index: 2, kind: input, shape index: {}]   ;;  %s189_s3 = inlined_call_operand.vmem [shape: f32[1,32], index: 3, kind: input, shape index: {}]   ;;  %s190_s4 = inlined_call_operand.vmem [shape: bf16[2,1,1,9,32], index: 4, kind: output, shape index: {}, may-alias: {0,4}]  }
   0x1   :  { %v17_v0 = vld [vmem:[%s188_s2] sm:$0xff]  ;;  %124 = vmatprep.subr.bf16.mxu0 %v138_v1  ;;  %132 = vmatprep.mubr.msk.bf16.mxu0 %vm139_vm0, %v138_v1  ;;  %v18_v2 = vld [vmem:[%s188_s2 + $0x8] sm:$0xff]  ;;  %v19_v3 = vld [vmem:[%s188_s2 + $0x10] sm:$0xff] }
   0x2   :  { %125 = vmatpush3.bf16.msra.mxu0 %v17_v0  ;;  %v20_v4 = vld [vmem:[%s188_s2 + $0x18] sm:$0xff]  ;;  %v22_v5 = vld [vmem:[%s187_s1] sm:$0x1] }
   0x3   :  { %126 = vmatprep.subr.bf16.mxu0 %v138_v1  ;;  %v116_v6 = vld [vmem:[%s189_s3] ss:$0 sm:$0xff] }
   0x6   :  { %127 = vmatpush3.bf16.msra.mxu0 %v18_v2 }
   0x7   :  { %128 = vmatprep.subr.bf16.mxu0 %v138_v1 }
   0xa   :  { %129 = vmatpush3.bf16.msra.mxu0 %v19_v3 }
   0xb   :  { %130 = vmatprep.subr.bf16.mxu0 %v138_v1 }
   0xe   :  { %131 = vmatpush3.bf16.msra.mxu0 %v20_v4 }
  0x11   :  { %133 = vmatmul.mubr.msk.bf16.vlgmr.msra.gmra.mrb[0].mxu0 %vm29_vm1, %v22_v5 }
  0xe4   :  { %v67_v7 = vpop.f32.mrb[0].mxu0 }
  0xe5   :  { %v68_v8 = vadd.f32 %v116_v6, %v67_v7  ;;  %v134_v9 = vpop.f32.mrb[1].mxu0 }
  0xe6   :  { %v70_v10 = vpop.f32.mrb[2].mxu0 }
  0xe7   :  { %v73_v11 = vmax.f32 %v68_v8, 0.0  ;;  %v135_v12 = vpop.f32.mrb[3].mxu0 }
  0xe9   :  { %v74_v13 = vpack.c.bf16 %v73_v11, %v73_v11 }
  0xeb   :  { %76 = vst.msk [vmem:[#allocation2] sm:$0x1] %vm75_vm2, %v74_v13 }
  0xf2   :  { %v94_v14 = vld [vmem:[#allocation2] sm:$0x1] }
  0xf3   :  { %118 = vst [vmem:[%s190_s4 + $0x4] sm:$0x1] %v94_v14 }

// kernel: _lambda_.16
= control target key start
LH: loop header
LB: loop body
LE: loop exit
PB: predicated region body
PF: predicated region fallthrough
CT: control target
= control target key end

     0   :  { %v370_v1 = vmov 0.0   ;;  %vm371_vm0 = vmmov 0   ;;  %v372_v6 = vmov 1966171168   ;;  %v71_v8 = vlaneseq  ;;  %s456_s1 = inlined_call_operand.vmem [shape: bf16[288,16], index: 1, kind: input, shape index: {}]   ;;  %s457_s0 = inlined_call_operand.vmem [shape: bf16[1,2,288], index: 0, kind: input, shape index: {}]   ;;  %s458_s2 = inlined_call_operand.vmem [shape: f32[1,16], index: 2, kind: input, shape index: {}]   ;;  %s459_s3 = inlined_call_operand.vmem [shape: bf16[2,16], index: 3, kind: output, shape index: {}]  }
   0x1   :  { %v350_v0 = vld [vmem:[%s456_s1 + $0x40] sm:$0xff]   ;;  %339 = vmatprep.subr.bf16.mxu1 %v370_v1  ;;  %343 = vmatprep.mubr.msk.bf16.mxu1 %vm371_vm0, %v370_v1  ;;  %v352_v3 = vld [vmem:[%s456_s1 + $0x48] sm:$0xff]   ;;  %v354_v5 = vld [vmem:[%s456_s1 + $0x50] sm:$0xff]   ;;  %v69_v7 = vunpack.c.l.s4 %v372_v6  ;;  %vm193_vm1 = vcmask 261120   ;;  %vm286_vm3 = vcmask 122880  }
   0x2   :  { %v351_v2 = vld [vmem:[%s456_s1] sm:$0xff]   ;;  %314 = vmatprep.subr.bf16.mxu0 %v350_v0  ;;  %v353_v4 = vld [vmem:[%s456_s1 + $0x8] sm:$0xff]   ;;  %v355_v9 = vld [vmem:[%s456_s1 + $0x10] sm:$0xff]   ;;  %v72_v12 = vshrl.u32 %v71_v8, 7 }
   0x3   :  { %315 = vmatpush3.bf16.msra.mxu0 %v351_v2  ;;  %v356_v10 = vld [vmem:[%s456_s1 + $0x58] sm:$0xff]   ;;  %v70_v11 = vunpack.c.0.s8 %v69_v7  ;;  %v358_v14 = vld [vmem:[%s456_s1 + $0x60] sm:$0xff]   ;;  %v360_v18 = vld [vmem:[%s456_s1 + $0x68] sm:$0xff]  }
   0x4   :  { %316 = vmatprep.subr.bf16.mxu0 %v352_v3  ;;  %v357_v13 = vld [vmem:[%s456_s1 + $0x18] sm:$0xff]   ;;  %v364_v15 = vld [vmem:[%s456_s1 + $0x80] sm:$0xff]   ;;  %v367_v21 = vld [vmem:[%s456_s1 + $0x88] sm:$0xff]  }
   0x5   :  { %v73_v16 = vsub.s32 %v70_v11, %v72_v12  ;;  %v359_v17 = vld [vmem:[%s456_s1 + $0x20] sm:$0xff]   ;;  %340 = vmatpush3.bf16.msra.mxu1 %v364_v15  ;;  %v361_v23 = vld [vmem:[%s456_s1 + $0x28] sm:$0xff]   ;;  %v362_v24 = vld [vmem:[%s456_s1 + $0x70] sm:$0xff]  }
   0x6   :  { %341 = vmatprep.subr.bf16.mxu1 %v370_v1  ;;  %v293_v19 = vld.sshfl [vmem:[%s457_s0] sm:$0x13 pattern:$0x75316420]  ;;  %v363_v27 = vld [vmem:[%s456_s1 + $0x30] sm:$0xff]   ;;  %v365_v28 = vld [vmem:[%s456_s1 + $0x78] sm:$0xff]  }
   0x7   :  { %317 = vmatpush3.bf16.msra.mxu0 %v353_v4  ;;  %v67_v20 = vcombine.high %v293_v19, %v293_v19  ;;  %v74_v22 = vrot.slane %v293_v19, %v73_v16  ;;  %v366_v29 = vld [vmem:[%s456_s1 + $0x38] sm:$0xff]   ;;  %v292_v36 = vld [vmem:[%s458_s2] ss:$0 sm:$0xff] }
   0x8   :  { %318 = vmatprep.subr.bf16.mxu0 %v354_v5 }
   0x9   :  { %v81_v25 = vrot.slane %v67_v20, %v73_v16  ;;  %342 = vmatpush3.bf16.msra.mxu1 %v367_v21  ;;  %v82_v26 = vcombine.high %v74_v22, %v74_v22 }
   0xb   :  { %319 = vmatpush3.bf16.msra.mxu0 %v355_v9  ;;  %229 = vmatprep.mubr.bf16.mxu0 %v81_v25 }
   0xc   :  { %320 = vmatprep.subr.bf16.mxu0 %v356_v10  ;;  %344 = vmatmul.mubr.msk.bf16.vlgmr.msra.gmra.mrb[0].mxu1 %vm193_vm1, %v82_v26 }
   0xf   :  { %321 = vmatpush3.bf16.msra.mxu0 %v357_v13 }
  0x10   :  { %322 = vmatprep.subr.bf16.mxu0 %v358_v14 }
  0x13   :  { %323 = vmatpush3.bf16.msra.mxu0 %v359_v17 }
  0x14   :  { %324 = vmatprep.subr.bf16.mxu0 %v360_v18 }
  0x17   :  { %325 = vmatpush3.bf16.msra.mxu0 %v361_v23 }
  0x18   :  { %326 = vmatprep.subr.bf16.mxu0 %v362_v24 }
  0x1b   :  { %327 = vmatpush3.bf16.msra.mxu0 %v363_v27 }
  0x1c   :  { %328 = vmatprep.subr.bf16.mxu0 %v365_v28 }
  0x1f   :  { %329 = vmatpush3.bf16.msra.mxu0 %v366_v29 }
  0x22   :  { %230 = vmatmul.mubr.bf16.vlgmr.msra.gmra.mrb[0].mxu0 %v74_v22 }
  0xdf   :  { %v271_v30 = vpop.f32.mrb[0].mxu1 }
  0xe0   :  { %v345_v31 = vpop.f32.mrb[1].mxu1 }
  0xe1   :  { %v274_v32 = vpop.f32.mrb[2].mxu1 }
  0xe2   :  { %v346_v33 = vpop.f32.mrb[3].mxu1 }
  0xf5   :  { %v330_v34 = vpop.f32.mrb[0].mxu0 }
  0xf6   :  { %v331_v35 = vpop.f32.mrb[1].mxu0 }
  0xf7   :  { %v332_v37 = vadd.f32 %v331_v35, %v330_v34  ;;  %v333_v38 = vpop.f32.mrb[2].mxu0 }
  0xf8   :  { %v334_v39 = vpop.f32.mrb[3].mxu0 }
  0xf9   :  { %v232_v40 = vadd.f32 %v332_v37, %v292_v36 }
  0xfb   :  { %v272_v41 = vadd.f32 %v271_v30, %v232_v40 }
  0xfd   :  { %v277_v42 = vmin.f32 %v272_v41, 0.0  ;;  %vm282_vm2 = vcmp.gt.f32.partialorder %v272_v41, 0.0 }
  0xff   :  { %v278_v43 = vmul.f32 1.442695, %v277_v42 }
 0x101   :  { %368 = vpow2.f32 %v278_v43 }
 0x10b   :  { %v369_v44 = vpop.eup %368 }
 0x10c   :  { %v313_v45 = vadd.f32 -1.0, %v369_v44 }
 0x10e   :  { %v281_v46 = vmul.f32 1.6732632, %v313_v45 }
 0x110   :  { %v283_v47 = vsel %vm282_vm2, %v272_v41, %v281_v46 }
 0x111   :  { %v284_v48 = vmul.f32 1.050701, %v283_v47 }
 0x113   :  { %v285_v49 = vpack.c.bf16 %v284_v48, %v284_v48 }
 0x115   :  { %287 = vst.msk [vmem:[%s459_s3] sm:$0x1] %vm286_vm3, %v285_v49 }

// kernel: _lambda_.17
= control target key start
LH: loop header
LB: loop body
LE: loop exit
PB: predicated region body
PF: predicated region fallthrough
CT: control target
= control target key end

     0   :  { %v133_v0 = vmov 0.0   ;;  %vm134_vm0 = vmmov 0   ;;  %vm47_vm1 = vcmask 1041408   ;;  %vm43_vm2 = vcmask 293888   ;;  %s173_s1 = inlined_call_operand.vmem [shape: bf16[36,32], index: 1, kind: input, shape index: {}]   ;;  %s174_s0 = inlined_call_operand.vmem [shape: bf16[1,8,36], index: 0, kind: input, shape index: {}]   ;;  %s175_s2 = inlined_call_operand.vmem [shape: f32[1,32], index: 2, kind: input, shape index: {}]   ;;  %s176_s3 = inlined_call_operand.vmem [shape: bf16[8,32], index: 3, kind: output, shape index: {}]  }
   0x1   :  { %116 = vmatprep.subr.bf16.mxu0 %v133_v0  ;;  %v128_v1 = vld [vmem:[%s173_s1] sm:$0xff]   ;;  %122 = vmatprep.mubr.msk.bf16.mxu0 %vm134_vm0, %v133_v0  ;;  %v129_v2 = vld [vmem:[%s173_s1 + $0x8] sm:$0xff]   ;;  %v130_v3 = vld [vmem:[%s173_s1 + $0x10] ss:$0 sps:$4 sm:$0x33]   ;;  %vm100_vm4 = vcmask 257024  }
   0x2   :  { %117 = vmatpush3.bf16.msra.mxu0 %v128_v1  ;;  %v49_v4 = vsel %vm47_vm1, %v130_v3, 0  ;;  %v21_v5 = vld [vmem:[%s174_s0] sm:$0xf] }
   0x3   :  { %118 = vmatprep.subr.bf16.mxu0 %v133_v0  ;;  %v106_v6 = vld [vmem:[%s175_s2] ss:$0 sm:$0xff] }
   0x6   :  { %119 = vmatpush3.bf16.msra.mxu0 %v129_v2 }
   0x7   :  { %120 = vmatprep.subr.bf16.mxu0 %v133_v0 }
   0xa   :  { %121 = vmatpush3.bf16.msra.mxu0 %v49_v4 }
   0xd   :  { %123 = vmatmul.mubr.msk.bf16.vlgmr.msra.gmra.mrb[0].mxu0 %vm43_vm2, %v21_v5 }
  0xe0   :  { %v85_v7 = vpop.f32.mrb[0].mxu0 }
  0xe1   :  { %v86_v8 = vadd.f32 %v106_v6, %v85_v7  ;;  %v124_v9 = vpop.f32.mrb[1].mxu0 }
  0xe2   :  { %v88_v10 = vpop.f32.mrb[2].mxu0 }
  0xe3   :  { %v91_v11 = vmin.f32 %v86_v8, 0.0  ;;  %v125_v12 = vpop.f32.mrb[3].mxu0  ;;  %vm96_vm3 = vcmp.gt.f32.partialorder %v86_v8, 0.0 }
  0xe5   :  { %v92_v13 = vmul.f32 1.442695, %v91_v11 }
  0xe7   :  { %131 = vpow2.f32 %v92_v13 }
  0xf1   :  { %v132_v14 = vpop.eup %131 }
  0xf2   :  { %v111_v15 = vadd.f32 -1.0, %v132_v14 }
  0xf4   :  { %v95_v16 = vmul.f32 1.6732632, %v111_v15 }
  0xf6   :  { %v97_v17 = vsel %vm96_vm3, %v86_v8, %v95_v16 }
  0xf7   :  { %v98_v18 = vmul.f32 1.050701, %v97_v17 }
  0xf9   :  { %v99_v19 = vpack.c.bf16 %v98_v18, %v98_v18 }
  0xfb   :  { %101 = vst.msk [vmem:[%s176_s3] sm:$0xf] %vm100_vm4, %v99_v19 }

// kernel: _lambda_.18
= control target key start
LH: loop header
LB: loop body
LE: loop exit
PB: predicated region body
PF: predicated region fallthrough
CT: control target
= control target key end

     0   :  { %s452_s12 = smov 0   ;;  %s494_s0 = inlined_call_operand.vmem [shape: bf16[1,32,72], index: 0, kind: input, shape index: {}]   ;;  %s495_s1 = inlined_call_operand.vmem [shape: bf16[72,64], index: 1, kind: input, shape index: {}]   ;;  %s496_s2 = inlined_call_operand.vmem [shape: f32[1,64], index: 2, kind: input, shape index: {}]   ;;  %s497_s3 = inlined_call_operand.vmem [shape: bf16[32,64], index: 3, kind: output, shape index: {}]  }
   0x1 LB: > { %s357_s13 = sadd.s32 4294967295, %s428_s12   ;;  %p361_p0 = scmp.ge.s32.totalorder %s428_s12, 1  ;;  %s428_s12 = sphi %s452_s12, %s13_s12  }
   0x2   : > { %p138_p1 = scmp.lt.s32.totalorder %s428_s12, 3 }
   0x4   : > { %p139_p2 = pnand %p361_p0, %p138_p1 }
   0x5   : > { %v412_v0 = vld [vmem:[%s495_s1] sm:$0xff] (!%p139_p2)   ;;  %v430_v1 = vmov (!%p139_p2), 0.0   ;;  %v413_v2 = vld [vmem:[%s495_s1 + $0x8] sm:$0xff] (!%p139_p2)   ;;  %vm431_vm0 = vmmov (!%p139_p2), 0   ;;  %s362_s18 = sshll.u32 (!%p139_p2), %s357_s13, 1  ;;  %v414_v3 = vld [vmem:[%s495_s1 + $0x10] sm:$0xff] (!%p139_p2)  }
   0x6   : > { %142 = sbr.rel (%p139_p2) target bundleno = 267 (0x10b), region = 32  ;;  %388 = vmatprep.subr.bf16.mxu0 (!%p139_p2), %v430_v1  ;;  %398 = vmatprep.mubr.msk.bf16.mxu0 (!%p139_p2), %vm431_vm0, %v430_v1  ;;  %p163_p3 = scmp.lt.s32.totalorder (!%p139_p2), %s362_s18, 3  ;;  %v415_v4 = vld [vmem:[%s495_s1 + $0x18] sm:$0xff] (!%p139_p2)   ;;  %v416_v5 = vld [vmem:[%s495_s1 + $0x20] ss:$0 sps:$4 sm:$0xff] (!%p139_p2)   ;;  %vm229_vm1 = vcmask (!%p139_p2), 1043456  }
   0x7   : > { %389 = vmatpush3.bf16.msra.mxu0 (!%p139_p2), %v412_v0  ;;  %v231_v6 = vsel (!%p139_p2), %vm229_vm1, %v416_v5, 0  ;;  %vm225_vm2 = vcmask (!%p139_p2), 588800   ;;  %v366_v8 = vld [vmem:[%s496_s2] ss:$0 sm:$0xff] (!%p139_p2)  ;;  %vm298_vm5 = vcmask (!%p139_p2), 519168  }
   0x8   : > { %390 = vmatprep.subr.bf16.mxu0 (!%p139_p2), %v430_v1 }
   0xb   : > { %391 = vmatpush3.bf16.msra.mxu0 (!%p139_p2), %v413_v2 }
   0xc   : > { %392 = vmatprep.subr.bf16.mxu0 (!%p139_p2), %v430_v1 }
   0xd   : > { %s499_s18 = smov (!%p163_p3, %s362_s18), 3 }
   0xe   : > { %s363_s21 = sshll.u32 %s499_s18, 2 }
   0xf   : > { %s166_s24 = scalar_lea.vmem %s494_s0, %s363_s21  ;;  %393 = vmatpush3.bf16.msra.mxu0 %v414_v3  ;;  %s172_s6 = scalar_lea.vmem %s497_s3, %s363_s21 }
  0x10   : > { %394 = vmatprep.subr.bf16.mxu0 %v430_v1  ;;  %v417_v7 = vld [vmem:[%s166_s24] sm:$0xff]  }
  0x13   : > { %395 = vmatpush3.bf16.msra.mxu0 %v415_v4 }
  0x14   : > { %396 = vmatprep.subr.bf16.mxu0 %v430_v1 }
  0x17   : > { %397 = vmatpush3.bf16.msra.mxu0 %v231_v6 }
  0x1a   : > { %399 = vmatmul.mubr.msk.bf16.vlgmr.msra.gmra.mrb[0].mxu0 %vm225_vm2, %v417_v7 }
  0xed   : > { %v267_v9 = vpop.f32.mrb[0].mxu0 }
  0xee   : > { %v268_v10 = vadd.f32 %v366_v8, %v267_v9  ;;  %v400_v11 = vpop.f32.mrb[1].mxu0 }
  0xef   : > { %v270_v12 = vpop.f32.mrb[2].mxu0 }
  0xf0   : > { %v274_v13 = vmin.f32 %v268_v10, 0.0  ;;  %v271_v14 = vadd.f32 %v366_v8, %v270_v12  ;;  %v401_v15 = vpop.f32.mrb[3].mxu0  ;;  %vm284_vm3 = vcmp.gt.f32.partialorder %v268_v10, 0.0 }
  0xf2   : > { %v276_v16 = vmul.f32 1.442695, %v274_v13  ;;  %v275_v17 = vmin.f32 %v271_v14, 0.0  ;;  %vm285_vm4 = vcmp.gt.f32.partialorder %v271_v14, 0.0 }
  0xf4   : > { %418 = vpow2.f32 %v276_v16  ;;  %v278_v18 = vmul.f32 1.442695, %v275_v17 }
  0xf6   : > { %420 = vpow2.f32 %v278_v18 }
  0xfe   : > { %v419_v19 = vpop.eup %418 }
  0xff   : > { %v374_v20 = vadd.f32 -1.0, %v419_v19 }
 0x100   : > { %v421_v21 = vpop.eup %420 }
 0x101   : > { %v282_v22 = vmul.f32 1.6732632, %v374_v20  ;;  %v375_v23 = vadd.f32 -1.0, %v421_v21 }
 0x103   : > { %v286_v24 = vsel %vm284_vm3, %v268_v10, %v282_v22  ;;  %v283_v25 = vmul.f32 1.6732632, %v375_v23 }
 0x104   : > { %v288_v26 = vmul.f32 1.050701, %v286_v24 }
 0x105   : > { %v287_v27 = vsel %vm285_vm4, %v271_v14, %v283_v25 }
 0x106   : > { %v380_v28 = vpack.c.bf16 %v288_v26, %v288_v26  ;;  %v289_v29 = vmul.f32 1.050701, %v287_v27 }
 0x108   : > { %299 = vst.msk [vmem:[%s172_s6] sm:$0xf] %vm298_vm5, %v380_v28  ;;  %v381_v30 = vpack.c.bf16 %v289_v29, %v289_v29 }
 0x10a   : > { %300 = vst.msk [vmem:[%s172_s6 + $0x4] sm:$0xf] %vm298_vm5, %v381_v30 }
 0x10b PF: > { %s13_s12 = sadd.s32 1, %s428_s12  }
 0x10c   : > { %p10_p4 = scmp.ge.s32.totalorder %s13_s12, 4  }
 0x10e   :  { %12 = sbr.rel (!%p10_p4) target bundleno = 1 (0x1), region = 62 }

// kernel: _lambda_.19
= control target key start
LH: loop header
LB: loop body
LE: loop exit
PB: predicated region body
PF: predicated region fallthrough
CT: control target
= control target key end

     0   :  { %s714_s12 = smov 0   ;;  %s794_s0 = inlined_call_operand.vmem [shape: bf16[1,128,144], index: 0, kind: input, shape index: {}]   ;;  %s795_s1 = inlined_call_operand.vmem [shape: bf16[144,128], index: 1, kind: input, shape index: {}]   ;;  %s796_s2 = inlined_call_operand.vmem [shape: f32[1,128], index: 2, kind: input, shape index: {}]   ;;  %s797_s3 = inlined_call_operand.vmem [shape: bf16[128,128], index: 3, kind: output, shape index: {}]  }
   0x1 LB: > { %s539_s13 = sadd.s32 4294967295, %s691_s12   ;;  %p543_p0 = scmp.ge.s32.totalorder %s691_s12, 1  ;;  %s691_s12 = sphi %s714_s12, %s13_s12  }
   0x2   : > { %p139_p1 = scmp.lt.s32.totalorder %s691_s12, 3 }
   0x4   : > { %p140_p2 = pnand %p543_p0, %p139_p1 }
   0x5   : > { %v648_v0 = vld [vmem:[%s795_s1] sm:$0xff] (!%p140_p2)   ;;  %v693_v1 = vmov (!%p140_p2), 0   ;;  %s544_s16 = sshll.u32 (!%p140_p2), %s539_s13, 3  ;;  %v649_v2 = vld [vmem:[%s795_s1 + $0x8] sm:$0xff] (!%p140_p2)   ;;  %v650_v3 = vld [vmem:[%s795_s1 + $0x10] sm:$0xff] (!%p140_p2)   ;;  %vm301_vm0 = vcmask (!%p140_p2), 130048  }
   0x6   : > { %143 = sbr.rel (%p140_p2) target bundleno = 292 (0x124), region = 32  ;;  %314 = vmatprep.subr.bf16.mxu0 (!%p140_p2), %v693_v1  ;;  %621 = vmatprep.subr.bf16.mxu1 (!%p140_p2), %v693_v1  ;;  %p165_p3 = scmp.lt.s32.totalorder (!%p140_p2), %s544_s16, 15  ;;  %v651_v4 = vld [vmem:[%s795_s1 + $0x18] sm:$0xff] (!%p140_p2)   ;;  %v652_v7 = vld [vmem:[%s795_s1 + $0x20] sm:$0xff] (!%p140_p2)   ;;  %v653_v8 = vld [vmem:[%s795_s1 + $0x28] sm:$0xff] (!%p140_p2)  }
   0x7   : > { %315 = vmatpush1.bf16.msra.mxu0 (!%p140_p2), %v648_v0  ;;  %630 = vmatpush1.bf16.msra.mxu1 (!%p140_p2), %v648_v0  ;;  %v654_v9 = vld [vmem:[%s795_s1 + $0x30] sm:$0xff] (!%p140_p2)   ;;  %v655_v10 = vld [vmem:[%s795_s1 + $0x38] sm:$0xff] (!%p140_p2)   ;;  %v656_v11 = vld [vmem:[%s795_s1 + $0x40] sm:$0xff] (!%p140_p2)  }
   0x8   : > { %316 = vmatprep.subr.bf16.mxu0 (!%p140_p2), %v693_v1  ;;  %622 = vmatprep.subr.bf16.mxu1 (!%p140_p2), %v693_v1  ;;  %v549_v18 = vld [vmem:[%s796_s2] ss:$0 sm:$0xff] (!%p140_p2) }
   0xb   : > { %317 = vmatpush1.bf16.msra.mxu0 (!%p140_p2), %v649_v2  ;;  %631 = vmatpush1.bf16.msra.mxu1 (!%p140_p2), %v649_v2 }
   0xc   : > { %318 = vmatprep.subr.bf16.mxu0 (!%p140_p2), %v693_v1  ;;  %623 = vmatprep.subr.bf16.mxu1 (!%p140_p2), %v693_v1 }
   0xd   : > { %s799_s16 = smov (!%p165_p3, %s544_s16), 15 }
   0xe   : > { %s589_s21 = sshll.u32 %s799_s16, 3  ;;  %s548_s13 = sshll.u32 %s799_s16, 2 }
   0xf   : > { %s737_s24 = scalar_lea.vmem %s794_s0, %s589_s21  ;;  %319 = vmatpush1.bf16.msra.mxu0 %v650_v3  ;;  %632 = vmatpush1.bf16.msra.mxu1 %v650_v3  ;;  %s175_s17 = scalar_lea.vmem %s797_s3, %s548_s13 }
  0x10   : > { %v659_v5 = vld [vmem:[%s737_s24 + $0x4] ss:$8 sps:$4 sm:$0xff]   ;;  %320 = vmatprep.subr.bf16.mxu0 %v693_v1  ;;  %624 = vmatprep.subr.bf16.mxu1 %v693_v1  ;;  %v657_v12 = vld [vmem:[%s737_s24] ss:$8 sps:$4 sm:$0xff]   ;;  %v663_v14 = vld [vmem:[%s737_s24 + $0x14] ss:$8 sps:$4 sm:$0xff]  }
  0x11   : > { %v662_v6 = vld [vmem:[%s737_s24 + $0x24] ss:$8 sps:$4 sm:$0xff]   ;;  %567 = vmatprep.mubr.msk.bf16.mxu0 %vm301_vm0, %v659_v5  ;;  %v660_v13 = vld [vmem:[%s737_s24 + $0x20] ss:$8 sps:$4 sm:$0xff]   ;;  %v665_v15 = vld [vmem:[%s737_s24 + $0x34] ss:$8 sps:$4 sm:$0xff]  }
  0x12   : > { %569 = vmatprep.mubr.msk.bf16.mxu1 %vm301_vm0, %v662_v6  ;;  %v667_v16 = vld [vmem:[%s737_s24 + $0x10] ss:$8 sps:$4 sm:$0xff]  }
  0x13   : > { %321 = vmatpush1.bf16.msra.mxu0 %v651_v4  ;;  %633 = vmatpush1.bf16.msra.mxu1 %v651_v4  ;;  %v668_v17 = vld [vmem:[%s737_s24 + $0x30] ss:$8 sps:$4 sm:$0xff]  }
  0x14   : > { %322 = vmatprep.subr.bf16.mxu0 %v693_v1  ;;  %625 = vmatprep.subr.bf16.mxu1 %v693_v1 }
  0x17   : > { %323 = vmatpush1.bf16.msra.mxu0 %v652_v7  ;;  %634 = vmatpush1.bf16.msra.mxu1 %v652_v7 }
  0x18   : > { %324 = vmatprep.subr.bf16.mxu0 %v693_v1  ;;  %626 = vmatprep.subr.bf16.mxu1 %v693_v1 }
  0x1b   : > { %325 = vmatpush1.bf16.msra.mxu0 %v653_v8  ;;  %635 = vmatpush1.bf16.msra.mxu1 %v653_v8 }
  0x1c   : > { %326 = vmatprep.subr.bf16.mxu0 %v693_v1  ;;  %627 = vmatprep.subr.bf16.mxu1 %v693_v1 }
  0x1f   : > { %327 = vmatpush1.bf16.msra.mxu0 %v654_v9  ;;  %636 = vmatpush1.bf16.msra.mxu1 %v654_v9 }
  0x20   : > { %328 = vmatprep.subr.bf16.mxu0 %v693_v1  ;;  %628 = vmatprep.subr.bf16.mxu1 %v693_v1 }
  0x23   : > { %329 = vmatpush1.bf16.msra.mxu0 %v655_v10  ;;  %637 = vmatpush1.bf16.msra.mxu1 %v655_v10 }
  0x24   : > { %330 = vmatprep.subr.bf16.mxu0 %v693_v1  ;;  %629 = vmatprep.subr.bf16.mxu1 %v693_v1 }
  0x27   : > { %331 = vmatpush1.bf16.msra.mxu0 %v656_v11  ;;  %638 = vmatpush1.bf16.msra.mxu1 %v656_v11 }
  0x2a   : > { %347 = vmatmul.mubr.bf16.vlgmr.msra.gmra.mrb[0].mxu0 %v657_v12  ;;  %363 = vmatmul.mubr.bf16.vlgmr.msra.gmra.mrb[0].mxu1 %v660_v13 }
  0x2b   : > { %568 = vmatprep.mubr.msk.bf16.mxu0 %vm301_vm0, %v663_v14  ;;  %570 = vmatprep.mubr.msk.bf16.mxu1 %vm301_vm0, %v665_v15 }
  0x32   : > { %355 = vmatmul.mubr.bf16.gmra.mrb[4].mxu0 %v667_v16  ;;  %371 = vmatmul.mubr.bf16.gmra.mrb[4].mxu1 %v668_v17 }
  0xfd   : > { %v348_v19 = vpop.f32.mrb[0].mxu0  ;;  %v364_v20 = vpop.f32.mrb[0].mxu1 }
  0xfe   : > { %v349_v21 = vadd.f32 %v549_v18, %v348_v19  ;;  %v365_v22 = vadd.f32 %v549_v18, %v364_v20  ;;  %v350_v23 = vpop.f32.mrb[1].mxu0  ;;  %v366_v24 = vpop.f32.mrb[1].mxu1 }
  0xff   : > { %v351_v25 = vpop.f32.mrb[2].mxu0  ;;  %v367_v26 = vpop.f32.mrb[2].mxu1 }
 0x100   : > { %v379_v27 = vmin.f32 %v349_v21, 0.0  ;;  %v383_v28 = vmin.f32 %v365_v22, 0.0  ;;  %v353_v29 = vpop.f32.mrb[3].mxu0  ;;  %v369_v30 = vpop.f32.mrb[3].mxu1  ;;  %v352_v31 = vadd.f32 %v549_v18, %v351_v25  ;;  %v368_v32 = vadd.f32 %v549_v18, %v367_v26 }
 0x101   : > { %vm419_vm1 = vcmp.gt.f32.partialorder %v349_v21, 0.0  ;;  %vm423_vm2 = vcmp.gt.f32.partialorder %v365_v22, 0.0 }
 0x102   : > { %v387_v33 = vmul.f32 1.442695, %v379_v27  ;;  %v395_v34 = vmul.f32 1.442695, %v383_v28  ;;  %v380_v35 = vmin.f32 %v352_v31, 0.0  ;;  %v384_v36 = vmin.f32 %v368_v32, 0.0 }
 0x103   : > { %vm420_vm3 = vcmp.gt.f32.partialorder %v352_v31, 0.0  ;;  %vm424_vm4 = vcmp.gt.f32.partialorder %v368_v32, 0.0 }
 0x104   : > { %669 = vpow2.f32 %v387_v33  ;;  %v389_v37 = vmul.f32 1.442695, %v380_v35  ;;  %v397_v38 = vmul.f32 1.442695, %v384_v36 }
 0x105   : > { %671 = vpow2.f32 %v395_v34  ;;  %v356_v39 = vpop.f32.mrb[4].mxu0  ;;  %v372_v40 = vpop.f32.mrb[4].mxu1 }
 0x106   : > { %v772_v41 = vadd.f32 %v549_v18, %v356_v39  ;;  %v774_v42 = vadd.f32 %v549_v18, %v372_v40  ;;  %v358_v43 = vpop.f32.mrb[5].mxu0  ;;  %v374_v44 = vpop.f32.mrb[5].mxu1  ;;  %673 = vpow2.f32 %v389_v37 }
 0x107   : > { %v359_v45 = vpop.f32.mrb[6].mxu0  ;;  %v375_v46 = vpop.f32.mrb[6].mxu1  ;;  %675 = vpow2.f32 %v397_v38 }
 0x108   : > { %v381_v47 = vmin.f32 %v772_v41, 0.0  ;;  %v385_v48 = vmin.f32 %v774_v42, 0.0  ;;  %v361_v49 = vpop.f32.mrb[7].mxu0  ;;  %v377_v50 = vpop.f32.mrb[7].mxu1  ;;  %v360_v51 = vadd.f32 %v549_v18, %v359_v45  ;;  %v778_v52 = vadd.f32 %v549_v18, %v375_v46 }
 0x109   : > { %vm421_vm5 = vcmp.gt.f32.partialorder %v772_v41, 0.0  ;;  %vm425_vm6 = vcmp.gt.f32.partialorder %v774_v42, 0.0 }
 0x10a   : > { %v391_v53 = vmul.f32 1.442695, %v381_v47  ;;  %v399_v54 = vmul.f32 1.442695, %v385_v48  ;;  %v382_v55 = vmin.f32 %v360_v51, 0.0  ;;  %v386_v56 = vmin.f32 %v778_v52, 0.0 }
 0x10b   : > { %vm422_vm7 = vcmp.gt.f32.partialorder %v360_v51, 0.0  ;;  %vm426_vm8 = vcmp.gt.f32.partialorder %v778_v52, 0.0 }
 0x10c   : > { %677 = vpow2.f32 %v391_v53  ;;  %v393_v57 = vmul.f32 1.442695, %v382_v55  ;;  %v401_v58 = vmul.f32 1.442695, %v386_v56 }
 0x10d   : > { %679 = vpow2.f32 %v399_v54 }
 0x10e   : > { %v670_v59 = vpop.eup %669  ;;  %681 = vpow2.f32 %v393_v57 }
 0x10f   : > { %v672_v60 = vpop.eup %671  ;;  %v571_v61 = vadd.f32 -1.0, %v670_v59  ;;  %683 = vpow2.f32 %v401_v58 }
 0x110   : > { %v575_v62 = vadd.f32 -1.0, %v672_v60  ;;  %v674_v63 = vpop.eup %673 }
 0x111   : > { %v411_v0 = vmul.f32 1.6732632, %v571_v61  ;;  %v676_v1 = vpop.eup %675  ;;  %v572_v3 = vadd.f32 -1.0, %v674_v63 }
 0x112   : > { %v415_v2 = vmul.f32 1.6732632, %v575_v62  ;;  %v576_v4 = vadd.f32 -1.0, %v676_v1 }
 0x113   : > { %v427_v5 = vsel %vm419_vm1, %v349_v21, %v411_v0  ;;  %v412_v6 = vmul.f32 1.6732632, %v572_v3 }
 0x114   : > { %v431_v7 = vsel %vm423_vm2, %v365_v22, %v415_v2  ;;  %v416_v8 = vmul.f32 1.6732632, %v576_v4  ;;  %v435_v12 = vmul.f32 1.050701, %v427_v5 }
 0x115   : > { %v428_v10 = vsel %vm420_vm3, %v352_v31, %v412_v6  ;;  %v439_v16 = vmul.f32 1.050701, %v431_v7 }
 0x116   : > { %v678_v9 = vpop.eup %677  ;;  %v436_v13 = vmul.f32 1.050701, %v428_v10  ;;  %v432_v14 = vsel %vm424_vm4, %v368_v32, %v416_v8 }
 0x117   : > { %v680_v11 = vpop.eup %679  ;;  %v573_v15 = vadd.f32 -1.0, %v678_v9  ;;  %v440_v17 = vmul.f32 1.050701, %v432_v14 }
 0x118   : > { %v577_v18 = vadd.f32 -1.0, %v680_v11  ;;  %v682_v19 = vpop.eup %681  ;;  %v601_v20 = vpack.c.bf16 %v436_v13, %v435_v12 }
 0x119   : > { %v413_v21 = vmul.f32 1.6732632, %v573_v15  ;;  %v684_v22 = vpop.eup %683  ;;  %v611_v23 = vpack.c.bf16 %v440_v17, %v439_v16  ;;  %v574_v25 = vadd.f32 -1.0, %v682_v19 }
 0x11a   : > { %v417_v24 = vmul.f32 1.6732632, %v577_v18  ;;  %602 = vst [vmem:[%s175_s17] sm:$0xff] %v601_v20   ;;  %v578_v26 = vadd.f32 -1.0, %v684_v22 }
 0x11b   : > { %619 = vst [vmem:[%s175_s17 + $0x10] sm:$0xff] %v611_v23   ;;  %v429_v27 = vsel %vm421_vm5, %v772_v41, %v413_v21  ;;  %v414_v28 = vmul.f32 1.6732632, %v574_v25 }
 0x11c   : > { %v433_v29 = vsel %vm425_vm6, %v774_v42, %v417_v24  ;;  %v418_v30 = vmul.f32 1.6732632, %v578_v26  ;;  %v437_v32 = vmul.f32 1.050701, %v429_v27 }
 0x11d   : > { %v430_v31 = vsel %vm422_vm7, %v360_v51, %v414_v28  ;;  %v441_v35 = vmul.f32 1.050701, %v433_v29 }
 0x11e   : > { %v438_v33 = vmul.f32 1.050701, %v430_v31  ;;  %v434_v34 = vsel %vm426_vm8, %v778_v52, %v418_v30 }
 0x11f   : > { %v442_v36 = vmul.f32 1.050701, %v434_v34 }
 0x120   : > { %v606_v37 = vpack.c.bf16 %v438_v33, %v437_v32 }
 0x121   : > { %v616_v38 = vpack.c.bf16 %v442_v36, %v441_v35 }
 0x122   : > { %618 = vst [vmem:[%s175_s17 + $0x8] sm:$0xff] %v606_v37  }
 0x123   : > { %620 = vst [vmem:[%s175_s17 + $0x18] sm:$0xff] %v616_v38  }
 0x124 PF: > { %s13_s12 = sadd.s32 1, %s691_s12  }
 0x125   : > { %p10_p4 = scmp.ge.s32.totalorder %s13_s12, 4  }
 0x127   :  { %12 = sbr.rel (!%p10_p4) target bundleno = 1 (0x1), region = 62 }

// kernel: _lambda_.20
= control target key start
LH: loop header
LB: loop body
LE: loop exit
PB: predicated region body
PF: predicated region fallthrough
CT: control target
= control target key end

     0   :  { %s2126_s12 = smov 0   ;;  %s2561_s0 = inlined_call_operand.vmem [shape: bf16[1,512,288], index: 0, kind: input, shape index: {}]   ;;  %s2562_s1 = inlined_call_operand.vmem [shape: bf16[288,128], index: 1, kind: input, shape index: {}]   ;;  %s2563_s2 = inlined_call_operand.vmem [shape: f32[1,128], index: 2, kind: input, shape index: {}]   ;;  %s2564_s3 = inlined_call_operand.vmem [shape: bf16[512,128], index: 3, kind: output, shape index: {}]  }
   0x1 LB: > { %s1476_s13 = sadd.s32 4294967295, %s2104_s12   ;;  %p1480_p0 = scmp.ge.s32.totalorder %s2104_s12, 1  ;;  %s2104_s12 = sphi %s2126_s12, %s13_s12  }
   0x2   : > { %p139_p1 = scmp.lt.s32.totalorder %s2104_s12, 3 }
   0x4   : > { %p140_p2 = pnand %p1480_p0, %p139_p1 }
   0x5   : > { %v1952_v0 = vld [vmem:[%s2562_s1 + $0x40] sm:$0xff] (!%p140_p2)   ;;  %s1481_s16 = sshll.u32 (!%p140_p2), %s1476_s13, 5  ;;  %v1954_v2 = vld [vmem:[%s2562_s1 + $0x48] sm:$0xff] (!%p140_p2)   ;;  %v1956_v4 = vld [vmem:[%s2562_s1 + $0x50] sm:$0xff] (!%p140_p2)   ;;  %vm633_vm0 = vcmask (!%p140_p2), 261120  }
   0x6   : > { %143 = sbr.rel (%p140_p2) target bundleno = 388 (0x184), region = 32  ;;  %v1953_v1 = vld [vmem:[%s2562_s1] sm:$0xff] (!%p140_p2)   ;;  %1761 = vmatprep.subr.bf16.mxu0 (!%p140_p2), %v1952_v0  ;;  %1927 = vmatprep.subr.bf16.mxu1 (!%p140_p2), %v1952_v0  ;;  %p165_p3 = scmp.lt.s32.totalorder (!%p140_p2), %s1481_s16, 63  ;;  %v1955_v3 = vld [vmem:[%s2562_s1 + $0x8] sm:$0xff] (!%p140_p2)   ;;  %v1957_v5 = vld [vmem:[%s2562_s1 + $0x10] sm:$0xff] (!%p140_p2)  }
   0x7   : > { %1762 = vmatpush3.bf16.msra.mxu0 (!%p140_p2), %v1953_v1  ;;  %1935 = vmatpush3.bf16.msra.mxu1 (!%p140_p2), %v1953_v1  ;;  %v1958_v6 = vld [vmem:[%s2562_s1 + $0x58] sm:$0xff] (!%p140_p2)   ;;  %v1960_v8 = vld [vmem:[%s2562_s1 + $0x60] sm:$0xff] (!%p140_p2)   ;;  %v1962_v10 = vld [vmem:[%s2562_s1 + $0x68] sm:$0xff] (!%p140_p2)  }
   0x8   : > { %1763 = vmatprep.subr.bf16.mxu0 (!%p140_p2), %v1954_v2  ;;  %1928 = vmatprep.subr.bf16.mxu1 (!%p140_p2), %v1954_v2  ;;  %v1959_v7 = vld [vmem:[%s2562_s1 + $0x18] sm:$0xff] (!%p140_p2)   ;;  %v1961_v9 = vld [vmem:[%s2562_s1 + $0x20] sm:$0xff] (!%p140_p2)   ;;  %v1963_v13 = vld [vmem:[%s2562_s1 + $0x28] sm:$0xff] (!%p140_p2)  }
   0x9   : > { %v1964_v14 = vld [vmem:[%s2562_s1 + $0x70] sm:$0xff] (!%p140_p2)   ;;  %v1966_v16 = vld [vmem:[%s2562_s1 + $0x78] sm:$0xff] (!%p140_p2)   ;;  %v1974_v18 = vld [vmem:[%s2562_s1 + $0x80] sm:$0xff] (!%p140_p2)  }
   0xa   : > { %v1965_v15 = vld [vmem:[%s2562_s1 + $0x30] sm:$0xff] (!%p140_p2)   ;;  %v1967_v17 = vld [vmem:[%s2562_s1 + $0x38] sm:$0xff] (!%p140_p2)   ;;  %v1987_v23 = vld [vmem:[%s2562_s1 + $0x88] sm:$0xff] (!%p140_p2)  }
   0xb   : > { %1764 = vmatpush3.bf16.msra.mxu0 (!%p140_p2), %v1955_v3  ;;  %1936 = vmatpush3.bf16.msra.mxu1 (!%p140_p2), %v1955_v3 }
   0xc   : > { %1765 = vmatprep.subr.bf16.mxu0 (!%p140_p2), %v1956_v4  ;;  %1929 = vmatprep.subr.bf16.mxu1 (!%p140_p2), %v1956_v4 }
   0xd   : > { %s2566_s16 = smov (!%p165_p3, %s1481_s16), 63 }
   0xe   : > { %s1943_s29 = smul.u32 12, %s2566_s16  ;;  %s1484_s5 = sshll.u32 %s2566_s16, 2 }
   0xf   : > { %1766 = vmatpush3.bf16.msra.mxu0 %v1957_v5  ;;  %1937 = vmatpush3.bf16.msra.mxu1 %v1957_v5  ;;  %s2355_s7 = scalar_lea.vmem %s2564_s3, %s1484_s5 }
  0x10   : > { %1767 = vmatprep.subr.bf16.mxu0 %v1958_v6  ;;  %1930 = vmatprep.subr.bf16.mxu1 %v1958_v6  ;;  %s2167_s9 = scalar_lea.vmem %s2561_s0, %s1943_s29 }
  0x11   : > { %v1970_v11 = vld [vmem:[%s2167_s9 + $0x4] ss:$12 sps:$4 sm:$0xff]   ;;  %v1968_v19 = vld [vmem:[%s2167_s9] ss:$12 sps:$4 sm:$0xff]   ;;  %v1975_v21 = vld [vmem:[%s2167_s9 + $0x1c] ss:$12 sps:$4 sm:$0xff]  }
  0x12   : > { %v1973_v12 = vld [vmem:[%s2167_s9 + $0x124] ss:$12 sps:$4 sm:$0xff]   ;;  %714 = vmatprep.mubr.bf16.mxu0 %v1970_v11  ;;  %v1971_v20 = vld [vmem:[%s2167_s9 + $0x120] ss:$12 sps:$4 sm:$0xff]   ;;  %v1977_v22 = vld [vmem:[%s2167_s9 + $0x13c] ss:$12 sps:$4 sm:$0xff]  }
  0x13   : > { %1768 = vmatpush3.bf16.msra.mxu0 %v1959_v7  ;;  %1938 = vmatpush3.bf16.msra.mxu1 %v1959_v7  ;;  %v1979_v24 = vld [vmem:[%s2167_s9 + $0x18] ss:$12 sps:$4 sm:$0xff]   ;;  %v1981_v26 = vld [vmem:[%s2167_s9 + $0x34] ss:$12 sps:$4 sm:$0xff]   ;;  %v1985_v28 = vld [vmem:[%s2167_s9 + $0x30] ss:$12 sps:$4 sm:$0xff]  }
  0x14   : > { %1769 = vmatprep.subr.bf16.mxu0 %v1960_v8  ;;  %1931 = vmatprep.subr.bf16.mxu1 %v1960_v8  ;;  %v1980_v25 = vld [vmem:[%s2167_s9 + $0x138] ss:$12 sps:$4 sm:$0xff]   ;;  %v1983_v27 = vld [vmem:[%s2167_s9 + $0x154] ss:$12 sps:$4 sm:$0xff]   ;;  %v1986_v29 = vld [vmem:[%s2167_s9 + $0x150] ss:$12 sps:$4 sm:$0xff]  }
  0x15   : > { %810 = vmatprep.mubr.bf16.mxu1 %v1973_v12  ;;  %v1988_v30 = vld [vmem:[%s2167_s9 + $0x4c] ss:$12 sps:$4 sm:$0xff]   ;;  %v1992_v32 = vld [vmem:[%s2167_s9 + $0x48] ss:$12 sps:$4 sm:$0xff]   ;;  %v1994_v34 = vld [vmem:[%s2167_s9 + $0x64] ss:$12 sps:$4 sm:$0xff]  }
  0x16   : > { %v1990_v31 = vld [vmem:[%s2167_s9 + $0x16c] ss:$12 sps:$4 sm:$0xff]   ;;  %v1993_v33 = vld [vmem:[%s2167_s9 + $0x168] ss:$12 sps:$4 sm:$0xff]   ;;  %v2003_v41 = vld [vmem:[%s2167_s9 + $0x50] ss:$12 sps:$4 sm:$0xff]  }
  0x17   : > { %1770 = vmatpush3.bf16.msra.mxu0 %v1961_v9  ;;  %1939 = vmatpush3.bf16.msra.mxu1 %v1961_v9  ;;  %v1996_v35 = vld [vmem:[%s2167_s9 + $0x8] ss:$12 sps:$4 sm:$0xff]   ;;  %v1997_v36 = vld [vmem:[%s2167_s9 + $0x60] ss:$12 sps:$4 sm:$0xff]   ;;  %v2001_v39 = vld [vmem:[%s2167_s9 + $0x38] ss:$12 sps:$4 sm:$0xff]  }
  0x18   : > { %1771 = vmatprep.subr.bf16.mxu0 %v1962_v10  ;;  %1932 = vmatprep.subr.bf16.mxu1 %v1962_v10  ;;  %v1998_v37 = vld [vmem:[%s2167_s9 + $0x20] ss:$12 sps:$4 sm:$0xff]   ;;  %v1999_v38 = vld [vmem:[%s2167_s9 + $0x7c] ss:$12 sps:$4 sm:$0xff]   ;;  %v2002_v40 = vld [vmem:[%s2167_s9 + $0x78] ss:$12 sps:$4 sm:$0xff]  }
  0x19   : > { %v2004_v42 = vld [vmem:[%s2167_s9 + $0x94] ss:$12 sps:$4 sm:$0xff]   ;;  %v2007_v44 = vld [vmem:[%s2167_s9 + $0x90] ss:$12 sps:$4 sm:$0xff]   ;;  %v2009_v46 = vld [vmem:[%s2167_s9 + $0xac] ss:$12 sps:$4 sm:$0xff]  }
  0x1a   : > { %v2006_v43 = vld [vmem:[%s2167_s9 + $0x68] ss:$12 sps:$4 sm:$0xff]   ;;  %v2008_v45 = vld [vmem:[%s2167_s9 + $0x80] ss:$12 sps:$4 sm:$0xff]   ;;  %v2011_v47 = vld [vmem:[%s2167_s9 + $0x98] ss:$12 sps:$4 sm:$0xff]  }
  0x1b   : > { %1772 = vmatpush3.bf16.msra.mxu0 %v1963_v13  ;;  %1940 = vmatpush3.bf16.msra.mxu1 %v1963_v13  ;;  %v2012_v48 = vld [vmem:[%s2167_s9 + $0xa8] ss:$12 sps:$4 sm:$0xff]   ;;  %v2013_v49 = vld [vmem:[%s2167_s9 + $0xb0] ss:$12 sps:$4 sm:$0xff]   ;;  %v2017_v52 = vld [vmem:[%s2167_s9 + $0xc0] ss:$12 sps:$4 sm:$0xff]  }
  0x1c   : > { %1773 = vmatprep.subr.bf16.mxu0 %v1964_v14  ;;  %1933 = vmatprep.subr.bf16.mxu1 %v1964_v14  ;;  %v2014_v50 = vld [vmem:[%s2167_s9 + $0xc4] ss:$12 sps:$4 sm:$0xff]   ;;  %v2016_v51 = vld [vmem:[%s2167_s9 + $0xc8] ss:$12 sps:$4 sm:$0xff]   ;;  %v2018_v53 = vld [vmem:[%s2167_s9 + $0xe0] ss:$12 sps:$4 sm:$0xff]  }
  0x1d   : > { %v2019_v54 = vld [vmem:[%s2167_s9 + $0xdc] ss:$12 sps:$4 sm:$0xff]   ;;  %v2021_v55 = vld [vmem:[%s2167_s9 + $0xf8] ss:$12 sps:$4 sm:$0xff]   ;;  %v2024_v58 = vld [vmem:[%s2167_s9 + $0xf4] ss:$12 sps:$4 sm:$0xff]  }
  0x1e   : > { %v2022_v56 = vld [vmem:[%s2167_s9 + $0xd8] ss:$12 sps:$4 sm:$0xff]   ;;  %v2023_v57 = vld [vmem:[%s2167_s9 + $0x110] ss:$12 sps:$4 sm:$0xff]   ;;  %v2026_v59 = vld [vmem:[%s2167_s9 + $0x128] ss:$12 sps:$4 sm:$0xff]  }
  0x1f   : > { %1774 = vmatpush3.bf16.msra.mxu0 %v1965_v15  ;;  %1941 = vmatpush3.bf16.msra.mxu1 %v1965_v15  ;;  %v2027_v60 = vld [vmem:[%s2167_s9 + $0xf0] ss:$12 sps:$4 sm:$0xff]   ;;  %v2028_v61 = vld [vmem:[%s2167_s9 + $0x140] ss:$12 sps:$4 sm:$0xff]   ;;  %v2031_v63 = vld [vmem:[%s2167_s9 + $0x158] ss:$12 sps:$4 sm:$0xff]  }
  0x20   : > { %1775 = vmatprep.subr.bf16.mxu0 %v1966_v16  ;;  %1934 = vmatprep.subr.bf16.mxu1 %v1966_v16  ;;  %v2029_v62 = vld [vmem:[%s2167_s9 + $0x10c] ss:$12 sps:$4 sm:$0xff]   ;;  %v2032_v0 = vld [vmem:[%s2167_s9 + $0x108] ss:$12 sps:$4 sm:$0xff]   ;;  %v2033_v1 = vld [vmem:[%s2167_s9 + $0x170] ss:$12 sps:$4 sm:$0xff]  }
  0x23   : > { %1776 = vmatpush3.bf16.msra.mxu0 %v1967_v17  ;;  %1942 = vmatpush3.bf16.msra.mxu1 %v1967_v17 }
  0x24   : > { %1891 = vmatprep.subr.bf16.mxu1 %v1974_v18 }
  0x26   : > { %715 = vmatmul.mubr.bf16.vlgmr.msra.gmra.mrb[0].mxu0 %v1968_v19  ;;  %811 = vmatmul.mubr.bf16.vlgmr.msra.gmra.mrb[0].mxu1 %v1971_v20 }
  0x27   : > { %1892 = vmatpush3.bf16.msra.mxu1 %v1974_v18  ;;  %722 = vmatprep.mubr.bf16.mxu0 %v1975_v21 }
  0x28   : > { %818 = vmatprep.mubr.bf16.mxu1 %v1977_v22  ;;  %1893 = vmatprep.subr.bf16.mxu1 %v1987_v23 }
  0x2b   : > { %1894 = vmatpush3.bf16.msra.mxu1 %v1987_v23 }
  0x2e   : > { %723 = vmatmul.mubr.bf16.gmra.mrb[4].mxu0 %v1979_v24  ;;  %819 = vmatmul.mubr.bf16.gmra.mrb[4].mxu1 %v1980_v25 }
  0x2f   : > { %730 = vmatprep.mubr.bf16.mxu0 %v1981_v26  ;;  %826 = vmatprep.mubr.bf16.mxu1 %v1983_v27 }
  0x36   : > { %731 = vmatmul.mubr.bf16.gmra.mrb[8].mxu0 %v1985_v28  ;;  %827 = vmatmul.mubr.bf16.gmra.mrb[8].mxu1 %v1986_v29 }
  0x37   : > { %738 = vmatprep.mubr.bf16.mxu0 %v1988_v30  ;;  %834 = vmatprep.mubr.bf16.mxu1 %v1990_v31 }
  0x3e   : > { %739 = vmatmul.mubr.bf16.gmra.mrb[12].mxu0 %v1992_v32  ;;  %835 = vmatmul.mubr.bf16.gmra.mrb[12].mxu1 %v1993_v33 }
  0x3f   : > { %746 = vmatprep.mubr.bf16.mxu0 %v1994_v34  ;;  %1895 = vmatprep.mubr.msk.bf16.mxu1 %vm633_vm0, %v1996_v35 }
  0x46   : > { %747 = vmatmul.mubr.bf16.gmra.mrb[16].mxu0 %v1997_v36  ;;  %1896 = vmatmul.mubr.msk.bf16.vlgmr.msra.gmra.mrb[16].mxu1 %vm633_vm0, %v1998_v37 }
  0x47   : > { %754 = vmatprep.mubr.bf16.mxu0 %v1999_v38  ;;  %1899 = vmatprep.mubr.msk.bf16.mxu1 %vm633_vm0, %v2001_v39 }
  0x4e   : > { %755 = vmatmul.mubr.bf16.gmra.mrb[20].mxu0 %v2002_v40  ;;  %1900 = vmatmul.mubr.msk.bf16.gmra.mrb[20].mxu1 %vm633_vm0, %v2003_v41 }
  0x4f   : > { %762 = vmatprep.mubr.bf16.mxu0 %v2004_v42  ;;  %1903 = vmatprep.mubr.msk.bf16.mxu1 %vm633_vm0, %v2006_v43 }
  0x56   : > { %763 = vmatmul.mubr.bf16.gmra.mrb[24].mxu0 %v2007_v44  ;;  %1904 = vmatmul.mubr.msk.bf16.gmra.mrb[24].mxu1 %vm633_vm0, %v2008_v45 }
  0x57   : > { %770 = vmatprep.mubr.bf16.mxu0 %v2009_v46  ;;  %1907 = vmatprep.mubr.msk.bf16.mxu1 %vm633_vm0, %v2011_v47 }
  0x5e   : > { %771 = vmatmul.mubr.bf16.gmra.mrb[28].mxu0 %v2012_v48  ;;  %1908 = vmatmul.mubr.msk.bf16.gmra.mrb[28].mxu1 %vm633_vm0, %v2013_v49 }
  0x5f   : > { %778 = vmatprep.mubr.bf16.mxu0 %v2014_v50  ;;  %1911 = vmatprep.mubr.msk.bf16.mxu1 %vm633_vm0, %v2016_v51  ;;  %v2279_v50 = vld [vmem:[%s2563_s2] ss:$0 sm:$0xff] }
  0x66   : > { %779 = vmatmul.mubr.bf16.gmra.mrb[32].mxu0 %v2017_v52  ;;  %1912 = vmatmul.mubr.msk.bf16.gmra.mrb[32].mxu1 %vm633_vm0, %v2018_v53 }
  0x67   : > { %786 = vmatprep.mubr.bf16.mxu0 %v2019_v54  ;;  %1915 = vmatprep.mubr.msk.bf16.mxu1 %vm633_vm0, %v2021_v55 }
  0x6e   : > { %787 = vmatmul.mubr.bf16.gmra.mrb[36].mxu0 %v2022_v56  ;;  %1916 = vmatmul.mubr.msk.bf16.gmra.mrb[36].mxu1 %vm633_vm0, %v2023_v57 }
  0x6f   : > { %794 = vmatprep.mubr.bf16.mxu0 %v2024_v58  ;;  %1919 = vmatprep.mubr.msk.bf16.mxu1 %vm633_vm0, %v2026_v59 }
  0x76   : > { %795 = vmatmul.mubr.bf16.gmra.mrb[40].mxu0 %v2027_v60  ;;  %1920 = vmatmul.mubr.msk.bf16.gmra.mrb[40].mxu1 %vm633_vm0, %v2028_v61 }
  0x77   : > { %802 = vmatprep.mubr.bf16.mxu0 %v2029_v62  ;;  %1923 = vmatprep.mubr.msk.bf16.mxu1 %vm633_vm0, %v2031_v63 }
  0x7e   : > { %803 = vmatmul.mubr.bf16.gmra.mrb[44].mxu0 %v2032_v0  ;;  %1924 = vmatmul.mubr.msk.bf16.gmra.mrb[44].mxu1 %vm633_vm0, %v2033_v1 }
  0xf9   : > { %v1777_v2 = vpop.f32.mrb[0].mxu0  ;;  %v1849_v3 = vpop.f32.mrb[0].mxu1 }
  0xfa   : > { %v1778_v4 = vpop.f32.mrb[1].mxu0  ;;  %v1850_v5 = vpop.f32.mrb[1].mxu1 }
  0xfb   : > { %v1779_v6 = vadd.f32 %v1778_v4, %v1777_v2  ;;  %v1780_v7 = vpop.f32.mrb[2].mxu0  ;;  %v2260_v8 = vadd.f32 %v1850_v5, %v1849_v3  ;;  %v1852_v9 = vpop.f32.mrb[2].mxu1 }
  0xfc   : > { %v1781_v10 = vpop.f32.mrb[3].mxu0  ;;  %v1853_v11 = vpop.f32.mrb[3].mxu1 }
  0xfd   : > { %v1782_v12 = vadd.f32 %v1781_v10, %v1780_v7  ;;  %v2262_v13 = vadd.f32 %v1853_v11, %v1852_v9  ;;  %v717_v54 = vadd.f32 %v1779_v6, %v2279_v50 }
  0xff   : > { %v720_v63 = vadd.f32 %v1782_v12, %v2279_v50 }
 0x101   : > { %v1783_v14 = vpop.f32.mrb[4].mxu0  ;;  %v1855_v15 = vpop.f32.mrb[4].mxu1 }
 0x102   : > { %v1784_v16 = vpop.f32.mrb[5].mxu0  ;;  %v1856_v17 = vpop.f32.mrb[5].mxu1 }
 0x103   : > { %v1785_v18 = vadd.f32 %v1784_v16, %v1783_v14  ;;  %v1786_v19 = vpop.f32.mrb[6].mxu0  ;;  %v2264_v20 = vadd.f32 %v1856_v17, %v1855_v15  ;;  %v1858_v21 = vpop.f32.mrb[6].mxu1 }
 0x104   : > { %v1787_v22 = vpop.f32.mrb[7].mxu0  ;;  %v1859_v23 = vpop.f32.mrb[7].mxu1 }
 0x105   : > { %v1788_v24 = vadd.f32 %v1787_v22, %v1786_v19  ;;  %v2266_v25 = vadd.f32 %v1859_v23, %v1858_v21  ;;  %v725_v51 = vadd.f32 %v1785_v18, %v2279_v50 }
 0x107   : > { %v728_v58 = vadd.f32 %v1788_v24, %v2279_v50 }
 0x109   : > { %v1789_v26 = vpop.f32.mrb[8].mxu0  ;;  %v1861_v27 = vpop.f32.mrb[8].mxu1 }
 0x10a   : > { %v1790_v28 = vpop.f32.mrb[9].mxu0  ;;  %v1862_v29 = vpop.f32.mrb[9].mxu1 }
 0x10b   : > { %v1791_v30 = vadd.f32 %v1790_v28, %v1789_v26  ;;  %v1792_v31 = vpop.f32.mrb[10].mxu0  ;;  %v2268_v32 = vadd.f32 %v1862_v29, %v1861_v27  ;;  %v1864_v33 = vpop.f32.mrb[10].mxu1 }
 0x10c   : > { %v1793_v34 = vpop.f32.mrb[11].mxu0  ;;  %v1865_v35 = vpop.f32.mrb[11].mxu1 }
 0x10d   : > { %v1794_v36 = vadd.f32 %v1793_v34, %v1792_v31  ;;  %v2270_v37 = vadd.f32 %v1865_v35, %v1864_v33  ;;  %v733_v18 = vadd.f32 %v1791_v30, %v2279_v50 }
 0x10f   : > { %v736_v29 = vadd.f32 %v1794_v36, %v2279_v50 }
 0x111   : > { %v1795_v38 = vpop.f32.mrb[12].mxu0  ;;  %v1867_v39 = vpop.f32.mrb[12].mxu1 }
 0x112   : > { %v1796_v40 = vpop.f32.mrb[13].mxu0  ;;  %v1868_v41 = vpop.f32.mrb[13].mxu1 }
 0x113   : > { %v1797_v42 = vadd.f32 %v1796_v40, %v1795_v38  ;;  %v1798_v43 = vpop.f32.mrb[14].mxu0  ;;  %v2272_v44 = vadd.f32 %v1868_v41, %v1867_v39  ;;  %v1870_v45 = vpop.f32.mrb[14].mxu1 }
 0x114   : > { %v1799_v46 = vpop.f32.mrb[15].mxu0  ;;  %v1871_v47 = vpop.f32.mrb[15].mxu1 }
 0x115   : > { %v1800_v48 = vadd.f32 %v1799_v46, %v1798_v43  ;;  %v2274_v49 = vadd.f32 %v1871_v47, %v1870_v45  ;;  %v741_v14 = vadd.f32 %v1797_v42, %v2279_v50 }
 0x117   : > { %v744_v23 = vadd.f32 %v1800_v48, %v2279_v50 }
 0x119   : > { %v1801_v52 = vpop.f32.mrb[16].mxu0  ;;  %v1897_v53 = vpop.f32.mrb[16].mxu1 }
 0x11a   : > { %v2283_v55 = vadd.f32 %v1897_v53, %v725_v51  ;;  %v1802_v56 = vpop.f32.mrb[17].mxu0  ;;  %v877_v57 = vpop.f32.mrb[17].mxu1 }
 0x11b   : > { %v1803_v59 = vadd.f32 %v1802_v56, %v1801_v52  ;;  %v2286_v60 = vadd.f32 %v877_v57, %v717_v54  ;;  %v1804_v61 = vpop.f32.mrb[18].mxu0  ;;  %v1898_v62 = vpop.f32.mrb[18].mxu1 }
 0x11c   : > { %v1006_v0 = vmin.f32 %v2283_v55, 0.0  ;;  %v2290_v1 = vadd.f32 %v1898_v62, %v728_v58  ;;  %v1805_v2 = vpop.f32.mrb[19].mxu0  ;;  %v880_v3 = vpop.f32.mrb[19].mxu1  ;;  %vm1166_vm1 = vcmp.gt.f32.partialorder %v2283_v55, 0.0 }
 0x11d   : > { %v1004_v4 = vmin.f32 %v2286_v60, 0.0  ;;  %v2293_v5 = vadd.f32 %v1805_v2, %v1804_v61  ;;  %v2295_v6 = vadd.f32 %v880_v3, %v720_v63  ;;  %vm1164_vm2 = vcmp.gt.f32.partialorder %v2286_v60, 0.0 }
 0x11e   : > { %v1040_v7 = vmul.f32 1.442695, %v1006_v0  ;;  %v1007_v9 = vmin.f32 %v2290_v1, 0.0  ;;  %v749_v51 = vadd.f32 %v1803_v59, %v2279_v50  ;;  %vm1167_vm3 = vcmp.gt.f32.partialorder %v2290_v1, 0.0 }
 0x11f   : > { %v1036_v10 = vmul.f32 1.442695, %v1004_v4  ;;  %v1005_v11 = vmin.f32 %v2295_v6, 0.0  ;;  %vm1165_vm4 = vcmp.gt.f32.partialorder %v2295_v6, 0.0 }
 0x120   : > { %2034 = vpow2.f32 %v1040_v7  ;;  %v1042_v12 = vmul.f32 1.442695, %v1007_v9 }
 0x121   : > { %2036 = vpow2.f32 %v1036_v10  ;;  %v1038_v15 = vmul.f32 1.442695, %v1005_v11  ;;  %v1807_v16 = vpop.f32.mrb[20].mxu0  ;;  %v1901_v17 = vpop.f32.mrb[20].mxu1 }
 0x122   : > { %2038 = vpow2.f32 %v1042_v12  ;;  %v2301_v19 = vadd.f32 %v1901_v17, %v741_v14  ;;  %v1808_v21 = vpop.f32.mrb[21].mxu0  ;;  %v893_v22 = vpop.f32.mrb[21].mxu1 }
 0x123   : > { %2040 = vpow2.f32 %v1038_v15  ;;  %v1809_v24 = vadd.f32 %v1808_v21, %v1807_v16  ;;  %v2304_v26 = vadd.f32 %v893_v22, %v733_v18  ;;  %v1810_v27 = vpop.f32.mrb[22].mxu0  ;;  %v1902_v28 = vpop.f32.mrb[22].mxu1  ;;  %v752_v16 = vadd.f32 %v2293_v5, %v2279_v50 }
 0x124   : > { %v1010_v31 = vmin.f32 %v2301_v19, 0.0  ;;  %v2308_v33 = vadd.f32 %v1902_v28, %v744_v23  ;;  %v1811_v30 = vpop.f32.mrb[23].mxu0  ;;  %v896_v34 = vpop.f32.mrb[23].mxu1  ;;  %vm1170_vm5 = vcmp.gt.f32.partialorder %v2301_v19, 0.0 }
 0x125   : > { %v1008_v35 = vmin.f32 %v2304_v26, 0.0  ;;  %v1812_v38 = vadd.f32 %v1811_v30, %v1810_v27  ;;  %v2311_v39 = vadd.f32 %v896_v34, %v736_v29  ;;  %v757_v45 = vadd.f32 %v1809_v24, %v2279_v50 }
 0x126   : > { %v1048_v40 = vmul.f32 1.442695, %v1010_v31  ;;  %v1011_v41 = vmin.f32 %v2308_v33, 0.0  ;;  %vm1168_vm6 = vcmp.gt.f32.partialorder %v2304_v26, 0.0  ;;  %vm1171_vm7 = vcmp.gt.f32.partialorder %v2308_v33, 0.0 }
 0x127   : > { %v1044_v42 = vmul.f32 1.442695, %v1008_v35  ;;  %v1009_v43 = vmin.f32 %v2311_v39, 0.0  ;;  %v760_v57 = vadd.f32 %v1812_v38, %v2279_v50  ;;  %vm1169_vm8 = vcmp.gt.f32.partialorder %v2311_v39, 0.0 }
 0x128   : > { %2042 = vpow2.f32 %v1048_v40  ;;  %v1050_v36 = vmul.f32 1.442695, %v1011_v41 }
 0x129   : > { %2044 = vpow2.f32 %v1044_v42  ;;  %v1046_v46 = vmul.f32 1.442695, %v1009_v43  ;;  %v1813_v47 = vpop.f32.mrb[24].mxu0  ;;  %v1905_v48 = vpop.f32.mrb[24].mxu1 }
 0x12a   : > { %v2035_v52 = vpop.eup %2034  ;;  %2046 = vpow2.f32 %v1050_v36  ;;  %v2320_v53 = vadd.f32 %v1905_v48, %v757_v45  ;;  %v1814_v54 = vpop.f32.mrb[25].mxu0 }
 0x12b   : > { %v909_v56 = vpop.f32.mrb[25].mxu1  ;;  %v2037_v58 = vpop.eup %2036  ;;  %v1570_v61 = vadd.f32 -1.0, %v2035_v52  ;;  %2048 = vpow2.f32 %v1046_v46  ;;  %v2323_v62 = vadd.f32 %v1814_v54, %v1813_v47 }
 0x12c   : > { %v2325_v63 = vadd.f32 %v909_v56, %v749_v51  ;;  %v1816_v0 = vpop.f32.mrb[26].mxu0  ;;  %v1906_v2 = vpop.f32.mrb[26].mxu1  ;;  %v1568_v3 = vadd.f32 -1.0, %v2037_v58  ;;  %v1014_v4 = vmin.f32 %v2320_v53, 0.0  ;;  %vm1174_vm9 = vcmp.gt.f32.partialorder %v2320_v53, 0.0 }
 0x12d   : > { %v2039_v59 = vpop.eup %2038  ;;  %v2329_v7 = vadd.f32 %v1906_v2, %v760_v57  ;;  %v1817_v9 = vpop.f32.mrb[27].mxu0  ;;  %v1134_v12 = vmul.f32 1.6732632, %v1570_v61 }
 0x12e   : > { %v912_v10 = vpop.f32.mrb[27].mxu1  ;;  %v2041_v11 = vpop.eup %2040  ;;  %v1571_v14 = vadd.f32 -1.0, %v2039_v59  ;;  %v1012_v15 = vmin.f32 %v2325_v63, 0.0  ;;  %v1132_v17 = vmul.f32 1.6732632, %v1568_v3  ;;  %v1818_v42 = vadd.f32 %v1817_v9, %v1816_v0 }
 0x12f   : > { %v1569_v18 = vadd.f32 -1.0, %v2041_v11  ;;  %v1056_v21 = vmul.f32 1.442695, %v1014_v4  ;;  %v1015_v22 = vmin.f32 %v2329_v7, 0.0  ;;  %v1198_v23 = vsel %vm1166_vm1, %v2283_v55, %v1134_v12 }
 0x130   : > { %v1135_v24 = vmul.f32 1.6732632, %v1571_v14  ;;  %v1052_v27 = vmul.f32 1.442695, %v1012_v15  ;;  %v1230_v28 = vmul.f32 1.050701, %v1198_v23  ;;  %v1196_v5 = vsel %vm1164_vm2, %v2286_v60, %v1132_v17 }
 0x131   : > { %v1133_v29 = vmul.f32 1.6732632, %v1569_v18  ;;  %2050 = vpow2.f32 %v1056_v21  ;;  %v1228_v31 = vmul.f32 1.050701, %v1196_v5  ;;  %v1058_v34 = vmul.f32 1.442695, %v1015_v22 }
 0x132   : > { %v1199_v30 = vsel %vm1167_vm3, %v2290_v1, %v1135_v24  ;;  %2052 = vpow2.f32 %v1052_v27  ;;  %v1819_v55 = vpop.f32.mrb[28].mxu0  ;;  %v1909_v35 = vpop.f32.mrb[28].mxu1  ;;  %v2350_v60 = vadd.f32 %v912_v10, %v752_v16  ;;  %v765_v11 = vadd.f32 %v2323_v62, %v2279_v50 }
 0x133   : > { %v2043_v38 = vpop.eup %2042  ;;  %v1231_v40 = vmul.f32 1.050701, %v1199_v30  ;;  %v1197_v41 = vsel %vm1165_vm4, %v2295_v6, %v1133_v29  ;;  %v1820_v43 = vpop.f32.mrb[29].mxu0  ;;  %2054 = vpow2.f32 %v1058_v34  ;;  %vm1172_vm10 = vcmp.gt.f32.partialorder %v2325_v63, 0.0 }
 0x134   : > { %v925_v36 = vpop.f32.mrb[29].mxu1  ;;  %v2045_v45 = vpop.eup %2044  ;;  %v1229_v1 = vmul.f32 1.050701, %v1197_v41  ;;  %v1574_v46 = vadd.f32 -1.0, %v2043_v38  ;;  %v1821_v47 = vadd.f32 %v1820_v43, %v1819_v55  ;;  %v1013_v56 = vmin.f32 %v2350_v60, 0.0 }
 0x135   : > { %v1822_v48 = vpop.f32.mrb[30].mxu0  ;;  %v1910_v51 = vpop.f32.mrb[30].mxu1  ;;  %v1674_v6 = vpack.c.bf16 %v1231_v40, %v1230_v28  ;;  %v1572_v54 = vadd.f32 -1.0, %v2045_v45  ;;  %v2380_v29 = vadd.f32 %v925_v36, %v765_v11  ;;  %v768_v45 = vadd.f32 %v1818_v42, %v2279_v50 }
 0x136   : > { %v2047_v52 = vpop.eup %2046  ;;  %v1823_v57 = vpop.f32.mrb[31].mxu0  ;;  %v1669_v0 = vpack.c.bf16 %v1229_v1, %v1228_v31  ;;  %v1138_v2 = vmul.f32 1.6732632, %v1574_v46  ;;  %v773_v3 = vadd.f32 %v1821_v47, %v2279_v50  ;;  %v1054_v10 = vmul.f32 1.442695, %v1013_v56 }
 0x137   : > { %v928_v58 = vpop.f32.mrb[31].mxu1  ;;  %v2049_v61 = vpop.eup %2048  ;;  %v1575_v59 = vadd.f32 -1.0, %v2047_v52  ;;  %1746 = vst [vmem:[%s2355_s7 + $0x8] sm:$0xff] %v1674_v6   ;;  %v1136_v4 = vmul.f32 1.6732632, %v1572_v54  ;;  %v1824_v16 = vadd.f32 %v1823_v57, %v1822_v48  ;;  %v1016_v43 = vmin.f32 %v2380_v29, 0.0 }
 0x138   : > { %v1573_v9 = vadd.f32 -1.0, %v2049_v61  ;;  %1670 = vst [vmem:[%s2355_s7] sm:$0xff] %v1669_v0   ;;  %v1202_v12 = vsel %vm1170_vm5, %v2301_v19, %v1138_v2  ;;  %v2367_v15 = vadd.f32 %v1909_v35, %v773_v3  ;;  %2056 = vpow2.f32 %v1054_v10 }
 0x139   : > { %v1139_v14 = vmul.f32 1.6732632, %v1575_v59  ;;  %v1234_v17 = vmul.f32 1.050701, %v1202_v12  ;;  %v1200_v18 = vsel %vm1168_vm6, %v2304_v26, %v1136_v4  ;;  %v1825_v23 = vpop.f32.mrb[32].mxu0  ;;  %v2377_v24 = vpop.f32.mrb[32].mxu1  ;;  %v776_v26 = vadd.f32 %v1824_v16, %v2279_v50 }
 0x13a   : > { %v1137_v21 = vmul.f32 1.6732632, %v1573_v9  ;;  %v1232_v22 = vmul.f32 1.050701, %v1200_v18  ;;  %v1018_v19 = vmin.f32 %v2367_v15, 0.0  ;;  %v1826_v31 = vpop.f32.mrb[33].mxu0  ;;  %v2391_v56 = vadd.f32 %v928_v58, %v768_v45 }
 0x13b   : > { %v1203_v62 = vsel %vm1171_vm7, %v2308_v33, %v1139_v14  ;;  %v2051_v27 = vpop.eup %2050  ;;  %v941_v30 = vpop.f32.mrb[33].mxu1  ;;  %v2387_v48 = vadd.f32 %v1910_v51, %v776_v26  ;;  %v1060_v54 = vmul.f32 1.442695, %v1016_v43  ;;  %v1827_v61 = vadd.f32 %v1826_v31, %v1825_v23 }
 0x13c   : > { %v1235_v28 = vmul.f32 1.050701, %v1203_v62  ;;  %v1201_v5 = vsel %vm1169_vm8, %v2311_v39, %v1137_v21  ;;  %v2053_v34 = vpop.eup %2052  ;;  %v1578_v33 = vadd.f32 -1.0, %v2051_v27  ;;  %v1064_v35 = vmul.f32 1.442695, %v1018_v19  ;;  %v1828_v38 = vpop.f32.mrb[34].mxu0 }
 0x13d   : > { %v1233_v55 = vmul.f32 1.050701, %v1201_v5  ;;  %v1576_v41 = vadd.f32 -1.0, %v2053_v34  ;;  %v1829_v39 = vpop.f32.mrb[35].mxu0  ;;  %v2385_v36 = vpop.f32.mrb[34].mxu1  ;;  %v1019_v57 = vmin.f32 %v2387_v48, 0.0  ;;  %v781_v9 = vadd.f32 %v1827_v61, %v2279_v50 }
 0x13e   : > { %v1684_v40 = vpack.c.bf16 %v1235_v28, %v1234_v17  ;;  %v2055_v1 = vpop.eup %2054  ;;  %v1142_v47 = vmul.f32 1.6732632, %v1578_v33  ;;  %2058 = vpow2.f32 %v1064_v35  ;;  %v944_v52 = vpop.f32.mrb[35].mxu1  ;;  %vm1175_vm11 = vcmp.gt.f32.partialorder %v2329_v7, 0.0 }
 0x13f   : > { %v1679_v46 = vpack.c.bf16 %v1233_v55, %v1232_v22  ;;  %v1579_v6 = vadd.f32 -1.0, %v2055_v1  ;;  %v1140_v0 = vmul.f32 1.6732632, %v1576_v41  ;;  %2060 = vpow2.f32 %v1060_v54 }
 0x140   : > { %1748 = vst [vmem:[%s2355_s7 + $0x18] sm:$0xff] %v1684_v40   ;;  %v1206_v42 = vsel %vm1174_vm9, %v2320_v53, %v1142_v47  ;;  %v1066_v51 = vmul.f32 1.442695, %v1019_v57  ;;  %v1017_v59 = vmin.f32 %v2391_v56, 0.0  ;;  %v1830_v53 = vadd.f32 %v1829_v39, %v1828_v38 }
 0x141   : > { %1747 = vst [vmem:[%s2355_s7 + $0x10] sm:$0xff] %v1679_v46   ;;  %v1143_v2 = vmul.f32 1.6732632, %v1579_v6  ;;  %v1238_v4 = vmul.f32 1.050701, %v1206_v42  ;;  %v1831_v10 = vpop.f32.mrb[36].mxu0  ;;  %v1204_v18 = vsel %vm1172_vm10, %v2325_v63, %v1140_v0  ;;  %v2406_v21 = vadd.f32 %v941_v30, %v781_v9 }
 0x142   : > { %v2057_v3 = vpop.eup %2056  ;;  %v2401_v11 = vpop.f32.mrb[36].mxu1  ;;  %2062 = vpow2.f32 %v1066_v51  ;;  %v1062_v16 = vmul.f32 1.442695, %v1017_v59  ;;  %v784_v22 = vadd.f32 %v1830_v53, %v2279_v50  ;;  %v813_v26 = vadd.f32 %v2260_v8, %v2279_v50 }
 0x143   : > { %v1207_v58 = vsel %vm1175_vm11, %v2329_v7, %v1143_v2  ;;  %v1577_v14 = vadd.f32 -1.0, %v2057_v3  ;;  %v1832_v17 = vpop.f32.mrb[37].mxu0  ;;  %v2409_v19 = vpop.f32.mrb[37].mxu1  ;;  %vm1173_vm12 = vcmp.gt.f32.partialorder %v2350_v60, 0.0  ;;  %v1020_v63 = vmin.f32 %v2406_v21, 0.0 }
 0x144   : > { %v1239_v12 = vmul.f32 1.050701, %v1207_v58  ;;  %v1833_v7 = vadd.f32 %v1832_v17, %v1831_v10  ;;  %v1834_v62 = vpop.f32.mrb[38].mxu0  ;;  %2064 = vpow2.f32 %v1062_v16  ;;  %v2411_v5 = vpop.f32.mrb[38].mxu1  ;;  %v2417_v31 = vadd.f32 %v944_v52, %v784_v22 }
 0x145   : > { %v1141_v27 = vmul.f32 1.6732632, %v1577_v14  ;;  %v1835_v28 = vpop.f32.mrb[39].mxu0  ;;  %v2420_v34 = vpop.f32.mrb[39].mxu1  ;;  %v1236_v33 = vmul.f32 1.050701, %v1204_v18  ;;  %v2426_v40 = vadd.f32 %v2262_v13, %v2279_v50  ;;  %v821_v47 = vadd.f32 %v2264_v20, %v2279_v50 }
 0x146   : > { %v1694_v23 = vpack.c.bf16 %v1239_v12, %v1238_v4  ;;  %v789_v30 = vadd.f32 %v1833_v7, %v2279_v50  ;;  %v1836_v38 = vadd.f32 %v1835_v28, %v1834_v62  ;;  %v1068_v43 = vmul.f32 1.442695, %v1020_v63 }
 0x147   : > { %v1205_v35 = vsel %vm1173_vm12, %v2350_v60, %v1141_v27  ;;  %v1021_v45 = vmin.f32 %v2417_v31, 0.0  ;;  %v824_v13 = vadd.f32 %v2266_v25, %v2279_v50  ;;  %v2443_v59 = vadd.f32 %v2268_v32, %v2279_v50 }
 0x148   : > { %v2059_v55 = vpop.eup %2058  ;;  %1750 = vst [vmem:[%s2355_s7 + $0x28] sm:$0xff] %v1694_v23   ;;  %v1237_v8 = vmul.f32 1.050701, %v1205_v35  ;;  %v2430_v39 = vadd.f32 %v2377_v24, %v789_v30  ;;  %v792_v1 = vadd.f32 %v1836_v38, %v2279_v50  ;;  %2066 = vpow2.f32 %v1068_v43 }
 0x149   : > { %v1582_v41 = vadd.f32 -1.0, %v2059_v55  ;;  %v1837_v46 = vpop.f32.mrb[40].mxu0  ;;  %v1921_v60 = vpop.f32.mrb[40].mxu1  ;;  %v1070_v42 = vmul.f32 1.442695, %v1021_v45  ;;  %vm1178_vm13 = vcmp.gt.f32.partialorder %v2367_v15, 0.0  ;;  %v837_v17 = vadd.f32 %v2272_v44, %v2279_v50 }
 0x14a   : > { %v2061_v52 = vpop.eup %2060  ;;  %v1689_v6 = vpack.c.bf16 %v1237_v8, %v1236_v33  ;;  %v1838_v57 = vpop.f32.mrb[41].mxu0  ;;  %v1022_v0 = vmin.f32 %v2430_v39, 0.0  ;;  %v2439_v2 = vadd.f32 %v2385_v36, %v792_v1  ;;  %v2447_v25 = vadd.f32 %v1921_v60, %v821_v47 }
 0x14b   : > { %v1146_v54 = vmul.f32 1.6732632, %v1582_v41  ;;  %v973_v61 = vpop.f32.mrb[41].mxu1  ;;  %v1580_v24 = vadd.f32 -1.0, %v2061_v52  ;;  %v1840_v51 = vpop.f32.mrb[42].mxu0  ;;  %2068 = vpow2.f32 %v1070_v42  ;;  %v1839_v3 = vadd.f32 %v1838_v57, %v1837_v46 }
 0x14c   : > { %v1922_v20 = vpop.f32.mrb[42].mxu1  ;;  %1749 = vst [vmem:[%s2355_s7 + $0x20] sm:$0xff] %v1689_v6   ;;  %v1841_v4 = vpop.f32.mrb[43].mxu0  ;;  %v1072_v10 = vmul.f32 1.442695, %v1022_v0  ;;  %v2450_v12 = vadd.f32 %v973_v61, %v813_v26  ;;  %v1023_v32 = vmin.f32 %v2439_v2, 0.0 }
 0x14d   : > { %v976_v58 = vpop.f32.mrb[43].mxu1  ;;  %v2063_v9 = vpop.eup %2062  ;;  %v1210_v53 = vsel %vm1178_vm13, %v2367_v15, %v1146_v54  ;;  %v1144_v36 = vmul.f32 1.6732632, %v1580_v24  ;;  %v1030_v16 = vmin.f32 %v2447_v25, 0.0  ;;  %vm1176_vm14 = vcmp.gt.f32.partialorder %v2380_v29, 0.0 }
 0x14e   : > { %v1583_v14 = vadd.f32 -1.0, %v2063_v9  ;;  %v2065_v18 = vpop.eup %2064  ;;  %vm1179_vm15 = vcmp.gt.f32.partialorder %v2387_v48, 0.0  ;;  %2070 = vpow2.f32 %v1072_v10  ;;  %v797_v15 = vadd.f32 %v1839_v3, %v2279_v50 }
 0x14f   : > { %v1242_v22 = vmul.f32 1.050701, %v1210_v53  ;;  %v1581_v62 = vadd.f32 -1.0, %v2065_v18  ;;  %v1028_v23 = vmin.f32 %v2450_v12, 0.0  ;;  %v1208_v27 = vsel %vm1176_vm14, %v2380_v29, %v1144_v36 }
 0x150   : > { %v1147_v7 = vmul.f32 1.6732632, %v1583_v14  ;;  %v1074_v28 = vmul.f32 1.442695, %v1023_v32  ;;  %v1088_v26 = vmul.f32 1.442695, %v1030_v16  ;;  %v2462_v63 = vadd.f32 %v2409_v19, %v797_v15 }
 0x151   : > { %v1843_v44 = vpop.f32.mrb[44].mxu0  ;;  %v1145_v55 = vmul.f32 1.6732632, %v1581_v62  ;;  %v1084_v33 = vmul.f32 1.442695, %v1028_v23  ;;  %v2465_v35 = vadd.f32 %v1922_v20, %v824_v13  ;;  %v1925_v38 = vpop.f32.mrb[44].mxu1  ;;  %v1842_v24 = vadd.f32 %v1841_v4, %v1840_v51 }
 0x152   : > { %v1211_v30 = vsel %vm1179_vm15, %v2387_v48, %v1147_v7  ;;  %v1844_v8 = vpop.f32.mrb[45].mxu0  ;;  %vm1177_vm0 = vcmp.gt.f32.partialorder %v2391_v56, 0.0  ;;  %2072 = vpow2.f32 %v1074_v28  ;;  %v1024_v29 = vmin.f32 %v2462_v63, 0.0  ;;  %v989_v43 = vpop.f32.mrb[45].mxu1 }
 0x153   : > { %v1243_v41 = vmul.f32 1.050701, %v1211_v30  ;;  %v2469_v45 = vpop.f32.mrb[46].mxu0  ;;  %v2067_v19 = vpop.eup %2066  ;;  %v1240_v1 = vmul.f32 1.050701, %v1208_v27  ;;  %v1209_v48 = vsel %vm1177_vm0, %v2391_v56, %v1145_v55  ;;  %2074 = vpow2.f32 %v1088_v26 }
 0x154   : > { %v1031_v46 = vmin.f32 %v2465_v35, 0.0  ;;  %v2473_v47 = vpop.f32.mrb[46].mxu1  ;;  %v2475_v60 = vpop.f32.mrb[47].mxu0  ;;  %v1241_v52 = vmul.f32 1.050701, %v1209_v48  ;;  %v1584_v6 = vadd.f32 -1.0, %v2067_v19  ;;  %2076 = vpow2.f32 %v1084_v33 }
 0x155   : > { %v1704_v13 = vpack.c.bf16 %v1243_v41, %v1242_v22  ;;  %v1076_v54 = vmul.f32 1.442695, %v1024_v29  ;;  %v2477_v42 = vpop.f32.mrb[47].mxu1  ;;  %v2069_v57 = vpop.eup %2068  ;;  %v2480_v56 = vadd.f32 %v976_v58, %v2426_v40  ;;  %vm1180_vm1 = vcmp.gt.f32.partialorder %v2406_v21, 0.0 }
 0x156   : > { %v1090_v61 = vmul.f32 1.442695, %v1031_v46  ;;  %v1699_v0 = vpack.c.bf16 %v1241_v52, %v1240_v1  ;;  %v1148_v20 = vmul.f32 1.6732632, %v1584_v6  ;;  %v1585_v3 = vadd.f32 -1.0, %v2069_v57 }
 0x157   : > { %1752 = vst [vmem:[%s2355_s7 + $0x38] sm:$0xff] %v1704_v13   ;;  %2078 = vpow2.f32 %v1076_v54  ;;  %v800_v9 = vadd.f32 %v1842_v24, %v2279_v50  ;;  %v1029_v53 = vmin.f32 %v2480_v56, 0.0  ;;  %v2488_v4 = vadd.f32 %v1925_v38, %v837_v17 }
 0x158   : > { %2080 = vpow2.f32 %v1090_v61  ;;  %v2071_v36 = vpop.eup %2070  ;;  %1751 = vst [vmem:[%s2355_s7 + $0x30] sm:$0xff] %v1699_v0   ;;  %v1212_v10 = vsel %vm1180_vm1, %v2406_v21, %v1148_v20  ;;  %v1149_v51 = vmul.f32 1.6732632, %v1585_v3  ;;  %v1845_v40 = vadd.f32 %v1844_v8, %v1843_v44 }
 0x159   : > { %vm1181_vm2 = vcmp.gt.f32.partialorder %v2417_v31, 0.0  ;;  %v1586_v58 = vadd.f32 -1.0, %v2071_v36  ;;  %v2492_v14 = vadd.f32 %v2420_v34, %v800_v9  ;;  %v1086_v32 = vmul.f32 1.442695, %v1029_v53 }
 0x15a   : > { %v1244_v16 = vmul.f32 1.050701, %v1212_v10  ;;  %v1213_v18 = vsel %vm1181_vm2, %v2417_v31, %v1149_v51  ;;  %v1034_v15 = vmin.f32 %v2488_v4, 0.0  ;;  %v805_v22 = vadd.f32 %v1845_v40, %v2279_v50 }
 0x15b   : > { %v1245_v7 = vmul.f32 1.050701, %v1213_v18  ;;  %v1150_v21 = vmul.f32 1.6732632, %v1586_v58  ;;  %v1025_v17 = vmin.f32 %v2492_v14, 0.0  ;;  %2082 = vpow2.f32 %v1086_v32 }
 0x15c   : > { %v2073_v62 = vpop.eup %2072  ;;  %v1096_v23 = vmul.f32 1.442695, %v1034_v15  ;;  %v2499_v27 = vadd.f32 %v2401_v11, %v805_v22  ;;  %v2502_v34 = vadd.f32 %v989_v43, %v2443_v59  ;;  %vm1182_vm3 = vcmp.gt.f32.partialorder %v2430_v39, 0.0 }
 0x15d   : > { %v2075_v28 = vpop.eup %2074  ;;  %v1709_v31 = vpack.c.bf16 %v1245_v7, %v1244_v16  ;;  %v1587_v26 = vadd.f32 -1.0, %v2073_v62  ;;  %v1078_v44 = vmul.f32 1.442695, %v1025_v17  ;;  %v840_v55 = vadd.f32 %v2274_v49, %v2279_v50 }
 0x15e   : > { %v1594_v30 = vadd.f32 -1.0, %v2075_v28  ;;  %2084 = vpow2.f32 %v1096_v23  ;;  %v2077_v33 = vpop.eup %2076  ;;  %v1214_v38 = vsel %vm1182_vm3, %v2430_v39, %v1150_v21  ;;  %v1032_v59 = vmin.f32 %v2502_v34, 0.0 }
 0x15f   : > { %1753 = vst [vmem:[%s2355_s7 + $0x40] sm:$0xff] %v1709_v31   ;;  %v1151_v11 = vmul.f32 1.6732632, %v1587_v26  ;;  %2086 = vpow2.f32 %v1078_v44  ;;  %vm1183_vm4 = vcmp.gt.f32.partialorder %v2439_v2, 0.0  ;;  %v1592_v29 = vadd.f32 -1.0, %v2077_v33 }
 0x160   : > { %v1158_v41 = vmul.f32 1.6732632, %v1594_v30  ;;  %v1026_v1 = vmin.f32 %v2499_v27, 0.0  ;;  %v1092_v48 = vmul.f32 1.442695, %v1032_v59  ;;  %v2514_v49 = vadd.f32 %v2473_v47, %v840_v55 }
 0x161   : > { %v2079_v8 = vpop.eup %2078  ;;  %v1215_v19 = vsel %vm1183_vm4, %v2439_v2, %v1151_v11  ;;  %v1246_v46 = vmul.f32 1.050701, %v1214_v38  ;;  %vm1190_vm5 = vcmp.gt.f32.partialorder %v2447_v25, 0.0  ;;  %v832_v2 = vadd.f32 %v2270_v37, %v2279_v50 }
 0x162   : > { %v2081_v43 = vpop.eup %2080  ;;  %v1247_v39 = vmul.f32 1.050701, %v1215_v19  ;;  %v1222_v52 = vsel %vm1190_vm5, %v2447_v25, %v1158_v41  ;;  %v1588_v6 = vadd.f32 -1.0, %v2079_v8  ;;  %v1035_v54 = vmin.f32 %v2514_v49, 0.0 }
 0x163   : > { %v1595_v13 = vadd.f32 -1.0, %v2081_v43  ;;  %v1156_v61 = vmul.f32 1.6732632, %v1592_v29  ;;  %vm1188_vm6 = vcmp.gt.f32.partialorder %v2450_v12, 0.0  ;;  %vm1191_vm7 = vcmp.gt.f32.partialorder %v2465_v35, 0.0 }
 0x164   : > { %v1714_v57 = vpack.c.bf16 %v1247_v39, %v1246_v46  ;;  %v1080_v24 = vmul.f32 1.442695, %v1026_v1  ;;  %2088 = vpow2.f32 %v1092_v48  ;;  %v1098_v0 = vmul.f32 1.442695, %v1035_v54 }
 0x165   : > { %v1159_v47 = vmul.f32 1.6732632, %v1595_v13  ;;  %v2083_v20 = vpop.eup %2082  ;;  %v1254_v3 = vmul.f32 1.050701, %v1222_v52  ;;  %v1848_v9 = vadd.f32 %v2475_v60, %v2469_v45  ;;  %v2528_v37 = vadd.f32 %v2477_v42, %v832_v2 }
 0x166   : > { %1754 = vst [vmem:[%s2355_s7 + $0x48] sm:$0xff] %v1714_v57   ;;  %v1152_v53 = vmul.f32 1.6732632, %v1588_v6  ;;  %v1593_v10 = vadd.f32 -1.0, %v2083_v20  ;;  %2090 = vpow2.f32 %v1098_v0  ;;  %v1220_v40 = vsel %vm1188_vm6, %v2450_v12, %v1156_v61 }
 0x167   : > { %v1223_v25 = vsel %vm1191_vm7, %v2465_v35, %v1159_v47  ;;  %v808_v58 = vadd.f32 %v1848_v9, %v2279_v50  ;;  %v1033_v35 = vmin.f32 %v2528_v37, 0.0  ;;  %vm1184_vm8 = vcmp.gt.f32.partialorder %v2462_v63, 0.0 }
 0x168   : > { %v1255_v36 = vmul.f32 1.050701, %v1223_v25  ;;  %v2085_v51 = vpop.eup %2084  ;;  %v1157_v60 = vmul.f32 1.6732632, %v1593_v10  ;;  %2092 = vpow2.f32 %v1080_v24  ;;  %vm1189_vm9 = vcmp.gt.f32.partialorder %v2480_v56, 0.0 }
 0x169   : > { %v2087_v32 = vpop.eup %2086  ;;  %v969_v16 = vadd.f32 %v2411_v5, %v808_v58  ;;  %v1094_v18 = vmul.f32 1.442695, %v1033_v35  ;;  %v1216_v15 = vsel %vm1184_vm8, %v2462_v63, %v1152_v53  ;;  %v1252_v12 = vmul.f32 1.050701, %v1220_v40 }
 0x16a   : > { %v1734_v45 = vpack.c.bf16 %v1255_v36, %v1254_v3  ;;  %v1589_v42 = vadd.f32 -1.0, %v2087_v32  ;;  %v1221_v50 = vsel %vm1189_vm9, %v2480_v56, %v1157_v60  ;;  %v1598_v21 = vadd.f32 -1.0, %v2085_v51 }
 0x16b   : > { %v1253_v7 = vmul.f32 1.050701, %v1221_v50  ;;  %v1027_v17 = vmin.f32 %v969_v16, 0.0  ;;  %vm1185_vm10 = vcmp.gt.f32.partialorder %v2492_v14, 0.0  ;;  %2094 = vpow2.f32 %v1094_v18 }
 0x16c   : > { %1758 = vst [vmem:[%s2355_s7 + $0x68] sm:$0xff] %v1734_v45   ;;  %v1153_v22 = vmul.f32 1.6732632, %v1589_v42  ;;  %v1248_v28 = vmul.f32 1.050701, %v1216_v15  ;;  %vm1194_vm11 = vcmp.gt.f32.partialorder %v2488_v4, 0.0 }
 0x16d   : > { %v1729_v23 = vpack.c.bf16 %v1253_v7, %v1252_v12  ;;  %v1082_v63 = vmul.f32 1.442695, %v1027_v17  ;;  %v1162_v26 = vmul.f32 1.6732632, %v1598_v21  ;;  %vm1195_vm12 = vcmp.gt.f32.partialorder %v2514_v49, 0.0 }
 0x16e   : > { %v1217_v62 = vsel %vm1185_vm10, %v2492_v14, %v1153_v22  ;;  %v2089_v5 = vpop.eup %2088  ;;  %vm1192_vm13 = vcmp.gt.f32.partialorder %v2502_v34, 0.0  ;;  %vm1193_vm14 = vcmp.gt.f32.partialorder %v2528_v37, 0.0  ;;  %vm1186_vm15 = vcmp.gt.f32.partialorder %v2499_v27, 0.0 }
 0x16f   : > { %v1249_v31 = vmul.f32 1.050701, %v1217_v62  ;;  %1757 = vst [vmem:[%s2355_s7 + $0x60] sm:$0xff] %v1729_v23   ;;  %2096 = vpow2.f32 %v1082_v63  ;;  %v1596_v56 = vadd.f32 -1.0, %v2089_v5  ;;  %v1226_v38 = vsel %vm1194_vm11, %v2488_v4, %v1162_v26 }
 0x170   : > { %v2091_v44 = vpop.eup %2090  ;;  %v1258_v29 = vmul.f32 1.050701, %v1226_v38  ;;  %vm1187_vm0 = vcmp.gt.f32.partialorder %v969_v16, 0.0 }
 0x171   : > { %v1719_v30 = vpack.c.bf16 %v1249_v31, %v1248_v28  ;;  %v1599_v55 = vadd.f32 -1.0, %v2091_v44  ;;  %v1160_v59 = vmul.f32 1.6732632, %v1596_v56 }
 0x172   : > { %v2093_v33 = vpop.eup %2092 }
 0x173   : > { %1755 = vst [vmem:[%s2355_s7 + $0x50] sm:$0xff] %v1719_v30   ;;  %v1163_v14 = vmul.f32 1.6732632, %v1599_v55  ;;  %v1590_v11 = vadd.f32 -1.0, %v2093_v33  ;;  %v1224_v46 = vsel %vm1192_vm13, %v2502_v34, %v1160_v59 }
 0x174   : > { %v1256_v52 = vmul.f32 1.050701, %v1224_v46 }
 0x175   : > { %v1227_v8 = vsel %vm1195_vm12, %v2514_v49, %v1163_v14  ;;  %v2095_v41 = vpop.eup %2094  ;;  %v1154_v48 = vmul.f32 1.6732632, %v1590_v11 }
 0x176   : > { %v1259_v43 = vmul.f32 1.050701, %v1227_v8  ;;  %v1597_v19 = vadd.f32 -1.0, %v2095_v41 }
 0x177   : > { %v1218_v54 = vsel %vm1186_vm15, %v2499_v27, %v1154_v48 }
 0x178   : > { %v1744_v1 = vpack.c.bf16 %v1259_v43, %v1258_v29  ;;  %v1161_v39 = vmul.f32 1.6732632, %v1597_v19  ;;  %v1250_v61 = vmul.f32 1.050701, %v1218_v54 }
 0x179   : > { %v2097_v4 = vpop.eup %2096 }
 0x17a   : > { %1760 = vst [vmem:[%s2355_s7 + $0x78] sm:$0xff] %v1744_v1   ;;  %v1591_v13 = vadd.f32 -1.0, %v2097_v4  ;;  %v1225_v49 = vsel %vm1193_vm14, %v2528_v37, %v1161_v39 }
 0x17b   : > { %v1257_v6 = vmul.f32 1.050701, %v1225_v49 }
 0x17c   : > { %v1155_v2 = vmul.f32 1.6732632, %v1591_v13 }
 0x17d   : > { %v1739_v57 = vpack.c.bf16 %v1257_v6, %v1256_v52 }
 0x17e   : > { %v1219_v34 = vsel %vm1187_vm0, %v969_v16, %v1155_v2 }
 0x17f   : > { %v1251_v47 = vmul.f32 1.050701, %v1219_v34  ;;  %1759 = vst [vmem:[%s2355_s7 + $0x70] sm:$0xff] %v1739_v57  }
 0x181   : > { %v1724_v24 = vpack.c.bf16 %v1251_v47, %v1250_v61 }
 0x183   : > { %1756 = vst [vmem:[%s2355_s7 + $0x58] sm:$0xff] %v1724_v24  }
 0x184 PF: > { %s13_s12 = sadd.s32 1, %s2104_s12  }
 0x185   : > { %p10_p4 = scmp.ge.s32.totalorder %s13_s12, 4  }
 0x187   :  { %12 = sbr.rel (!%p10_p4) target bundleno = 1 (0x1), region = 62 }

// kernel: _lambda_.21
= control target key start
LH: loop header
LB: loop body
LE: loop exit
PB: predicated region body
PF: predicated region fallthrough
CT: control target
= control target key end

     0   :  { %s2787_s12 = smov 0   ;;  %s3396_s0 = inlined_call_operand.vmem [shape: bf16[1,2048,288], index: 0, kind: input, shape index: {}]   ;;  %s3397_s1 = inlined_call_operand.vmem [shape: bf16[288,12], index: 1, kind: input, shape index: {}]   ;;  %s3398_s2 = inlined_call_operand.vmem [shape: f32[1,12], index: 2, kind: input, shape index: {}]   ;;  %s3399_s3 = inlined_call_operand.vmem [shape: f32[2048,12], index: 3, kind: output, shape index: {}]  }
   0x1 LB: > { %s2053_s13 = sadd.s32 4294967295, %s2764_s12   ;;  %p2057_p0 = scmp.ge.s32.totalorder %s2764_s12, 1  ;;  %s2764_s12 = sphi %s2787_s12, %s13_s12  }
   0x2   : > { %p139_p1 = scmp.lt.s32.totalorder %s2764_s12, 5 }
   0x4   : > { %p140_p2 = pnand %p2057_p0, %p139_p1 }
   0x5   : > { %v2355_v0 = vld [vmem:[%s3397_s1] sm:$0xff] (!%p140_p2)   ;;  %v2766_v1 = vmov (!%p140_p2), 0   ;;  %s2058_s16 = sshll.u32 (!%p140_p2), %s2053_s13, 6  ;;  %v2356_v2 = vld [vmem:[%s3397_s1 + $0x8] sm:$0xff] (!%p140_p2)   ;;  %v2357_v3 = vld [vmem:[%s3397_s1 + $0x10] sm:$0xff] (!%p140_p2)   ;;  %vm937_vm0 = vcmask (!%p140_p2), 261120  }
   0x6   : > { %143 = sbr.rel (%p140_p2) target bundleno = 516 (0x204), region = 32  ;;  %1034 = vmatprep.subr.bf16.mxu0 (!%p140_p2), %v2766_v1  ;;  %2313 = vmatprep.subr.bf16.mxu1 (!%p140_p2), %v2766_v1  ;;  %p165_p3 = scmp.lt.s32.totalorder (!%p140_p2), %s2058_s16, 255  ;;  %v2358_v4 = vld [vmem:[%s3397_s1 + $0x18] sm:$0xff] (!%p140_p2)   ;;  %v2359_v5 = vld [vmem:[%s3397_s1 + $0x20] sm:$0xff] (!%p140_p2)   ;;  %v2360_v7 = vld [vmem:[%s3397_s1 + $0x28] sm:$0xff] (!%p140_p2)   ;;  %vm1932_vm1 = vcmask (!%p140_p2), 97280  }
   0x7   : > { %1035 = vmatpush1.bf16.msra.mxu0 (!%p140_p2), %v2355_v0  ;;  %2329 = vmatpush1.bf16.msra.mxu1 (!%p140_p2), %v2355_v0  ;;  %v2361_v9 = vld [vmem:[%s3397_s1 + $0x30] sm:$0xff] (!%p140_p2)   ;;  %v2362_v10 = vld [vmem:[%s3397_s1 + $0x38] sm:$0xff] (!%p140_p2)   ;;  %v2363_v11 = vld [vmem:[%s3397_s1 + $0x40] sm:$0xff] (!%p140_p2)  }
   0x8   : > { %1036 = vmatprep.subr.bf16.mxu0 (!%p140_p2), %v2766_v1  ;;  %2314 = vmatprep.subr.bf16.mxu1 (!%p140_p2), %v2766_v1  ;;  %v2364_v12 = vld [vmem:[%s3397_s1 + $0x48] sm:$0xff] (!%p140_p2)   ;;  %v2365_v13 = vld [vmem:[%s3397_s1 + $0x50] sm:$0xff] (!%p140_p2)   ;;  %v2366_v14 = vld [vmem:[%s3397_s1 + $0x58] sm:$0xff] (!%p140_p2)  }
   0x9   : > { %v2367_v15 = vld [vmem:[%s3397_s1 + $0x60] sm:$0xff] (!%p140_p2)   ;;  %v2368_v16 = vld [vmem:[%s3397_s1 + $0x68] sm:$0xff] (!%p140_p2)   ;;  %v2369_v17 = vld [vmem:[%s3397_s1 + $0x70] sm:$0xff] (!%p140_p2)  }
   0xa   : > { %v2370_v18 = vld [vmem:[%s3397_s1 + $0x78] sm:$0xff] (!%p140_p2)   ;;  %v2377_v19 = vld [vmem:[%s3397_s1 + $0x80] sm:$0xff] (!%p140_p2)   ;;  %v2402_v24 = vld [vmem:[%s3397_s1 + $0x88] sm:$0xff] (!%p140_p2)  }
   0xb   : > { %1037 = vmatpush1.bf16.msra.mxu0 (!%p140_p2), %v2356_v2  ;;  %2330 = vmatpush1.bf16.msra.mxu1 (!%p140_p2), %v2356_v2 }
   0xc   : > { %1038 = vmatprep.subr.bf16.mxu0 (!%p140_p2), %v2766_v1  ;;  %2315 = vmatprep.subr.bf16.mxu1 (!%p140_p2), %v2766_v1 }
   0xd   : > { %s3401_s16 = smov (!%p165_p3, %s2058_s16), 255 }
   0xe   : > { %s2345_s23 = smul.u32 12, %s3401_s16  ;;  %s2061_s5 = sshll.u32 %s3401_s16, 3 }
   0xf   : > { %1039 = vmatpush1.bf16.msra.mxu0 %v2357_v3  ;;  %2331 = vmatpush1.bf16.msra.mxu1 %v2357_v3  ;;  %s3132_s7 = scalar_lea.vmem %s3399_s3, %s2061_s5 }
  0x10   : > { %1040 = vmatprep.subr.bf16.mxu0 %v2766_v1  ;;  %2316 = vmatprep.subr.bf16.mxu1 %v2766_v1  ;;  %s2824_s28 = scalar_lea.vmem %s3396_s0, %s2345_s23 }
  0x11   : > { %v2373_v6 = vld [vmem:[%s2824_s28 + $0x4] ss:$12 sps:$4 sm:$0xff]   ;;  %v2371_v20 = vld [vmem:[%s2824_s28] ss:$12 sps:$4 sm:$0xff]   ;;  %v2378_v22 = vld [vmem:[%s2824_s28 + $0x1c] ss:$12 sps:$4 sm:$0xff]  }
  0x12   : > { %v2376_v8 = vld [vmem:[%s2824_s28 + $0x244] ss:$12 sps:$4 sm:$0xff]   ;;  %1066 = vmatprep.mubr.bf16.mxu0 %v2373_v6  ;;  %v2374_v21 = vld [vmem:[%s2824_s28 + $0x240] ss:$12 sps:$4 sm:$0xff]   ;;  %v2380_v23 = vld [vmem:[%s2824_s28 + $0x25c] ss:$12 sps:$4 sm:$0xff]  }
  0x13   : > { %1041 = vmatpush1.bf16.msra.mxu0 %v2358_v4  ;;  %2332 = vmatpush1.bf16.msra.mxu1 %v2358_v4  ;;  %v2382_v25 = vld [vmem:[%s2824_s28 + $0x18] ss:$12 sps:$4 sm:$0xff]   ;;  %v2384_v27 = vld [vmem:[%s2824_s28 + $0x34] ss:$12 sps:$4 sm:$0xff]   ;;  %v2388_v29 = vld [vmem:[%s2824_s28 + $0x30] ss:$12 sps:$4 sm:$0xff]  }
  0x14   : > { %1042 = vmatprep.subr.bf16.mxu0 %v2766_v1  ;;  %2317 = vmatprep.subr.bf16.mxu1 %v2766_v1  ;;  %v2383_v26 = vld [vmem:[%s2824_s28 + $0x258] ss:$12 sps:$4 sm:$0xff]   ;;  %v2386_v28 = vld [vmem:[%s2824_s28 + $0x274] ss:$12 sps:$4 sm:$0xff]   ;;  %v2389_v30 = vld [vmem:[%s2824_s28 + $0x270] ss:$12 sps:$4 sm:$0xff]  }
  0x15   : > { %1258 = vmatprep.mubr.bf16.mxu1 %v2376_v8  ;;  %v2390_v31 = vld [vmem:[%s2824_s28 + $0x4c] ss:$12 sps:$4 sm:$0xff]   ;;  %v2394_v33 = vld [vmem:[%s2824_s28 + $0x48] ss:$12 sps:$4 sm:$0xff]   ;;  %v2396_v35 = vld [vmem:[%s2824_s28 + $0x64] ss:$12 sps:$4 sm:$0xff]  }
  0x16   : > { %v2392_v32 = vld [vmem:[%s2824_s28 + $0x28c] ss:$12 sps:$4 sm:$0xff]   ;;  %v2395_v34 = vld [vmem:[%s2824_s28 + $0x288] ss:$12 sps:$4 sm:$0xff]   ;;  %v2398_v36 = vld [vmem:[%s2824_s28 + $0x2a4] ss:$12 sps:$4 sm:$0xff]  }
  0x17   : > { %1043 = vmatpush1.bf16.msra.mxu0 %v2359_v5  ;;  %2333 = vmatpush1.bf16.msra.mxu1 %v2359_v5  ;;  %v2400_v37 = vld [vmem:[%s2824_s28 + $0x60] ss:$12 sps:$4 sm:$0xff]   ;;  %v2403_v39 = vld [vmem:[%s2824_s28 + $0x7c] ss:$12 sps:$4 sm:$0xff]   ;;  %v2407_v41 = vld [vmem:[%s2824_s28 + $0x78] ss:$12 sps:$4 sm:$0xff]  }
  0x18   : > { %1044 = vmatprep.subr.bf16.mxu0 %v2766_v1  ;;  %2318 = vmatprep.subr.bf16.mxu1 %v2766_v1  ;;  %v2401_v38 = vld [vmem:[%s2824_s28 + $0x2a0] ss:$12 sps:$4 sm:$0xff]   ;;  %v2405_v40 = vld [vmem:[%s2824_s28 + $0x2bc] ss:$12 sps:$4 sm:$0xff]   ;;  %v2408_v42 = vld [vmem:[%s2824_s28 + $0x2b8] ss:$12 sps:$4 sm:$0xff]  }
  0x19   : > { %v2409_v43 = vld [vmem:[%s2824_s28 + $0x94] ss:$12 sps:$4 sm:$0xff]   ;;  %v2413_v45 = vld [vmem:[%s2824_s28 + $0x90] ss:$12 sps:$4 sm:$0xff]   ;;  %v2415_v47 = vld [vmem:[%s2824_s28 + $0xac] ss:$12 sps:$4 sm:$0xff]  }
  0x1a   : > { %v2411_v44 = vld [vmem:[%s2824_s28 + $0x2d4] ss:$12 sps:$4 sm:$0xff]   ;;  %v2414_v46 = vld [vmem:[%s2824_s28 + $0x2d0] ss:$12 sps:$4 sm:$0xff]   ;;  %v2417_v48 = vld [vmem:[%s2824_s28 + $0x2ec] ss:$12 sps:$4 sm:$0xff]  }
  0x1b   : > { %1045 = vmatpush1.bf16.msra.mxu0 %v2360_v7  ;;  %2334 = vmatpush1.bf16.msra.mxu1 %v2360_v7  ;;  %v2419_v49 = vld [vmem:[%s2824_s28 + $0xa8] ss:$12 sps:$4 sm:$0xff]   ;;  %v2421_v51 = vld [vmem:[%s2824_s28 + $0xc4] ss:$12 sps:$4 sm:$0xff]   ;;  %v2424_v53 = vld [vmem:[%s2824_s28 + $0xc0] ss:$12 sps:$4 sm:$0xff]  }
  0x1c   : > { %1046 = vmatprep.subr.bf16.mxu0 %v2766_v1  ;;  %2319 = vmatprep.subr.bf16.mxu1 %v2766_v1  ;;  %v2420_v50 = vld [vmem:[%s2824_s28 + $0x2e8] ss:$12 sps:$4 sm:$0xff]   ;;  %v2425_v54 = vld [vmem:[%s2824_s28 + $0x20] ss:$12 sps:$4 sm:$0xff]   ;;  %v2428_v56 = vld [vmem:[%s2824_s28 + $0x38] ss:$12 sps:$4 sm:$0xff]  }
  0x1d   : > { %v2423_v52 = vld [vmem:[%s2824_s28 + $0x8] ss:$12 sps:$4 sm:$0xff]   ;;  %v2429_v57 = vld [vmem:[%s2824_s28 + $0xd8] ss:$12 sps:$4 sm:$0xff]   ;;  %v2430_v58 = vld [vmem:[%s2824_s28 + $0x50] ss:$12 sps:$4 sm:$0xff]  }
  0x1e   : > { %v2426_v55 = vld [vmem:[%s2824_s28 + $0xdc] ss:$12 sps:$4 sm:$0xff]   ;;  %v2431_v59 = vld [vmem:[%s2824_s28 + $0xf4] ss:$12 sps:$4 sm:$0xff]   ;;  %v2436_v63 = vld [vmem:[%s2824_s28 + $0x10c] ss:$12 sps:$4 sm:$0xff]  }
  0x1f   : > { %1047 = vmatpush1.bf16.msra.mxu0 %v2361_v9  ;;  %2335 = vmatpush1.bf16.msra.mxu1 %v2361_v9  ;;  %v2433_v60 = vld [vmem:[%s2824_s28 + $0x68] ss:$12 sps:$4 sm:$0xff]   ;;  %v2434_v61 = vld [vmem:[%s2824_s28 + $0xf0] ss:$12 sps:$4 sm:$0xff]   ;;  %v2435_v62 = vld [vmem:[%s2824_s28 + $0x80] ss:$12 sps:$4 sm:$0xff]  }
  0x20   : > { %1048 = vmatprep.subr.bf16.mxu0 %v2766_v1  ;;  %2320 = vmatprep.subr.bf16.mxu1 %v2766_v1  ;;  %v2438_v0 = vld [vmem:[%s2824_s28 + $0x98] ss:$12 sps:$4 sm:$0xff]   ;;  %v2440_v2 = vld [vmem:[%s2824_s28 + $0xb0] ss:$12 sps:$4 sm:$0xff]   ;;  %v2443_v4 = vld [vmem:[%s2824_s28 + $0xc8] ss:$12 sps:$4 sm:$0xff]  }
  0x21   : > { %v2441_v3 = vld [vmem:[%s2824_s28 + $0x124] ss:$12 sps:$4 sm:$0xff]   ;;  %v2444_v5 = vld [vmem:[%s2824_s28 + $0x120] ss:$12 sps:$4 sm:$0xff]   ;;  %v2446_v7 = vld [vmem:[%s2824_s28 + $0x13c] ss:$12 sps:$4 sm:$0xff]  }
  0x22   : > { %v2445_v6 = vld [vmem:[%s2824_s28 + $0xe0] ss:$12 sps:$4 sm:$0xff]   ;;  %v2448_v8 = vld [vmem:[%s2824_s28 + $0xf8] ss:$12 sps:$4 sm:$0xff]  }
  0x23   : > { %1049 = vmatpush1.bf16.msra.mxu0 %v2362_v10  ;;  %2336 = vmatpush1.bf16.msra.mxu1 %v2362_v10  ;;  %v2449_v9 = vld [vmem:[%s2824_s28 + $0x138] ss:$12 sps:$4 sm:$0xff]   ;;  %v2450_v10 = vld [vmem:[%s2824_s28 + $0x110] ss:$12 sps:$4 sm:$0xff]  }
  0x24   : > { %1050 = vmatprep.subr.bf16.mxu0 %v2766_v1  ;;  %2321 = vmatprep.subr.bf16.mxu1 %v2766_v1 }
  0x27   : > { %1051 = vmatpush1.bf16.msra.mxu0 %v2363_v11  ;;  %2337 = vmatpush1.bf16.msra.mxu1 %v2363_v11  ;;  %v2451_v11 = vld [vmem:[%s2824_s28 + $0x154] ss:$12 sps:$4 sm:$0xff]  }
  0x28   : > { %1052 = vmatprep.subr.bf16.mxu0 %v2766_v1  ;;  %2322 = vmatprep.subr.bf16.mxu1 %v2766_v1 }
  0x2b   : > { %1053 = vmatpush1.bf16.msra.mxu0 %v2364_v12  ;;  %2338 = vmatpush1.bf16.msra.mxu1 %v2364_v12  ;;  %v2453_v12 = vld [vmem:[%s2824_s28 + $0x128] ss:$12 sps:$4 sm:$0xff]  }
  0x2c   : > { %1054 = vmatprep.subr.bf16.mxu0 %v2766_v1  ;;  %2323 = vmatprep.subr.bf16.mxu1 %v2766_v1 }
  0x2f   : > { %1055 = vmatpush1.bf16.msra.mxu0 %v2365_v13  ;;  %2339 = vmatpush1.bf16.msra.mxu1 %v2365_v13  ;;  %v2454_v13 = vld [vmem:[%s2824_s28 + $0x150] ss:$12 sps:$4 sm:$0xff]  }
  0x30   : > { %1056 = vmatprep.subr.bf16.mxu0 %v2766_v1  ;;  %2324 = vmatprep.subr.bf16.mxu1 %v2766_v1 }
  0x33   : > { %1057 = vmatpush1.bf16.msra.mxu0 %v2366_v14  ;;  %2340 = vmatpush1.bf16.msra.mxu1 %v2366_v14  ;;  %v2455_v14 = vld [vmem:[%s2824_s28 + $0x140] ss:$12 sps:$4 sm:$0xff]  }
  0x34   : > { %1058 = vmatprep.subr.bf16.mxu0 %v2766_v1  ;;  %2325 = vmatprep.subr.bf16.mxu1 %v2766_v1 }
  0x37   : > { %1059 = vmatpush1.bf16.msra.mxu0 %v2367_v15  ;;  %2341 = vmatpush1.bf16.msra.mxu1 %v2367_v15  ;;  %v2456_v15 = vld [vmem:[%s2824_s28 + $0x16c] ss:$12 sps:$4 sm:$0xff]  }
  0x38   : > { %1060 = vmatprep.subr.bf16.mxu0 %v2766_v1  ;;  %2326 = vmatprep.subr.bf16.mxu1 %v2766_v1 }
  0x3b   : > { %1061 = vmatpush1.bf16.msra.mxu0 %v2368_v16  ;;  %2342 = vmatpush1.bf16.msra.mxu1 %v2368_v16  ;;  %v2458_v16 = vld [vmem:[%s2824_s28 + $0x158] ss:$12 sps:$4 sm:$0xff]  }
  0x3c   : > { %1062 = vmatprep.subr.bf16.mxu0 %v2766_v1  ;;  %2327 = vmatprep.subr.bf16.mxu1 %v2766_v1 }
  0x3f   : > { %1063 = vmatpush1.bf16.msra.mxu0 %v2369_v17  ;;  %2343 = vmatpush1.bf16.msra.mxu1 %v2369_v17  ;;  %v2459_v17 = vld [vmem:[%s2824_s28 + $0x168] ss:$12 sps:$4 sm:$0xff]  }
  0x40   : > { %1064 = vmatprep.subr.bf16.mxu0 %v2766_v1  ;;  %2328 = vmatprep.subr.bf16.mxu1 %v2766_v1  ;;  %v2439_v1 = vld [vmem:[%s2824_s28 + $0x108] ss:$12 sps:$4 sm:$0xff]  }
  0x43   : > { %1065 = vmatpush1.bf16.msra.mxu0 %v2370_v18  ;;  %2344 = vmatpush1.bf16.msra.mxu1 %v2370_v18  ;;  %v2460_v18 = vld [vmem:[%s2824_s28 + $0x170] ss:$12 sps:$4 sm:$0xff]  }
  0x44   : > { %2245 = vmatprep.subr.bf16.mxu1 %v2377_v19 }
  0x46   : > { %1067 = vmatmul.mubr.bf16.vlgmr.msra.gmra.mrb[0].mxu0 %v2371_v20  ;;  %1259 = vmatmul.mubr.bf16.vlgmr.msra.gmra.mrb[0].mxu1 %v2374_v21  ;;  %v2463_v20 = vld [vmem:[%s2824_s28 + $0x188] ss:$12 sps:$4 sm:$0xff]   ;;  %v2464_v21 = vld [vmem:[%s2824_s28 + $0x180] ss:$12 sps:$4 sm:$0xff]  }
  0x47   : > { %2246 = vmatpush3.bf16.msra.mxu1 %v2377_v19  ;;  %1074 = vmatprep.mubr.bf16.mxu0 %v2378_v22  ;;  %v2461_v19 = vld [vmem:[%s2824_s28 + $0x184] ss:$12 sps:$4 sm:$0xff]   ;;  %v2465_v22 = vld [vmem:[%s2824_s28 + $0x1a0] ss:$12 sps:$4 sm:$0xff]  }
  0x48   : > { %1266 = vmatprep.mubr.bf16.mxu1 %v2380_v23  ;;  %2247 = vmatprep.subr.bf16.mxu1 %v2402_v24  ;;  %v2466_v23 = vld [vmem:[%s2824_s28 + $0x19c] ss:$12 sps:$4 sm:$0xff]  }
  0x4b   : > { %2248 = vmatpush3.bf16.msra.mxu1 %v2402_v24  ;;  %v2468_v24 = vld [vmem:[%s2824_s28 + $0x1b8] ss:$12 sps:$4 sm:$0xff]  }
  0x4e   : > { %1075 = vmatmul.mubr.bf16.gmra.mrb[4].mxu0 %v2382_v25  ;;  %1267 = vmatmul.mubr.bf16.gmra.mrb[4].mxu1 %v2383_v26  ;;  %v2469_v25 = vld [vmem:[%s2824_s28 + $0x198] ss:$12 sps:$4 sm:$0xff]   ;;  %v2470_v26 = vld [vmem:[%s2824_s28 + $0x1d0] ss:$12 sps:$4 sm:$0xff]  }
  0x4f   : > { %1082 = vmatprep.mubr.bf16.mxu0 %v2384_v27  ;;  %1274 = vmatprep.mubr.bf16.mxu1 %v2386_v28  ;;  %v2471_v27 = vld [vmem:[%s2824_s28 + $0x1b4] ss:$12 sps:$4 sm:$0xff]  }
  0x50   : > { %v2473_v28 = vld [vmem:[%s2824_s28 + $0x1e8] ss:$12 sps:$4 sm:$0xff]  }
  0x56   : > { %1083 = vmatmul.mubr.bf16.gmra.mrb[8].mxu0 %v2388_v29  ;;  %1275 = vmatmul.mubr.bf16.gmra.mrb[8].mxu1 %v2389_v30  ;;  %v2474_v29 = vld [vmem:[%s2824_s28 + $0x1b0] ss:$12 sps:$4 sm:$0xff]   ;;  %v2475_v30 = vld [vmem:[%s2824_s28 + $0x200] ss:$12 sps:$4 sm:$0xff]  }
  0x57   : > { %1090 = vmatprep.mubr.bf16.mxu0 %v2390_v31  ;;  %1282 = vmatprep.mubr.bf16.mxu1 %v2392_v32  ;;  %v2476_v31 = vld [vmem:[%s2824_s28 + $0x1cc] ss:$12 sps:$4 sm:$0xff]  }
  0x58   : > { %v2478_v32 = vld [vmem:[%s2824_s28 + $0x218] ss:$12 sps:$4 sm:$0xff]  }
  0x5e   : > { %1091 = vmatmul.mubr.bf16.gmra.mrb[12].mxu0 %v2394_v33  ;;  %1283 = vmatmul.mubr.bf16.gmra.mrb[12].mxu1 %v2395_v34  ;;  %v2479_v33 = vld [vmem:[%s2824_s28 + $0x1c8] ss:$12 sps:$4 sm:$0xff]   ;;  %v2480_v34 = vld [vmem:[%s2824_s28 + $0x230] ss:$12 sps:$4 sm:$0xff]  }
  0x5f   : > { %1098 = vmatprep.mubr.bf16.mxu0 %v2396_v35  ;;  %1290 = vmatprep.mubr.bf16.mxu1 %v2398_v36  ;;  %v2481_v35 = vld [vmem:[%s2824_s28 + $0x1e4] ss:$12 sps:$4 sm:$0xff]   ;;  %v2483_v36 = vld [vmem:[%s2824_s28 + $0x248] ss:$12 sps:$4 sm:$0xff]  }
  0x66   : > { %1099 = vmatmul.mubr.bf16.gmra.mrb[16].mxu0 %v2400_v37  ;;  %1291 = vmatmul.mubr.bf16.gmra.mrb[16].mxu1 %v2401_v38  ;;  %v2484_v37 = vld [vmem:[%s2824_s28 + $0x1e0] ss:$12 sps:$4 sm:$0xff]  }
  0x67   : > { %1106 = vmatprep.mubr.bf16.mxu0 %v2403_v39  ;;  %1298 = vmatprep.mubr.bf16.mxu1 %v2405_v40  ;;  %v2485_v38 = vld [vmem:[%s2824_s28 + $0x260] ss:$12 sps:$4 sm:$0xff]   ;;  %v2486_v39 = vld [vmem:[%s2824_s28 + $0x1fc] ss:$12 sps:$4 sm:$0xff]   ;;  %v2488_v40 = vld [vmem:[%s2824_s28 + $0x278] ss:$12 sps:$4 sm:$0xff]  }
  0x6e   : > { %1107 = vmatmul.mubr.bf16.gmra.mrb[20].mxu0 %v2407_v41  ;;  %1299 = vmatmul.mubr.bf16.gmra.mrb[20].mxu1 %v2408_v42  ;;  %v2489_v41 = vld [vmem:[%s2824_s28 + $0x1f8] ss:$12 sps:$4 sm:$0xff]   ;;  %v2490_v42 = vld [vmem:[%s2824_s28 + $0x290] ss:$12 sps:$4 sm:$0xff]  }
  0x6f   : > { %1114 = vmatprep.mubr.bf16.mxu0 %v2409_v43  ;;  %1306 = vmatprep.mubr.bf16.mxu1 %v2411_v44  ;;  %v2491_v43 = vld [vmem:[%s2824_s28 + $0x214] ss:$12 sps:$4 sm:$0xff]  }
  0x70   : > { %v2493_v44 = vld [vmem:[%s2824_s28 + $0x2a8] ss:$12 sps:$4 sm:$0xff]  }
  0x76   : > { %1115 = vmatmul.mubr.bf16.gmra.mrb[24].mxu0 %v2413_v45  ;;  %1307 = vmatmul.mubr.bf16.gmra.mrb[24].mxu1 %v2414_v46  ;;  %v2494_v45 = vld [vmem:[%s2824_s28 + $0x210] ss:$12 sps:$4 sm:$0xff]   ;;  %v2495_v46 = vld [vmem:[%s2824_s28 + $0x2c0] ss:$12 sps:$4 sm:$0xff]  }
  0x77   : > { %1122 = vmatprep.mubr.bf16.mxu0 %v2415_v47  ;;  %1314 = vmatprep.mubr.bf16.mxu1 %v2417_v48  ;;  %v2496_v47 = vld [vmem:[%s2824_s28 + $0x22c] ss:$12 sps:$4 sm:$0xff]  }
  0x78   : > { %v2498_v48 = vld [vmem:[%s2824_s28 + $0x2d8] ss:$12 sps:$4 sm:$0xff]  }
  0x7e   : > { %1123 = vmatmul.mubr.bf16.gmra.mrb[28].mxu0 %v2419_v49  ;;  %1315 = vmatmul.mubr.bf16.gmra.mrb[28].mxu1 %v2420_v50  ;;  %v2499_v49 = vld [vmem:[%s2824_s28 + $0x228] ss:$12 sps:$4 sm:$0xff]   ;;  %v2500_v50 = vld [vmem:[%s2824_s28 + $0x2f0] ss:$12 sps:$4 sm:$0xff]  }
  0x7f   : > { %1130 = vmatprep.mubr.bf16.mxu0 %v2421_v51  ;;  %2249 = vmatprep.mubr.msk.bf16.mxu1 %vm937_vm0, %v2423_v52 }
  0x86   : > { %1131 = vmatmul.mubr.bf16.gmra.mrb[32].mxu0 %v2424_v53  ;;  %2250 = vmatmul.mubr.msk.bf16.vlgmr.msra.gmra.mrb[32].mxu1 %vm937_vm0, %v2425_v54 }
  0x87   : > { %1138 = vmatprep.mubr.bf16.mxu0 %v2426_v55  ;;  %2253 = vmatprep.mubr.msk.bf16.mxu1 %vm937_vm0, %v2428_v56 }
  0x8e   : > { %1139 = vmatmul.mubr.bf16.gmra.mrb[36].mxu0 %v2429_v57  ;;  %2254 = vmatmul.mubr.msk.bf16.gmra.mrb[36].mxu1 %vm937_vm0, %v2430_v58 }
  0x8f   : > { %1146 = vmatprep.mubr.bf16.mxu0 %v2431_v59  ;;  %2257 = vmatprep.mubr.msk.bf16.mxu1 %vm937_vm0, %v2433_v60 }
  0x96   : > { %1147 = vmatmul.mubr.bf16.gmra.mrb[40].mxu0 %v2434_v61  ;;  %2258 = vmatmul.mubr.msk.bf16.gmra.mrb[40].mxu1 %vm937_vm0, %v2435_v62 }
  0x97   : > { %1154 = vmatprep.mubr.bf16.mxu0 %v2436_v63  ;;  %2261 = vmatprep.mubr.msk.bf16.mxu1 %vm937_vm0, %v2438_v0 }
  0x9e   : > { %1155 = vmatmul.mubr.bf16.gmra.mrb[44].mxu0 %v2439_v1  ;;  %2262 = vmatmul.mubr.msk.bf16.gmra.mrb[44].mxu1 %vm937_vm0, %v2440_v2 }
  0x9f   : > { %1162 = vmatprep.mubr.bf16.mxu0 %v2441_v3  ;;  %2265 = vmatprep.mubr.msk.bf16.mxu1 %vm937_vm0, %v2443_v4 }
  0xa6   : > { %1163 = vmatmul.mubr.bf16.gmra.mrb[48].mxu0 %v2444_v5  ;;  %2266 = vmatmul.mubr.msk.bf16.gmra.mrb[48].mxu1 %vm937_vm0, %v2445_v6 }
  0xa7   : > { %1170 = vmatprep.mubr.bf16.mxu0 %v2446_v7  ;;  %2269 = vmatprep.mubr.msk.bf16.mxu1 %vm937_vm0, %v2448_v8 }
  0xae   : > { %1171 = vmatmul.mubr.bf16.gmra.mrb[52].mxu0 %v2449_v9  ;;  %2270 = vmatmul.mubr.msk.bf16.gmra.mrb[52].mxu1 %vm937_vm0, %v2450_v10 }
  0xaf   : > { %1178 = vmatprep.mubr.bf16.mxu0 %v2451_v11  ;;  %2273 = vmatprep.mubr.msk.bf16.mxu1 %vm937_vm0, %v2453_v12 }
  0xb6   : > { %1179 = vmatmul.mubr.bf16.gmra.mrb[56].mxu0 %v2454_v13  ;;  %2274 = vmatmul.mubr.msk.bf16.gmra.mrb[56].mxu1 %vm937_vm0, %v2455_v14 }
  0xb7   : > { %1186 = vmatprep.mubr.bf16.mxu0 %v2456_v15  ;;  %2277 = vmatprep.mubr.msk.bf16.mxu1 %vm937_vm0, %v2458_v16 }
  0xbe   : > { %1187 = vmatmul.mubr.bf16.gmra.mrb[60].mxu0 %v2459_v17  ;;  %2278 = vmatmul.mubr.msk.bf16.gmra.mrb[60].mxu1 %vm937_vm0, %v2460_v18 }
  0xbf   : > { %1194 = vmatprep.mubr.bf16.mxu0 %v2461_v19  ;;  %2281 = vmatprep.mubr.msk.bf16.mxu1 %vm937_vm0, %v2463_v20 }
  0xc6   : > { %1195 = vmatmul.mubr.bf16.gmra.mrb[64].mxu0 %v2464_v21  ;;  %2282 = vmatmul.mubr.msk.bf16.gmra.mrb[64].mxu1 %vm937_vm0, %v2465_v22 }
  0xc7   : > { %1202 = vmatprep.mubr.bf16.mxu0 %v2466_v23  ;;  %2285 = vmatprep.mubr.msk.bf16.mxu1 %vm937_vm0, %v2468_v24 }
  0xce   : > { %1203 = vmatmul.mubr.bf16.gmra.mrb[68].mxu0 %v2469_v25  ;;  %2286 = vmatmul.mubr.msk.bf16.gmra.mrb[68].mxu1 %vm937_vm0, %v2470_v26 }
  0xcf   : > { %1210 = vmatprep.mubr.bf16.mxu0 %v2471_v27  ;;  %2289 = vmatprep.mubr.msk.bf16.mxu1 %vm937_vm0, %v2473_v28 }
  0xd6   : > { %1211 = vmatmul.mubr.bf16.gmra.mrb[72].mxu0 %v2474_v29  ;;  %2290 = vmatmul.mubr.msk.bf16.gmra.mrb[72].mxu1 %vm937_vm0, %v2475_v30 }
  0xd7   : > { %1218 = vmatprep.mubr.bf16.mxu0 %v2476_v31  ;;  %2293 = vmatprep.mubr.msk.bf16.mxu1 %vm937_vm0, %v2478_v32 }
  0xde   : > { %1219 = vmatmul.mubr.bf16.gmra.mrb[76].mxu0 %v2479_v33  ;;  %2294 = vmatmul.mubr.msk.bf16.gmra.mrb[76].mxu1 %vm937_vm0, %v2480_v34 }
  0xdf   : > { %1226 = vmatprep.mubr.bf16.mxu0 %v2481_v35  ;;  %2297 = vmatprep.mubr.msk.bf16.mxu1 %vm937_vm0, %v2483_v36 }
  0xe6   : > { %1227 = vmatmul.mubr.bf16.gmra.mrb[80].mxu0 %v2484_v37  ;;  %2298 = vmatmul.mubr.msk.bf16.gmra.mrb[80].mxu1 %vm937_vm0, %v2485_v38 }
  0xe7   : > { %1234 = vmatprep.mubr.bf16.mxu0 %v2486_v39  ;;  %2301 = vmatprep.mubr.msk.bf16.mxu1 %vm937_vm0, %v2488_v40 }
  0xee   : > { %1235 = vmatmul.mubr.bf16.gmra.mrb[84].mxu0 %v2489_v41  ;;  %2302 = vmatmul.mubr.msk.bf16.gmra.mrb[84].mxu1 %vm937_vm0, %v2490_v42 }
  0xef   : > { %1242 = vmatprep.mubr.bf16.mxu0 %v2491_v43  ;;  %2305 = vmatprep.mubr.msk.bf16.mxu1 %vm937_vm0, %v2493_v44 }
  0xf6   : > { %1243 = vmatmul.mubr.bf16.gmra.mrb[88].mxu0 %v2494_v45  ;;  %2306 = vmatmul.mubr.msk.bf16.gmra.mrb[88].mxu1 %vm937_vm0, %v2495_v46 }
  0xf7   : > { %1250 = vmatprep.mubr.bf16.mxu0 %v2496_v47  ;;  %2309 = vmatprep.mubr.msk.bf16.mxu1 %vm937_vm0, %v2498_v48 }
  0xfe   : > { %1251 = vmatmul.mubr.bf16.gmra.mrb[92].mxu0 %v2499_v49  ;;  %2310 = vmatmul.mubr.msk.bf16.gmra.mrb[92].mxu1 %vm937_vm0, %v2500_v50 }
 0x119   : > { %v3017_v51 = vpop.f32.mrb[0].mxu0  ;;  %v3019_v52 = vpop.f32.mrb[0].mxu1 }
 0x11a   : > { %v1070_v53 = vpop.f32.mrb[1].mxu0  ;;  %v1262_v54 = vpop.f32.mrb[1].mxu1 }
 0x11b   : > { %v3021_v55 = vpop.f32.mrb[2].mxu0  ;;  %v3023_v56 = vpop.f32.mrb[2].mxu1  ;;  %v3080_v53 = vld [vmem:[%s3398_s2] ss:$0 sm:$0xff] }
 0x11c   : > { %v1073_v57 = vpop.f32.mrb[3].mxu0  ;;  %v1265_v58 = vpop.f32.mrb[3].mxu1 }
 0x11d   : > { %v1069_v57 = vadd.f32 %v3080_v53, %v3017_v51 }
 0x121   : > { %v1076_v59 = vpop.f32.mrb[4].mxu0  ;;  %v3025_v60 = vpop.f32.mrb[4].mxu1 }
 0x122   : > { %v1078_v61 = vpop.f32.mrb[5].mxu0  ;;  %v1270_v62 = vpop.f32.mrb[5].mxu1  ;;  %v1077_v54 = vadd.f32 %v3080_v53, %v1076_v59 }
 0x123   : > { %v1079_v63 = vpop.f32.mrb[6].mxu0  ;;  %v3027_v0 = vpop.f32.mrb[6].mxu1 }
 0x124   : > { %v1081_v1 = vpop.f32.mrb[7].mxu0  ;;  %v1273_v2 = vpop.f32.mrb[7].mxu1  ;;  %v1080_v62 = vadd.f32 %v3080_v53, %v1079_v63 }
 0x129   : > { %v3029_v3 = vpop.f32.mrb[8].mxu0  ;;  %v3031_v4 = vpop.f32.mrb[8].mxu1 }
 0x12a   : > { %v1086_v5 = vpop.f32.mrb[9].mxu0  ;;  %v1278_v6 = vpop.f32.mrb[9].mxu1 }
 0x12b   : > { %v3033_v7 = vpop.f32.mrb[10].mxu0  ;;  %v3035_v8 = vpop.f32.mrb[10].mxu1  ;;  %v1072_v6 = vadd.f32 %v3080_v53, %v3021_v55  ;;  %v1085_v55 = vadd.f32 %v3080_v53, %v3029_v3 }
 0x12c   : > { %v1089_v9 = vpop.f32.mrb[11].mxu0  ;;  %v1281_v10 = vpop.f32.mrb[11].mxu1 }
 0x131   : > { %v3037_v11 = vpop.f32.mrb[12].mxu0  ;;  %v3039_v12 = vpop.f32.mrb[12].mxu1 }
 0x132   : > { %v1094_v13 = vpop.f32.mrb[13].mxu0  ;;  %v1286_v14 = vpop.f32.mrb[13].mxu1 }
 0x133   : > { %v3041_v15 = vpop.f32.mrb[14].mxu0  ;;  %v3043_v16 = vpop.f32.mrb[14].mxu1 }
 0x134   : > { %v1097_v17 = vpop.f32.mrb[15].mxu0  ;;  %v1289_v18 = vpop.f32.mrb[15].mxu1 }
 0x139   : > { %v3045_v19 = vpop.f32.mrb[16].mxu0  ;;  %v3047_v20 = vpop.f32.mrb[16].mxu1 }
 0x13a   : > { %v1102_v21 = vpop.f32.mrb[17].mxu0  ;;  %v1294_v22 = vpop.f32.mrb[17].mxu1 }
 0x13b   : > { %v3049_v23 = vpop.f32.mrb[18].mxu0  ;;  %v3051_v24 = vpop.f32.mrb[18].mxu1 }
 0x13c   : > { %v1105_v25 = vpop.f32.mrb[19].mxu0  ;;  %v1297_v26 = vpop.f32.mrb[19].mxu1 }
 0x141   : > { %v3053_v27 = vpop.f32.mrb[20].mxu0  ;;  %v3055_v28 = vpop.f32.mrb[20].mxu1 }
 0x142   : > { %v1110_v29 = vpop.f32.mrb[21].mxu0  ;;  %v1302_v30 = vpop.f32.mrb[21].mxu1 }
 0x143   : > { %v3057_v31 = vpop.f32.mrb[22].mxu0  ;;  %v3059_v32 = vpop.f32.mrb[22].mxu1  ;;  %v1093_v29 = vadd.f32 %v3080_v53, %v3037_v11  ;;  %v1088_v11 = vadd.f32 %v3080_v53, %v3033_v7 }
 0x144   : > { %v1113_v33 = vpop.f32.mrb[23].mxu0  ;;  %v1305_v34 = vpop.f32.mrb[23].mxu1 }
 0x149   : > { %v3061_v35 = vpop.f32.mrb[24].mxu0  ;;  %v3063_v36 = vpop.f32.mrb[24].mxu1 }
 0x14a   : > { %v1118_v37 = vpop.f32.mrb[25].mxu0  ;;  %v1310_v38 = vpop.f32.mrb[25].mxu1 }
 0x14b   : > { %v3065_v39 = vpop.f32.mrb[26].mxu0  ;;  %v3067_v40 = vpop.f32.mrb[26].mxu1  ;;  %v1096_v38 = vadd.f32 %v3080_v53, %v3041_v15 }
 0x14c   : > { %v1121_v41 = vpop.f32.mrb[27].mxu0  ;;  %v1313_v42 = vpop.f32.mrb[27].mxu1 }
 0x151   : > { %v3069_v43 = vpop.f32.mrb[28].mxu0  ;;  %v3071_v44 = vpop.f32.mrb[28].mxu1 }
 0x152   : > { %v1126_v45 = vpop.f32.mrb[29].mxu0  ;;  %v1318_v46 = vpop.f32.mrb[29].mxu1 }
 0x153   : > { %v3073_v47 = vpop.f32.mrb[30].mxu0  ;;  %v3075_v48 = vpop.f32.mrb[30].mxu1 }
 0x154   : > { %v1129_v49 = vpop.f32.mrb[31].mxu0  ;;  %v1321_v50 = vpop.f32.mrb[31].mxu1 }
 0x159   : > { %v3085_v58 = vpop.f32.mrb[32].mxu0  ;;  %v2251_v61 = vpop.f32.mrb[32].mxu1 }
 0x15a   : > { %v1366_v1 = vadd.f32 %v2251_v61, %v1077_v54  ;;  %v1134_v2 = vpop.f32.mrb[33].mxu0  ;;  %v1357_v5 = vpop.f32.mrb[33].mxu1 }
 0x15b   : > { %v1358_v9 = vadd.f32 %v1357_v5, %v1069_v57  ;;  %v3090_v10 = vpop.f32.mrb[34].mxu0  ;;  %v2252_v13 = vpop.f32.mrb[34].mxu1 }
 0x15c   : > { %v1614_v14 = vsub.f32 0.0, %v1366_v1  ;;  %v1369_v59 = vadd.f32 %v2252_v13, %v1080_v62  ;;  %v1137_v17 = vpop.f32.mrb[35].mxu0  ;;  %v1360_v18 = vpop.f32.mrb[35].mxu1  ;;  %v1101_v13 = vadd.f32 %v3080_v53, %v3045_v19 }
 0x15d   : > { %v1612_v51 = vsub.f32 0.0, %v1358_v9  ;;  %v1361_v21 = vadd.f32 %v1360_v18, %v1072_v6  ;;  %v1109_v9 = vadd.f32 %v3080_v53, %v3053_v27  ;;  %v1104_v27 = vadd.f32 %v3080_v53, %v3049_v23 }
 0x15e   : > { %v1680_v22 = vmul.f32 1.442695, %v1614_v14  ;;  %v1615_v25 = vsub.f32 0.0, %v1369_v59 }
 0x15f   : > { %v1676_v26 = vmul.f32 1.442695, %v1612_v51  ;;  %v1613_v63 = vsub.f32 0.0, %v1361_v21  ;;  %v1112_v51 = vadd.f32 %v3080_v53, %v3057_v31 }
 0x160   : > { %2501 = vpow2.f32 %v1680_v22  ;;  %v1682_v30 = vmul.f32 1.442695, %v1615_v25 }
 0x161   : > { %2503 = vpow2.f32 %v1676_v26  ;;  %v1678_v33 = vmul.f32 1.442695, %v1613_v63  ;;  %v3096_v34 = vpop.f32.mrb[36].mxu0  ;;  %v2255_v37 = vpop.f32.mrb[36].mxu1 }
 0x162   : > { %2505 = vpow2.f32 %v1682_v30  ;;  %v1382_v41 = vadd.f32 %v2255_v37, %v1093_v29  ;;  %v1142_v42 = vpop.f32.mrb[37].mxu0  ;;  %v1373_v45 = vpop.f32.mrb[37].mxu1 }
 0x163   : > { %2507 = vpow2.f32 %v1678_v33  ;;  %v1374_v46 = vadd.f32 %v1373_v45, %v1085_v55  ;;  %v3102_v49 = vpop.f32.mrb[38].mxu0  ;;  %v2256_v3 = vpop.f32.mrb[38].mxu1 }
 0x164   : > { %v1618_v50 = vsub.f32 0.0, %v1382_v41  ;;  %v1385_v54 = vadd.f32 %v2256_v3, %v1096_v38  ;;  %v1145_v57 = vpop.f32.mrb[39].mxu0  ;;  %v1376_v61 = vpop.f32.mrb[39].mxu1 }
 0x165   : > { %v1616_v62 = vsub.f32 0.0, %v1374_v46  ;;  %v1377_v1 = vadd.f32 %v1376_v61, %v1088_v11  ;;  %v1125_v61 = vadd.f32 %v3080_v53, %v3069_v43  ;;  %v1128_v43 = vadd.f32 %v3080_v53, %v3073_v47 }
 0x166   : > { %v1688_v2 = vmul.f32 1.442695, %v1618_v50  ;;  %v1619_v15 = vsub.f32 0.0, %v1385_v54 }
 0x167   : > { %v1684_v5 = vmul.f32 1.442695, %v1616_v62  ;;  %v1617_v6 = vsub.f32 0.0, %v1377_v1  ;;  %v1117_v1 = vadd.f32 %v3080_v53, %v3061_v35 }
 0x168   : > { %2509 = vpow2.f32 %v1688_v2  ;;  %v1690_v7 = vmul.f32 1.442695, %v1619_v15 }
 0x169   : > { %2511 = vpow2.f32 %v1684_v5  ;;  %v1686_v14 = vmul.f32 1.442695, %v1617_v6  ;;  %v3108_v59 = vpop.f32.mrb[40].mxu0  ;;  %v2259_v17 = vpop.f32.mrb[40].mxu1 }
 0x16a   : > { %v2502_v18 = vpop.eup %2501  ;;  %2513 = vpow2.f32 %v1690_v7  ;;  %v1398_v21 = vadd.f32 %v2259_v17, %v1109_v9  ;;  %v1150_v22 = vpop.f32.mrb[41].mxu0 }
 0x16b   : > { %v1389_v25 = vpop.f32.mrb[41].mxu1  ;;  %v2504_v26 = vpop.eup %2503  ;;  %v1806_v63 = vadd.f32 1.0, %v2502_v18  ;;  %2515 = vpow2.f32 %v1686_v14  ;;  %v1120_v22 = vadd.f32 %v3080_v53, %v3065_v39 }
 0x16c   : > { %v1390_v19 = vadd.f32 %v1389_v25, %v1101_v13  ;;  %v3114_v29 = vpop.f32.mrb[42].mxu0  ;;  %v2260_v30 = vpop.f32.mrb[42].mxu1  ;;  %v1804_v33 = vadd.f32 1.0, %v2504_v26  ;;  %v1622_v37 = vsub.f32 0.0, %v1398_v21 }
 0x16d   : > { %v2506_v55 = vpop.eup %2505  ;;  %v1401_v38 = vadd.f32 %v2260_v30, %v1112_v51  ;;  %v1153_v41 = vpop.f32.mrb[43].mxu0  ;;  %2517 = vrcp.f32 %v1806_v63 }
 0x16e   : > { %v1392_v31 = vpop.f32.mrb[43].mxu1  ;;  %v2508_v42 = vpop.eup %2507  ;;  %v1807_v45 = vadd.f32 1.0, %v2506_v55  ;;  %v1620_v11 = vsub.f32 0.0, %v1390_v19  ;;  %2519 = vrcp.f32 %v1804_v33  ;;  %v1696_v3 = vmul.f32 1.442695, %v1622_v37 }
 0x16f   : > { %v1393_v46 = vadd.f32 %v1392_v31, %v1104_v27  ;;  %v1805_v23 = vadd.f32 1.0, %v2508_v42  ;;  %v1623_v50 = vsub.f32 0.0, %v1401_v38 }
 0x170   : > { %2521 = vrcp.f32 %v1807_v45  ;;  %v1692_v54 = vmul.f32 1.442695, %v1620_v11  ;;  %v1141_v45 = vadd.f32 %v3080_v53, %v3096_v34 }
 0x171   : > { %v1621_v57 = vsub.f32 0.0, %v1393_v46  ;;  %2523 = vrcp.f32 %v1805_v23  ;;  %v1698_v62 = vmul.f32 1.442695, %v1623_v50  ;;  %v3120_v15 = vpop.f32.mrb[44].mxu0  ;;  %v2263_v5 = vpop.f32.mrb[44].mxu1  ;;  %v1133_v23 = vadd.f32 %v3080_v53, %v3085_v58 }
 0x172   : > { %2525 = vpow2.f32 %v1696_v3  ;;  %v2510_v6 = vpop.eup %2509  ;;  %v1414_v9 = vadd.f32 %v2263_v5, %v1125_v61  ;;  %v1158_v7 = vpop.f32.mrb[45].mxu0  ;;  %v1136_v5 = vadd.f32 %v3080_v53, %v3090_v10  ;;  %v1144_v58 = vadd.f32 %v3080_v53, %v3102_v49 }
 0x173   : > { %v1694_v2 = vmul.f32 1.442695, %v1621_v57  ;;  %2527 = vpow2.f32 %v1692_v54  ;;  %v1405_v13 = vpop.f32.mrb[45].mxu1  ;;  %v2512_v14 = vpop.eup %2511  ;;  %v1810_v17 = vadd.f32 1.0, %v2510_v6 }
 0x174   : > { %2529 = vpow2.f32 %v1698_v62  ;;  %v1406_v18 = vadd.f32 %v1405_v13, %v1117_v1  ;;  %v3125_v35 = vpop.f32.mrb[46].mxu0  ;;  %v2264_v51 = vpop.f32.mrb[46].mxu1  ;;  %v1808_v25 = vadd.f32 1.0, %v2512_v14  ;;  %v1626_v26 = vsub.f32 0.0, %v1414_v9 }
 0x175   : > { %v2514_v21 = vpop.eup %2513  ;;  %2531 = vpow2.f32 %v1694_v2  ;;  %v1161_v27 = vpop.f32.mrb[47].mxu0  ;;  %v1417_v55 = vadd.f32 %v2264_v51, %v1128_v43 }
 0x176   : > { %v1408_v63 = vpop.f32.mrb[47].mxu1  ;;  %v2516_v19 = vpop.eup %2515  ;;  %2533 = vrcp.f32 %v1810_v17  ;;  %v1811_v47 = vadd.f32 1.0, %v2514_v21  ;;  %v1624_v30 = vsub.f32 0.0, %v1406_v18  ;;  %v1704_v39 = vmul.f32 1.442695, %v1626_v26 }
 0x177   : > { %2535 = vrcp.f32 %v1808_v25  ;;  %v1809_v33 = vadd.f32 1.0, %v2516_v19  ;;  %v1409_v37 = vadd.f32 %v1408_v63, %v1120_v22  ;;  %v2518_v38 = vpop.eup %2517  ;;  %v1627_v31 = vsub.f32 0.0, %v1417_v55 }
 0x178   : > { %2537 = vrcp.f32 %v1811_v47  ;;  %v1700_v41 = vmul.f32 1.442695, %v1624_v30  ;;  %v2520_v42 = vpop.eup %2519  ;;  %1935 = vst.msk [vmem:[%s3132_s7 + $0x10] sm:$0xff] %vm1932_vm1, %v2518_v38  ;;  %v1149_v38 = vadd.f32 %v3080_v53, %v3108_v59 }
 0x179   : > { %2539 = vrcp.f32 %v1809_v33  ;;  %v1625_v11 = vsub.f32 0.0, %v1409_v37  ;;  %1933 = vst.msk [vmem:[%s3132_s7] sm:$0xff] %vm1932_vm1, %v2520_v42  ;;  %v1706_v3 = vmul.f32 1.442695, %v1627_v31  ;;  %v3142_v50 = vpop.f32.mrb[48].mxu0  ;;  %v2267_v54 = vpop.f32.mrb[48].mxu1  ;;  %v1157_v33 = vadd.f32 %v3080_v53, %v3120_v15 }
 0x17a   : > { %v2522_v46 = vpop.eup %2521  ;;  %2541 = vpow2.f32 %v1704_v39  ;;  %v1430_v34 = vadd.f32 %v2267_v54, %v1141_v45  ;;  %v1166_v62 = vpop.f32.mrb[49].mxu0  ;;  %v1160_v54 = vadd.f32 %v3080_v53, %v3125_v35 }
 0x17b   : > { %v2524_v57 = vpop.eup %2523  ;;  %1936 = vst.msk [vmem:[%s3132_s7 + $0x18] sm:$0xff] %vm1932_vm1, %v2522_v46  ;;  %2543 = vpow2.f32 %v1700_v41  ;;  %v1702_v61 = vmul.f32 1.442695, %v1625_v11  ;;  %v1421_v1 = vpop.f32.mrb[49].mxu1  ;;  %v1152_v62 = vadd.f32 %v3080_v53, %v3114_v29 }
 0x17c   : > { %v2526_v2 = vpop.eup %2525  ;;  %1934 = vst.msk [vmem:[%s3132_s7 + $0x8] sm:$0xff] %vm1932_vm1, %v2524_v57  ;;  %2545 = vpow2.f32 %v1706_v3  ;;  %v1422_v6 = vadd.f32 %v1421_v1, %v1133_v23  ;;  %v3152_v9 = vpop.f32.mrb[50].mxu0  ;;  %v1630_v43 = vsub.f32 0.0, %v1430_v34 }
 0x17d   : > { %v2268_v7 = vpop.f32.mrb[50].mxu1  ;;  %v2528_v13 = vpop.eup %2527  ;;  %v1814_v14 = vadd.f32 1.0, %v2526_v2  ;;  %2547 = vpow2.f32 %v1702_v61 }
 0x17e   : > { %v1169_v17 = vpop.f32.mrb[51].mxu0  ;;  %v1424_v18 = vpop.f32.mrb[51].mxu1  ;;  %v1812_v21 = vadd.f32 1.0, %v2528_v13  ;;  %v1628_v10 = vsub.f32 0.0, %v1422_v6  ;;  %v1433_v22 = vadd.f32 %v2268_v7, %v1144_v58  ;;  %v1712_v27 = vmul.f32 1.442695, %v1630_v43 }
 0x17f   : > { %v2530_v51 = vpop.eup %2529  ;;  %v1425_v25 = vadd.f32 %v1424_v18, %v1136_v5  ;;  %2549 = vrcp.f32 %v1814_v14 }
 0x180   : > { %v2532_v26 = vpop.eup %2531  ;;  %v1815_v49 = vadd.f32 1.0, %v2530_v51  ;;  %2551 = vrcp.f32 %v1812_v21  ;;  %v1708_v47 = vmul.f32 1.442695, %v1628_v10  ;;  %v1631_v30 = vsub.f32 0.0, %v1433_v22 }
 0x181   : > { %v2534_v63 = vpop.eup %2533  ;;  %v1813_v19 = vadd.f32 1.0, %v2532_v26  ;;  %v1629_v39 = vsub.f32 0.0, %v1425_v25  ;;  %v1172_v31 = vpop.f32.mrb[52].mxu0 }
 0x182   : > { %v2536_v55 = vpop.eup %2535  ;;  %1939 = vst.msk [vmem:[%s3132_s7 + $0x30] sm:$0xff] %vm1932_vm1, %v2534_v63  ;;  %2553 = vrcp.f32 %v1815_v49  ;;  %v1714_v41 = vmul.f32 1.442695, %v1631_v30  ;;  %v2271_v42 = vpop.f32.mrb[52].mxu1  ;;  %v1173_v22 = vadd.f32 %v3080_v53, %v1172_v31  ;;  %v1165_v49 = vadd.f32 %v3080_v53, %v3142_v50 }
 0x183   : > { %v2538_v37 = vpop.eup %2537  ;;  %1937 = vst.msk [vmem:[%s3132_s7 + $0x20] sm:$0xff] %vm1932_vm1, %v2536_v55  ;;  %2555 = vrcp.f32 %v1813_v19  ;;  %v1710_v11 = vmul.f32 1.442695, %v1629_v39  ;;  %v1446_v46 = vadd.f32 %v2271_v42, %v1157_v33  ;;  %v1174_v23 = vpop.f32.mrb[53].mxu0  ;;  %v1168_v50 = vadd.f32 %v3080_v53, %v3152_v9 }
 0x184   : > { %v2540_v45 = vpop.eup %2539  ;;  %1940 = vst.msk [vmem:[%s3132_s7 + $0x38] sm:$0xff] %vm1932_vm1, %v2538_v37  ;;  %2557 = vpow2.f32 %v1712_v27  ;;  %v1437_v15 = vpop.f32.mrb[53].mxu1 }
 0x185   : > { %v2542_v3 = vpop.eup %2541  ;;  %1938 = vst.msk [vmem:[%s3132_s7 + $0x28] sm:$0xff] %vm1932_vm1, %v2540_v45  ;;  %2559 = vpow2.f32 %v1708_v47  ;;  %v1438_v59 = vadd.f32 %v1437_v15, %v1149_v38  ;;  %v1175_v57 = vpop.f32.mrb[54].mxu0  ;;  %v1634_v2 = vsub.f32 0.0, %v1446_v46 }
 0x186   : > { %v2272_v61 = vpop.f32.mrb[54].mxu1  ;;  %v2544_v34 = vpop.eup %2543  ;;  %v1818_v1 = vadd.f32 1.0, %v2542_v3  ;;  %2561 = vpow2.f32 %v1714_v41  ;;  %v1176_v30 = vadd.f32 %v3080_v53, %v1175_v57 }
 0x187   : > { %v1177_v5 = vpop.f32.mrb[55].mxu0  ;;  %v1440_v58 = vpop.f32.mrb[55].mxu1  ;;  %v1816_v7 = vadd.f32 1.0, %v2544_v34  ;;  %2563 = vpow2.f32 %v1710_v11  ;;  %v1632_v13 = vsub.f32 0.0, %v1438_v59  ;;  %v1449_v14 = vadd.f32 %v2272_v61, %v1160_v54 }
 0x188   : > { %v2546_v6 = vpop.eup %2545  ;;  %2565 = vrcp.f32 %v1818_v1  ;;  %v1720_v17 = vmul.f32 1.442695, %v1634_v2  ;;  %v1441_v18 = vadd.f32 %v1440_v58, %v1152_v62 }
 0x189   : > { %v2548_v35 = vpop.eup %2547  ;;  %v1819_v43 = vadd.f32 1.0, %v2546_v6  ;;  %2567 = vrcp.f32 %v1816_v7  ;;  %v1716_v29 = vmul.f32 1.442695, %v1632_v13  ;;  %v1635_v21 = vsub.f32 0.0, %v1449_v14  ;;  %v1180_v63 = vpop.f32.mrb[56].mxu0 }
 0x18a   : > { %v1817_v51 = vadd.f32 1.0, %v2548_v35  ;;  %v2550_v10 = vpop.eup %2549  ;;  %v1633_v25 = vsub.f32 0.0, %v1441_v18  ;;  %v2275_v19 = vpop.f32.mrb[56].mxu1  ;;  %v1181_v14 = vadd.f32 %v3080_v53, %v1180_v63 }
 0x18b   : > { %2569 = vrcp.f32 %v1819_v43  ;;  %v2552_v26 = vpop.eup %2551  ;;  %1943 = vst.msk [vmem:[%s3132_s7 + $0x50] sm:$0xff] %vm1932_vm1, %v2550_v10  ;;  %v1722_v27 = vmul.f32 1.442695, %v1635_v21  ;;  %v1462_v33 = vadd.f32 %v2275_v19, %v1173_v22  ;;  %v1182_v39 = vpop.f32.mrb[57].mxu0 }
 0x18c   : > { %2571 = vrcp.f32 %v1817_v51  ;;  %v2554_v47 = vpop.eup %2553  ;;  %1941 = vst.msk [vmem:[%s3132_s7 + $0x40] sm:$0xff] %vm1932_vm1, %v2552_v26  ;;  %v1718_v55 = vmul.f32 1.442695, %v1633_v25  ;;  %v1453_v37 = vpop.f32.mrb[57].mxu1 }
 0x18d   : > { %2573 = vpow2.f32 %v1720_v17  ;;  %v2556_v38 = vpop.eup %2555  ;;  %1944 = vst.msk [vmem:[%s3132_s7 + $0x58] sm:$0xff] %vm1932_vm1, %v2554_v47  ;;  %v1454_v41 = vadd.f32 %v1453_v37, %v1165_v49  ;;  %v1183_v31 = vpop.f32.mrb[58].mxu0  ;;  %v1638_v11 = vsub.f32 0.0, %v1462_v33 }
 0x18e   : > { %2575 = vpow2.f32 %v1716_v29  ;;  %v2276_v42 = vpop.f32.mrb[58].mxu1  ;;  %v2558_v45 = vpop.eup %2557  ;;  %1942 = vst.msk [vmem:[%s3132_s7 + $0x48] sm:$0xff] %vm1932_vm1, %v2556_v38  ;;  %v1184_v25 = vadd.f32 %v3080_v53, %v1183_v31 }
 0x18f   : > { %2577 = vpow2.f32 %v1722_v27  ;;  %v1465_v46 = vadd.f32 %v2276_v42, %v1176_v30  ;;  %v1185_v23 = vpop.f32.mrb[59].mxu0  ;;  %v1456_v15 = vpop.f32.mrb[59].mxu1  ;;  %v1822_v54 = vadd.f32 1.0, %v2558_v45  ;;  %v1636_v59 = vsub.f32 0.0, %v1454_v41 }
 0x190   : > { %v2560_v3 = vpop.eup %2559  ;;  %2579 = vpow2.f32 %v1718_v55  ;;  %v1457_v57 = vadd.f32 %v1456_v15, %v1168_v50  ;;  %v1728_v2 = vmul.f32 1.442695, %v1638_v11 }
 0x191   : > { %v2562_v61 = vpop.eup %2561  ;;  %v1820_v9 = vadd.f32 1.0, %v2560_v3  ;;  %v1639_v34 = vsub.f32 0.0, %v1465_v46  ;;  %2581 = vrcp.f32 %v1822_v54  ;;  %v1724_v7 = vmul.f32 1.442695, %v1636_v59  ;;  %v1188_v43 = vpop.f32.mrb[60].mxu0 }
 0x192   : > { %v2564_v62 = vpop.eup %2563  ;;  %v1823_v1 = vadd.f32 1.0, %v2562_v61  ;;  %v1637_v5 = vsub.f32 0.0, %v1457_v57  ;;  %v2279_v17 = vpop.f32.mrb[60].mxu1  ;;  %v1189_v29 = vadd.f32 %v3080_v53, %v1188_v43 }
 0x193   : > { %v2566_v58 = vpop.eup %2565  ;;  %2583 = vrcp.f32 %v1820_v9  ;;  %v1821_v6 = vadd.f32 1.0, %v2564_v62  ;;  %v1730_v35 = vmul.f32 1.442695, %v1639_v34  ;;  %v1190_v21 = vpop.f32.mrb[61].mxu0 }
 0x194   : > { %v2568_v13 = vpop.eup %2567  ;;  %1947 = vst.msk [vmem:[%s3132_s7 + $0x70] sm:$0xff] %vm1932_vm1, %v2566_v58  ;;  %2585 = vrcp.f32 %v1823_v1  ;;  %v1726_v51 = vmul.f32 1.442695, %v1637_v5  ;;  %v1469_v10 = vpop.f32.mrb[61].mxu1  ;;  %v1478_v19 = vadd.f32 %v2279_v17, %v1189_v29 }
 0x195   : > { %v2570_v18 = vpop.eup %2569  ;;  %1945 = vst.msk [vmem:[%s3132_s7 + $0x60] sm:$0xff] %vm1932_vm1, %v2568_v13  ;;  %2587 = vrcp.f32 %v1821_v6  ;;  %v1470_v26 = vadd.f32 %v1469_v10, %v1181_v14  ;;  %v1191_v49 = vpop.f32.mrb[62].mxu0 }
 0x196   : > { %v2572_v22 = vpop.eup %2571  ;;  %1948 = vst.msk [vmem:[%s3132_s7 + $0x78] sm:$0xff] %vm1932_vm1, %v2570_v18  ;;  %2589 = vpow2.f32 %v1728_v2  ;;  %v2280_v27 = vpop.f32.mrb[62].mxu1  ;;  %v1192_v47 = vadd.f32 %v3080_v53, %v1191_v49  ;;  %v1642_v31 = vsub.f32 0.0, %v1478_v19 }
 0x197   : > { %v2574_v63 = vpop.eup %2573  ;;  %1946 = vst.msk [vmem:[%s3132_s7 + $0x68] sm:$0xff] %vm1932_vm1, %v2572_v22  ;;  %2591 = vpow2.f32 %v1724_v7  ;;  %v1193_v30 = vpop.f32.mrb[63].mxu0  ;;  %v1640_v37 = vsub.f32 0.0, %v1470_v26 }
 0x198   : > { %v1472_v55 = vpop.f32.mrb[63].mxu1  ;;  %v2576_v33 = vpop.eup %2575  ;;  %v1826_v39 = vadd.f32 1.0, %v2574_v63  ;;  %2593 = vpow2.f32 %v1730_v35  ;;  %v1481_v42 = vadd.f32 %v2280_v27, %v1192_v47  ;;  %v1736_v3 = vmul.f32 1.442695, %v1642_v31 }
 0x199   : > { %v1473_v38 = vadd.f32 %v1472_v55, %v1184_v25  ;;  %v2578_v50 = vpop.eup %2577  ;;  %v1824_v41 = vadd.f32 1.0, %v2576_v33  ;;  %2595 = vpow2.f32 %v1726_v51  ;;  %v1732_v46 = vmul.f32 1.442695, %v1640_v37  ;;  %v1196_v57 = vpop.f32.mrb[64].mxu0 }
 0x19a   : > { %v2580_v45 = vpop.eup %2579  ;;  %2597 = vrcp.f32 %v1826_v39  ;;  %v1827_v11 = vadd.f32 1.0, %v2578_v50  ;;  %v1643_v54 = vsub.f32 0.0, %v1481_v42  ;;  %v2283_v61 = vpop.f32.mrb[64].mxu1  ;;  %v1197_v1 = vadd.f32 %v3080_v53, %v1196_v57 }
 0x19b   : > { %v1641_v23 = vsub.f32 0.0, %v1473_v38  ;;  %2599 = vrcp.f32 %v1824_v41  ;;  %v1825_v15 = vadd.f32 1.0, %v2580_v45  ;;  %v2582_v59 = vpop.eup %2581  ;;  %v1198_v2 = vpop.f32.mrb[65].mxu0 }
 0x19c   : > { %2601 = vrcp.f32 %v1827_v11  ;;  %1951 = vst.msk [vmem:[%s3132_s7 + $0x90] sm:$0xff] %vm1932_vm1, %v2582_v59  ;;  %v1738_v34 = vmul.f32 1.442695, %v1643_v54  ;;  %v1485_v5 = vpop.f32.mrb[65].mxu1  ;;  %v1199_v6 = vpop.f32.mrb[66].mxu0 }
 0x19d   : > { %v2584_v9 = vpop.eup %2583  ;;  %2603 = vrcp.f32 %v1825_v15  ;;  %v1734_v62 = vmul.f32 1.442695, %v1641_v23  ;;  %v2284_v7 = vpop.f32.mrb[66].mxu1  ;;  %v1486_v14 = vadd.f32 %v1485_v5, %v1197_v1  ;;  %v1200_v35 = vadd.f32 %v3080_v53, %v1199_v6 }
 0x19e   : > { %v2586_v58 = vpop.eup %2585  ;;  %1949 = vst.msk [vmem:[%s3132_s7 + $0x80] sm:$0xff] %vm1932_vm1, %v2584_v9  ;;  %2605 = vpow2.f32 %v1736_v3  ;;  %v1201_v43 = vpop.f32.mrb[67].mxu0 }
 0x19f   : > { %v2588_v13 = vpop.eup %2587  ;;  %1952 = vst.msk [vmem:[%s3132_s7 + $0x98] sm:$0xff] %vm1932_vm1, %v2586_v58  ;;  %2607 = vpow2.f32 %v1732_v46  ;;  %v1488_v17 = vpop.f32.mrb[67].mxu1  ;;  %v1644_v21 = vsub.f32 0.0, %v1486_v14 }
 0x1a0   : > { %v2590_v18 = vpop.eup %2589  ;;  %1950 = vst.msk [vmem:[%s3132_s7 + $0x88] sm:$0xff] %vm1932_vm1, %v2588_v13  ;;  %2609 = vpow2.f32 %v1738_v34  ;;  %v1489_v10 = vadd.f32 %v1488_v17, %v1200_v35 }
 0x1a1   : > { %v2592_v51 = vpop.eup %2591  ;;  %v1830_v29 = vadd.f32 1.0, %v2590_v18  ;;  %2611 = vpow2.f32 %v1734_v62  ;;  %v1740_v27 = vmul.f32 1.442695, %v1644_v21  ;;  %v1204_v30 = vpop.f32.mrb[68].mxu0 }
 0x1a2   : > { %v2594_v22 = vpop.eup %2593  ;;  %v1828_v25 = vadd.f32 1.0, %v2592_v51  ;;  %v1645_v63 = vsub.f32 0.0, %v1489_v10  ;;  %v3206_v55 = vpop.f32.mrb[68].mxu1  ;;  %v1205_v37 = vadd.f32 %v3080_v53, %v1204_v30 }
 0x1a3   : > { %v2596_v26 = vpop.eup %2595  ;;  %2613 = vrcp.f32 %v1830_v29  ;;  %v1831_v49 = vadd.f32 1.0, %v2594_v22  ;;  %v1206_v38 = vpop.f32.mrb[69].mxu0 }
 0x1a4   : > { %v2598_v19 = vpop.eup %2597  ;;  %2615 = vrcp.f32 %v1828_v25  ;;  %v1829_v47 = vadd.f32 1.0, %v2596_v26  ;;  %v1742_v39 = vmul.f32 1.442695, %v1645_v63  ;;  %v1501_v50 = vpop.f32.mrb[69].mxu1  ;;  %v1494_v11 = vadd.f32 %v2283_v61, %v1205_v37 }
 0x1a5   : > { %v2600_v33 = vpop.eup %2599  ;;  %1955 = vst.msk [vmem:[%s3132_s7 + $0xb0] sm:$0xff] %vm1932_vm1, %v2598_v19  ;;  %2617 = vrcp.f32 %v1831_v49  ;;  %v1207_v31 = vpop.f32.mrb[70].mxu0 }
 0x1a6   : > { %v2602_v41 = vpop.eup %2601  ;;  %1953 = vst.msk [vmem:[%s3132_s7 + $0xa0] sm:$0xff] %vm1932_vm1, %v2600_v33  ;;  %2619 = vrcp.f32 %v1829_v47  ;;  %v3213_v42 = vpop.f32.mrb[70].mxu1  ;;  %v1208_v46 = vadd.f32 %v3080_v53, %v1207_v31  ;;  %v1646_v57 = vsub.f32 0.0, %v1494_v11 }
 0x1a7   : > { %v2604_v45 = vpop.eup %2603  ;;  %1956 = vst.msk [vmem:[%s3132_s7 + $0xb8] sm:$0xff] %vm1932_vm1, %v2602_v41  ;;  %2621 = vpow2.f32 %v1740_v27  ;;  %v1209_v23 = vpop.f32.mrb[71].mxu0 }
 0x1a8   : > { %v1504_v15 = vpop.f32.mrb[71].mxu1  ;;  %v2606_v3 = vpop.eup %2605  ;;  %1954 = vst.msk [vmem:[%s3132_s7 + $0xa8] sm:$0xff] %vm1932_vm1, %v2604_v45  ;;  %2623 = vpow2.f32 %v1742_v39  ;;  %v1497_v9 = vadd.f32 %v2284_v7, %v1208_v46  ;;  %v1744_v5 = vmul.f32 1.442695, %v1646_v57 }
 0x1a9   : > { %v2608_v54 = vpop.eup %2607  ;;  %v1834_v59 = vadd.f32 1.0, %v2606_v3  ;;  %v1212_v6 = vpop.f32.mrb[72].mxu0 }
 0x1aa   : > { %v2610_v34 = vpop.eup %2609  ;;  %v1832_v62 = vadd.f32 1.0, %v2608_v54  ;;  %v1647_v61 = vsub.f32 0.0, %v1497_v9  ;;  %v3220_v13 = vpop.f32.mrb[72].mxu1  ;;  %v1213_v43 = vadd.f32 %v3080_v53, %v1212_v6  ;;  %v1269_v6 = vadd.f32 %v3080_v53, %v3025_v60 }
 0x1ab   : > { %v2612_v1 = vpop.eup %2611  ;;  %2625 = vrcp.f32 %v1834_v59  ;;  %v1835_v2 = vadd.f32 1.0, %v2610_v34  ;;  %v1214_v7 = vpop.f32.mrb[73].mxu0  ;;  %v1264_v60 = vadd.f32 %v3080_v53, %v3023_v56 }
 0x1ac   : > { %2627 = vrcp.f32 %v1832_v62  ;;  %v1833_v58 = vadd.f32 1.0, %v2612_v1  ;;  %v1746_v35 = vmul.f32 1.442695, %v1647_v61  ;;  %v3223_v17 = vpop.f32.mrb[73].mxu1  ;;  %v1215_v51 = vpop.f32.mrb[74].mxu0  ;;  %v1502_v10 = vadd.f32 %v1501_v50, %v1213_v43 }
 0x1ad   : > { %v2614_v14 = vpop.eup %2613  ;;  %2629 = vrcp.f32 %v1835_v2  ;;  %v3227_v29 = vpop.f32.mrb[74].mxu1  ;;  %v1216_v22 = vadd.f32 %v3080_v53, %v1215_v51  ;;  %v1261_v43 = vadd.f32 %v3080_v53, %v3019_v52 }
 0x1ae   : > { %v2616_v18 = vpop.eup %2615  ;;  %1959 = vst.msk [vmem:[%s3132_s7 + $0xd0] sm:$0xff] %vm1932_vm1, %v2614_v14  ;;  %2631 = vrcp.f32 %v1833_v58  ;;  %v1217_v25 = vpop.f32.mrb[75].mxu0  ;;  %v1648_v63 = vsub.f32 0.0, %v1502_v10 }
 0x1af   : > { %v2618_v21 = vpop.eup %2617  ;;  %1957 = vst.msk [vmem:[%s3132_s7 + $0xc0] sm:$0xff] %vm1932_vm1, %v2616_v18  ;;  %2633 = vpow2.f32 %v1744_v5  ;;  %v3232_v26 = vpop.f32.mrb[75].mxu1  ;;  %v1505_v19 = vadd.f32 %v1504_v15, %v1216_v22 }
 0x1b0   : > { %v2620_v49 = vpop.eup %2619  ;;  %1960 = vst.msk [vmem:[%s3132_s7 + $0xd8] sm:$0xff] %vm1932_vm1, %v2618_v21  ;;  %2635 = vpow2.f32 %v1746_v35  ;;  %v1748_v39 = vmul.f32 1.442695, %v1648_v63 }
 0x1b1   : > { %v2622_v27 = vpop.eup %2621  ;;  %1958 = vst.msk [vmem:[%s3132_s7 + $0xc8] sm:$0xff] %vm1932_vm1, %v2620_v49  ;;  %v1649_v37 = vsub.f32 0.0, %v1505_v19  ;;  %v1220_v38 = vpop.f32.mrb[76].mxu0  ;;  %v1272_v49 = vadd.f32 %v3080_v53, %v3027_v0 }
 0x1b2   : > { %v2624_v47 = vpop.eup %2623  ;;  %v1836_v30 = vadd.f32 1.0, %v2622_v27  ;;  %v3238_v50 = vpop.f32.mrb[76].mxu1  ;;  %v1221_v45 = vadd.f32 %v3080_v53, %v1220_v38 }
 0x1b3   : > { %v1837_v33 = vadd.f32 1.0, %v2624_v47  ;;  %v1750_v31 = vmul.f32 1.442695, %v1649_v37  ;;  %v1222_v11 = vpop.f32.mrb[77].mxu0  ;;  %v3241_v46 = vpop.f32.mrb[77].mxu1 }
 0x1b4   : > { %2637 = vrcp.f32 %v1836_v30  ;;  %v1223_v15 = vpop.f32.mrb[78].mxu0  ;;  %v3245_v3 = vpop.f32.mrb[78].mxu1  ;;  %v1510_v59 = vadd.f32 %v3206_v55, %v1221_v45  ;;  %v1285_v45 = vadd.f32 %v3080_v53, %v3039_v12 }
 0x1b5   : > { %v2626_v41 = vpop.eup %2625  ;;  %2639 = vrcp.f32 %v1837_v33  ;;  %v1224_v57 = vadd.f32 %v3080_v53, %v1223_v15  ;;  %v1225_v9 = vpop.f32.mrb[79].mxu0 }
 0x1b6   : > { %v2628_v23 = vpop.eup %2627  ;;  %1963 = vst.msk [vmem:[%s3132_s7 + $0xf0] sm:$0xff] %vm1932_vm1, %v2626_v41  ;;  %2641 = vpow2.f32 %v1748_v39  ;;  %v3251_v34 = vpop.f32.mrb[79].mxu1  ;;  %v1650_v2 = vsub.f32 0.0, %v1510_v59 }
 0x1b7   : > { %v2630_v54 = vpop.eup %2629  ;;  %1961 = vst.msk [vmem:[%s3132_s7 + $0xe0] sm:$0xff] %vm1932_vm1, %v2628_v23  ;;  %2643 = vpow2.f32 %v1750_v31  ;;  %v1513_v5 = vadd.f32 %v3213_v42, %v1224_v57 }
 0x1b8   : > { %v2632_v62 = vpop.eup %2631  ;;  %1964 = vst.msk [vmem:[%s3132_s7 + $0xf8] sm:$0xff] %vm1932_vm1, %v2630_v54  ;;  %v1752_v14 = vmul.f32 1.442695, %v1650_v2  ;;  %v1277_v2 = vadd.f32 %v3080_v53, %v3031_v4 }
 0x1b9   : > { %v2634_v1 = vpop.eup %2633  ;;  %1962 = vst.msk [vmem:[%s3132_s7 + $0xe8] sm:$0xff] %vm1932_vm1, %v2632_v62  ;;  %v1651_v35 = vsub.f32 0.0, %v1513_v5  ;;  %v1228_v7 = vpop.f32.mrb[80].mxu0  ;;  %v3281_v5 = vld [vmem:[%s3398_s2] ss:$0 sm:$0xff] }
 0x1ba   : > { %v2636_v61 = vpop.eup %2635  ;;  %v1838_v58 = vadd.f32 1.0, %v2634_v1  ;;  %v2299_v18 = vpop.f32.mrb[80].mxu1  ;;  %v1229_v21 = vadd.f32 %v3080_v53, %v1228_v7  ;;  %v1280_v12 = vadd.f32 %v3281_v5, %v3035_v8 }
 0x1bb   : > { %v1839_v55 = vadd.f32 1.0, %v2636_v61  ;;  %v1754_v51 = vmul.f32 1.442695, %v1651_v35  ;;  %v1558_v42 = vadd.f32 %v2299_v18, %v1269_v6  ;;  %v1230_v10 = vpop.f32.mrb[81].mxu0  ;;  %v1549_v22 = vpop.f32.mrb[81].mxu1 }
 0x1bc   : > { %2645 = vrcp.f32 %v1838_v58  ;;  %v1550_v52 = vadd.f32 %v1549_v22, %v1261_v43  ;;  %v1231_v27 = vpop.f32.mrb[82].mxu0  ;;  %v2300_v63 = vpop.f32.mrb[82].mxu1  ;;  %v1518_v47 = vadd.f32 %v3223_v17, %v1229_v21  ;;  %v1288_v43 = vadd.f32 %v3281_v5, %v3043_v16 }
 0x1bd   : > { %2647 = vrcp.f32 %v1839_v55  ;;  %v1662_v30 = vsub.f32 0.0, %v1558_v42  ;;  %v1232_v33 = vadd.f32 %v3080_v53, %v1231_v27  ;;  %v1233_v39 = vpop.f32.mrb[83].mxu0  ;;  %v1552_v37 = vpop.f32.mrb[83].mxu1  ;;  %v1561_v0 = vadd.f32 %v2300_v63, %v1272_v49 }
 0x1be   : > { %v2638_v25 = vpop.eup %2637  ;;  %2649 = vpow2.f32 %v1752_v14  ;;  %v1660_v56 = vsub.f32 0.0, %v1550_v52  ;;  %v1553_v41 = vadd.f32 %v1552_v37, %v1264_v60  ;;  %v1652_v23 = vsub.f32 0.0, %v1518_v47 }
 0x1bf   : > { %v2640_v19 = vpop.eup %2639  ;;  %1965 = vst.msk [vmem:[%s3132_s7 + $0x100] sm:$0xff] %vm1932_vm1, %v2638_v25  ;;  %2651 = vpow2.f32 %v1754_v51  ;;  %v1521_v15 = vadd.f32 %v3232_v26, %v1232_v33  ;;  %v1776_v54 = vmul.f32 1.442695, %v1662_v30  ;;  %v1663_v59 = vsub.f32 0.0, %v1561_v0 }
 0x1c0   : > { %v2642_v38 = vpop.eup %2641  ;;  %1966 = vst.msk [vmem:[%s3132_s7 + $0x108] sm:$0xff] %vm1932_vm1, %v2640_v19  ;;  %v1661_v57 = vsub.f32 0.0, %v1553_v41  ;;  %v1756_v9 = vmul.f32 1.442695, %v1652_v23  ;;  %v1772_v62 = vmul.f32 1.442695, %v1660_v56  ;;  %v1293_v19 = vadd.f32 %v3281_v5, %v3047_v20 }
 0x1c1   : > { %v2644_v31 = vpop.eup %2643  ;;  %v1840_v11 = vadd.f32 1.0, %v2642_v38  ;;  %v1653_v1 = vsub.f32 0.0, %v1521_v15  ;;  %v1778_v26 = vmul.f32 1.442695, %v1663_v59  ;;  %v1236_v61 = vpop.f32.mrb[84].mxu0  ;;  %v1301_v0 = vadd.f32 %v3281_v5, %v3055_v28 }
 0x1c2   : > { %v1841_v17 = vadd.f32 1.0, %v2644_v31  ;;  %v2303_v58 = vpop.f32.mrb[84].mxu1  ;;  %v1237_v55 = vadd.f32 %v3281_v5, %v1236_v61  ;;  %v1238_v35 = vpop.f32.mrb[85].mxu0  ;;  %v1774_v7 = vmul.f32 1.442695, %v1661_v57  ;;  %v1304_v41 = vadd.f32 %v3281_v5, %v3059_v32 }
 0x1c3   : > { %2653 = vrcp.f32 %v1840_v11  ;;  %v1758_v6 = vmul.f32 1.442695, %v1653_v1  ;;  %v1574_v14 = vadd.f32 %v2303_v58, %v1285_v45  ;;  %v1565_v4 = vpop.f32.mrb[85].mxu1  ;;  %v1239_v18 = vpop.f32.mrb[86].mxu0 }
 0x1c4   : > { %2655 = vrcp.f32 %v1841_v17  ;;  %v1566_v8 = vadd.f32 %v1565_v4, %v1277_v2  ;;  %v2304_v51 = vpop.f32.mrb[86].mxu1  ;;  %v1526_v42 = vadd.f32 %v3220_v13, %v1237_v55  ;;  %v1240_v22 = vadd.f32 %v3281_v5, %v1239_v18  ;;  %v1241_v25 = vpop.f32.mrb[87].mxu0 }
 0x1c5   : > { %2657 = vpow2.f32 %v1756_v9  ;;  %v1666_v10 = vsub.f32 0.0, %v1574_v14  ;;  %v1568_v60 = vpop.f32.mrb[87].mxu1  ;;  %v1577_v52 = vadd.f32 %v2304_v51, %v1288_v43  ;;  %v1317_v51 = vadd.f32 %v3281_v5, %v3071_v44 }
 0x1c6   : > { %v2646_v53 = vpop.eup %2645  ;;  %2659 = vpow2.f32 %v1776_v54  ;;  %v1664_v16 = vsub.f32 0.0, %v1566_v8  ;;  %v1569_v27 = vadd.f32 %v1568_v60, %v1280_v12  ;;  %v1654_v30 = vsub.f32 0.0, %v1526_v42 }
 0x1c7   : > { %v2648_v21 = vpop.eup %2647  ;;  %1967 = vst.msk [vmem:[%s3132_s7 + $0x110] sm:$0xff] %vm1932_vm1, %v2646_v53  ;;  %2661 = vpow2.f32 %v1772_v62  ;;  %v1784_v33 = vmul.f32 1.442695, %v1666_v10  ;;  %v1529_v39 = vadd.f32 %v3227_v29, %v1240_v22  ;;  %v1667_v56 = vsub.f32 0.0, %v1577_v52 }
 0x1c8   : > { %v2650_v49 = vpop.eup %2649  ;;  %1968 = vst.msk [vmem:[%s3132_s7 + $0x118] sm:$0xff] %vm1932_vm1, %v2648_v21  ;;  %2663 = vpow2.f32 %v1758_v6  ;;  %v1760_v37 = vmul.f32 1.442695, %v1654_v30  ;;  %v1780_v38 = vmul.f32 1.442695, %v1664_v16  ;;  %v1665_v29 = vsub.f32 0.0, %v1569_v27 }
 0x1c9   : > { %v2652_v63 = vpop.eup %2651  ;;  %v1842_v47 = vadd.f32 1.0, %v2650_v49  ;;  %2665 = vpow2.f32 %v1778_v26  ;;  %v1655_v20 = vsub.f32 0.0, %v1529_v39  ;;  %v1244_v31 = vpop.f32.mrb[88].mxu0  ;;  %v1786_v23 = vmul.f32 1.442695, %v1667_v56 }
 0x1ca   : > { %v1843_v13 = vadd.f32 1.0, %v2652_v63  ;;  %2667 = vpow2.f32 %v1774_v7  ;;  %v2307_v45 = vpop.f32.mrb[88].mxu1  ;;  %v1245_v15 = vadd.f32 %v3281_v5, %v1244_v31  ;;  %v1246_v17 = vpop.f32.mrb[89].mxu0  ;;  %v1309_v7 = vadd.f32 %v3281_v5, %v3063_v36 }
 0x1cb   : > { %2669 = vrcp.f32 %v1842_v47  ;;  %v1581_v54 = vpop.f32.mrb[89].mxu1  ;;  %v1762_v28 = vmul.f32 1.442695, %v1655_v20  ;;  %v3304_v57 = vadd.f32 %v2307_v45, %v1301_v0  ;;  %v1247_v9 = vpop.f32.mrb[90].mxu0  ;;  %v1782_v42 = vmul.f32 1.442695, %v1665_v29 }
 0x1cc   : > { %2671 = vrcp.f32 %v1843_v13  ;;  %v3306_v32 = vadd.f32 %v1581_v54, %v1293_v19  ;;  %v2308_v62 = vpop.f32.mrb[90].mxu1  ;;  %v1534_v2 = vadd.f32 %v3241_v46, %v1245_v15  ;;  %v1248_v12 = vadd.f32 %v3281_v5, %v1247_v9  ;;  %v1249_v61 = vpop.f32.mrb[91].mxu0 }
 0x1cd   : > { %v2654_v11 = vpop.eup %2653  ;;  %2673 = vpow2.f32 %v1760_v37  ;;  %v3312_v26 = vadd.f32 %v2308_v62, %v1304_v41  ;;  %v1584_v58 = vpop.f32.mrb[91].mxu1  ;;  %v1296_v46 = vadd.f32 %v3281_v5, %v3051_v24  ;;  %v1670_v22 = vsub.f32 0.0, %v3304_v57 }
 0x1ce   : > { %v2656_v59 = vpop.eup %2655  ;;  %1969 = vst.msk [vmem:[%s3132_s7 + $0x120] sm:$0xff] %vm1932_vm1, %v2654_v11  ;;  %2675 = vpow2.f32 %v1784_v33  ;;  %v1656_v4 = vsub.f32 0.0, %v1534_v2  ;;  %v3315_v53 = vadd.f32 %v3251_v34, %v1248_v12  ;;  %v1668_v19 = vsub.f32 0.0, %v3306_v32 }
 0x1cf   : > { %v2658_v1 = vpop.eup %2657  ;;  %1970 = vst.msk [vmem:[%s3132_s7 + $0x128] sm:$0xff] %vm1932_vm1, %v2656_v59  ;;  %2677 = vpow2.f32 %v1780_v38  ;;  %v1585_v25 = vadd.f32 %v1584_v58, %v1296_v46  ;;  %v1312_v20 = vadd.f32 %v3281_v5, %v3067_v40  ;;  %v1320_v31 = vadd.f32 %v3281_v5, %v3075_v48 }
 0x1d0   : > { %v2660_v6 = vpop.eup %2659  ;;  %v1844_v55 = vadd.f32 1.0, %v2658_v1  ;;  %2679 = vpow2.f32 %v1762_v28  ;;  %v1764_v16 = vmul.f32 1.442695, %v1656_v4  ;;  %v1792_v29 = vmul.f32 1.442695, %v1670_v22 }
 0x1d1   : > { %v2662_v14 = vpop.eup %2661  ;;  %v1854_v35 = vadd.f32 1.0, %v2660_v6  ;;  %2681 = vpow2.f32 %v1786_v23  ;;  %v1252_v24 = vpop.f32.mrb[92].mxu0  ;;  %v1671_v54 = vsub.f32 0.0, %v3312_v26  ;;  %v1669_v28 = vsub.f32 0.0, %v1585_v25 }
 0x1d2   : > { %v2664_v43 = vpop.eup %2663  ;;  %2683 = vrcp.f32 %v1844_v55  ;;  %v1852_v8 = vadd.f32 1.0, %v2662_v14  ;;  %v2311_v60 = vpop.f32.mrb[92].mxu1  ;;  %v1253_v52 = vadd.f32 %v3281_v5, %v1252_v24 }
 0x1d3   : > { %v2666_v18 = vpop.eup %2665  ;;  %2685 = vrcp.f32 %v1854_v35  ;;  %v1845_v21 = vadd.f32 1.0, %v2664_v43  ;;  %v1254_v44 = vpop.f32.mrb[93].mxu0  ;;  %v3328_v47 = vadd.f32 %v2311_v60, %v1317_v51  ;;  %v1794_v26 = vmul.f32 1.442695, %v1671_v54 }
 0x1d4   : > { %v2668_v10 = vpop.eup %2667  ;;  %2687 = vrcp.f32 %v1852_v8  ;;  %v1855_v34 = vadd.f32 1.0, %v2666_v18  ;;  %v1597_v27 = vpop.f32.mrb[93].mxu1  ;;  %v1542_v39 = vadd.f32 %v3238_v50, %v1253_v52  ;;  %v1657_v50 = vsub.f32 0.0, %v3315_v53 }
 0x1d5   : > { %v2670_v36 = vpop.eup %2669  ;;  %2689 = vrcp.f32 %v1845_v21  ;;  %v1853_v49 = vadd.f32 1.0, %v2668_v10  ;;  %v1255_v30 = vpop.f32.mrb[94].mxu0  ;;  %v3333_v37 = vadd.f32 %v1597_v27, %v1309_v7  ;;  %v1790_v58 = vmul.f32 1.442695, %v1669_v28 }
 0x1d6   : > { %v2672_v63 = vpop.eup %2671  ;;  %1971 = vst.msk [vmem:[%s3132_s7 + $0x130] sm:$0xff] %vm1932_vm1, %v2670_v36  ;;  %2691 = vrcp.f32 %v1855_v34  ;;  %v2312_v13 = vpop.f32.mrb[94].mxu1  ;;  %v1256_v38 = vadd.f32 %v3281_v5, %v1255_v30  ;;  %v1788_v5 = vmul.f32 1.442695, %v1668_v19  ;;  %v1658_v9 = vsub.f32 0.0, %v1542_v39 }
 0x1d7   : > { %v2674_v33 = vpop.eup %2673  ;;  %1972 = vst.msk [vmem:[%s3132_s7 + $0x138] sm:$0xff] %vm1932_vm1, %v2672_v63  ;;  %2693 = vrcp.f32 %v1853_v49  ;;  %v1257_v56 = vpop.f32.mrb[95].mxu0  ;;  %v1609_v62 = vadd.f32 %v2312_v13, %v1320_v31  ;;  %v1766_v2 = vmul.f32 1.442695, %v1657_v50  ;;  %v1674_v6 = vsub.f32 0.0, %v3328_v47 }
 0x1d8   : > { %v1600_v0 = vpop.f32.mrb[95].mxu1  ;;  %v2676_v41 = vpop.eup %2675  ;;  %v1846_v45 = vadd.f32 1.0, %v2674_v33  ;;  %2695 = vpow2.f32 %v1782_v42  ;;  %v1545_v59 = vadd.f32 %v3245_v3, %v1256_v38  ;;  %v1768_v14 = vmul.f32 1.442695, %v1658_v9 }
 0x1d9   : > { %v2678_v11 = vpop.eup %2677  ;;  %v1858_v23 = vadd.f32 1.0, %v2676_v41  ;;  %2697 = vpow2.f32 %v1764_v16  ;;  %v1601_v12 = vadd.f32 %v1600_v0, %v1312_v20  ;;  %v1672_v35 = vsub.f32 0.0, %v3333_v37 }
 0x1da   : > { %v2680_v15 = vpop.eup %2679  ;;  %2699 = vrcp.f32 %v1846_v45  ;;  %v1856_v17 = vadd.f32 1.0, %v2678_v11  ;;  %v1659_v53 = vsub.f32 0.0, %v1545_v59  ;;  %v1675_v46 = vsub.f32 0.0, %v1609_v62 }
 0x1db   : > { %v2682_v40 = vpop.eup %2681  ;;  %2701 = vrcp.f32 %v1858_v23  ;;  %v1847_v48 = vadd.f32 1.0, %v2680_v15  ;;  %v1800_v18 = vmul.f32 1.442695, %v1674_v6  ;;  %v1673_v51 = vsub.f32 0.0, %v1601_v12 }
 0x1dc   : > { %v2684_v57 = vpop.eup %2683  ;;  %2703 = vrcp.f32 %v1856_v17  ;;  %v1859_v32 = vadd.f32 1.0, %v2682_v40  ;;  %v1796_v10 = vmul.f32 1.442695, %v1672_v35  ;;  %v1770_v22 = vmul.f32 1.442695, %v1659_v53 }
 0x1dd   : > { %v2686_v1 = vpop.eup %2685  ;;  %1973 = vst.msk [vmem:[%s3132_s7 + $0x140] sm:$0xff] %vm1932_vm1, %v2684_v57  ;;  %2705 = vrcp.f32 %v1847_v48  ;;  %v1802_v24 = vmul.f32 1.442695, %v1675_v46  ;;  %v1798_v36 = vmul.f32 1.442695, %v1673_v51 }
 0x1de   : > { %v2688_v3 = vpop.eup %2687  ;;  %1983 = vst.msk [vmem:[%s3132_s7 + $0x190] sm:$0xff] %vm1932_vm1, %v2686_v1  ;;  %2707 = vrcp.f32 %v1859_v32 }
 0x1df   : > { %v2690_v61 = vpop.eup %2689  ;;  %1981 = vst.msk [vmem:[%s3132_s7 + $0x180] sm:$0xff] %vm1932_vm1, %v2688_v3  ;;  %2709 = vpow2.f32 %v1792_v29 }
 0x1e0   : > { %v2692_v55 = vpop.eup %2691  ;;  %1974 = vst.msk [vmem:[%s3132_s7 + $0x148] sm:$0xff] %vm1932_vm1, %v2690_v61  ;;  %2711 = vpow2.f32 %v1788_v5 }
 0x1e1   : > { %v2694_v4 = vpop.eup %2693  ;;  %1984 = vst.msk [vmem:[%s3132_s7 + $0x198] sm:$0xff] %vm1932_vm1, %v2692_v55  ;;  %2713 = vpow2.f32 %v1766_v2 }
 0x1e2   : > { %v2696_v43 = vpop.eup %2695  ;;  %1982 = vst.msk [vmem:[%s3132_s7 + $0x188] sm:$0xff] %vm1932_vm1, %v2694_v4  ;;  %2715 = vpow2.f32 %v1794_v26 }
 0x1e3   : > { %v2698_v7 = vpop.eup %2697  ;;  %v1857_v8 = vadd.f32 1.0, %v2696_v43  ;;  %2717 = vpow2.f32 %v1790_v58 }
 0x1e4   : > { %v2700_v21 = vpop.eup %2699  ;;  %v1848_v42 = vadd.f32 1.0, %v2698_v7  ;;  %2719 = vpow2.f32 %v1768_v14 }
 0x1e5   : > { %v2702_v34 = vpop.eup %2701  ;;  %1975 = vst.msk [vmem:[%s3132_s7 + $0x150] sm:$0xff] %vm1932_vm1, %v2700_v21  ;;  %2721 = vrcp.f32 %v1857_v8 }
 0x1e6   : > { %v2704_v25 = vpop.eup %2703  ;;  %1987 = vst.msk [vmem:[%s3132_s7 + $0x1b0] sm:$0xff] %vm1932_vm1, %v2702_v34  ;;  %2723 = vrcp.f32 %v1848_v42 }
 0x1e7   : > { %v2706_v60 = vpop.eup %2705  ;;  %1985 = vst.msk [vmem:[%s3132_s7 + $0x1a0] sm:$0xff] %vm1932_vm1, %v2704_v25  ;;  %2725 = vpow2.f32 %v1800_v18 }
 0x1e8   : > { %v2708_v49 = vpop.eup %2707  ;;  %1976 = vst.msk [vmem:[%s3132_s7 + $0x158] sm:$0xff] %vm1932_vm1, %v2706_v60  ;;  %2727 = vpow2.f32 %v1796_v10 }
 0x1e9   : > { %v2710_v16 = vpop.eup %2709  ;;  %1988 = vst.msk [vmem:[%s3132_s7 + $0x1b8] sm:$0xff] %vm1932_vm1, %v2708_v49  ;;  %2729 = vpow2.f32 %v1770_v22 }
 0x1ea   : > { %v2712_v52 = vpop.eup %2711  ;;  %v1862_v44 = vadd.f32 1.0, %v2710_v16  ;;  %2731 = vpow2.f32 %v1802_v24 }
 0x1eb   : > { %v2714_v27 = vpop.eup %2713  ;;  %v1860_v63 = vadd.f32 1.0, %v2712_v52  ;;  %2733 = vpow2.f32 %v1798_v36 }
 0x1ec   : > { %v2716_v19 = vpop.eup %2715  ;;  %2735 = vrcp.f32 %v1862_v44  ;;  %v1849_v47 = vadd.f32 1.0, %v2714_v27 }
 0x1ed   : > { %v2718_v30 = vpop.eup %2717  ;;  %2737 = vrcp.f32 %v1860_v63  ;;  %v1863_v13 = vadd.f32 1.0, %v2716_v19 }
 0x1ee   : > { %v2720_v33 = vpop.eup %2719  ;;  %2739 = vrcp.f32 %v1849_v47  ;;  %v1861_v39 = vadd.f32 1.0, %v2718_v30 }
 0x1ef   : > { %v2722_v37 = vpop.eup %2721  ;;  %2741 = vrcp.f32 %v1863_v13  ;;  %v1850_v38 = vadd.f32 1.0, %v2720_v33 }
 0x1f0   : > { %v2724_v56 = vpop.eup %2723  ;;  %1986 = vst.msk [vmem:[%s3132_s7 + $0x1a8] sm:$0xff] %vm1932_vm1, %v2722_v37  ;;  %2743 = vrcp.f32 %v1861_v39 }
 0x1f1   : > { %v2726_v0 = vpop.eup %2725  ;;  %1977 = vst.msk [vmem:[%s3132_s7 + $0x160] sm:$0xff] %vm1932_vm1, %v2724_v56  ;;  %2745 = vrcp.f32 %v1850_v38 }
 0x1f2   : > { %v2728_v41 = vpop.eup %2727  ;;  %v1866_v20 = vadd.f32 1.0, %v2726_v0 }
 0x1f3   : > { %v2730_v31 = vpop.eup %2729  ;;  %v1864_v45 = vadd.f32 1.0, %v2728_v41 }
 0x1f4   : > { %v2732_v11 = vpop.eup %2731  ;;  %2747 = vrcp.f32 %v1866_v20  ;;  %v1851_v23 = vadd.f32 1.0, %v2730_v31 }
 0x1f5   : > { %v2734_v29 = vpop.eup %2733  ;;  %2749 = vrcp.f32 %v1864_v45  ;;  %v1867_v50 = vadd.f32 1.0, %v2732_v11 }
 0x1f6   : > { %v2736_v15 = vpop.eup %2735  ;;  %2751 = vrcp.f32 %v1851_v23  ;;  %v1865_v17 = vadd.f32 1.0, %v2734_v29 }
 0x1f7   : > { %v2738_v54 = vpop.eup %2737  ;;  %1991 = vst.msk [vmem:[%s3132_s7 + $0x1d0] sm:$0xff] %vm1932_vm1, %v2736_v15  ;;  %2753 = vrcp.f32 %v1867_v50 }
 0x1f8   : > { %v2740_v59 = vpop.eup %2739  ;;  %1989 = vst.msk [vmem:[%s3132_s7 + $0x1c0] sm:$0xff] %vm1932_vm1, %v2738_v54  ;;  %2755 = vrcp.f32 %v1865_v17 }
 0x1f9   : > { %v2742_v40 = vpop.eup %2741  ;;  %1978 = vst.msk [vmem:[%s3132_s7 + $0x168] sm:$0xff] %vm1932_vm1, %v2740_v59 }
 0x1fa   : > { %v2744_v48 = vpop.eup %2743  ;;  %1992 = vst.msk [vmem:[%s3132_s7 + $0x1d8] sm:$0xff] %vm1932_vm1, %v2742_v40 }
 0x1fb   : > { %v2746_v5 = vpop.eup %2745  ;;  %1990 = vst.msk [vmem:[%s3132_s7 + $0x1c8] sm:$0xff] %vm1932_vm1, %v2744_v48 }
 0x1fc   : > { %1979 = vst.msk [vmem:[%s3132_s7 + $0x170] sm:$0xff] %vm1932_vm1, %v2746_v5 }
 0x1fe   : > { %v2748_v28 = vpop.eup %2747 }
 0x1ff   : > { %v2750_v57 = vpop.eup %2749  ;;  %1995 = vst.msk [vmem:[%s3132_s7 + $0x1f0] sm:$0xff] %vm1932_vm1, %v2748_v28 }
 0x200   : > { %v2752_v32 = vpop.eup %2751  ;;  %1993 = vst.msk [vmem:[%s3132_s7 + $0x1e0] sm:$0xff] %vm1932_vm1, %v2750_v57 }
 0x201   : > { %v2754_v9 = vpop.eup %2753  ;;  %1980 = vst.msk [vmem:[%s3132_s7 + $0x178] sm:$0xff] %vm1932_vm1, %v2752_v32 }
 0x202   : > { %v2756_v62 = vpop.eup %2755  ;;  %1996 = vst.msk [vmem:[%s3132_s7 + $0x1f8] sm:$0xff] %vm1932_vm1, %v2754_v9 }
 0x203   : > { %1994 = vst.msk [vmem:[%s3132_s7 + $0x1e8] sm:$0xff] %vm1932_vm1, %v2756_v62 }
 0x204 PF: > { %s13_s12 = sadd.s32 1, %s2764_s12  }
 0x205   : > { %p10_p4 = scmp.ge.s32.totalorder %s13_s12, 6  }
 0x207   :  { %12 = sbr.rel (!%p10_p4) target bundleno = 1 (0x1), region = 62 }

</bundles_post_ra>
